<compile_context>
chip_gen: v7x
topology: tpu7x:2x2x1
jax: 0.10.0
libtpu: 0.0.40
codegen_flags: <defaults>
</compile_context>

<pallas_src>
import jax
import jax.numpy as jnp
from jax.experimental import pallas as pl
from jax.experimental.pallas import tpu as pltpu


LANE = 128
SUB = 8


def _round_up(x, m):
    return ((x + m - 1) // m) * m


# ----------------------------- Pallas kernels ------------------------------

def _conv_pool_kernel(pe_ref, po_ref, w_ref, b_ref, o_ref):
    """Fused conv(valid) + bias + ReLU + MaxPool2d(2,2) for one image.

    pe_ref/po_ref: (1, A, K)   im2col patches for even/odd conv output rows,
                               one patch row per *pooled* (row, col) position.
    w_ref:         (K, 2*OCP)  conv weights; lanes [0:OCP] produce the even
                               output column, lanes [OCP:2*OCP] the odd one.
    b_ref:         (1, OCP)    bias.
    o_ref:         (1, A, OCP) pooled output (bf16).
    """
    ze = jnp.dot(pe_ref[0], w_ref[...], preferred_element_type=jnp.float32)
    zo = jnp.dot(po_ref[0], w_ref[...], preferred_element_type=jnp.float32)
    r = jnp.maximum(ze, zo)                    # max over output-row parity
    c = o_ref.shape[-1]
    r = jnp.maximum(r[:, :c], r[:, c:])        # max over output-col parity
    o = jnp.maximum(r + b_ref[...], 0.0)       # bias + ReLU (commutes w/ max)
    o_ref[0] = o.astype(o_ref.dtype)


def _fc_head_kernel(x_ref, w1_ref, b1_ref, w2_ref, b2_ref, w3_ref, b3_ref,
                    o_ref):
    """fc1+ReLU -> fc1_5+ReLU -> fc3, all in VMEM, bf16 MXU / f32 accumulate."""
    h = jnp.dot(x_ref[...], w1_ref[...], preferred_element_type=jnp.float32)
    h = jnp.maximum(h + b1_ref[...], 0.0).astype(jnp.bfloat16)
    h = jnp.dot(h, w2_ref[...], preferred_element_type=jnp.float32)
    h = jnp.maximum(h + b2_ref[...], 0.0).astype(jnp.bfloat16)
    h = jnp.dot(h, w3_ref[...], preferred_element_type=jnp.float32)
    o_ref[...] = (h + b3_ref[...]).astype(o_ref.dtype)


# ------------------------------- Layer glue --------------------------------

def conv_relu_pool(x, w, b):
    """maxpool2x2(relu(conv2d_valid(x, w) + b)) as one fused Pallas kernel.

    x: (N, H, W, Cin) NHWC (only real channels), w: (OC, Cin, KH, KW) torch
    layout, b: (OC,).  Returns the valid (N, OH/2, OW/2, OC) bf16 activation.
    """
    N, H, W, Cin = x.shape
    OC, Cin_w, KH, KW = w.shape
    assert Cin == Cin_w
    OH, OW = H - KH + 1, W - KW + 1
    assert OH % 2 == 0 and OW % 2 == 0
    PH, PW = OH // 2, OW // 2
    PWP = _round_up(PW, SUB)                   # pooled width, sublane aligned
    A = PH * PWP                               # pooled positions per image
    K0 = KH * (KW + 1) * Cin                   # extended-window patch length
    Kp = _round_up(K0, LANE)
    OCP = _round_up(OC, LANE)

    xb = x.astype(jnp.bfloat16)

    def build_patches(parity):
        # P[n, a, m, (i, j2, c)] = x[n, 2a+parity+i, 2m+j2, c]
        cols = []
        for i in range(KH):
            for j2 in range(KW + 1):
                sl = xb[:, i + parity::2, j2::2, :][:, :PH, :PW, :]
                cols.append(sl)
        pm = jnp.concatenate(cols, axis=-1)                    # (N,PH,PW,K0)
        pm = jnp.pad(pm, ((0, 0), (0, 0), (0, PWP - PW), (0, Kp - K0)))
        return pm.reshape(N, A, Kp)

    pe = build_patches(0)                      # even conv output rows
    po = build_patches(1)                      # odd conv output rows

    # Augmented weight: lanes [0:OCP] = kernel at window offset j2 (even col),
    # lanes [OCP:2*OCP] = kernel shifted by one column (odd col).
    wt = jnp.transpose(w, (2, 3, 1, 0))                        # (KH,KW,Cin,OC)
    wa = jnp.pad(wt, ((0, 0), (0, 1), (0, 0), (0, 0))).reshape(K0, OC)
    wb = jnp.pad(wt, ((0, 0), (1, 0), (0, 0), (0, 0))).reshape(K0, OC)
    wf = jnp.concatenate(
        [jnp.pad(wa, ((0, Kp - K0), (0, OCP - OC))),
         jnp.pad(wb, ((0, Kp - K0), (0, OCP - OC)))],
        axis=1).astype(jnp.bfloat16)                           # (Kp, 2*OCP)
    bp = jnp.pad(b, (0, OCP - OC)).astype(jnp.float32).reshape(1, OCP)

    out = pl.pallas_call(
        _conv_pool_kernel,
        out_shape=jax.ShapeDtypeStruct((N, A, OCP), jnp.bfloat16),
        grid=(N,),
        in_specs=[
            pl.BlockSpec((1, A, Kp), lambda n: (n, 0, 0)),
            pl.BlockSpec((1, A, Kp), lambda n: (n, 0, 0)),
            pl.BlockSpec((Kp, 2 * OCP), lambda n: (0, 0)),   # weights resident
            pl.BlockSpec((1, OCP), lambda n: (0, 0)),
        ],
        out_specs=pl.BlockSpec((1, A, OCP), lambda n: (n, 0, 0)),
        compiler_params=pltpu.CompilerParams(
            dimension_semantics=("parallel",),
            vmem_limit_bytes=32 * 1024 * 1024),
    )(pe, po, wf, bp)

    out = out.reshape(N, PH, PWP, OCP)
    return out[:, :, :PW, :OC]                 # drop width / channel padding


def fc_head(xf, p):
    """Fused fc1 -> fc1_5 -> fc3 on the (N, 7*7*64) (h, w, c)-ordered flatten."""
    N, K0 = xf.shape
    C3 = p["conv3_w"].shape[0]                                 # 64
    S = int(round((p["fc1_w"].shape[1] // C3) ** 0.5))         # 7
    H1 = p["fc1_b"].shape[0]                                   # 300
    H2 = p["fc1_5_b"].shape[0]                                 # 120
    NO = p["fc3_b"].shape[0]                                   # 9
    H1P, H2P, NOP = (_round_up(v, LANE) for v in (H1, H2, NO))
    Kp = _round_up(K0, LANE)                                   # 3200

    # torch flattens (c, h, w); our flatten is (h, w, c) -> permute fc1 cols.
    w1 = p["fc1_w"].reshape(H1, C3, S, S).transpose(2, 3, 1, 0).reshape(K0, H1)
    w1 = jnp.pad(w1, ((0, Kp - K0), (0, H1P - H1))).astype(jnp.bfloat16)
    b1 = jnp.pad(p["fc1_b"], (0, H1P - H1)).astype(jnp.float32).reshape(1, H1P)
    w2 = jnp.pad(p["fc1_5_w"].T, ((0, H1P - H1), (0, H2P - H2))).astype(jnp.bfloat16)
    b2 = jnp.pad(p["fc1_5_b"], (0, H2P - H2)).astype(jnp.float32).reshape(1, H2P)
    w3 = jnp.pad(p["fc3_w"].T, ((0, H2P - H2), (0, NOP - NO))).astype(jnp.bfloat16)
    b3 = jnp.pad(p["fc3_b"], (0, NOP - NO)).astype(jnp.float32).reshape(1, NOP)
    xp = jnp.pad(xf, ((0, 0), (0, Kp - K0))).astype(jnp.bfloat16)

    out = pl.pallas_call(
        _fc_head_kernel,
        out_shape=jax.ShapeDtypeStruct((N, NOP), jnp.float32),
        in_specs=[
            pl.BlockSpec((N, Kp), lambda: (0, 0)),
            pl.BlockSpec((Kp, H1P), lambda: (0, 0)),
            pl.BlockSpec((1, H1P), lambda: (0, 0)),
            pl.BlockSpec((H1P, H2P), lambda: (0, 0)),
            pl.BlockSpec((1, H2P), lambda: (0, 0)),
            pl.BlockSpec((H2P, NOP), lambda: (0, 0)),
            pl.BlockSpec((1, NOP), lambda: (0, 0)),
        ],
        out_specs=pl.BlockSpec((N, NOP), lambda: (0, 0)),
        compiler_params=pltpu.CompilerParams(
            vmem_limit_bytes=32 * 1024 * 1024),
    )(xp, w1, b1, w2, b2, w3, b3)
    return out[:, :NO]


def lenet_forward(x, p):
    """x: (N, 3, 74, 74) f32 NCHW (PyTorch layout) -> (N, 9) f32 logits."""
    x = jnp.transpose(x, (0, 2, 3, 1))                         # NHWC once
    x = conv_relu_pool(x, p["conv1_w"], p["conv1_b"])          # (N,35,35,16)
    x = conv_relu_pool(x, p["conv2_w"], p["conv2_b"])          # (N,16,16,32)
    x = conv_relu_pool(x, p["conv3_w"], p["conv3_b"])          # (N, 7, 7,64)
    N = x.shape[0]
    return fc_head(x.reshape(N, -1), p)                        # (N, 9)


def init_params(key):
    """Deterministic synthetic parameters with PyTorch shapes."""
    shapes = {
        "conv1_w": (16, 3, 5, 5),   "conv1_b": (16,),
        "conv2_w": (32, 16, 4, 4),  "conv2_b": (32,),
        "conv3_w": (64, 32, 3, 3),  "conv3_b": (64,),
        "fc1_w":   (300, 64 * 7 * 7), "fc1_b": (300,),
        "fc1_5_w": (120, 300),      "fc1_5_b": (120,),
        "fc3_w":   (9, 120),        "fc3_b": (9,),
    }
    params = {}
    keys = jax.random.split(key, len(shapes))
    for k, (name, shp) in zip(keys, sorted(shapes.items())):
        fan_in = 1
        for d in shp[1:]:
            fan_in *= d
        scale = 1.0 / jnp.sqrt(jnp.maximum(fan_in, 1)).astype(jnp.float32)
        params[name] = scale * jax.random.normal(k, shp, dtype=jnp.float32)
    return params


if __name__ == "__main__":
    key = jax.random.PRNGKey(0)
    k_x, k_p = jax.random.split(key)
    # Input spatial size fixed by the architecture (fc1 expects 64*7*7).
    x = jax.random.normal(k_x, (2, 3, 74, 74), dtype=jnp.float32)
    params = init_params(k_p)

    out = jax.jit(lenet_forward)(x, params)
    out = jax.block_until_ready(out)
    assert out.shape == (2, 9), out.shape
    print("KERNEL_OK")
</pallas_src>

<mosaic_0001>
module attributes {stable_mosaic.version = 11 : i64} {
  func.func @_conv_pool_kernel(%arg0: i32, %arg1: memref<1x1400x128xbf16, #tpu.memory_space<vmem>>, %arg2: memref<1x1400x128xbf16, #tpu.memory_space<vmem>>, %arg3: memref<128x256xbf16, #tpu.memory_space<vmem>>, %arg4: memref<1x128xf32, #tpu.memory_space<vmem>>, %arg5: memref<1x1400x128xbf16, #tpu.memory_space<vmem>>) attributes {dimension_semantics = [#tpu.dimension_semantics<parallel>], iteration_bounds = array<i64: 2>, scalar_prefetch = 0 : i64, scratch_operands = 0 : i64, tpu.core_type = #tpu.core_type<tc>, window_params = [{transform_indices = @transform_0, window_bounds = array<i64: 1, 1400, 128>}, {transform_indices = @transform_1, window_bounds = array<i64: 1, 1400, 128>}, {pipeline_mode = #tpu.pipeline_mode<synchronous>, transform_indices = @transform_2, window_bounds = array<i64: 128, 256>}, {pipeline_mode = #tpu.pipeline_mode<synchronous>, transform_indices = @transform_3, window_bounds = array<i64: 1, 128>}, {transform_indices = @transform_4, window_bounds = array<i64: 1, 1400, 128>}]} {
    %c0 = arith.constant 0 : index
    %c0_0 = arith.constant 0 : index
    %c0_1 = arith.constant 0 : index
    %0 = vector.load %arg1[%c0, %c0_0, %c0_1] : memref<1x1400x128xbf16, #tpu.memory_space<vmem>>, vector<1x1400x128xbf16>
    %1 = vector.shape_cast %0 : vector<1x1400x128xbf16> to vector<1400x128xbf16>
    %c0_2 = arith.constant 0 : index
    %c0_3 = arith.constant 0 : index
    %2 = vector.load %arg3[%c0_2, %c0_3] : memref<128x256xbf16, #tpu.memory_space<vmem>>, vector<128x256xbf16>
    %cst = arith.constant dense<0.000000e+00> : vector<1400x256xf32>
    %3 = tpu.matmul %1, %2, %cst {dimension_numbers = #tpu.dot_dimension_numbers<[1], [0], [0], [1], [0, 0, 1, 1], [], []>} : vector<1400x128xbf16>, vector<128x256xbf16>, vector<1400x256xf32> -> vector<1400x256xf32>
    %c0_4 = arith.constant 0 : index
    %c0_5 = arith.constant 0 : index
    %c0_6 = arith.constant 0 : index
    %4 = vector.load %arg2[%c0_4, %c0_5, %c0_6] : memref<1x1400x128xbf16, #tpu.memory_space<vmem>>, vector<1x1400x128xbf16>
    %5 = vector.shape_cast %4 : vector<1x1400x128xbf16> to vector<1400x128xbf16>
    %c0_7 = arith.constant 0 : index
    %c0_8 = arith.constant 0 : index
    %6 = vector.load %arg3[%c0_7, %c0_8] : memref<128x256xbf16, #tpu.memory_space<vmem>>, vector<128x256xbf16>
    %cst_9 = arith.constant dense<0.000000e+00> : vector<1400x256xf32>
    %7 = tpu.matmul %5, %6, %cst_9 {dimension_numbers = #tpu.dot_dimension_numbers<[1], [0], [0], [1], [0, 0, 1, 1], [], []>} : vector<1400x128xbf16>, vector<128x256xbf16>, vector<1400x256xf32> -> vector<1400x256xf32>
    %8 = arith.maximumf %3, %7 : vector<1400x256xf32>
    %9 = vector.extract_strided_slice %8 {offsets = [0, 0], sizes = [1400, 128], strides = [1, 1]} : vector<1400x256xf32> to vector<1400x128xf32>
    %10 = vector.extract_strided_slice %8 {offsets = [0, 128], sizes = [1400, 128], strides = [1, 1]} : vector<1400x256xf32> to vector<1400x128xf32>
    %11 = arith.maximumf %9, %10 : vector<1400x128xf32>
    %c0_10 = arith.constant 0 : index
    %c0_11 = arith.constant 0 : index
    %12 = vector.load %arg4[%c0_10, %c0_11] : memref<1x128xf32, #tpu.memory_space<vmem>>, vector<1x128xf32>
    %13 = vector.broadcast %12 : vector<1x128xf32> to vector<1400x128xf32>
    %14 = arith.addf %11, %13 : vector<1400x128xf32>
    %cst_12 = arith.constant 0.000000e+00 : f32
    %15 = vector.broadcast %cst_12 : f32 to vector<1400x128xf32>
    %16 = arith.maximumf %14, %15 : vector<1400x128xf32>
    %17 = arith.truncf %16 : vector<1400x128xf32> to vector<1400x128xbf16>
    %c0_13 = arith.constant 0 : index
    %c0_14 = arith.constant 0 : index
    %c0_15 = arith.constant 0 : index
    %18 = vector.load %arg5[%c0_13, %c0_14, %c0_15] : memref<1x1400x128xbf16, #tpu.memory_space<vmem>>, vector<1x1400x128xbf16>
    %19 = vector.shape_cast %18 : vector<1x1400x128xbf16> to vector<1400x128xbf16>
    %20 = vector.shape_cast %17 : vector<1400x128xbf16> to vector<1x1400x128xbf16>
    tpu.vector_store %arg5[%c0_13, %c0_14, %c0_15], %20 {strides = array<i32>} : memref<1x1400x128xbf16, #tpu.memory_space<vmem>>, vector<1x1400x128xbf16>,
    return
  }
  func.func @transform_0(%arg0: i32) -> (i32, i32, i32) {
    %c0_i32 = arith.constant 0 : i32
    %c0_i32_0 = arith.constant 0 : i32
    %c0_i32_1 = arith.constant 0 : i32
    return %arg0, %c0_i32, %c0_i32_0 : i32, i32, i32
  }
  func.func @transform_1(%arg0: i32) -> (i32, i32, i32) {
    %c0_i32 = arith.constant 0 : i32
    %c0_i32_0 = arith.constant 0 : i32
    %c0_i32_1 = arith.constant 0 : i32
    return %arg0, %c0_i32, %c0_i32_0 : i32, i32, i32
  }
  func.func @transform_2(%arg0: i32) -> (i32, i32) {
    %c0_i32 = arith.constant 0 : i32
    %c0_i32_0 = arith.constant 0 : i32
    %c0_i32_1 = arith.constant 0 : i32
    return %c0_i32, %c0_i32_0 : i32, i32
  }
  func.func @transform_3(%arg0: i32) -> (i32, i32) {
    %c0_i32 = arith.constant 0 : i32
    %c0_i32_0 = arith.constant 0 : i32
    %c0_i32_1 = arith.constant 0 : i32
    return %c0_i32, %c0_i32_0 : i32, i32
  }
  func.func @transform_4(%arg0: i32) -> (i32, i32, i32) {
    %c0_i32 = arith.constant 0 : i32
    %c0_i32_0 = arith.constant 0 : i32
    %c0_i32_1 = arith.constant 0 : i32
    return %arg0, %c0_i32, %c0_i32_0 : i32, i32, i32
  }
}

module attributes {stable_mosaic.version = 11 : i64} {
  func.func @_conv_pool_kernel(%arg0: i32, %arg1: memref<1x256x384xbf16, #tpu.memory_space<vmem>>, %arg2: memref<1x256x384xbf16, #tpu.memory_space<vmem>>, %arg3: memref<384x256xbf16, #tpu.memory_space<vmem>>, %arg4: memref<1x128xf32, #tpu.memory_space<vmem>>, %arg5: memref<1x256x128xbf16, #tpu.memory_space<vmem>>) attributes {dimension_semantics = [#tpu.dimension_semantics<parallel>], iteration_bounds = array<i64: 2>, scalar_prefetch = 0 : i64, scratch_operands = 0 : i64, tpu.core_type = #tpu.core_type<tc>, window_params = [{transform_indices = @transform_0, window_bounds = array<i64: 1, 256, 384>}, {transform_indices = @transform_1, window_bounds = array<i64: 1, 256, 384>}, {pipeline_mode = #tpu.pipeline_mode<synchronous>, transform_indices = @transform_2, window_bounds = array<i64: 384, 256>}, {pipeline_mode = #tpu.pipeline_mode<synchronous>, transform_indices = @transform_3, window_bounds = array<i64: 1, 128>}, {transform_indices = @transform_4, window_bounds = array<i64: 1, 256, 128>}]} {
    %c0 = arith.constant 0 : index
    %c0_0 = arith.constant 0 : index
    %c0_1 = arith.constant 0 : index
    %0 = vector.load %arg1[%c0, %c0_0, %c0_1] : memref<1x256x384xbf16, #tpu.memory_space<vmem>>, vector<1x256x384xbf16>
    %1 = vector.shape_cast %0 : vector<1x256x384xbf16> to vector<256x384xbf16>
    %c0_2 = arith.constant 0 : index
    %c0_3 = arith.constant 0 : index
    %2 = vector.load %arg3[%c0_2, %c0_3] : memref<384x256xbf16, #tpu.memory_space<vmem>>, vector<384x256xbf16>
    %cst = arith.constant dense<0.000000e+00> : vector<256x256xf32>
    %3 = tpu.matmul %1, %2, %cst {dimension_numbers = #tpu.dot_dimension_numbers<[1], [0], [0], [1], [0, 0, 1, 1], [], []>} : vector<256x384xbf16>, vector<384x256xbf16>, vector<256x256xf32> -> vector<256x256xf32>
    %c0_4 = arith.constant 0 : index
    %c0_5 = arith.constant 0 : index
    %c0_6 = arith.constant 0 : index
    %4 = vector.load %arg2[%c0_4, %c0_5, %c0_6] : memref<1x256x384xbf16, #tpu.memory_space<vmem>>, vector<1x256x384xbf16>
    %5 = vector.shape_cast %4 : vector<1x256x384xbf16> to vector<256x384xbf16>
    %c0_7 = arith.constant 0 : index
    %c0_8 = arith.constant 0 : index
    %6 = vector.load %arg3[%c0_7, %c0_8] : memref<384x256xbf16, #tpu.memory_space<vmem>>, vector<384x256xbf16>
    %cst_9 = arith.constant dense<0.000000e+00> : vector<256x256xf32>
    %7 = tpu.matmul %5, %6, %cst_9 {dimension_numbers = #tpu.dot_dimension_numbers<[1], [0], [0], [1], [0, 0, 1, 1], [], []>} : vector<256x384xbf16>, vector<384x256xbf16>, vector<256x256xf32> -> vector<256x256xf32>
    %8 = arith.maximumf %3, %7 : vector<256x256xf32>
    %9 = vector.extract_strided_slice %8 {offsets = [0, 0], sizes = [256, 128], strides = [1, 1]} : vector<256x256xf32> to vector<256x128xf32>
    %10 = vector.extract_strided_slice %8 {offsets = [0, 128], sizes = [256, 128], strides = [1, 1]} : vector<256x256xf32> to vector<256x128xf32>
    %11 = arith.maximumf %9, %10 : vector<256x128xf32>
    %c0_10 = arith.constant 0 : index
    %c0_11 = arith.constant 0 : index
    %12 = vector.load %arg4[%c0_10, %c0_11] : memref<1x128xf32, #tpu.memory_space<vmem>>, vector<1x128xf32>
    %13 = vector.broadcast %12 : vector<1x128xf32> to vector<256x128xf32>
    %14 = arith.addf %11, %13 : vector<256x128xf32>
    %cst_12 = arith.constant 0.000000e+00 : f32
    %15 = vector.broadcast %cst_12 : f32 to vector<256x128xf32>
    %16 = arith.maximumf %14, %15 : vector<256x128xf32>
    %17 = arith.truncf %16 : vector<256x128xf32> to vector<256x128xbf16>
    %c0_13 = arith.constant 0 : index
    %c0_14 = arith.constant 0 : index
    %c0_15 = arith.constant 0 : index
    %18 = vector.load %arg5[%c0_13, %c0_14, %c0_15] : memref<1x256x128xbf16, #tpu.memory_space<vmem>>, vector<1x256x128xbf16>
    %19 = vector.shape_cast %18 : vector<1x256x128xbf16> to vector<256x128xbf16>
    %20 = vector.shape_cast %17 : vector<256x128xbf16> to vector<1x256x128xbf16>
    tpu.vector_store %arg5[%c0_13, %c0_14, %c0_15], %20 {strides = array<i32>} : memref<1x256x128xbf16, #tpu.memory_space<vmem>>, vector<1x256x128xbf16>,
    return
  }
  func.func @transform_0(%arg0: i32) -> (i32, i32, i32) {
    %c0_i32 = arith.constant 0 : i32
    %c0_i32_0 = arith.constant 0 : i32
    %c0_i32_1 = arith.constant 0 : i32
    return %arg0, %c0_i32, %c0_i32_0 : i32, i32, i32
  }
  func.func @transform_1(%arg0: i32) -> (i32, i32, i32) {
    %c0_i32 = arith.constant 0 : i32
    %c0_i32_0 = arith.constant 0 : i32
    %c0_i32_1 = arith.constant 0 : i32
    return %arg0, %c0_i32, %c0_i32_0 : i32, i32, i32
  }
  func.func @transform_2(%arg0: i32) -> (i32, i32) {
    %c0_i32 = arith.constant 0 : i32
    %c0_i32_0 = arith.constant 0 : i32
    %c0_i32_1 = arith.constant 0 : i32
    return %c0_i32, %c0_i32_0 : i32, i32
  }
  func.func @transform_3(%arg0: i32) -> (i32, i32) {
    %c0_i32 = arith.constant 0 : i32
    %c0_i32_0 = arith.constant 0 : i32
    %c0_i32_1 = arith.constant 0 : i32
    return %c0_i32, %c0_i32_0 : i32, i32
  }
  func.func @transform_4(%arg0: i32) -> (i32, i32, i32) {
    %c0_i32 = arith.constant 0 : i32
    %c0_i32_0 = arith.constant 0 : i32
    %c0_i32_1 = arith.constant 0 : i32
    return %arg0, %c0_i32, %c0_i32_0 : i32, i32, i32
  }
}

module attributes {stable_mosaic.version = 11 : i64} {
  func.func @_conv_pool_kernel(%arg0: i32, %arg1: memref<1x56x384xbf16, #tpu.memory_space<vmem>>, %arg2: memref<1x56x384xbf16, #tpu.memory_space<vmem>>, %arg3: memref<384x256xbf16, #tpu.memory_space<vmem>>, %arg4: memref<1x128xf32, #tpu.memory_space<vmem>>, %arg5: memref<1x56x128xbf16, #tpu.memory_space<vmem>>) attributes {dimension_semantics = [#tpu.dimension_semantics<parallel>], iteration_bounds = array<i64: 2>, scalar_prefetch = 0 : i64, scratch_operands = 0 : i64, tpu.core_type = #tpu.core_type<tc>, window_params = [{transform_indices = @transform_0, window_bounds = array<i64: 1, 56, 384>}, {transform_indices = @transform_1, window_bounds = array<i64: 1, 56, 384>}, {pipeline_mode = #tpu.pipeline_mode<synchronous>, transform_indices = @transform_2, window_bounds = array<i64: 384, 256>}, {pipeline_mode = #tpu.pipeline_mode<synchronous>, transform_indices = @transform_3, window_bounds = array<i64: 1, 128>}, {transform_indices = @transform_4, window_bounds = array<i64: 1, 56, 128>}]} {
    %c0 = arith.constant 0 : index
    %c0_0 = arith.constant 0 : index
    %c0_1 = arith.constant 0 : index
    %0 = vector.load %arg1[%c0, %c0_0, %c0_1] : memref<1x56x384xbf16, #tpu.memory_space<vmem>>, vector<1x56x384xbf16>
    %1 = vector.shape_cast %0 : vector<1x56x384xbf16> to vector<56x384xbf16>
    %c0_2 = arith.constant 0 : index
    %c0_3 = arith.constant 0 : index
    %2 = vector.load %arg3[%c0_2, %c0_3] : memref<384x256xbf16, #tpu.memory_space<vmem>>, vector<384x256xbf16>
    %cst = arith.constant dense<0.000000e+00> : vector<56x256xf32>
    %3 = tpu.matmul %1, %2, %cst {dimension_numbers = #tpu.dot_dimension_numbers<[1], [0], [0], [1], [0, 0, 1, 1], [], []>} : vector<56x384xbf16>, vector<384x256xbf16>, vector<56x256xf32> -> vector<56x256xf32>
    %c0_4 = arith.constant 0 : index
    %c0_5 = arith.constant 0 : index
    %c0_6 = arith.constant 0 : index
    %4 = vector.load %arg2[%c0_4, %c0_5, %c0_6] : memref<1x56x384xbf16, #tpu.memory_space<vmem>>, vector<1x56x384xbf16>
    %5 = vector.shape_cast %4 : vector<1x56x384xbf16> to vector<56x384xbf16>
    %c0_7 = arith.constant 0 : index
    %c0_8 = arith.constant 0 : index
    %6 = vector.load %arg3[%c0_7, %c0_8] : memref<384x256xbf16, #tpu.memory_space<vmem>>, vector<384x256xbf16>
    %cst_9 = arith.constant dense<0.000000e+00> : vector<56x256xf32>
    %7 = tpu.matmul %5, %6, %cst_9 {dimension_numbers = #tpu.dot_dimension_numbers<[1], [0], [0], [1], [0, 0, 1, 1], [], []>} : vector<56x384xbf16>, vector<384x256xbf16>, vector<56x256xf32> -> vector<56x256xf32>
    %8 = arith.maximumf %3, %7 : vector<56x256xf32>
    %9 = vector.extract_strided_slice %8 {offsets = [0, 0], sizes = [56, 128], strides = [1, 1]} : vector<56x256xf32> to vector<56x128xf32>
    %10 = vector.extract_strided_slice %8 {offsets = [0, 128], sizes = [56, 128], strides = [1, 1]} : vector<56x256xf32> to vector<56x128xf32>
    %11 = arith.maximumf %9, %10 : vector<56x128xf32>
    %c0_10 = arith.constant 0 : index
    %c0_11 = arith.constant 0 : index
    %12 = vector.load %arg4[%c0_10, %c0_11] : memref<1x128xf32, #tpu.memory_space<vmem>>, vector<1x128xf32>
    %13 = vector.broadcast %12 : vector<1x128xf32> to vector<56x128xf32>
    %14 = arith.addf %11, %13 : vector<56x128xf32>
    %cst_12 = arith.constant 0.000000e+00 : f32
    %15 = vector.broadcast %cst_12 : f32 to vector<56x128xf32>
    %16 = arith.maximumf %14, %15 : vector<56x128xf32>
    %17 = arith.truncf %16 : vector<56x128xf32> to vector<56x128xbf16>
    %c0_13 = arith.constant 0 : index
    %c0_14 = arith.constant 0 : index
    %c0_15 = arith.constant 0 : index
    %18 = vector.load %arg5[%c0_13, %c0_14, %c0_15] : memref<1x56x128xbf16, #tpu.memory_space<vmem>>, vector<1x56x128xbf16>
    %19 = vector.shape_cast %18 : vector<1x56x128xbf16> to vector<56x128xbf16>
    %20 = vector.shape_cast %17 : vector<56x128xbf16> to vector<1x56x128xbf16>
    tpu.vector_store %arg5[%c0_13, %c0_14, %c0_15], %20 {strides = array<i32>} : memref<1x56x128xbf16, #tpu.memory_space<vmem>>, vector<1x56x128xbf16>,
    return
  }
  func.func @transform_0(%arg0: i32) -> (i32, i32, i32) {
    %c0_i32 = arith.constant 0 : i32
    %c0_i32_0 = arith.constant 0 : i32
    %c0_i32_1 = arith.constant 0 : i32
    return %arg0, %c0_i32, %c0_i32_0 : i32, i32, i32
  }
  func.func @transform_1(%arg0: i32) -> (i32, i32, i32) {
    %c0_i32 = arith.constant 0 : i32
    %c0_i32_0 = arith.constant 0 : i32
    %c0_i32_1 = arith.constant 0 : i32
    return %arg0, %c0_i32, %c0_i32_0 : i32, i32, i32
  }
  func.func @transform_2(%arg0: i32) -> (i32, i32) {
    %c0_i32 = arith.constant 0 : i32
    %c0_i32_0 = arith.constant 0 : i32
    %c0_i32_1 = arith.constant 0 : i32
    return %c0_i32, %c0_i32_0 : i32, i32
  }
  func.func @transform_3(%arg0: i32) -> (i32, i32) {
    %c0_i32 = arith.constant 0 : i32
    %c0_i32_0 = arith.constant 0 : i32
    %c0_i32_1 = arith.constant 0 : i32
    return %c0_i32, %c0_i32_0 : i32, i32
  }
  func.func @transform_4(%arg0: i32) -> (i32, i32, i32) {
    %c0_i32 = arith.constant 0 : i32
    %c0_i32_0 = arith.constant 0 : i32
    %c0_i32_1 = arith.constant 0 : i32
    return %arg0, %c0_i32, %c0_i32_0 : i32, i32, i32
  }
}

module attributes {stable_mosaic.version = 11 : i64} {
  func.func @_fc_head_kernel(%arg0: memref<2x3200xbf16, #tpu.memory_space<vmem>>, %arg1: memref<3200x384xbf16, #tpu.memory_space<vmem>>, %arg2: memref<1x384xf32, #tpu.memory_space<vmem>>, %arg3: memref<384x128xbf16, #tpu.memory_space<vmem>>, %arg4: memref<1x128xf32, #tpu.memory_space<vmem>>, %arg5: memref<128x128xbf16, #tpu.memory_space<vmem>>, %arg6: memref<1x128xf32, #tpu.memory_space<vmem>>, %arg7: memref<2x128xf32, #tpu.memory_space<vmem>>) attributes {dimension_semantics = [], scalar_prefetch = 0 : i64, scratch_operands = 0 : i64, tpu.core_type = #tpu.core_type<tc>} {
    %c0 = arith.constant 0 : index
    %c0_0 = arith.constant 0 : index
    %0 = vector.load %arg0[%c0, %c0_0] : memref<2x3200xbf16, #tpu.memory_space<vmem>>, vector<2x3200xbf16>
    %c0_1 = arith.constant 0 : index
    %c0_2 = arith.constant 0 : index
    %1 = vector.load %arg1[%c0_1, %c0_2] : memref<3200x384xbf16, #tpu.memory_space<vmem>>, vector<3200x384xbf16>
    %cst = arith.constant dense<0.000000e+00> : vector<2x384xf32>
    %2 = tpu.matmul %0, %1, %cst {dimension_numbers = #tpu.dot_dimension_numbers<[1], [0], [0], [1], [0, 0, 1, 1], [], []>} : vector<2x3200xbf16>, vector<3200x384xbf16>, vector<2x384xf32> -> vector<2x384xf32>
    %c0_3 = arith.constant 0 : index
    %c0_4 = arith.constant 0 : index
    %3 = vector.load %arg2[%c0_3, %c0_4] : memref<1x384xf32, #tpu.memory_space<vmem>>, vector<1x384xf32>
    %4 = vector.broadcast %3 : vector<1x384xf32> to vector<2x384xf32>
    %5 = arith.addf %2, %4 : vector<2x384xf32>
    %cst_5 = arith.constant 0.000000e+00 : f32
    %6 = vector.broadcast %cst_5 : f32 to vector<2x384xf32>
    %7 = arith.maximumf %5, %6 : vector<2x384xf32>
    %8 = arith.truncf %7 : vector<2x384xf32> to vector<2x384xbf16>
    %c0_6 = arith.constant 0 : index
    %c0_7 = arith.constant 0 : index
    %9 = vector.load %arg3[%c0_6, %c0_7] : memref<384x128xbf16, #tpu.memory_space<vmem>>, vector<384x128xbf16>
    %cst_8 = arith.constant dense<0.000000e+00> : vector<2x128xf32>
    %10 = tpu.matmul %8, %9, %cst_8 {dimension_numbers = #tpu.dot_dimension_numbers<[1], [0], [0], [1], [0, 0, 1, 1], [], []>} : vector<2x384xbf16>, vector<384x128xbf16>, vector<2x128xf32> -> vector<2x128xf32>
    %c0_9 = arith.constant 0 : index
    %c0_10 = arith.constant 0 : index
    %11 = vector.load %arg4[%c0_9, %c0_10] : memref<1x128xf32, #tpu.memory_space<vmem>>, vector<1x128xf32>
    %12 = vector.broadcast %11 : vector<1x128xf32> to vector<2x128xf32>
    %13 = arith.addf %10, %12 : vector<2x128xf32>
    %cst_11 = arith.constant 0.000000e+00 : f32
    %14 = vector.broadcast %cst_11 : f32 to vector<2x128xf32>
    %15 = arith.maximumf %13, %14 : vector<2x128xf32>
    %16 = arith.truncf %15 : vector<2x128xf32> to vector<2x128xbf16>
    %c0_12 = arith.constant 0 : index
    %c0_13 = arith.constant 0 : index
    %17 = vector.load %arg5[%c0_12, %c0_13] : memref<128x128xbf16, #tpu.memory_space<vmem>>, vector<128x128xbf16>
    %cst_14 = arith.constant dense<0.000000e+00> : vector<2x128xf32>
    %18 = tpu.matmul %16, %17, %cst_14 {dimension_numbers = #tpu.dot_dimension_numbers<[1], [0], [0], [1], [0, 0, 1, 1], [], []>} : vector<2x128xbf16>, vector<128x128xbf16>, vector<2x128xf32> -> vector<2x128xf32>
    %c0_15 = arith.constant 0 : index
    %c0_16 = arith.constant 0 : index
    %19 = vector.load %arg6[%c0_15, %c0_16] : memref<1x128xf32, #tpu.memory_space<vmem>>, vector<1x128xf32>
    %20 = vector.broadcast %19 : vector<1x128xf32> to vector<2x128xf32>
    %21 = arith.addf %18, %20 : vector<2x128xf32>
    %c0_17 = arith.constant 0 : index
    %c0_18 = arith.constant 0 : index
    %22 = vector.load %arg7[%c0_17, %c0_18] : memref<2x128xf32, #tpu.memory_space<vmem>>, vector<2x128xf32>
    tpu.vector_store %arg7[%c0_17, %c0_18], %21 {strides = array<i32>} : memref<2x128xf32, #tpu.memory_space<vmem>>, vector<2x128xf32>,
    return
  }
}

</mosaic_0001>

<bundles_post_ra>
// kernel: lenet_forward.4
= control target key start
LH: loop header
LB: loop body
LE: loop exit
PB: predicated region body
PF: predicated region fallthrough
CT: control target
= control target key end

     0   :  { %s6686_s15 = smov 0   ;;  %s7400_s0 = inlined_call_operand.vmem [shape: bf16[2,1400,128], index: 0, kind: input, shape index: {}]   ;;  %s7401_s1 = inlined_call_operand.vmem [shape: bf16[2,1400,128], index: 1, kind: input, shape index: {}]   ;;  %s7402_s2 = inlined_call_operand.vmem [shape: bf16[128,256], index: 2, kind: input, shape index: {}]   ;;  %s7403_s3 = inlined_call_operand.vmem [shape: f32[1,128], index: 3, kind: input, shape index: {}]   ;;  %s7404_s4 = inlined_call_operand.vmem [shape: bf16[2,1400,128], index: 4, kind: output, shape index: {}]  }
   0x1 LB: > { %s5364_s16 = sadd.s32 4294967295, %s6658_s15   ;;  %p5368_p0 = scmp.ge.s32.totalorder %s6658_s15, 1  ;;  %s6658_s15 = sphi %s6686_s15, %s14_s15  }
   0x2   : > { %p172_p1 = scmp.lt.s32.totalorder %s6658_s15, 3 }
   0x4   : > { %p173_p2 = pnand %p5368_p0, %p172_p1 }
   0x5   : > { %v6448_v0 = vld [vmem:[%s7402_s2 + $0x4] ss:$8 sps:$4 sm:$0xff] (!%p173_p2)   ;;  %p203_p3 = scmp.lt.s32.totalorder (!%p173_p2), %s5364_s16, 1  ;;  %v6450_v1 = vld [vmem:[%s7402_s2] ss:$8 sps:$4 sm:$0xff] (!%p173_p2)   ;;  %v6660_v2 = vmov (!%p173_p2), 0  }
   0x6   : > { %176 = sbr.rel (%p173_p2) target bundleno = 959 (0x3bf), region = 36  ;;  %1048 = vmatprep.mubr.bf16.mxu0 (!%p173_p2), %v6660_v2  ;;  %2660 = vmatprep.mubr.bf16.mxu1 (!%p173_p2), %v6660_v2  ;;  %v6451_v3 = vld [vmem:[%s7402_s2 + $0x14] ss:$8 sps:$4 sm:$0xff] (!%p173_p2)   ;;  %v6453_v4 = vld [vmem:[%s7402_s2 + $0x10] ss:$8 sps:$4 sm:$0xff] (!%p173_p2)  }
   0x7   : > { %1016 = vmatprep.subr.bf16.mxu0 (!%p173_p2), %v6448_v0  ;;  %2628 = vmatprep.subr.bf16.mxu1 (!%p173_p2), %v6448_v0  ;;  %v6454_v5 = vld [vmem:[%s7402_s2 + $0x24] ss:$8 sps:$4 sm:$0xff] (!%p173_p2)   ;;  %v6456_v6 = vld [vmem:[%s7402_s2 + $0x20] ss:$8 sps:$4 sm:$0xff] (!%p173_p2)   ;;  %v6457_v7 = vld [vmem:[%s7402_s2 + $0x34] ss:$8 sps:$4 sm:$0xff] (!%p173_p2)  }
   0x8   : > { %1017 = vmatpush1.bf16.msra.mxu0 (!%p173_p2), %v6450_v1  ;;  %2629 = vmatpush1.bf16.msra.mxu1 (!%p173_p2), %v6450_v1  ;;  %v6459_v8 = vld [vmem:[%s7402_s2 + $0x30] ss:$8 sps:$4 sm:$0xff] (!%p173_p2)   ;;  %v6460_v9 = vld [vmem:[%s7402_s2 + $0x44] ss:$8 sps:$4 sm:$0xff] (!%p173_p2)   ;;  %v6462_v10 = vld [vmem:[%s7402_s2 + $0x40] ss:$8 sps:$4 sm:$0xff] (!%p173_p2)  }
   0x9   : > { %1018 = vmatprep.subr.bf16.mxu0 (!%p173_p2), %v6451_v3  ;;  %2630 = vmatprep.subr.bf16.mxu1 (!%p173_p2), %v6451_v3  ;;  %v6463_v11 = vld [vmem:[%s7402_s2 + $0x54] ss:$8 sps:$4 sm:$0xff] (!%p173_p2)   ;;  %v6465_v12 = vld [vmem:[%s7402_s2 + $0x50] ss:$8 sps:$4 sm:$0xff] (!%p173_p2)   ;;  %v6466_v13 = vld [vmem:[%s7402_s2 + $0x64] ss:$8 sps:$4 sm:$0xff] (!%p173_p2)  }
   0xa   : > { %v6468_v14 = vld [vmem:[%s7402_s2 + $0x60] ss:$8 sps:$4 sm:$0xff] (!%p173_p2)   ;;  %v6469_v15 = vld [vmem:[%s7402_s2 + $0x74] ss:$8 sps:$4 sm:$0xff] (!%p173_p2)   ;;  %v6471_v16 = vld [vmem:[%s7402_s2 + $0x70] ss:$8 sps:$4 sm:$0xff] (!%p173_p2)  }
   0xc   : > { %1019 = vmatpush1.bf16.msra.mxu0 (!%p173_p2), %v6453_v4  ;;  %2631 = vmatpush1.bf16.msra.mxu1 (!%p173_p2), %v6453_v4 }
   0xd   : > { %s7406_s16 = smov (!%p203_p3, %s5364_s16), 1  ;;  %1020 = vmatprep.subr.bf16.mxu0 %v6454_v5  ;;  %2632 = vmatprep.subr.bf16.mxu1 %v6454_v5 }
   0xe   : > { %s6711_s27 = smul.u32 700, %s7406_s16 }
  0x10   : > { %s6723_s8 = scalar_lea.vmem %s7400_s0, %s6711_s27  ;;  %s6729_s11 = scalar_lea.vmem %s7401_s1, %s6711_s27  ;;  %1021 = vmatpush1.bf16.msra.mxu0 %v6456_v6  ;;  %2633 = vmatpush1.bf16.msra.mxu1 %v6456_v6 }
  0x11   : > { %1022 = vmatprep.subr.bf16.mxu0 %v6457_v7  ;;  %2634 = vmatprep.subr.bf16.mxu1 %v6457_v7  ;;  %v6472_v17 = vld [vmem:[%s6723_s8] sm:$0xff]   ;;  %v6474_v19 = vld [vmem:[%s6723_s8 + $0x8] sm:$0xff]   ;;  %v6476_v21 = vld [vmem:[%s6723_s8 + $0x10] sm:$0xff]   ;;  %s6883_s12 = scalar_lea.vmem %s7404_s4, %s6711_s27 }
  0x12   : > { %v6473_v18 = vld [vmem:[%s6729_s11] sm:$0xff]   ;;  %v6475_v20 = vld [vmem:[%s6729_s11 + $0x8] sm:$0xff]   ;;  %v6477_v22 = vld [vmem:[%s6729_s11 + $0x10] sm:$0xff]  }
  0x13   : > { %v6478_v23 = vld [vmem:[%s6723_s8 + $0x18] sm:$0xff]   ;;  %v6480_v25 = vld [vmem:[%s6723_s8 + $0x20] sm:$0xff]   ;;  %v6482_v27 = vld [vmem:[%s6723_s8 + $0x28] sm:$0xff]  }
  0x14   : > { %1023 = vmatpush1.bf16.msra.mxu0 %v6459_v8  ;;  %2635 = vmatpush1.bf16.msra.mxu1 %v6459_v8  ;;  %v6479_v24 = vld [vmem:[%s6729_s11 + $0x18] sm:$0xff]   ;;  %v6481_v26 = vld [vmem:[%s6729_s11 + $0x20] sm:$0xff]   ;;  %v6483_v28 = vld [vmem:[%s6729_s11 + $0x28] sm:$0xff]  }
  0x15   : > { %1024 = vmatprep.subr.bf16.mxu0 %v6460_v9  ;;  %2636 = vmatprep.subr.bf16.mxu1 %v6460_v9  ;;  %v6484_v29 = vld [vmem:[%s6723_s8 + $0x30] sm:$0xff]   ;;  %v6486_v31 = vld [vmem:[%s6723_s8 + $0x38] sm:$0xff]   ;;  %v6488_v33 = vld [vmem:[%s6723_s8 + $0x40] sm:$0xff]  }
  0x16   : > { %v6485_v30 = vld [vmem:[%s6729_s11 + $0x30] sm:$0xff]   ;;  %v6487_v32 = vld [vmem:[%s6729_s11 + $0x38] sm:$0xff]   ;;  %v6489_v34 = vld [vmem:[%s6729_s11 + $0x40] sm:$0xff]  }
  0x17   : > { %v6490_v35 = vld [vmem:[%s6723_s8 + $0x48] sm:$0xff]   ;;  %v6492_v37 = vld [vmem:[%s6723_s8 + $0x50] sm:$0xff]   ;;  %v6494_v39 = vld [vmem:[%s6723_s8 + $0x58] sm:$0xff]  }
  0x18   : > { %1025 = vmatpush1.bf16.msra.mxu0 %v6462_v10  ;;  %2637 = vmatpush1.bf16.msra.mxu1 %v6462_v10  ;;  %v6491_v36 = vld [vmem:[%s6729_s11 + $0x48] sm:$0xff]   ;;  %v6493_v38 = vld [vmem:[%s6729_s11 + $0x50] sm:$0xff]   ;;  %v6495_v40 = vld [vmem:[%s6729_s11 + $0x58] sm:$0xff]  }
  0x19   : > { %1026 = vmatprep.subr.bf16.mxu0 %v6463_v11  ;;  %2638 = vmatprep.subr.bf16.mxu1 %v6463_v11  ;;  %v6496_v41 = vld [vmem:[%s6723_s8 + $0x60] sm:$0xff]   ;;  %v6498_v43 = vld [vmem:[%s6723_s8 + $0x68] sm:$0xff]   ;;  %v6500_v45 = vld [vmem:[%s6723_s8 + $0x70] sm:$0xff]  }
  0x1a   : > { %v6497_v42 = vld [vmem:[%s6729_s11 + $0x60] sm:$0xff]   ;;  %v6499_v44 = vld [vmem:[%s6729_s11 + $0x68] sm:$0xff]   ;;  %v6501_v46 = vld [vmem:[%s6729_s11 + $0x70] sm:$0xff]  }
  0x1b   : > { %v6502_v47 = vld [vmem:[%s6723_s8 + $0x78] sm:$0xff]   ;;  %v6504_v49 = vld [vmem:[%s6723_s8 + $0x80] sm:$0xff]   ;;  %v6506_v51 = vld [vmem:[%s6723_s8 + $0x88] sm:$0xff]  }
  0x1c   : > { %1027 = vmatpush1.bf16.msra.mxu0 %v6465_v12  ;;  %2639 = vmatpush1.bf16.msra.mxu1 %v6465_v12  ;;  %v6503_v48 = vld [vmem:[%s6729_s11 + $0x78] sm:$0xff]   ;;  %v6505_v50 = vld [vmem:[%s6729_s11 + $0x80] sm:$0xff]   ;;  %v6507_v52 = vld [vmem:[%s6729_s11 + $0x88] sm:$0xff]  }
  0x1d   : > { %1028 = vmatprep.subr.bf16.mxu0 %v6466_v13  ;;  %2640 = vmatprep.subr.bf16.mxu1 %v6466_v13  ;;  %v6508_v53 = vld [vmem:[%s6723_s8 + $0x90] sm:$0xff]   ;;  %v6510_v55 = vld [vmem:[%s6723_s8 + $0x98] sm:$0xff]   ;;  %v6512_v57 = vld [vmem:[%s6723_s8 + $0xa0] sm:$0xff]  }
  0x1e   : > { %v6509_v54 = vld [vmem:[%s6729_s11 + $0x90] sm:$0xff]   ;;  %v6511_v56 = vld [vmem:[%s6729_s11 + $0x98] sm:$0xff]   ;;  %v6513_v58 = vld [vmem:[%s6729_s11 + $0xa0] sm:$0xff]  }
  0x1f   : > { %v6514_v59 = vld [vmem:[%s6723_s8 + $0xa8] sm:$0xff]   ;;  %v6516_v61 = vld [vmem:[%s6723_s8 + $0xb0] sm:$0xff]   ;;  %v6518_v63 = vld [vmem:[%s6723_s8 + $0xb8] sm:$0xff]  }
  0x20   : > { %1029 = vmatpush1.bf16.msra.mxu0 %v6468_v14  ;;  %2641 = vmatpush1.bf16.msra.mxu1 %v6468_v14  ;;  %v6515_v60 = vld [vmem:[%s6729_s11 + $0xa8] sm:$0xff]   ;;  %v6517_v62 = vld [vmem:[%s6729_s11 + $0xb0] sm:$0xff]   ;;  %v6519_v0 = vld [vmem:[%s6729_s11 + $0xb8] sm:$0xff]  }
  0x21   : > { %1030 = vmatprep.subr.bf16.mxu0 %v6469_v15  ;;  %2642 = vmatprep.subr.bf16.mxu1 %v6469_v15  ;;  %v6520_v1 = vld [vmem:[%s6723_s8 + $0xc0] sm:$0xff]   ;;  %v6522_v4 = vld [vmem:[%s6723_s8 + $0xc8] sm:$0xff]   ;;  %v6524_v6 = vld [vmem:[%s6723_s8 + $0xd0] sm:$0xff]  }
  0x22   : > { %v6521_v3 = vld [vmem:[%s6729_s11 + $0xc0] sm:$0xff]   ;;  %v6523_v5 = vld [vmem:[%s6729_s11 + $0xc8] sm:$0xff]   ;;  %v6525_v7 = vld [vmem:[%s6729_s11 + $0xd0] sm:$0xff]  }
  0x23   : > { %v6526_v13 = vld [vmem:[%s6723_s8 + $0xd8] sm:$0xff]  }
  0x24   : > { %1031 = vmatpush1.bf16.msra.mxu0 %v6471_v16  ;;  %2643 = vmatpush1.bf16.msra.mxu1 %v6471_v16  ;;  %v6527_v14 = vld [vmem:[%s6729_s11 + $0xd8] sm:$0xff]  }
  0x27   : > { %1049 = vmatmul.mubr.bf16.vlgmr.msra.gmra.mrb[0].mxu0 %v6472_v17  ;;  %2661 = vmatmul.mubr.bf16.vlgmr.msra.gmra.mrb[0].mxu1 %v6473_v18  ;;  %v6871_v18 = vld [vmem:[%s7403_s3] ss:$0 sm:$0xff] }
  0x28   : > { %1058 = vmatprep.mubr.bf16.mxu0 %v6660_v2  ;;  %2670 = vmatprep.mubr.bf16.mxu1 %v6660_v2 }
  0x2f   : > { %1059 = vmatmul.mubr.bf16.gmra.mrb[4].mxu0 %v6474_v19  ;;  %2671 = vmatmul.mubr.bf16.gmra.mrb[4].mxu1 %v6475_v20 }
  0x30   : > { %1068 = vmatprep.mubr.bf16.mxu0 %v6660_v2  ;;  %2680 = vmatprep.mubr.bf16.mxu1 %v6660_v2 }
  0x37   : > { %1069 = vmatmul.mubr.bf16.gmra.mrb[8].mxu0 %v6476_v21  ;;  %2681 = vmatmul.mubr.bf16.gmra.mrb[8].mxu1 %v6477_v22 }
  0x38   : > { %1078 = vmatprep.mubr.bf16.mxu0 %v6660_v2  ;;  %2690 = vmatprep.mubr.bf16.mxu1 %v6660_v2 }
  0x3f   : > { %1079 = vmatmul.mubr.bf16.gmra.mrb[12].mxu0 %v6478_v23  ;;  %2691 = vmatmul.mubr.bf16.gmra.mrb[12].mxu1 %v6479_v24 }
  0x40   : > { %1088 = vmatprep.mubr.bf16.mxu0 %v6660_v2  ;;  %2700 = vmatprep.mubr.bf16.mxu1 %v6660_v2 }
  0x47   : > { %1089 = vmatmul.mubr.bf16.gmra.mrb[16].mxu0 %v6480_v25  ;;  %2701 = vmatmul.mubr.bf16.gmra.mrb[16].mxu1 %v6481_v26 }
  0x48   : > { %1098 = vmatprep.mubr.bf16.mxu0 %v6660_v2  ;;  %2710 = vmatprep.mubr.bf16.mxu1 %v6660_v2 }
  0x4f   : > { %1099 = vmatmul.mubr.bf16.gmra.mrb[20].mxu0 %v6482_v27  ;;  %2711 = vmatmul.mubr.bf16.gmra.mrb[20].mxu1 %v6483_v28 }
  0x50   : > { %1108 = vmatprep.mubr.bf16.mxu0 %v6660_v2  ;;  %2720 = vmatprep.mubr.bf16.mxu1 %v6660_v2 }
  0x57   : > { %1109 = vmatmul.mubr.bf16.gmra.mrb[24].mxu0 %v6484_v29  ;;  %2721 = vmatmul.mubr.bf16.gmra.mrb[24].mxu1 %v6485_v30 }
  0x58   : > { %1118 = vmatprep.mubr.bf16.mxu0 %v6660_v2  ;;  %2730 = vmatprep.mubr.bf16.mxu1 %v6660_v2 }
  0x5f   : > { %1119 = vmatmul.mubr.bf16.gmra.mrb[28].mxu0 %v6486_v31  ;;  %2731 = vmatmul.mubr.bf16.gmra.mrb[28].mxu1 %v6487_v32  ;;  %v6528_v32 = vld [vmem:[%s6723_s8 + $0xe0] sm:$0xff]  }
  0x60   : > { %1128 = vmatprep.mubr.bf16.mxu0 %v6660_v2  ;;  %2740 = vmatprep.mubr.bf16.mxu1 %v6660_v2 }
  0x67   : > { %1129 = vmatmul.mubr.bf16.gmra.mrb[32].mxu0 %v6488_v33  ;;  %2741 = vmatmul.mubr.bf16.gmra.mrb[32].mxu1 %v6489_v34  ;;  %v6529_v33 = vld [vmem:[%s6729_s11 + $0xe0] sm:$0xff]  }
  0x68   : > { %1138 = vmatprep.mubr.bf16.mxu0 %v6660_v2  ;;  %2750 = vmatprep.mubr.bf16.mxu1 %v6660_v2 }
  0x6f   : > { %1139 = vmatmul.mubr.bf16.gmra.mrb[36].mxu0 %v6490_v35  ;;  %2751 = vmatmul.mubr.bf16.gmra.mrb[36].mxu1 %v6491_v36 }
  0x70   : > { %1148 = vmatprep.mubr.bf16.mxu0 %v6660_v2  ;;  %2760 = vmatprep.mubr.bf16.mxu1 %v6660_v2 }
  0x77   : > { %1149 = vmatmul.mubr.bf16.gmra.mrb[40].mxu0 %v6492_v37  ;;  %2761 = vmatmul.mubr.bf16.gmra.mrb[40].mxu1 %v6493_v38 }
  0x78   : > { %1158 = vmatprep.mubr.bf16.mxu0 %v6660_v2  ;;  %2770 = vmatprep.mubr.bf16.mxu1 %v6660_v2 }
  0x7f   : > { %1159 = vmatmul.mubr.bf16.gmra.mrb[44].mxu0 %v6494_v39  ;;  %2771 = vmatmul.mubr.bf16.gmra.mrb[44].mxu1 %v6495_v40 }
  0x80   : > { %1168 = vmatprep.mubr.bf16.mxu0 %v6660_v2  ;;  %2780 = vmatprep.mubr.bf16.mxu1 %v6660_v2 }
  0x87   : > { %1169 = vmatmul.mubr.bf16.gmra.mrb[48].mxu0 %v6496_v41  ;;  %2781 = vmatmul.mubr.bf16.gmra.mrb[48].mxu1 %v6497_v42 }
  0x88   : > { %1178 = vmatprep.mubr.bf16.mxu0 %v6660_v2  ;;  %2790 = vmatprep.mubr.bf16.mxu1 %v6660_v2 }
  0x8f   : > { %1179 = vmatmul.mubr.bf16.gmra.mrb[52].mxu0 %v6498_v43  ;;  %2791 = vmatmul.mubr.bf16.gmra.mrb[52].mxu1 %v6499_v44 }
  0x90   : > { %1188 = vmatprep.mubr.bf16.mxu0 %v6660_v2  ;;  %2800 = vmatprep.mubr.bf16.mxu1 %v6660_v2 }
  0x97   : > { %1189 = vmatmul.mubr.bf16.gmra.mrb[56].mxu0 %v6500_v45  ;;  %2801 = vmatmul.mubr.bf16.gmra.mrb[56].mxu1 %v6501_v46 }
  0x98   : > { %1198 = vmatprep.mubr.bf16.mxu0 %v6660_v2  ;;  %2810 = vmatprep.mubr.bf16.mxu1 %v6660_v2 }
  0x9f   : > { %1199 = vmatmul.mubr.bf16.gmra.mrb[60].mxu0 %v6502_v47  ;;  %2811 = vmatmul.mubr.bf16.gmra.mrb[60].mxu1 %v6503_v48 }
  0xa0   : > { %1208 = vmatprep.mubr.bf16.mxu0 %v6660_v2  ;;  %2820 = vmatprep.mubr.bf16.mxu1 %v6660_v2 }
  0xa7   : > { %1209 = vmatmul.mubr.bf16.gmra.mrb[64].mxu0 %v6504_v49  ;;  %2821 = vmatmul.mubr.bf16.gmra.mrb[64].mxu1 %v6505_v50 }
  0xa8   : > { %1218 = vmatprep.mubr.bf16.mxu0 %v6660_v2  ;;  %2830 = vmatprep.mubr.bf16.mxu1 %v6660_v2 }
  0xaf   : > { %1219 = vmatmul.mubr.bf16.gmra.mrb[68].mxu0 %v6506_v51  ;;  %2831 = vmatmul.mubr.bf16.gmra.mrb[68].mxu1 %v6507_v52 }
  0xb0   : > { %1228 = vmatprep.mubr.bf16.mxu0 %v6660_v2  ;;  %2840 = vmatprep.mubr.bf16.mxu1 %v6660_v2 }
  0xb7   : > { %1229 = vmatmul.mubr.bf16.gmra.mrb[72].mxu0 %v6508_v53  ;;  %2841 = vmatmul.mubr.bf16.gmra.mrb[72].mxu1 %v6509_v54  ;;  %v6530_v53 = vld [vmem:[%s6723_s8 + $0xe8] sm:$0xff]  }
  0xb8   : > { %1238 = vmatprep.mubr.bf16.mxu0 %v6660_v2  ;;  %2850 = vmatprep.mubr.bf16.mxu1 %v6660_v2  ;;  %v6531_v54 = vld [vmem:[%s6729_s11 + $0xe8] sm:$0xff]  }
  0xbf   : > { %1239 = vmatmul.mubr.bf16.gmra.mrb[76].mxu0 %v6510_v55  ;;  %2851 = vmatmul.mubr.bf16.gmra.mrb[76].mxu1 %v6511_v56 }
  0xc0   : > { %1248 = vmatprep.mubr.bf16.mxu0 %v6660_v2  ;;  %2860 = vmatprep.mubr.bf16.mxu1 %v6660_v2 }
  0xc7   : > { %1249 = vmatmul.mubr.bf16.gmra.mrb[80].mxu0 %v6512_v57  ;;  %2861 = vmatmul.mubr.bf16.gmra.mrb[80].mxu1 %v6513_v58 }
  0xc8   : > { %1258 = vmatprep.mubr.bf16.mxu0 %v6660_v2  ;;  %2870 = vmatprep.mubr.bf16.mxu1 %v6660_v2 }
  0xcf   : > { %1259 = vmatmul.mubr.bf16.gmra.mrb[84].mxu0 %v6514_v59  ;;  %2871 = vmatmul.mubr.bf16.gmra.mrb[84].mxu1 %v6515_v60 }
  0xd0   : > { %1268 = vmatprep.mubr.bf16.mxu0 %v6660_v2  ;;  %2880 = vmatprep.mubr.bf16.mxu1 %v6660_v2 }
  0xd7   : > { %1269 = vmatmul.mubr.bf16.gmra.mrb[88].mxu0 %v6516_v61  ;;  %2881 = vmatmul.mubr.bf16.gmra.mrb[88].mxu1 %v6517_v62 }
  0xd8   : > { %1278 = vmatprep.mubr.bf16.mxu0 %v6660_v2  ;;  %2890 = vmatprep.mubr.bf16.mxu1 %v6660_v2 }
  0xdf   : > { %1279 = vmatmul.mubr.bf16.gmra.mrb[92].mxu0 %v6518_v63  ;;  %2891 = vmatmul.mubr.bf16.gmra.mrb[92].mxu1 %v6519_v0 }
  0xe0   : > { %1288 = vmatprep.mubr.bf16.mxu0 %v6660_v2  ;;  %2900 = vmatprep.mubr.bf16.mxu1 %v6660_v2 }
  0xe7   : > { %1289 = vmatmul.mubr.bf16.gmra.mrb[96].mxu0 %v6520_v1  ;;  %2901 = vmatmul.mubr.bf16.gmra.mrb[96].mxu1 %v6521_v3 }
  0xe8   : > { %1298 = vmatprep.mubr.bf16.mxu0 %v6660_v2  ;;  %2910 = vmatprep.mubr.bf16.mxu1 %v6660_v2 }
  0xef   : > { %1299 = vmatmul.mubr.bf16.gmra.mrb[100].mxu0 %v6522_v4  ;;  %2911 = vmatmul.mubr.bf16.gmra.mrb[100].mxu1 %v6523_v5 }
  0xf0   : > { %1308 = vmatprep.mubr.bf16.mxu0 %v6660_v2  ;;  %2920 = vmatprep.mubr.bf16.mxu1 %v6660_v2 }
  0xf7   : > { %1309 = vmatmul.mubr.bf16.gmra.mrb[104].mxu0 %v6524_v6  ;;  %2921 = vmatmul.mubr.bf16.gmra.mrb[104].mxu1 %v6525_v7 }
  0xf8   : > { %1318 = vmatprep.mubr.bf16.mxu0 %v6660_v2  ;;  %2930 = vmatprep.mubr.bf16.mxu1 %v6660_v2 }
  0xfa   : > { %v1050_v8 = vpop.f32.mrb[0].mxu0  ;;  %v2662_v9 = vpop.f32.mrb[0].mxu1 }
  0xfb   : > { %v3539_v10 = vmax.f32 %v1050_v8, %v2662_v9  ;;  %v1052_v11 = vpop.f32.mrb[1].mxu0  ;;  %v2664_v12 = vpop.f32.mrb[1].mxu1 }
  0xfc   : > { %v3540_v15 = vmax.f32 %v1052_v11, %v2664_v12  ;;  %v1054_v16 = vpop.f32.mrb[2].mxu0  ;;  %v2666_v17 = vpop.f32.mrb[2].mxu1  ;;  %v6532_v11 = vld [vmem:[%s6723_s8 + $0xf0] sm:$0xff]  }
  0xfd   : > { %v3541_v19 = vmax.f32 %v1054_v16, %v2666_v17  ;;  %v1056_v20 = vpop.f32.mrb[3].mxu0  ;;  %v2668_v21 = vpop.f32.mrb[3].mxu1  ;;  %v6533_v12 = vld [vmem:[%s6729_s11 + $0xf0] sm:$0xff]  }
  0xfe   : > { %v3889_v22 = vmax.f32 %v3539_v10, %v3540_v15  ;;  %v3542_v23 = vmax.f32 %v1056_v20, %v2668_v21 }
  0xff   : > { %1319 = vmatmul.mubr.bf16.gmra.mrb[108].mxu0 %v6526_v13  ;;  %2931 = vmatmul.mubr.bf16.gmra.mrb[108].mxu1 %v6527_v14 }
 0x100   : > { %v4071_v24 = vadd.f32 %v6871_v18, %v3889_v22  ;;  %v3890_v25 = vmax.f32 %v3541_v19, %v3542_v23  ;;  %1328 = vmatprep.mubr.bf16.mxu0 %v6660_v2  ;;  %2940 = vmatprep.mubr.bf16.mxu1 %v6660_v2 }
 0x102   : > { %v4072_v26 = vadd.f32 %v6871_v18, %v3890_v25  ;;  %v1060_v27 = vpop.f32.mrb[4].mxu0  ;;  %v2672_v28 = vpop.f32.mrb[4].mxu1  ;;  %v4246_v34 = vmax.f32 %v4071_v24, 0.0 }
 0x103   : > { %v3543_v29 = vmax.f32 %v1060_v27, %v2672_v28  ;;  %v1062_v30 = vpop.f32.mrb[5].mxu0  ;;  %v2674_v31 = vpop.f32.mrb[5].mxu1 }
 0x104   : > { %v4247_v35 = vmax.f32 %v4072_v26, 0.0  ;;  %v3544_v36 = vmax.f32 %v1062_v30, %v2674_v31  ;;  %v1064_v37 = vpop.f32.mrb[6].mxu0  ;;  %v2676_v38 = vpop.f32.mrb[6].mxu1 }
 0x105   : > { %v3545_v39 = vmax.f32 %v1064_v37, %v2676_v38  ;;  %v1066_v40 = vpop.f32.mrb[7].mxu0  ;;  %v2678_v41 = vpop.f32.mrb[7].mxu1 }
 0x106   : > { %v5920_v42 = vpack.c.bf16 %v4247_v35, %v4246_v34  ;;  %v3891_v43 = vmax.f32 %v3543_v29, %v3544_v36  ;;  %v3546_v44 = vmax.f32 %v1066_v40, %v2678_v41  ;;  %v6535_v34 = vld [vmem:[%s6729_s11 + $0xf8] sm:$0xff]  }
 0x107   : > { %1329 = vmatmul.mubr.bf16.gmra.mrb[112].mxu0 %v6528_v32  ;;  %2941 = vmatmul.mubr.bf16.gmra.mrb[112].mxu1 %v6529_v33  ;;  %v6534_v33 = vld [vmem:[%s6723_s8 + $0xf8] sm:$0xff]  }
 0x108   : > { %5921 = vst [vmem:[%s6883_s12] sm:$0xff] %v5920_v42   ;;  %v4073_v45 = vadd.f32 %v6871_v18, %v3891_v43  ;;  %v3892_v46 = vmax.f32 %v3545_v39, %v3546_v44  ;;  %1338 = vmatprep.mubr.bf16.mxu0 %v6660_v2  ;;  %2950 = vmatprep.mubr.bf16.mxu1 %v6660_v2 }
 0x10a   : > { %v4074_v47 = vadd.f32 %v6871_v18, %v3892_v46  ;;  %v1070_v48 = vpop.f32.mrb[8].mxu0  ;;  %v2682_v49 = vpop.f32.mrb[8].mxu1  ;;  %v4248_v55 = vmax.f32 %v4073_v45, 0.0 }
 0x10b   : > { %v3547_v50 = vmax.f32 %v1070_v48, %v2682_v49  ;;  %v1072_v51 = vpop.f32.mrb[9].mxu0  ;;  %v2684_v52 = vpop.f32.mrb[9].mxu1 }
 0x10c   : > { %v4249_v56 = vmax.f32 %v4074_v47, 0.0  ;;  %v3548_v57 = vmax.f32 %v1072_v51, %v2684_v52  ;;  %v1074_v58 = vpop.f32.mrb[10].mxu0  ;;  %v2686_v59 = vpop.f32.mrb[10].mxu1 }
 0x10d   : > { %v3549_v60 = vmax.f32 %v1074_v58, %v2686_v59  ;;  %v1076_v61 = vpop.f32.mrb[11].mxu0  ;;  %v2688_v62 = vpop.f32.mrb[11].mxu1 }
 0x10e   : > { %v5925_v63 = vpack.c.bf16 %v4249_v56, %v4248_v55  ;;  %v3893_v0 = vmax.f32 %v3547_v50, %v3548_v57  ;;  %v3550_v1 = vmax.f32 %v1076_v61, %v2688_v62  ;;  %v6537_v55 = vld [vmem:[%s6729_s11 + $0x100] sm:$0xff]  }
 0x10f   : > { %1339 = vmatmul.mubr.bf16.gmra.mrb[116].mxu0 %v6530_v53  ;;  %2951 = vmatmul.mubr.bf16.gmra.mrb[116].mxu1 %v6531_v54  ;;  %v6536_v54 = vld [vmem:[%s6723_s8 + $0x100] sm:$0xff]  }
 0x110   : > { %6352 = vst [vmem:[%s6883_s12 + $0x8] sm:$0xff] %v5925_v63   ;;  %v4075_v3 = vadd.f32 %v6871_v18, %v3893_v0  ;;  %v3894_v4 = vmax.f32 %v3549_v60, %v3550_v1  ;;  %1348 = vmatprep.mubr.bf16.mxu0 %v6660_v2  ;;  %2960 = vmatprep.mubr.bf16.mxu1 %v6660_v2 }
 0x112   : > { %v4076_v5 = vadd.f32 %v6871_v18, %v3894_v4  ;;  %v1080_v6 = vpop.f32.mrb[12].mxu0  ;;  %v2692_v7 = vpop.f32.mrb[12].mxu1  ;;  %v4250_v13 = vmax.f32 %v4075_v3, 0.0 }
 0x113   : > { %v3551_v8 = vmax.f32 %v1080_v6, %v2692_v7  ;;  %v1082_v9 = vpop.f32.mrb[13].mxu0  ;;  %v2694_v10 = vpop.f32.mrb[13].mxu1 }
 0x114   : > { %v4251_v14 = vmax.f32 %v4076_v5, 0.0  ;;  %v3552_v15 = vmax.f32 %v1082_v9, %v2694_v10  ;;  %v1084_v16 = vpop.f32.mrb[14].mxu0  ;;  %v2696_v17 = vpop.f32.mrb[14].mxu1 }
 0x115   : > { %v3553_v19 = vmax.f32 %v1084_v16, %v2696_v17  ;;  %v1086_v20 = vpop.f32.mrb[15].mxu0  ;;  %v2698_v21 = vpop.f32.mrb[15].mxu1 }
 0x116   : > { %v5930_v22 = vpack.c.bf16 %v4251_v14, %v4250_v13  ;;  %v3895_v23 = vmax.f32 %v3551_v8, %v3552_v15  ;;  %v3554_v24 = vmax.f32 %v1086_v20, %v2698_v21  ;;  %v6539_v13 = vld [vmem:[%s6729_s11 + $0x108] sm:$0xff]  }
 0x117   : > { %1349 = vmatmul.mubr.bf16.gmra.mrb[120].mxu0 %v6532_v11  ;;  %2961 = vmatmul.mubr.bf16.gmra.mrb[120].mxu1 %v6533_v12  ;;  %v6538_v12 = vld [vmem:[%s6723_s8 + $0x108] sm:$0xff]  }
 0x118   : > { %6353 = vst [vmem:[%s6883_s12 + $0x10] sm:$0xff] %v5930_v22   ;;  %v4077_v25 = vadd.f32 %v6871_v18, %v3895_v23  ;;  %v3896_v26 = vmax.f32 %v3553_v19, %v3554_v24  ;;  %1358 = vmatprep.mubr.bf16.mxu0 %v6660_v2  ;;  %2970 = vmatprep.mubr.bf16.mxu1 %v6660_v2 }
 0x11a   : > { %v4078_v27 = vadd.f32 %v6871_v18, %v3896_v26  ;;  %v1090_v28 = vpop.f32.mrb[16].mxu0  ;;  %v2702_v29 = vpop.f32.mrb[16].mxu1  ;;  %v4252_v35 = vmax.f32 %v4077_v25, 0.0 }
 0x11b   : > { %v3555_v30 = vmax.f32 %v1090_v28, %v2702_v29  ;;  %v1092_v31 = vpop.f32.mrb[17].mxu0  ;;  %v2704_v32 = vpop.f32.mrb[17].mxu1 }
 0x11c   : > { %v4253_v36 = vmax.f32 %v4078_v27, 0.0  ;;  %v3556_v37 = vmax.f32 %v1092_v31, %v2704_v32  ;;  %v1094_v38 = vpop.f32.mrb[18].mxu0  ;;  %v2706_v39 = vpop.f32.mrb[18].mxu1 }
 0x11d   : > { %v3557_v40 = vmax.f32 %v1094_v38, %v2706_v39  ;;  %v1096_v41 = vpop.f32.mrb[19].mxu0  ;;  %v2708_v42 = vpop.f32.mrb[19].mxu1 }
 0x11e   : > { %v5935_v43 = vpack.c.bf16 %v4253_v36, %v4252_v35  ;;  %v3897_v44 = vmax.f32 %v3555_v30, %v3556_v37  ;;  %v3558_v45 = vmax.f32 %v1096_v41, %v2708_v42  ;;  %v6541_v35 = vld [vmem:[%s6729_s11 + $0x110] sm:$0xff]  }
 0x11f   : > { %1359 = vmatmul.mubr.bf16.gmra.mrb[124].mxu0 %v6534_v33  ;;  %2971 = vmatmul.mubr.bf16.gmra.mrb[124].mxu1 %v6535_v34  ;;  %v6540_v34 = vld [vmem:[%s6723_s8 + $0x110] sm:$0xff]  }
 0x120   : > { %6354 = vst [vmem:[%s6883_s12 + $0x18] sm:$0xff] %v5935_v43   ;;  %v4079_v46 = vadd.f32 %v6871_v18, %v3897_v44  ;;  %v3898_v47 = vmax.f32 %v3557_v40, %v3558_v45  ;;  %1368 = vmatprep.mubr.bf16.mxu0 %v6660_v2  ;;  %2980 = vmatprep.mubr.bf16.mxu1 %v6660_v2 }
 0x122   : > { %v4080_v48 = vadd.f32 %v6871_v18, %v3898_v47  ;;  %v1100_v49 = vpop.f32.mrb[20].mxu0  ;;  %v2712_v50 = vpop.f32.mrb[20].mxu1  ;;  %v4254_v56 = vmax.f32 %v4079_v46, 0.0 }
 0x123   : > { %v3559_v51 = vmax.f32 %v1100_v49, %v2712_v50  ;;  %v1102_v52 = vpop.f32.mrb[21].mxu0  ;;  %v2714_v53 = vpop.f32.mrb[21].mxu1 }
 0x124   : > { %v4255_v57 = vmax.f32 %v4080_v48, 0.0  ;;  %v3560_v58 = vmax.f32 %v1102_v52, %v2714_v53  ;;  %v1104_v59 = vpop.f32.mrb[22].mxu0  ;;  %v2716_v60 = vpop.f32.mrb[22].mxu1 }
 0x125   : > { %v3561_v61 = vmax.f32 %v1104_v59, %v2716_v60  ;;  %v1106_v62 = vpop.f32.mrb[23].mxu0  ;;  %v2718_v63 = vpop.f32.mrb[23].mxu1 }
 0x126   : > { %v5940_v0 = vpack.c.bf16 %v4255_v57, %v4254_v56  ;;  %v3899_v1 = vmax.f32 %v3559_v51, %v3560_v58  ;;  %v3562_v3 = vmax.f32 %v1106_v62, %v2718_v63  ;;  %v6543_v56 = vld [vmem:[%s6729_s11 + $0x118] sm:$0xff]  }
 0x127   : > { %1369 = vmatmul.mubr.bf16.gmra.mrb[128].mxu0 %v6536_v54  ;;  %2981 = vmatmul.mubr.bf16.gmra.mrb[128].mxu1 %v6537_v55  ;;  %v6542_v55 = vld [vmem:[%s6723_s8 + $0x118] sm:$0xff]  }
 0x128   : > { %6355 = vst [vmem:[%s6883_s12 + $0x20] sm:$0xff] %v5940_v0   ;;  %v4081_v4 = vadd.f32 %v6871_v18, %v3899_v1  ;;  %v3900_v5 = vmax.f32 %v3561_v61, %v3562_v3  ;;  %1378 = vmatprep.mubr.bf16.mxu0 %v6660_v2  ;;  %2990 = vmatprep.mubr.bf16.mxu1 %v6660_v2 }
 0x12a   : > { %v4082_v6 = vadd.f32 %v6871_v18, %v3900_v5  ;;  %v1110_v7 = vpop.f32.mrb[24].mxu0  ;;  %v2722_v8 = vpop.f32.mrb[24].mxu1  ;;  %v4256_v14 = vmax.f32 %v4081_v4, 0.0 }
 0x12b   : > { %v3563_v9 = vmax.f32 %v1110_v7, %v2722_v8  ;;  %v1112_v10 = vpop.f32.mrb[25].mxu0  ;;  %v2724_v11 = vpop.f32.mrb[25].mxu1 }
 0x12c   : > { %v4257_v15 = vmax.f32 %v4082_v6, 0.0  ;;  %v3564_v16 = vmax.f32 %v1112_v10, %v2724_v11  ;;  %v1114_v17 = vpop.f32.mrb[26].mxu0  ;;  %v2726_v19 = vpop.f32.mrb[26].mxu1 }
 0x12d   : > { %v3565_v20 = vmax.f32 %v1114_v17, %v2726_v19  ;;  %v1116_v21 = vpop.f32.mrb[27].mxu0  ;;  %v2728_v22 = vpop.f32.mrb[27].mxu1 }
 0x12e   : > { %v5945_v23 = vpack.c.bf16 %v4257_v15, %v4256_v14  ;;  %v3901_v24 = vmax.f32 %v3563_v9, %v3564_v16  ;;  %v3566_v25 = vmax.f32 %v1116_v21, %v2728_v22  ;;  %v6545_v14 = vld [vmem:[%s6729_s11 + $0x120] sm:$0xff]  }
 0x12f   : > { %1379 = vmatmul.mubr.bf16.gmra.mrb[132].mxu0 %v6538_v12  ;;  %2991 = vmatmul.mubr.bf16.gmra.mrb[132].mxu1 %v6539_v13  ;;  %v6544_v13 = vld [vmem:[%s6723_s8 + $0x120] sm:$0xff]  }
 0x130   : > { %6356 = vst [vmem:[%s6883_s12 + $0x28] sm:$0xff] %v5945_v23   ;;  %v4083_v26 = vadd.f32 %v6871_v18, %v3901_v24  ;;  %v3902_v27 = vmax.f32 %v3565_v20, %v3566_v25  ;;  %1388 = vmatprep.mubr.bf16.mxu0 %v6660_v2  ;;  %3000 = vmatprep.mubr.bf16.mxu1 %v6660_v2 }
 0x132   : > { %v4084_v28 = vadd.f32 %v6871_v18, %v3902_v27  ;;  %v1120_v29 = vpop.f32.mrb[28].mxu0  ;;  %v2732_v30 = vpop.f32.mrb[28].mxu1  ;;  %v4258_v36 = vmax.f32 %v4083_v26, 0.0 }
 0x133   : > { %v3567_v31 = vmax.f32 %v1120_v29, %v2732_v30  ;;  %v1122_v32 = vpop.f32.mrb[29].mxu0  ;;  %v2734_v33 = vpop.f32.mrb[29].mxu1 }
 0x134   : > { %v4259_v37 = vmax.f32 %v4084_v28, 0.0  ;;  %v3568_v38 = vmax.f32 %v1122_v32, %v2734_v33  ;;  %v1124_v39 = vpop.f32.mrb[30].mxu0  ;;  %v2736_v40 = vpop.f32.mrb[30].mxu1 }
 0x135   : > { %v3569_v41 = vmax.f32 %v1124_v39, %v2736_v40  ;;  %v1126_v42 = vpop.f32.mrb[31].mxu0  ;;  %v2738_v43 = vpop.f32.mrb[31].mxu1 }
 0x136   : > { %v5950_v44 = vpack.c.bf16 %v4259_v37, %v4258_v36  ;;  %v3903_v45 = vmax.f32 %v3567_v31, %v3568_v38  ;;  %v3570_v46 = vmax.f32 %v1126_v42, %v2738_v43  ;;  %v6547_v36 = vld [vmem:[%s6729_s11 + $0x128] sm:$0xff]  }
 0x137   : > { %1389 = vmatmul.mubr.bf16.gmra.mrb[136].mxu0 %v6540_v34  ;;  %3001 = vmatmul.mubr.bf16.gmra.mrb[136].mxu1 %v6541_v35  ;;  %v6546_v35 = vld [vmem:[%s6723_s8 + $0x128] sm:$0xff]  }
 0x138   : > { %6357 = vst [vmem:[%s6883_s12 + $0x30] sm:$0xff] %v5950_v44   ;;  %v4085_v47 = vadd.f32 %v6871_v18, %v3903_v45  ;;  %v3904_v48 = vmax.f32 %v3569_v41, %v3570_v46  ;;  %1398 = vmatprep.mubr.bf16.mxu0 %v6660_v2  ;;  %3010 = vmatprep.mubr.bf16.mxu1 %v6660_v2 }
 0x13a   : > { %v4086_v49 = vadd.f32 %v6871_v18, %v3904_v48  ;;  %v1130_v50 = vpop.f32.mrb[32].mxu0  ;;  %v2742_v51 = vpop.f32.mrb[32].mxu1  ;;  %v4260_v57 = vmax.f32 %v4085_v47, 0.0 }
 0x13b   : > { %v3571_v52 = vmax.f32 %v1130_v50, %v2742_v51  ;;  %v1132_v53 = vpop.f32.mrb[33].mxu0  ;;  %v2744_v54 = vpop.f32.mrb[33].mxu1 }
 0x13c   : > { %v4261_v58 = vmax.f32 %v4086_v49, 0.0  ;;  %v3572_v59 = vmax.f32 %v1132_v53, %v2744_v54  ;;  %v1134_v60 = vpop.f32.mrb[34].mxu0  ;;  %v2746_v61 = vpop.f32.mrb[34].mxu1 }
 0x13d   : > { %v3573_v62 = vmax.f32 %v1134_v60, %v2746_v61  ;;  %v1136_v63 = vpop.f32.mrb[35].mxu0  ;;  %v2748_v0 = vpop.f32.mrb[35].mxu1 }
 0x13e   : > { %v5955_v1 = vpack.c.bf16 %v4261_v58, %v4260_v57  ;;  %v3905_v3 = vmax.f32 %v3571_v52, %v3572_v59  ;;  %v3574_v4 = vmax.f32 %v1136_v63, %v2748_v0  ;;  %v6549_v57 = vld [vmem:[%s6729_s11 + $0x130] sm:$0xff]  }
 0x13f   : > { %1399 = vmatmul.mubr.bf16.gmra.mrb[140].mxu0 %v6542_v55  ;;  %3011 = vmatmul.mubr.bf16.gmra.mrb[140].mxu1 %v6543_v56  ;;  %v6548_v56 = vld [vmem:[%s6723_s8 + $0x130] sm:$0xff]  }
 0x140   : > { %6358 = vst [vmem:[%s6883_s12 + $0x38] sm:$0xff] %v5955_v1   ;;  %v4087_v5 = vadd.f32 %v6871_v18, %v3905_v3  ;;  %v3906_v6 = vmax.f32 %v3573_v62, %v3574_v4  ;;  %1408 = vmatprep.mubr.bf16.mxu0 %v6660_v2  ;;  %3020 = vmatprep.mubr.bf16.mxu1 %v6660_v2 }
 0x142   : > { %v4088_v7 = vadd.f32 %v6871_v18, %v3906_v6  ;;  %v1140_v8 = vpop.f32.mrb[36].mxu0  ;;  %v2752_v9 = vpop.f32.mrb[36].mxu1  ;;  %v4262_v15 = vmax.f32 %v4087_v5, 0.0 }
 0x143   : > { %v3575_v10 = vmax.f32 %v1140_v8, %v2752_v9  ;;  %v1142_v11 = vpop.f32.mrb[37].mxu0  ;;  %v2754_v12 = vpop.f32.mrb[37].mxu1 }
 0x144   : > { %v4263_v16 = vmax.f32 %v4088_v7, 0.0  ;;  %v3576_v17 = vmax.f32 %v1142_v11, %v2754_v12  ;;  %v1144_v19 = vpop.f32.mrb[38].mxu0  ;;  %v2756_v20 = vpop.f32.mrb[38].mxu1 }
 0x145   : > { %v3577_v21 = vmax.f32 %v1144_v19, %v2756_v20  ;;  %v1146_v22 = vpop.f32.mrb[39].mxu0  ;;  %v2758_v23 = vpop.f32.mrb[39].mxu1 }
 0x146   : > { %v5960_v24 = vpack.c.bf16 %v4263_v16, %v4262_v15  ;;  %v3907_v25 = vmax.f32 %v3575_v10, %v3576_v17  ;;  %v3578_v26 = vmax.f32 %v1146_v22, %v2758_v23  ;;  %v6551_v15 = vld [vmem:[%s6729_s11 + $0x138] sm:$0xff]  }
 0x147   : > { %1409 = vmatmul.mubr.bf16.gmra.mrb[144].mxu0 %v6544_v13  ;;  %3021 = vmatmul.mubr.bf16.gmra.mrb[144].mxu1 %v6545_v14  ;;  %v6550_v14 = vld [vmem:[%s6723_s8 + $0x138] sm:$0xff]  }
 0x148   : > { %6359 = vst [vmem:[%s6883_s12 + $0x40] sm:$0xff] %v5960_v24   ;;  %v4089_v27 = vadd.f32 %v6871_v18, %v3907_v25  ;;  %v3908_v28 = vmax.f32 %v3577_v21, %v3578_v26  ;;  %1418 = vmatprep.mubr.bf16.mxu0 %v6660_v2  ;;  %3030 = vmatprep.mubr.bf16.mxu1 %v6660_v2 }
 0x14a   : > { %v4090_v29 = vadd.f32 %v6871_v18, %v3908_v28  ;;  %v1150_v30 = vpop.f32.mrb[40].mxu0  ;;  %v2762_v31 = vpop.f32.mrb[40].mxu1  ;;  %v4264_v37 = vmax.f32 %v4089_v27, 0.0 }
 0x14b   : > { %v3579_v32 = vmax.f32 %v1150_v30, %v2762_v31  ;;  %v1152_v33 = vpop.f32.mrb[41].mxu0  ;;  %v2764_v34 = vpop.f32.mrb[41].mxu1 }
 0x14c   : > { %v4265_v38 = vmax.f32 %v4090_v29, 0.0  ;;  %v3580_v39 = vmax.f32 %v1152_v33, %v2764_v34  ;;  %v1154_v40 = vpop.f32.mrb[42].mxu0  ;;  %v2766_v41 = vpop.f32.mrb[42].mxu1 }
 0x14d   : > { %v3581_v42 = vmax.f32 %v1154_v40, %v2766_v41  ;;  %v1156_v43 = vpop.f32.mrb[43].mxu0  ;;  %v2768_v44 = vpop.f32.mrb[43].mxu1 }
 0x14e   : > { %v5965_v45 = vpack.c.bf16 %v4265_v38, %v4264_v37  ;;  %v3909_v46 = vmax.f32 %v3579_v32, %v3580_v39  ;;  %v3582_v47 = vmax.f32 %v1156_v43, %v2768_v44  ;;  %v6553_v37 = vld [vmem:[%s6729_s11 + $0x140] sm:$0xff]  }
 0x14f   : > { %1419 = vmatmul.mubr.bf16.gmra.mrb[148].mxu0 %v6546_v35  ;;  %3031 = vmatmul.mubr.bf16.gmra.mrb[148].mxu1 %v6547_v36  ;;  %v6552_v36 = vld [vmem:[%s6723_s8 + $0x140] sm:$0xff]  }
 0x150   : > { %6360 = vst [vmem:[%s6883_s12 + $0x48] sm:$0xff] %v5965_v45   ;;  %v4091_v48 = vadd.f32 %v6871_v18, %v3909_v46  ;;  %v3910_v49 = vmax.f32 %v3581_v42, %v3582_v47  ;;  %1428 = vmatprep.mubr.bf16.mxu0 %v6660_v2  ;;  %3040 = vmatprep.mubr.bf16.mxu1 %v6660_v2 }
 0x152   : > { %v4092_v50 = vadd.f32 %v6871_v18, %v3910_v49  ;;  %v1160_v51 = vpop.f32.mrb[44].mxu0  ;;  %v2772_v52 = vpop.f32.mrb[44].mxu1  ;;  %v4266_v58 = vmax.f32 %v4091_v48, 0.0 }
 0x153   : > { %v3583_v53 = vmax.f32 %v1160_v51, %v2772_v52  ;;  %v1162_v54 = vpop.f32.mrb[45].mxu0  ;;  %v2774_v55 = vpop.f32.mrb[45].mxu1 }
 0x154   : > { %v4267_v59 = vmax.f32 %v4092_v50, 0.0  ;;  %v3584_v60 = vmax.f32 %v1162_v54, %v2774_v55  ;;  %v1164_v61 = vpop.f32.mrb[46].mxu0  ;;  %v2776_v62 = vpop.f32.mrb[46].mxu1 }
 0x155   : > { %v3585_v63 = vmax.f32 %v1164_v61, %v2776_v62  ;;  %v1166_v0 = vpop.f32.mrb[47].mxu0  ;;  %v2778_v1 = vpop.f32.mrb[47].mxu1 }
 0x156   : > { %v5970_v3 = vpack.c.bf16 %v4267_v59, %v4266_v58  ;;  %v3911_v4 = vmax.f32 %v3583_v53, %v3584_v60  ;;  %v3586_v5 = vmax.f32 %v1166_v0, %v2778_v1  ;;  %v6555_v58 = vld [vmem:[%s6729_s11 + $0x148] sm:$0xff]  }
 0x157   : > { %1429 = vmatmul.mubr.bf16.gmra.mrb[152].mxu0 %v6548_v56  ;;  %3041 = vmatmul.mubr.bf16.gmra.mrb[152].mxu1 %v6549_v57  ;;  %v6554_v57 = vld [vmem:[%s6723_s8 + $0x148] sm:$0xff]  }
 0x158   : > { %6361 = vst [vmem:[%s6883_s12 + $0x50] sm:$0xff] %v5970_v3   ;;  %v4093_v6 = vadd.f32 %v6871_v18, %v3911_v4  ;;  %v3912_v7 = vmax.f32 %v3585_v63, %v3586_v5  ;;  %1438 = vmatprep.mubr.bf16.mxu0 %v6660_v2  ;;  %3050 = vmatprep.mubr.bf16.mxu1 %v6660_v2 }
 0x15a   : > { %v4094_v8 = vadd.f32 %v6871_v18, %v3912_v7  ;;  %v1170_v9 = vpop.f32.mrb[48].mxu0  ;;  %v2782_v10 = vpop.f32.mrb[48].mxu1  ;;  %v4268_v16 = vmax.f32 %v4093_v6, 0.0 }
 0x15b   : > { %v3587_v11 = vmax.f32 %v1170_v9, %v2782_v10  ;;  %v1172_v12 = vpop.f32.mrb[49].mxu0  ;;  %v2784_v13 = vpop.f32.mrb[49].mxu1 }
 0x15c   : > { %v4269_v17 = vmax.f32 %v4094_v8, 0.0  ;;  %v3588_v19 = vmax.f32 %v1172_v12, %v2784_v13  ;;  %v1174_v20 = vpop.f32.mrb[50].mxu0  ;;  %v2786_v21 = vpop.f32.mrb[50].mxu1 }
 0x15d   : > { %v3589_v22 = vmax.f32 %v1174_v20, %v2786_v21  ;;  %v1176_v23 = vpop.f32.mrb[51].mxu0  ;;  %v2788_v24 = vpop.f32.mrb[51].mxu1 }
 0x15e   : > { %v5975_v25 = vpack.c.bf16 %v4269_v17, %v4268_v16  ;;  %v3913_v26 = vmax.f32 %v3587_v11, %v3588_v19  ;;  %v3590_v27 = vmax.f32 %v1176_v23, %v2788_v24  ;;  %v6557_v16 = vld [vmem:[%s6729_s11 + $0x150] sm:$0xff]  }
 0x15f   : > { %1439 = vmatmul.mubr.bf16.gmra.mrb[156].mxu0 %v6550_v14  ;;  %3051 = vmatmul.mubr.bf16.gmra.mrb[156].mxu1 %v6551_v15  ;;  %v6556_v15 = vld [vmem:[%s6723_s8 + $0x150] sm:$0xff]  }
 0x160   : > { %6362 = vst [vmem:[%s6883_s12 + $0x58] sm:$0xff] %v5975_v25   ;;  %v4095_v28 = vadd.f32 %v6871_v18, %v3913_v26  ;;  %v3914_v29 = vmax.f32 %v3589_v22, %v3590_v27  ;;  %1448 = vmatprep.mubr.bf16.mxu0 %v6660_v2  ;;  %3060 = vmatprep.mubr.bf16.mxu1 %v6660_v2 }
 0x162   : > { %v4096_v30 = vadd.f32 %v6871_v18, %v3914_v29  ;;  %v1180_v31 = vpop.f32.mrb[52].mxu0  ;;  %v2792_v32 = vpop.f32.mrb[52].mxu1  ;;  %v4270_v38 = vmax.f32 %v4095_v28, 0.0 }
 0x163   : > { %v3591_v33 = vmax.f32 %v1180_v31, %v2792_v32  ;;  %v1182_v34 = vpop.f32.mrb[53].mxu0  ;;  %v2794_v35 = vpop.f32.mrb[53].mxu1 }
 0x164   : > { %v4271_v39 = vmax.f32 %v4096_v30, 0.0  ;;  %v3592_v40 = vmax.f32 %v1182_v34, %v2794_v35  ;;  %v1184_v41 = vpop.f32.mrb[54].mxu0  ;;  %v2796_v42 = vpop.f32.mrb[54].mxu1 }
 0x165   : > { %v3593_v43 = vmax.f32 %v1184_v41, %v2796_v42  ;;  %v1186_v44 = vpop.f32.mrb[55].mxu0  ;;  %v2798_v45 = vpop.f32.mrb[55].mxu1 }
 0x166   : > { %v5980_v46 = vpack.c.bf16 %v4271_v39, %v4270_v38  ;;  %v3915_v47 = vmax.f32 %v3591_v33, %v3592_v40  ;;  %v3594_v48 = vmax.f32 %v1186_v44, %v2798_v45  ;;  %v6559_v38 = vld [vmem:[%s6729_s11 + $0x158] sm:$0xff]  }
 0x167   : > { %1449 = vmatmul.mubr.bf16.gmra.mrb[160].mxu0 %v6552_v36  ;;  %3061 = vmatmul.mubr.bf16.gmra.mrb[160].mxu1 %v6553_v37  ;;  %v6558_v37 = vld [vmem:[%s6723_s8 + $0x158] sm:$0xff]  }
 0x168   : > { %6363 = vst [vmem:[%s6883_s12 + $0x60] sm:$0xff] %v5980_v46   ;;  %v4097_v49 = vadd.f32 %v6871_v18, %v3915_v47  ;;  %v3916_v50 = vmax.f32 %v3593_v43, %v3594_v48  ;;  %1458 = vmatprep.mubr.bf16.mxu0 %v6660_v2  ;;  %3070 = vmatprep.mubr.bf16.mxu1 %v6660_v2 }
 0x16a   : > { %v4098_v51 = vadd.f32 %v6871_v18, %v3916_v50  ;;  %v1190_v52 = vpop.f32.mrb[56].mxu0  ;;  %v2802_v53 = vpop.f32.mrb[56].mxu1  ;;  %v4272_v59 = vmax.f32 %v4097_v49, 0.0 }
 0x16b   : > { %v3595_v54 = vmax.f32 %v1190_v52, %v2802_v53  ;;  %v1192_v55 = vpop.f32.mrb[57].mxu0  ;;  %v2804_v56 = vpop.f32.mrb[57].mxu1 }
 0x16c   : > { %v4273_v60 = vmax.f32 %v4098_v51, 0.0  ;;  %v3596_v61 = vmax.f32 %v1192_v55, %v2804_v56  ;;  %v1194_v62 = vpop.f32.mrb[58].mxu0  ;;  %v2806_v63 = vpop.f32.mrb[58].mxu1 }
 0x16d   : > { %v3597_v0 = vmax.f32 %v1194_v62, %v2806_v63  ;;  %v1196_v1 = vpop.f32.mrb[59].mxu0  ;;  %v2808_v3 = vpop.f32.mrb[59].mxu1 }
 0x16e   : > { %v5985_v4 = vpack.c.bf16 %v4273_v60, %v4272_v59  ;;  %v3917_v5 = vmax.f32 %v3595_v54, %v3596_v61  ;;  %v3598_v6 = vmax.f32 %v1196_v1, %v2808_v3  ;;  %v6561_v59 = vld [vmem:[%s6729_s11 + $0x160] sm:$0xff]  }
 0x16f   : > { %1459 = vmatmul.mubr.bf16.gmra.mrb[164].mxu0 %v6554_v57  ;;  %3071 = vmatmul.mubr.bf16.gmra.mrb[164].mxu1 %v6555_v58  ;;  %v6560_v58 = vld [vmem:[%s6723_s8 + $0x160] sm:$0xff]  }
 0x170   : > { %6364 = vst [vmem:[%s6883_s12 + $0x68] sm:$0xff] %v5985_v4   ;;  %v4099_v7 = vadd.f32 %v6871_v18, %v3917_v5  ;;  %v3918_v8 = vmax.f32 %v3597_v0, %v3598_v6  ;;  %1468 = vmatprep.mubr.bf16.mxu0 %v6660_v2  ;;  %3080 = vmatprep.mubr.bf16.mxu1 %v6660_v2 }
 0x172   : > { %v4100_v9 = vadd.f32 %v6871_v18, %v3918_v8  ;;  %v1200_v10 = vpop.f32.mrb[60].mxu0  ;;  %v2812_v11 = vpop.f32.mrb[60].mxu1  ;;  %v4274_v17 = vmax.f32 %v4099_v7, 0.0 }
 0x173   : > { %v3599_v12 = vmax.f32 %v1200_v10, %v2812_v11  ;;  %v1202_v13 = vpop.f32.mrb[61].mxu0  ;;  %v2814_v14 = vpop.f32.mrb[61].mxu1 }
 0x174   : > { %v4275_v19 = vmax.f32 %v4100_v9, 0.0  ;;  %v3600_v20 = vmax.f32 %v1202_v13, %v2814_v14  ;;  %v1204_v21 = vpop.f32.mrb[62].mxu0  ;;  %v2816_v22 = vpop.f32.mrb[62].mxu1 }
 0x175   : > { %v3601_v23 = vmax.f32 %v1204_v21, %v2816_v22  ;;  %v1206_v24 = vpop.f32.mrb[63].mxu0  ;;  %v2818_v25 = vpop.f32.mrb[63].mxu1 }
 0x176   : > { %v5990_v26 = vpack.c.bf16 %v4275_v19, %v4274_v17  ;;  %v3919_v27 = vmax.f32 %v3599_v12, %v3600_v20  ;;  %v3602_v28 = vmax.f32 %v1206_v24, %v2818_v25  ;;  %v6563_v17 = vld [vmem:[%s6729_s11 + $0x168] sm:$0xff]  }
 0x177   : > { %1469 = vmatmul.mubr.bf16.gmra.mrb[168].mxu0 %v6556_v15  ;;  %3081 = vmatmul.mubr.bf16.gmra.mrb[168].mxu1 %v6557_v16  ;;  %v6562_v16 = vld [vmem:[%s6723_s8 + $0x168] sm:$0xff]  }
 0x178   : > { %6365 = vst [vmem:[%s6883_s12 + $0x70] sm:$0xff] %v5990_v26   ;;  %v4101_v29 = vadd.f32 %v6871_v18, %v3919_v27  ;;  %v3920_v30 = vmax.f32 %v3601_v23, %v3602_v28  ;;  %1478 = vmatprep.mubr.bf16.mxu0 %v6660_v2  ;;  %3090 = vmatprep.mubr.bf16.mxu1 %v6660_v2 }
 0x17a   : > { %v4102_v31 = vadd.f32 %v6871_v18, %v3920_v30  ;;  %v1210_v32 = vpop.f32.mrb[64].mxu0  ;;  %v2822_v33 = vpop.f32.mrb[64].mxu1  ;;  %v4276_v39 = vmax.f32 %v4101_v29, 0.0 }
 0x17b   : > { %v3603_v34 = vmax.f32 %v1210_v32, %v2822_v33  ;;  %v1212_v35 = vpop.f32.mrb[65].mxu0  ;;  %v2824_v36 = vpop.f32.mrb[65].mxu1 }
 0x17c   : > { %v4277_v40 = vmax.f32 %v4102_v31, 0.0  ;;  %v3604_v41 = vmax.f32 %v1212_v35, %v2824_v36  ;;  %v1214_v42 = vpop.f32.mrb[66].mxu0  ;;  %v2826_v43 = vpop.f32.mrb[66].mxu1 }
 0x17d   : > { %v3605_v44 = vmax.f32 %v1214_v42, %v2826_v43  ;;  %v1216_v45 = vpop.f32.mrb[67].mxu0  ;;  %v2828_v46 = vpop.f32.mrb[67].mxu1 }
 0x17e   : > { %v5995_v47 = vpack.c.bf16 %v4277_v40, %v4276_v39  ;;  %v3921_v48 = vmax.f32 %v3603_v34, %v3604_v41  ;;  %v3606_v49 = vmax.f32 %v1216_v45, %v2828_v46  ;;  %v6565_v39 = vld [vmem:[%s6729_s11 + $0x170] sm:$0xff]  }
 0x17f   : > { %1479 = vmatmul.mubr.bf16.gmra.mrb[172].mxu0 %v6558_v37  ;;  %3091 = vmatmul.mubr.bf16.gmra.mrb[172].mxu1 %v6559_v38  ;;  %v6564_v38 = vld [vmem:[%s6723_s8 + $0x170] sm:$0xff]  }
 0x180   : > { %6366 = vst [vmem:[%s6883_s12 + $0x78] sm:$0xff] %v5995_v47   ;;  %v4103_v50 = vadd.f32 %v6871_v18, %v3921_v48  ;;  %v3922_v51 = vmax.f32 %v3605_v44, %v3606_v49  ;;  %1488 = vmatprep.mubr.bf16.mxu0 %v6660_v2  ;;  %3100 = vmatprep.mubr.bf16.mxu1 %v6660_v2 }
 0x182   : > { %v4104_v52 = vadd.f32 %v6871_v18, %v3922_v51  ;;  %v1220_v53 = vpop.f32.mrb[68].mxu0  ;;  %v2832_v54 = vpop.f32.mrb[68].mxu1  ;;  %v4278_v60 = vmax.f32 %v4103_v50, 0.0 }
 0x183   : > { %v3607_v55 = vmax.f32 %v1220_v53, %v2832_v54  ;;  %v1222_v56 = vpop.f32.mrb[69].mxu0  ;;  %v2834_v57 = vpop.f32.mrb[69].mxu1 }
 0x184   : > { %v4279_v61 = vmax.f32 %v4104_v52, 0.0  ;;  %v3608_v62 = vmax.f32 %v1222_v56, %v2834_v57  ;;  %v1224_v63 = vpop.f32.mrb[70].mxu0  ;;  %v2836_v0 = vpop.f32.mrb[70].mxu1 }
 0x185   : > { %v3609_v1 = vmax.f32 %v1224_v63, %v2836_v0  ;;  %v1226_v3 = vpop.f32.mrb[71].mxu0  ;;  %v2838_v4 = vpop.f32.mrb[71].mxu1 }
 0x186   : > { %v6000_v5 = vpack.c.bf16 %v4279_v61, %v4278_v60  ;;  %v3923_v6 = vmax.f32 %v3607_v55, %v3608_v62  ;;  %v3610_v7 = vmax.f32 %v1226_v3, %v2838_v4  ;;  %v6567_v60 = vld [vmem:[%s6729_s11 + $0x178] sm:$0xff]  }
 0x187   : > { %1489 = vmatmul.mubr.bf16.gmra.mrb[176].mxu0 %v6560_v58  ;;  %3101 = vmatmul.mubr.bf16.gmra.mrb[176].mxu1 %v6561_v59  ;;  %v6566_v59 = vld [vmem:[%s6723_s8 + $0x178] sm:$0xff]  }
 0x188   : > { %6367 = vst [vmem:[%s6883_s12 + $0x80] sm:$0xff] %v6000_v5   ;;  %v4105_v8 = vadd.f32 %v6871_v18, %v3923_v6  ;;  %v3924_v9 = vmax.f32 %v3609_v1, %v3610_v7  ;;  %1498 = vmatprep.mubr.bf16.mxu0 %v6660_v2  ;;  %3110 = vmatprep.mubr.bf16.mxu1 %v6660_v2 }
 0x18a   : > { %v4106_v10 = vadd.f32 %v6871_v18, %v3924_v9  ;;  %v1230_v11 = vpop.f32.mrb[72].mxu0  ;;  %v2842_v12 = vpop.f32.mrb[72].mxu1  ;;  %v4280_v19 = vmax.f32 %v4105_v8, 0.0  ;;  %v7022_v8 = vld [vmem:[%s7403_s3] ss:$0 sm:$0xff] }
 0x18b   : > { %v3611_v13 = vmax.f32 %v1230_v11, %v2842_v12  ;;  %v1232_v14 = vpop.f32.mrb[73].mxu0  ;;  %v2844_v15 = vpop.f32.mrb[73].mxu1 }
 0x18c   : > { %v4281_v20 = vmax.f32 %v4106_v10, 0.0  ;;  %v3612_v21 = vmax.f32 %v1232_v14, %v2844_v15  ;;  %v1234_v22 = vpop.f32.mrb[74].mxu0  ;;  %v2846_v23 = vpop.f32.mrb[74].mxu1 }
 0x18d   : > { %v3613_v24 = vmax.f32 %v1234_v22, %v2846_v23  ;;  %v1236_v25 = vpop.f32.mrb[75].mxu0  ;;  %v2848_v26 = vpop.f32.mrb[75].mxu1 }
 0x18e   : > { %v6005_v27 = vpack.c.bf16 %v4281_v20, %v4280_v19  ;;  %v3925_v28 = vmax.f32 %v3611_v13, %v3612_v21  ;;  %v3614_v29 = vmax.f32 %v1236_v25, %v2848_v26  ;;  %v6569_v19 = vld [vmem:[%s6729_s11 + $0x180] sm:$0xff]  }
 0x18f   : > { %1499 = vmatmul.mubr.bf16.gmra.mrb[180].mxu0 %v6562_v16  ;;  %3111 = vmatmul.mubr.bf16.gmra.mrb[180].mxu1 %v6563_v17  ;;  %v6568_v17 = vld [vmem:[%s6723_s8 + $0x180] sm:$0xff]  }
 0x190   : > { %6368 = vst [vmem:[%s6883_s12 + $0x88] sm:$0xff] %v6005_v27   ;;  %v4107_v30 = vadd.f32 %v6871_v18, %v3925_v28  ;;  %v3926_v31 = vmax.f32 %v3613_v24, %v3614_v29  ;;  %1508 = vmatprep.mubr.bf16.mxu0 %v6660_v2  ;;  %3120 = vmatprep.mubr.bf16.mxu1 %v6660_v2 }
 0x192   : > { %v4108_v32 = vadd.f32 %v6871_v18, %v3926_v31  ;;  %v1240_v33 = vpop.f32.mrb[76].mxu0  ;;  %v2852_v34 = vpop.f32.mrb[76].mxu1  ;;  %v4282_v40 = vmax.f32 %v4107_v30, 0.0 }
 0x193   : > { %v3615_v35 = vmax.f32 %v1240_v33, %v2852_v34  ;;  %v1242_v36 = vpop.f32.mrb[77].mxu0  ;;  %v2854_v37 = vpop.f32.mrb[77].mxu1 }
 0x194   : > { %v4283_v41 = vmax.f32 %v4108_v32, 0.0  ;;  %v3616_v42 = vmax.f32 %v1242_v36, %v2854_v37  ;;  %v1244_v43 = vpop.f32.mrb[78].mxu0  ;;  %v2856_v44 = vpop.f32.mrb[78].mxu1 }
 0x195   : > { %v3617_v45 = vmax.f32 %v1244_v43, %v2856_v44  ;;  %v1246_v46 = vpop.f32.mrb[79].mxu0  ;;  %v2858_v47 = vpop.f32.mrb[79].mxu1 }
 0x196   : > { %v6010_v48 = vpack.c.bf16 %v4283_v41, %v4282_v40  ;;  %v3927_v49 = vmax.f32 %v3615_v35, %v3616_v42  ;;  %v3618_v50 = vmax.f32 %v1246_v46, %v2858_v47  ;;  %v6571_v40 = vld [vmem:[%s6729_s11 + $0x188] sm:$0xff]  }
 0x197   : > { %1509 = vmatmul.mubr.bf16.gmra.mrb[184].mxu0 %v6564_v38  ;;  %3121 = vmatmul.mubr.bf16.gmra.mrb[184].mxu1 %v6565_v39  ;;  %v6570_v39 = vld [vmem:[%s6723_s8 + $0x188] sm:$0xff]  }
 0x198   : > { %6369 = vst [vmem:[%s6883_s12 + $0x90] sm:$0xff] %v6010_v48   ;;  %v4109_v51 = vadd.f32 %v6871_v18, %v3927_v49  ;;  %v3928_v52 = vmax.f32 %v3617_v45, %v3618_v50  ;;  %1518 = vmatprep.mubr.bf16.mxu0 %v6660_v2  ;;  %3130 = vmatprep.mubr.bf16.mxu1 %v6660_v2 }
 0x19a   : > { %v4110_v53 = vadd.f32 %v6871_v18, %v3928_v52  ;;  %v1250_v54 = vpop.f32.mrb[80].mxu0  ;;  %v2862_v55 = vpop.f32.mrb[80].mxu1  ;;  %v4284_v61 = vmax.f32 %v4109_v51, 0.0 }
 0x19b   : > { %v3619_v56 = vmax.f32 %v1250_v54, %v2862_v55  ;;  %v1252_v57 = vpop.f32.mrb[81].mxu0  ;;  %v2864_v58 = vpop.f32.mrb[81].mxu1 }
 0x19c   : > { %v4285_v62 = vmax.f32 %v4110_v53, 0.0  ;;  %v3620_v63 = vmax.f32 %v1252_v57, %v2864_v58  ;;  %v1254_v0 = vpop.f32.mrb[82].mxu0  ;;  %v2866_v1 = vpop.f32.mrb[82].mxu1 }
 0x19d   : > { %v3621_v3 = vmax.f32 %v1254_v0, %v2866_v1  ;;  %v1256_v4 = vpop.f32.mrb[83].mxu0  ;;  %v2868_v5 = vpop.f32.mrb[83].mxu1 }
 0x19e   : > { %v6015_v6 = vpack.c.bf16 %v4285_v62, %v4284_v61  ;;  %v3929_v7 = vmax.f32 %v3619_v56, %v3620_v63  ;;  %v3622_v18 = vmax.f32 %v1256_v4, %v2868_v5  ;;  %v6573_v61 = vld [vmem:[%s6729_s11 + $0x190] sm:$0xff]  }
 0x19f   : > { %1519 = vmatmul.mubr.bf16.gmra.mrb[188].mxu0 %v6566_v59  ;;  %3131 = vmatmul.mubr.bf16.gmra.mrb[188].mxu1 %v6567_v60  ;;  %v6572_v60 = vld [vmem:[%s6723_s8 + $0x190] sm:$0xff]  }
 0x1a0   : > { %6370 = vst [vmem:[%s6883_s12 + $0x98] sm:$0xff] %v6015_v6   ;;  %v4111_v9 = vadd.f32 %v7022_v8, %v3929_v7  ;;  %v3930_v10 = vmax.f32 %v3621_v3, %v3622_v18  ;;  %1528 = vmatprep.mubr.bf16.mxu0 %v6660_v2  ;;  %3140 = vmatprep.mubr.bf16.mxu1 %v6660_v2 }
 0x1a2   : > { %v4112_v11 = vadd.f32 %v7022_v8, %v3930_v10  ;;  %v1260_v12 = vpop.f32.mrb[84].mxu0  ;;  %v2872_v13 = vpop.f32.mrb[84].mxu1  ;;  %v4286_v20 = vmax.f32 %v4111_v9, 0.0 }
 0x1a3   : > { %v3623_v14 = vmax.f32 %v1260_v12, %v2872_v13  ;;  %v1262_v15 = vpop.f32.mrb[85].mxu0  ;;  %v2874_v16 = vpop.f32.mrb[85].mxu1 }
 0x1a4   : > { %v4287_v21 = vmax.f32 %v4112_v11, 0.0  ;;  %v3624_v22 = vmax.f32 %v1262_v15, %v2874_v16  ;;  %v1264_v23 = vpop.f32.mrb[86].mxu0  ;;  %v2876_v24 = vpop.f32.mrb[86].mxu1 }
 0x1a5   : > { %v3625_v25 = vmax.f32 %v1264_v23, %v2876_v24  ;;  %v1266_v26 = vpop.f32.mrb[87].mxu0  ;;  %v2878_v27 = vpop.f32.mrb[87].mxu1 }
 0x1a6   : > { %v6020_v28 = vpack.c.bf16 %v4287_v21, %v4286_v20  ;;  %v3931_v29 = vmax.f32 %v3623_v14, %v3624_v22  ;;  %v3626_v30 = vmax.f32 %v1266_v26, %v2878_v27  ;;  %v6575_v20 = vld [vmem:[%s6729_s11 + $0x198] sm:$0xff]  }
 0x1a7   : > { %1529 = vmatmul.mubr.bf16.gmra.mrb[192].mxu0 %v6568_v17  ;;  %3141 = vmatmul.mubr.bf16.gmra.mrb[192].mxu1 %v6569_v19  ;;  %v6574_v19 = vld [vmem:[%s6723_s8 + $0x198] sm:$0xff]  }
 0x1a8   : > { %6371 = vst [vmem:[%s6883_s12 + $0xa0] sm:$0xff] %v6020_v28   ;;  %v4113_v31 = vadd.f32 %v7022_v8, %v3931_v29  ;;  %v3932_v32 = vmax.f32 %v3625_v25, %v3626_v30  ;;  %1538 = vmatprep.mubr.bf16.mxu0 %v6660_v2  ;;  %3150 = vmatprep.mubr.bf16.mxu1 %v6660_v2 }
 0x1aa   : > { %v4114_v33 = vadd.f32 %v7022_v8, %v3932_v32  ;;  %v1270_v34 = vpop.f32.mrb[88].mxu0  ;;  %v2882_v35 = vpop.f32.mrb[88].mxu1  ;;  %v4288_v41 = vmax.f32 %v4113_v31, 0.0 }
 0x1ab   : > { %v3627_v36 = vmax.f32 %v1270_v34, %v2882_v35  ;;  %v1272_v37 = vpop.f32.mrb[89].mxu0  ;;  %v2884_v38 = vpop.f32.mrb[89].mxu1 }
 0x1ac   : > { %v4289_v42 = vmax.f32 %v4114_v33, 0.0  ;;  %v3628_v43 = vmax.f32 %v1272_v37, %v2884_v38  ;;  %v1274_v44 = vpop.f32.mrb[90].mxu0  ;;  %v2886_v45 = vpop.f32.mrb[90].mxu1 }
 0x1ad   : > { %v3629_v46 = vmax.f32 %v1274_v44, %v2886_v45  ;;  %v1276_v47 = vpop.f32.mrb[91].mxu0  ;;  %v2888_v48 = vpop.f32.mrb[91].mxu1 }
 0x1ae   : > { %v6025_v49 = vpack.c.bf16 %v4289_v42, %v4288_v41  ;;  %v3933_v50 = vmax.f32 %v3627_v36, %v3628_v43  ;;  %v3630_v51 = vmax.f32 %v1276_v47, %v2888_v48  ;;  %v6577_v41 = vld [vmem:[%s6729_s11 + $0x1a0] sm:$0xff]  }
 0x1af   : > { %1539 = vmatmul.mubr.bf16.gmra.mrb[196].mxu0 %v6570_v39  ;;  %3151 = vmatmul.mubr.bf16.gmra.mrb[196].mxu1 %v6571_v40  ;;  %v6576_v40 = vld [vmem:[%s6723_s8 + $0x1a0] sm:$0xff]  }
 0x1b0   : > { %6372 = vst [vmem:[%s6883_s12 + $0xa8] sm:$0xff] %v6025_v49   ;;  %v4115_v52 = vadd.f32 %v7022_v8, %v3933_v50  ;;  %v3934_v53 = vmax.f32 %v3629_v46, %v3630_v51  ;;  %1548 = vmatprep.mubr.bf16.mxu0 %v6660_v2  ;;  %3160 = vmatprep.mubr.bf16.mxu1 %v6660_v2 }
 0x1b2   : > { %v4116_v54 = vadd.f32 %v7022_v8, %v3934_v53  ;;  %v1280_v55 = vpop.f32.mrb[92].mxu0  ;;  %v2892_v56 = vpop.f32.mrb[92].mxu1  ;;  %v4290_v62 = vmax.f32 %v4115_v52, 0.0 }
 0x1b3   : > { %v3631_v57 = vmax.f32 %v1280_v55, %v2892_v56  ;;  %v1282_v58 = vpop.f32.mrb[93].mxu0  ;;  %v2894_v59 = vpop.f32.mrb[93].mxu1 }
 0x1b4   : > { %v4291_v63 = vmax.f32 %v4116_v54, 0.0  ;;  %v3632_v0 = vmax.f32 %v1282_v58, %v2894_v59  ;;  %v1284_v1 = vpop.f32.mrb[94].mxu0  ;;  %v2896_v3 = vpop.f32.mrb[94].mxu1 }
 0x1b5   : > { %v3633_v4 = vmax.f32 %v1284_v1, %v2896_v3  ;;  %v1286_v5 = vpop.f32.mrb[95].mxu0  ;;  %v2898_v6 = vpop.f32.mrb[95].mxu1 }
 0x1b6   : > { %v6030_v7 = vpack.c.bf16 %v4291_v63, %v4290_v62  ;;  %v3935_v18 = vmax.f32 %v3631_v57, %v3632_v0  ;;  %v3634_v9 = vmax.f32 %v1286_v5, %v2898_v6  ;;  %v6579_v62 = vld [vmem:[%s6729_s11 + $0x1a8] sm:$0xff]  }
 0x1b7   : > { %1549 = vmatmul.mubr.bf16.gmra.mrb[200].mxu0 %v6572_v60  ;;  %3161 = vmatmul.mubr.bf16.gmra.mrb[200].mxu1 %v6573_v61  ;;  %v6578_v61 = vld [vmem:[%s6723_s8 + $0x1a8] sm:$0xff]  }
 0x1b8   : > { %6373 = vst [vmem:[%s6883_s12 + $0xb0] sm:$0xff] %v6030_v7   ;;  %v4117_v10 = vadd.f32 %v7022_v8, %v3935_v18  ;;  %v3936_v11 = vmax.f32 %v3633_v4, %v3634_v9  ;;  %1558 = vmatprep.mubr.bf16.mxu0 %v6660_v2  ;;  %3170 = vmatprep.mubr.bf16.mxu1 %v6660_v2 }
 0x1ba   : > { %v4118_v12 = vadd.f32 %v7022_v8, %v3936_v11  ;;  %v1290_v13 = vpop.f32.mrb[96].mxu0  ;;  %v2902_v14 = vpop.f32.mrb[96].mxu1  ;;  %v4292_v21 = vmax.f32 %v4117_v10, 0.0 }
 0x1bb   : > { %v3635_v15 = vmax.f32 %v1290_v13, %v2902_v14  ;;  %v1292_v16 = vpop.f32.mrb[97].mxu0  ;;  %v2904_v17 = vpop.f32.mrb[97].mxu1 }
 0x1bc   : > { %v4293_v22 = vmax.f32 %v4118_v12, 0.0  ;;  %v3636_v23 = vmax.f32 %v1292_v16, %v2904_v17  ;;  %v1294_v24 = vpop.f32.mrb[98].mxu0  ;;  %v2906_v25 = vpop.f32.mrb[98].mxu1 }
 0x1bd   : > { %v3637_v26 = vmax.f32 %v1294_v24, %v2906_v25  ;;  %v1296_v27 = vpop.f32.mrb[99].mxu0  ;;  %v2908_v28 = vpop.f32.mrb[99].mxu1 }
 0x1be   : > { %v6035_v29 = vpack.c.bf16 %v4293_v22, %v4292_v21  ;;  %v3937_v30 = vmax.f32 %v3635_v15, %v3636_v23  ;;  %v3638_v31 = vmax.f32 %v1296_v27, %v2908_v28  ;;  %v6581_v21 = vld [vmem:[%s6729_s11 + $0x1b0] sm:$0xff]  }
 0x1bf   : > { %1559 = vmatmul.mubr.bf16.gmra.mrb[204].mxu0 %v6574_v19  ;;  %3171 = vmatmul.mubr.bf16.gmra.mrb[204].mxu1 %v6575_v20  ;;  %v6580_v20 = vld [vmem:[%s6723_s8 + $0x1b0] sm:$0xff]  }
 0x1c0   : > { %6374 = vst [vmem:[%s6883_s12 + $0xb8] sm:$0xff] %v6035_v29   ;;  %v4119_v32 = vadd.f32 %v7022_v8, %v3937_v30  ;;  %v3938_v33 = vmax.f32 %v3637_v26, %v3638_v31  ;;  %1568 = vmatprep.mubr.bf16.mxu0 %v6660_v2  ;;  %3180 = vmatprep.mubr.bf16.mxu1 %v6660_v2 }
 0x1c2   : > { %v4120_v34 = vadd.f32 %v7022_v8, %v3938_v33  ;;  %v1300_v35 = vpop.f32.mrb[100].mxu0  ;;  %v2912_v36 = vpop.f32.mrb[100].mxu1  ;;  %v4294_v42 = vmax.f32 %v4119_v32, 0.0 }
 0x1c3   : > { %v3639_v37 = vmax.f32 %v1300_v35, %v2912_v36  ;;  %v1302_v38 = vpop.f32.mrb[101].mxu0  ;;  %v2914_v39 = vpop.f32.mrb[101].mxu1 }
 0x1c4   : > { %v4295_v43 = vmax.f32 %v4120_v34, 0.0  ;;  %v3640_v44 = vmax.f32 %v1302_v38, %v2914_v39  ;;  %v1304_v45 = vpop.f32.mrb[102].mxu0  ;;  %v2916_v46 = vpop.f32.mrb[102].mxu1 }
 0x1c5   : > { %v3641_v47 = vmax.f32 %v1304_v45, %v2916_v46  ;;  %v1306_v48 = vpop.f32.mrb[103].mxu0  ;;  %v2918_v49 = vpop.f32.mrb[103].mxu1 }
 0x1c6   : > { %v6040_v50 = vpack.c.bf16 %v4295_v43, %v4294_v42  ;;  %v3939_v51 = vmax.f32 %v3639_v37, %v3640_v44  ;;  %v3642_v52 = vmax.f32 %v1306_v48, %v2918_v49  ;;  %v6583_v42 = vld [vmem:[%s6729_s11 + $0x1b8] sm:$0xff]  }
 0x1c7   : > { %1569 = vmatmul.mubr.bf16.gmra.mrb[208].mxu0 %v6576_v40  ;;  %3181 = vmatmul.mubr.bf16.gmra.mrb[208].mxu1 %v6577_v41  ;;  %v6582_v41 = vld [vmem:[%s6723_s8 + $0x1b8] sm:$0xff]  }
 0x1c8   : > { %6375 = vst [vmem:[%s6883_s12 + $0xc0] sm:$0xff] %v6040_v50   ;;  %v4121_v53 = vadd.f32 %v7022_v8, %v3939_v51  ;;  %v3940_v54 = vmax.f32 %v3641_v47, %v3642_v52  ;;  %1578 = vmatprep.mubr.bf16.mxu0 %v6660_v2  ;;  %3190 = vmatprep.mubr.bf16.mxu1 %v6660_v2 }
 0x1ca   : > { %v4122_v55 = vadd.f32 %v7022_v8, %v3940_v54  ;;  %v1310_v56 = vpop.f32.mrb[104].mxu0  ;;  %v2922_v57 = vpop.f32.mrb[104].mxu1  ;;  %v4296_v63 = vmax.f32 %v4121_v53, 0.0 }
 0x1cb   : > { %v3643_v58 = vmax.f32 %v1310_v56, %v2922_v57  ;;  %v1312_v59 = vpop.f32.mrb[105].mxu0  ;;  %v2924_v60 = vpop.f32.mrb[105].mxu1 }
 0x1cc   : > { %v4297_v0 = vmax.f32 %v4122_v55, 0.0  ;;  %v3644_v1 = vmax.f32 %v1312_v59, %v2924_v60  ;;  %v1314_v3 = vpop.f32.mrb[106].mxu0  ;;  %v2926_v4 = vpop.f32.mrb[106].mxu1 }
 0x1cd   : > { %v3645_v5 = vmax.f32 %v1314_v3, %v2926_v4  ;;  %v1316_v6 = vpop.f32.mrb[107].mxu0  ;;  %v2928_v7 = vpop.f32.mrb[107].mxu1 }
 0x1ce   : > { %v6045_v18 = vpack.c.bf16 %v4297_v0, %v4296_v63  ;;  %v3941_v9 = vmax.f32 %v3643_v58, %v3644_v1  ;;  %v3646_v10 = vmax.f32 %v1316_v6, %v2928_v7  ;;  %v6585_v63 = vld [vmem:[%s6729_s11 + $0x1c0] sm:$0xff]  }
 0x1cf   : > { %1579 = vmatmul.mubr.bf16.gmra.mrb[212].mxu0 %v6578_v61  ;;  %3191 = vmatmul.mubr.bf16.gmra.mrb[212].mxu1 %v6579_v62  ;;  %v6584_v62 = vld [vmem:[%s6723_s8 + $0x1c0] sm:$0xff]  }
 0x1d0   : > { %6376 = vst [vmem:[%s6883_s12 + $0xc8] sm:$0xff] %v6045_v18   ;;  %v4123_v11 = vadd.f32 %v7022_v8, %v3941_v9  ;;  %v3942_v12 = vmax.f32 %v3645_v5, %v3646_v10  ;;  %1588 = vmatprep.mubr.bf16.mxu0 %v6660_v2  ;;  %3200 = vmatprep.mubr.bf16.mxu1 %v6660_v2 }
 0x1d2   : > { %v4124_v13 = vadd.f32 %v7022_v8, %v3942_v12  ;;  %v1320_v14 = vpop.f32.mrb[108].mxu0  ;;  %v2932_v15 = vpop.f32.mrb[108].mxu1  ;;  %v4298_v22 = vmax.f32 %v4123_v11, 0.0 }
 0x1d3   : > { %v3647_v16 = vmax.f32 %v1320_v14, %v2932_v15  ;;  %v1322_v17 = vpop.f32.mrb[109].mxu0  ;;  %v2934_v19 = vpop.f32.mrb[109].mxu1 }
 0x1d4   : > { %v4299_v23 = vmax.f32 %v4124_v13, 0.0  ;;  %v3648_v24 = vmax.f32 %v1322_v17, %v2934_v19  ;;  %v1324_v25 = vpop.f32.mrb[110].mxu0  ;;  %v2936_v26 = vpop.f32.mrb[110].mxu1 }
 0x1d5   : > { %v3649_v27 = vmax.f32 %v1324_v25, %v2936_v26  ;;  %v1326_v28 = vpop.f32.mrb[111].mxu0  ;;  %v2938_v29 = vpop.f32.mrb[111].mxu1 }
 0x1d6   : > { %v6050_v30 = vpack.c.bf16 %v4299_v23, %v4298_v22  ;;  %v3943_v31 = vmax.f32 %v3647_v16, %v3648_v24  ;;  %v3650_v32 = vmax.f32 %v1326_v28, %v2938_v29  ;;  %v6587_v22 = vld [vmem:[%s6729_s11 + $0x1c8] sm:$0xff]  }
 0x1d7   : > { %1589 = vmatmul.mubr.bf16.gmra.mrb[216].mxu0 %v6580_v20  ;;  %3201 = vmatmul.mubr.bf16.gmra.mrb[216].mxu1 %v6581_v21  ;;  %v6586_v21 = vld [vmem:[%s6723_s8 + $0x1c8] sm:$0xff]  }
 0x1d8   : > { %6377 = vst [vmem:[%s6883_s12 + $0xd0] sm:$0xff] %v6050_v30   ;;  %v4125_v33 = vadd.f32 %v7022_v8, %v3943_v31  ;;  %v3944_v34 = vmax.f32 %v3649_v27, %v3650_v32  ;;  %1598 = vmatprep.mubr.bf16.mxu0 %v6660_v2  ;;  %3210 = vmatprep.mubr.bf16.mxu1 %v6660_v2 }
 0x1da   : > { %v4126_v35 = vadd.f32 %v7022_v8, %v3944_v34  ;;  %v1330_v36 = vpop.f32.mrb[112].mxu0  ;;  %v2942_v37 = vpop.f32.mrb[112].mxu1  ;;  %v4300_v43 = vmax.f32 %v4125_v33, 0.0 }
 0x1db   : > { %v3651_v38 = vmax.f32 %v1330_v36, %v2942_v37  ;;  %v1332_v39 = vpop.f32.mrb[113].mxu0  ;;  %v2944_v40 = vpop.f32.mrb[113].mxu1 }
 0x1dc   : > { %v4301_v44 = vmax.f32 %v4126_v35, 0.0  ;;  %v3652_v45 = vmax.f32 %v1332_v39, %v2944_v40  ;;  %v1334_v46 = vpop.f32.mrb[114].mxu0  ;;  %v2946_v47 = vpop.f32.mrb[114].mxu1 }
 0x1dd   : > { %v3653_v48 = vmax.f32 %v1334_v46, %v2946_v47  ;;  %v1336_v49 = vpop.f32.mrb[115].mxu0  ;;  %v2948_v50 = vpop.f32.mrb[115].mxu1 }
 0x1de   : > { %v6055_v51 = vpack.c.bf16 %v4301_v44, %v4300_v43  ;;  %v3945_v52 = vmax.f32 %v3651_v38, %v3652_v45  ;;  %v3654_v53 = vmax.f32 %v1336_v49, %v2948_v50  ;;  %v6589_v43 = vld [vmem:[%s6729_s11 + $0x1d0] sm:$0xff]  }
 0x1df   : > { %1599 = vmatmul.mubr.bf16.gmra.mrb[220].mxu0 %v6582_v41  ;;  %3211 = vmatmul.mubr.bf16.gmra.mrb[220].mxu1 %v6583_v42  ;;  %v6588_v42 = vld [vmem:[%s6723_s8 + $0x1d0] sm:$0xff]  }
 0x1e0   : > { %6378 = vst [vmem:[%s6883_s12 + $0xd8] sm:$0xff] %v6055_v51   ;;  %v4127_v54 = vadd.f32 %v7022_v8, %v3945_v52  ;;  %v3946_v55 = vmax.f32 %v3653_v48, %v3654_v53  ;;  %1608 = vmatprep.mubr.bf16.mxu0 %v6660_v2  ;;  %3220 = vmatprep.mubr.bf16.mxu1 %v6660_v2 }
 0x1e2   : > { %v4128_v56 = vadd.f32 %v7022_v8, %v3946_v55  ;;  %v1340_v57 = vpop.f32.mrb[116].mxu0  ;;  %v2952_v58 = vpop.f32.mrb[116].mxu1  ;;  %v4302_v0 = vmax.f32 %v4127_v54, 0.0 }
 0x1e3   : > { %v3655_v59 = vmax.f32 %v1340_v57, %v2952_v58  ;;  %v1342_v60 = vpop.f32.mrb[117].mxu0  ;;  %v2954_v61 = vpop.f32.mrb[117].mxu1 }
 0x1e4   : > { %v4303_v1 = vmax.f32 %v4128_v56, 0.0  ;;  %v3656_v3 = vmax.f32 %v1342_v60, %v2954_v61  ;;  %v1344_v4 = vpop.f32.mrb[118].mxu0  ;;  %v2956_v5 = vpop.f32.mrb[118].mxu1 }
 0x1e5   : > { %v3657_v6 = vmax.f32 %v1344_v4, %v2956_v5  ;;  %v1346_v7 = vpop.f32.mrb[119].mxu0  ;;  %v2958_v18 = vpop.f32.mrb[119].mxu1 }
 0x1e6   : > { %v6060_v9 = vpack.c.bf16 %v4303_v1, %v4302_v0  ;;  %v3947_v10 = vmax.f32 %v3655_v59, %v3656_v3  ;;  %v3658_v11 = vmax.f32 %v1346_v7, %v2958_v18  ;;  %v6591_v0 = vld [vmem:[%s6729_s11 + $0x1d8] sm:$0xff]  }
 0x1e7   : > { %1609 = vmatmul.mubr.bf16.gmra.mrb[224].mxu0 %v6584_v62  ;;  %3221 = vmatmul.mubr.bf16.gmra.mrb[224].mxu1 %v6585_v63  ;;  %v6590_v63 = vld [vmem:[%s6723_s8 + $0x1d8] sm:$0xff]  }
 0x1e8   : > { %6379 = vst [vmem:[%s6883_s12 + $0xe0] sm:$0xff] %v6060_v9   ;;  %v4129_v12 = vadd.f32 %v7022_v8, %v3947_v10  ;;  %v3948_v13 = vmax.f32 %v3657_v6, %v3658_v11  ;;  %1618 = vmatprep.mubr.bf16.mxu0 %v6660_v2  ;;  %3230 = vmatprep.mubr.bf16.mxu1 %v6660_v2 }
 0x1ea   : > { %v4130_v14 = vadd.f32 %v7022_v8, %v3948_v13  ;;  %v1350_v15 = vpop.f32.mrb[120].mxu0  ;;  %v2962_v16 = vpop.f32.mrb[120].mxu1  ;;  %v4304_v23 = vmax.f32 %v4129_v12, 0.0 }
 0x1eb   : > { %v3659_v17 = vmax.f32 %v1350_v15, %v2962_v16  ;;  %v1352_v19 = vpop.f32.mrb[121].mxu0  ;;  %v2964_v20 = vpop.f32.mrb[121].mxu1 }
 0x1ec   : > { %v4305_v24 = vmax.f32 %v4130_v14, 0.0  ;;  %v3660_v25 = vmax.f32 %v1352_v19, %v2964_v20  ;;  %v1354_v26 = vpop.f32.mrb[122].mxu0  ;;  %v2966_v27 = vpop.f32.mrb[122].mxu1 }
 0x1ed   : > { %v3661_v28 = vmax.f32 %v1354_v26, %v2966_v27  ;;  %v1356_v29 = vpop.f32.mrb[123].mxu0  ;;  %v2968_v30 = vpop.f32.mrb[123].mxu1 }
 0x1ee   : > { %v6065_v31 = vpack.c.bf16 %v4305_v24, %v4304_v23  ;;  %v3949_v32 = vmax.f32 %v3659_v17, %v3660_v25  ;;  %v3662_v33 = vmax.f32 %v1356_v29, %v2968_v30  ;;  %v6593_v23 = vld [vmem:[%s6729_s11 + $0x1e0] sm:$0xff]  }
 0x1ef   : > { %1619 = vmatmul.mubr.bf16.gmra.mrb[228].mxu0 %v6586_v21  ;;  %3231 = vmatmul.mubr.bf16.gmra.mrb[228].mxu1 %v6587_v22  ;;  %v6592_v22 = vld [vmem:[%s6723_s8 + $0x1e0] sm:$0xff]  }
 0x1f0   : > { %6380 = vst [vmem:[%s6883_s12 + $0xe8] sm:$0xff] %v6065_v31   ;;  %v4131_v34 = vadd.f32 %v7022_v8, %v3949_v32  ;;  %v3950_v35 = vmax.f32 %v3661_v28, %v3662_v33  ;;  %1628 = vmatprep.mubr.bf16.mxu0 %v6660_v2  ;;  %3240 = vmatprep.mubr.bf16.mxu1 %v6660_v2 }
 0x1f2   : > { %v4132_v36 = vadd.f32 %v7022_v8, %v3950_v35  ;;  %v1360_v37 = vpop.f32.mrb[124].mxu0  ;;  %v2972_v38 = vpop.f32.mrb[124].mxu1  ;;  %v4306_v44 = vmax.f32 %v4131_v34, 0.0 }
 0x1f3   : > { %v3663_v39 = vmax.f32 %v1360_v37, %v2972_v38  ;;  %v1362_v40 = vpop.f32.mrb[125].mxu0  ;;  %v2974_v41 = vpop.f32.mrb[125].mxu1 }
 0x1f4   : > { %v4307_v45 = vmax.f32 %v4132_v36, 0.0  ;;  %v3664_v46 = vmax.f32 %v1362_v40, %v2974_v41  ;;  %v1364_v47 = vpop.f32.mrb[126].mxu0  ;;  %v2976_v48 = vpop.f32.mrb[126].mxu1 }
 0x1f5   : > { %v3665_v49 = vmax.f32 %v1364_v47, %v2976_v48  ;;  %v1366_v50 = vpop.f32.mrb[127].mxu0  ;;  %v2978_v51 = vpop.f32.mrb[127].mxu1 }
 0x1f6   : > { %v6070_v52 = vpack.c.bf16 %v4307_v45, %v4306_v44  ;;  %v3951_v53 = vmax.f32 %v3663_v39, %v3664_v46  ;;  %v3666_v54 = vmax.f32 %v1366_v50, %v2978_v51  ;;  %v6595_v44 = vld [vmem:[%s6729_s11 + $0x1e8] sm:$0xff]  }
 0x1f7   : > { %1629 = vmatmul.mubr.bf16.gmra.mrb[232].mxu0 %v6588_v42  ;;  %3241 = vmatmul.mubr.bf16.gmra.mrb[232].mxu1 %v6589_v43  ;;  %v6594_v43 = vld [vmem:[%s6723_s8 + $0x1e8] sm:$0xff]  }
 0x1f8   : > { %6381 = vst [vmem:[%s6883_s12 + $0xf0] sm:$0xff] %v6070_v52   ;;  %v4133_v55 = vadd.f32 %v7022_v8, %v3951_v53  ;;  %v3952_v56 = vmax.f32 %v3665_v49, %v3666_v54  ;;  %1638 = vmatprep.mubr.bf16.mxu0 %v6660_v2  ;;  %3250 = vmatprep.mubr.bf16.mxu1 %v6660_v2 }
 0x1fa   : > { %v4134_v57 = vadd.f32 %v7022_v8, %v3952_v56  ;;  %v1370_v58 = vpop.f32.mrb[128].mxu0  ;;  %v2982_v59 = vpop.f32.mrb[128].mxu1  ;;  %v4308_v1 = vmax.f32 %v4133_v55, 0.0 }
 0x1fb   : > { %v3667_v60 = vmax.f32 %v1370_v58, %v2982_v59  ;;  %v1372_v61 = vpop.f32.mrb[129].mxu0  ;;  %v2984_v62 = vpop.f32.mrb[129].mxu1 }
 0x1fc   : > { %v4309_v3 = vmax.f32 %v4134_v57, 0.0  ;;  %v3668_v4 = vmax.f32 %v1372_v61, %v2984_v62  ;;  %v1374_v5 = vpop.f32.mrb[130].mxu0  ;;  %v2986_v6 = vpop.f32.mrb[130].mxu1 }
 0x1fd   : > { %v3669_v7 = vmax.f32 %v1374_v5, %v2986_v6  ;;  %v1376_v18 = vpop.f32.mrb[131].mxu0  ;;  %v2988_v9 = vpop.f32.mrb[131].mxu1 }
 0x1fe   : > { %v6075_v10 = vpack.c.bf16 %v4309_v3, %v4308_v1  ;;  %v3953_v11 = vmax.f32 %v3667_v60, %v3668_v4  ;;  %v3670_v12 = vmax.f32 %v1376_v18, %v2988_v9  ;;  %v6597_v1 = vld [vmem:[%s6729_s11 + $0x1f0] sm:$0xff]  }
 0x1ff   : > { %1639 = vmatmul.mubr.bf16.gmra.mrb[236].mxu0 %v6590_v63  ;;  %3251 = vmatmul.mubr.bf16.gmra.mrb[236].mxu1 %v6591_v0  ;;  %v6596_v0 = vld [vmem:[%s6723_s8 + $0x1f0] sm:$0xff]  }
 0x200   : > { %6382 = vst [vmem:[%s6883_s12 + $0xf8] sm:$0xff] %v6075_v10   ;;  %v4135_v13 = vadd.f32 %v7022_v8, %v3953_v11  ;;  %v3954_v14 = vmax.f32 %v3669_v7, %v3670_v12  ;;  %1648 = vmatprep.mubr.bf16.mxu0 %v6660_v2  ;;  %3260 = vmatprep.mubr.bf16.mxu1 %v6660_v2 }
 0x202   : > { %v4136_v15 = vadd.f32 %v7022_v8, %v3954_v14  ;;  %v1380_v16 = vpop.f32.mrb[132].mxu0  ;;  %v2992_v17 = vpop.f32.mrb[132].mxu1  ;;  %v4310_v24 = vmax.f32 %v4135_v13, 0.0 }
 0x203   : > { %v3671_v19 = vmax.f32 %v1380_v16, %v2992_v17  ;;  %v1382_v20 = vpop.f32.mrb[133].mxu0  ;;  %v2994_v21 = vpop.f32.mrb[133].mxu1 }
 0x204   : > { %v4311_v25 = vmax.f32 %v4136_v15, 0.0  ;;  %v3672_v26 = vmax.f32 %v1382_v20, %v2994_v21  ;;  %v1384_v27 = vpop.f32.mrb[134].mxu0  ;;  %v2996_v28 = vpop.f32.mrb[134].mxu1 }
 0x205   : > { %v3673_v29 = vmax.f32 %v1384_v27, %v2996_v28  ;;  %v1386_v30 = vpop.f32.mrb[135].mxu0  ;;  %v2998_v31 = vpop.f32.mrb[135].mxu1 }
 0x206   : > { %v6080_v32 = vpack.c.bf16 %v4311_v25, %v4310_v24  ;;  %v3955_v33 = vmax.f32 %v3671_v19, %v3672_v26  ;;  %v3674_v34 = vmax.f32 %v1386_v30, %v2998_v31  ;;  %v6599_v24 = vld [vmem:[%s6729_s11 + $0x1f8] sm:$0xff]  }
 0x207   : > { %1649 = vmatmul.mubr.bf16.gmra.mrb[240].mxu0 %v6592_v22  ;;  %3261 = vmatmul.mubr.bf16.gmra.mrb[240].mxu1 %v6593_v23  ;;  %v6598_v23 = vld [vmem:[%s6723_s8 + $0x1f8] sm:$0xff]  }
 0x208   : > { %6383 = vst [vmem:[%s6883_s12 + $0x100] sm:$0xff] %v6080_v32   ;;  %v4137_v35 = vadd.f32 %v7022_v8, %v3955_v33  ;;  %v3956_v36 = vmax.f32 %v3673_v29, %v3674_v34  ;;  %1658 = vmatprep.mubr.bf16.mxu0 %v6660_v2  ;;  %3270 = vmatprep.mubr.bf16.mxu1 %v6660_v2 }
 0x20a   : > { %v4138_v37 = vadd.f32 %v7022_v8, %v3956_v36  ;;  %v1390_v38 = vpop.f32.mrb[136].mxu0  ;;  %v3002_v39 = vpop.f32.mrb[136].mxu1  ;;  %v4312_v45 = vmax.f32 %v4137_v35, 0.0 }
 0x20b   : > { %v3675_v40 = vmax.f32 %v1390_v38, %v3002_v39  ;;  %v1392_v41 = vpop.f32.mrb[137].mxu0  ;;  %v3004_v42 = vpop.f32.mrb[137].mxu1 }
 0x20c   : > { %v4313_v46 = vmax.f32 %v4138_v37, 0.0  ;;  %v3676_v47 = vmax.f32 %v1392_v41, %v3004_v42  ;;  %v1394_v48 = vpop.f32.mrb[138].mxu0  ;;  %v3006_v49 = vpop.f32.mrb[138].mxu1 }
 0x20d   : > { %v3677_v50 = vmax.f32 %v1394_v48, %v3006_v49  ;;  %v1396_v51 = vpop.f32.mrb[139].mxu0  ;;  %v3008_v52 = vpop.f32.mrb[139].mxu1 }
 0x20e   : > { %v6085_v53 = vpack.c.bf16 %v4313_v46, %v4312_v45  ;;  %v3957_v54 = vmax.f32 %v3675_v40, %v3676_v47  ;;  %v3678_v55 = vmax.f32 %v1396_v51, %v3008_v52  ;;  %v6601_v45 = vld [vmem:[%s6729_s11 + $0x200] sm:$0xff]  }
 0x20f   : > { %1659 = vmatmul.mubr.bf16.gmra.mrb[244].mxu0 %v6594_v43  ;;  %3271 = vmatmul.mubr.bf16.gmra.mrb[244].mxu1 %v6595_v44  ;;  %v6600_v44 = vld [vmem:[%s6723_s8 + $0x200] sm:$0xff]  }
 0x210   : > { %6384 = vst [vmem:[%s6883_s12 + $0x108] sm:$0xff] %v6085_v53   ;;  %v4139_v56 = vadd.f32 %v7022_v8, %v3957_v54  ;;  %v3958_v57 = vmax.f32 %v3677_v50, %v3678_v55  ;;  %1668 = vmatprep.mubr.bf16.mxu0 %v6660_v2  ;;  %3280 = vmatprep.mubr.bf16.mxu1 %v6660_v2 }
 0x212   : > { %v4140_v58 = vadd.f32 %v7022_v8, %v3958_v57  ;;  %v1400_v59 = vpop.f32.mrb[140].mxu0  ;;  %v3012_v60 = vpop.f32.mrb[140].mxu1  ;;  %v4314_v3 = vmax.f32 %v4139_v56, 0.0 }
 0x213   : > { %v3679_v61 = vmax.f32 %v1400_v59, %v3012_v60  ;;  %v1402_v62 = vpop.f32.mrb[141].mxu0  ;;  %v3014_v63 = vpop.f32.mrb[141].mxu1 }
 0x214   : > { %v4315_v4 = vmax.f32 %v4140_v58, 0.0  ;;  %v3680_v5 = vmax.f32 %v1402_v62, %v3014_v63  ;;  %v1404_v6 = vpop.f32.mrb[142].mxu0  ;;  %v3016_v7 = vpop.f32.mrb[142].mxu1 }
 0x215   : > { %v3681_v18 = vmax.f32 %v1404_v6, %v3016_v7  ;;  %v1406_v9 = vpop.f32.mrb[143].mxu0  ;;  %v3018_v10 = vpop.f32.mrb[143].mxu1 }
 0x216   : > { %v6090_v11 = vpack.c.bf16 %v4315_v4, %v4314_v3  ;;  %v3959_v12 = vmax.f32 %v3679_v61, %v3680_v5  ;;  %v3682_v13 = vmax.f32 %v1406_v9, %v3018_v10  ;;  %v6603_v3 = vld [vmem:[%s6729_s11 + $0x208] sm:$0xff]  }
 0x217   : > { %1669 = vmatmul.mubr.bf16.gmra.mrb[248].mxu0 %v6596_v0  ;;  %3281 = vmatmul.mubr.bf16.gmra.mrb[248].mxu1 %v6597_v1  ;;  %v6602_v1 = vld [vmem:[%s6723_s8 + $0x208] sm:$0xff]  }
 0x218   : > { %6385 = vst [vmem:[%s6883_s12 + $0x110] sm:$0xff] %v6090_v11   ;;  %v4141_v14 = vadd.f32 %v7022_v8, %v3959_v12  ;;  %v3960_v15 = vmax.f32 %v3681_v18, %v3682_v13  ;;  %1678 = vmatprep.mubr.bf16.mxu0 %v6660_v2  ;;  %3290 = vmatprep.mubr.bf16.mxu1 %v6660_v2 }
 0x21a   : > { %v4142_v16 = vadd.f32 %v7022_v8, %v3960_v15  ;;  %v1410_v17 = vpop.f32.mrb[144].mxu0  ;;  %v3022_v19 = vpop.f32.mrb[144].mxu1  ;;  %v4316_v25 = vmax.f32 %v4141_v14, 0.0 }
 0x21b   : > { %v3683_v20 = vmax.f32 %v1410_v17, %v3022_v19  ;;  %v1412_v21 = vpop.f32.mrb[145].mxu0  ;;  %v3024_v22 = vpop.f32.mrb[145].mxu1 }
 0x21c   : > { %v4317_v26 = vmax.f32 %v4142_v16, 0.0  ;;  %v3684_v27 = vmax.f32 %v1412_v21, %v3024_v22  ;;  %v1414_v28 = vpop.f32.mrb[146].mxu0  ;;  %v3026_v29 = vpop.f32.mrb[146].mxu1 }
 0x21d   : > { %v3685_v30 = vmax.f32 %v1414_v28, %v3026_v29  ;;  %v1416_v31 = vpop.f32.mrb[147].mxu0  ;;  %v3028_v32 = vpop.f32.mrb[147].mxu1 }
 0x21e   : > { %v6095_v33 = vpack.c.bf16 %v4317_v26, %v4316_v25  ;;  %v3961_v34 = vmax.f32 %v3683_v20, %v3684_v27  ;;  %v3686_v35 = vmax.f32 %v1416_v31, %v3028_v32  ;;  %v6605_v25 = vld [vmem:[%s6729_s11 + $0x210] sm:$0xff]  }
 0x21f   : > { %1679 = vmatmul.mubr.bf16.gmra.mrb[252].mxu0 %v6598_v23  ;;  %3291 = vmatmul.mubr.bf16.gmra.mrb[252].mxu1 %v6599_v24  ;;  %v6604_v24 = vld [vmem:[%s6723_s8 + $0x210] sm:$0xff]  }
 0x220   : > { %6386 = vst [vmem:[%s6883_s12 + $0x118] sm:$0xff] %v6095_v33   ;;  %v4143_v36 = vadd.f32 %v7022_v8, %v3961_v34  ;;  %v3962_v37 = vmax.f32 %v3685_v30, %v3686_v35  ;;  %1688 = vmatprep.mubr.bf16.mxu0 %v6660_v2  ;;  %3300 = vmatprep.mubr.bf16.mxu1 %v6660_v2 }
 0x222   : > { %v4144_v38 = vadd.f32 %v7022_v8, %v3962_v37  ;;  %v1420_v39 = vpop.f32.mrb[148].mxu0  ;;  %v3032_v40 = vpop.f32.mrb[148].mxu1  ;;  %v4318_v46 = vmax.f32 %v4143_v36, 0.0 }
 0x223   : > { %v3687_v41 = vmax.f32 %v1420_v39, %v3032_v40  ;;  %v1422_v42 = vpop.f32.mrb[149].mxu0  ;;  %v3034_v43 = vpop.f32.mrb[149].mxu1 }
 0x224   : > { %v4319_v47 = vmax.f32 %v4144_v38, 0.0  ;;  %v3688_v48 = vmax.f32 %v1422_v42, %v3034_v43  ;;  %v1424_v49 = vpop.f32.mrb[150].mxu0  ;;  %v3036_v50 = vpop.f32.mrb[150].mxu1 }
 0x225   : > { %v3689_v51 = vmax.f32 %v1424_v49, %v3036_v50  ;;  %v1426_v52 = vpop.f32.mrb[151].mxu0  ;;  %v3038_v53 = vpop.f32.mrb[151].mxu1 }
 0x226   : > { %v6100_v54 = vpack.c.bf16 %v4319_v47, %v4318_v46  ;;  %v3963_v55 = vmax.f32 %v3687_v41, %v3688_v48  ;;  %v3690_v56 = vmax.f32 %v1426_v52, %v3038_v53  ;;  %v6607_v46 = vld [vmem:[%s6729_s11 + $0x218] sm:$0xff]  }
 0x227   : > { %1689 = vmatmul.mubr.bf16.gmra.mrb[0].mxu0 %v6600_v44  ;;  %3301 = vmatmul.mubr.bf16.gmra.mrb[0].mxu1 %v6601_v45  ;;  %v6606_v45 = vld [vmem:[%s6723_s8 + $0x218] sm:$0xff]  }
 0x228   : > { %6387 = vst [vmem:[%s6883_s12 + $0x120] sm:$0xff] %v6100_v54   ;;  %v4145_v57 = vadd.f32 %v7022_v8, %v3963_v55  ;;  %v3964_v58 = vmax.f32 %v3689_v51, %v3690_v56  ;;  %1698 = vmatprep.mubr.bf16.mxu0 %v6660_v2  ;;  %3310 = vmatprep.mubr.bf16.mxu1 %v6660_v2 }
 0x22a   : > { %v4146_v59 = vadd.f32 %v7022_v8, %v3964_v58  ;;  %v1430_v60 = vpop.f32.mrb[152].mxu0  ;;  %v3042_v61 = vpop.f32.mrb[152].mxu1  ;;  %v4320_v4 = vmax.f32 %v4145_v57, 0.0  ;;  %v7167_v57 = vld [vmem:[%s7403_s3] ss:$0 sm:$0xff] }
 0x22b   : > { %v3691_v62 = vmax.f32 %v1430_v60, %v3042_v61  ;;  %v1432_v63 = vpop.f32.mrb[153].mxu0  ;;  %v3044_v0 = vpop.f32.mrb[153].mxu1 }
 0x22c   : > { %v4321_v5 = vmax.f32 %v4146_v59, 0.0  ;;  %v3692_v6 = vmax.f32 %v1432_v63, %v3044_v0  ;;  %v1434_v7 = vpop.f32.mrb[154].mxu0  ;;  %v3046_v18 = vpop.f32.mrb[154].mxu1 }
 0x22d   : > { %v3693_v9 = vmax.f32 %v1434_v7, %v3046_v18  ;;  %v1436_v10 = vpop.f32.mrb[155].mxu0  ;;  %v3048_v11 = vpop.f32.mrb[155].mxu1 }
 0x22e   : > { %v6105_v12 = vpack.c.bf16 %v4321_v5, %v4320_v4  ;;  %v3965_v13 = vmax.f32 %v3691_v62, %v3692_v6  ;;  %v3694_v14 = vmax.f32 %v1436_v10, %v3048_v11  ;;  %v6609_v4 = vld [vmem:[%s6729_s11 + $0x220] sm:$0xff]  }
 0x22f   : > { %1699 = vmatmul.mubr.bf16.gmra.mrb[4].mxu0 %v6602_v1  ;;  %3311 = vmatmul.mubr.bf16.gmra.mrb[4].mxu1 %v6603_v3  ;;  %v6608_v3 = vld [vmem:[%s6723_s8 + $0x220] sm:$0xff]  }
 0x230   : > { %6388 = vst [vmem:[%s6883_s12 + $0x128] sm:$0xff] %v6105_v12   ;;  %v4147_v15 = vadd.f32 %v7022_v8, %v3965_v13  ;;  %v3966_v16 = vmax.f32 %v3693_v9, %v3694_v14  ;;  %1708 = vmatprep.mubr.bf16.mxu0 %v6660_v2  ;;  %3320 = vmatprep.mubr.bf16.mxu1 %v6660_v2 }
 0x232   : > { %v4148_v17 = vadd.f32 %v7022_v8, %v3966_v16  ;;  %v1440_v19 = vpop.f32.mrb[156].mxu0  ;;  %v3052_v20 = vpop.f32.mrb[156].mxu1  ;;  %v4322_v26 = vmax.f32 %v4147_v15, 0.0 }
 0x233   : > { %v3695_v21 = vmax.f32 %v1440_v19, %v3052_v20  ;;  %v1442_v22 = vpop.f32.mrb[157].mxu0  ;;  %v3054_v23 = vpop.f32.mrb[157].mxu1 }
 0x234   : > { %v4323_v27 = vmax.f32 %v4148_v17, 0.0  ;;  %v3696_v28 = vmax.f32 %v1442_v22, %v3054_v23  ;;  %v1444_v29 = vpop.f32.mrb[158].mxu0  ;;  %v3056_v30 = vpop.f32.mrb[158].mxu1 }
 0x235   : > { %v3697_v31 = vmax.f32 %v1444_v29, %v3056_v30  ;;  %v1446_v32 = vpop.f32.mrb[159].mxu0  ;;  %v3058_v33 = vpop.f32.mrb[159].mxu1 }
 0x236   : > { %v6110_v34 = vpack.c.bf16 %v4323_v27, %v4322_v26  ;;  %v3967_v35 = vmax.f32 %v3695_v21, %v3696_v28  ;;  %v3698_v36 = vmax.f32 %v1446_v32, %v3058_v33  ;;  %v6611_v26 = vld [vmem:[%s6729_s11 + $0x228] sm:$0xff]  }
 0x237   : > { %1709 = vmatmul.mubr.bf16.gmra.mrb[8].mxu0 %v6604_v24  ;;  %3321 = vmatmul.mubr.bf16.gmra.mrb[8].mxu1 %v6605_v25  ;;  %v6610_v25 = vld [vmem:[%s6723_s8 + $0x228] sm:$0xff]  }
 0x238   : > { %6389 = vst [vmem:[%s6883_s12 + $0x130] sm:$0xff] %v6110_v34   ;;  %v4149_v37 = vadd.f32 %v7022_v8, %v3967_v35  ;;  %v3968_v38 = vmax.f32 %v3697_v31, %v3698_v36  ;;  %1718 = vmatprep.mubr.bf16.mxu0 %v6660_v2  ;;  %3330 = vmatprep.mubr.bf16.mxu1 %v6660_v2 }
 0x23a   : > { %v4150_v39 = vadd.f32 %v7022_v8, %v3968_v38  ;;  %v1450_v40 = vpop.f32.mrb[160].mxu0  ;;  %v3062_v41 = vpop.f32.mrb[160].mxu1  ;;  %v4324_v47 = vmax.f32 %v4149_v37, 0.0 }
 0x23b   : > { %v3699_v42 = vmax.f32 %v1450_v40, %v3062_v41  ;;  %v1452_v43 = vpop.f32.mrb[161].mxu0  ;;  %v3064_v44 = vpop.f32.mrb[161].mxu1 }
 0x23c   : > { %v4325_v48 = vmax.f32 %v4150_v39, 0.0  ;;  %v3700_v49 = vmax.f32 %v1452_v43, %v3064_v44  ;;  %v1454_v50 = vpop.f32.mrb[162].mxu0  ;;  %v3066_v51 = vpop.f32.mrb[162].mxu1 }
 0x23d   : > { %v3701_v52 = vmax.f32 %v1454_v50, %v3066_v51  ;;  %v1456_v53 = vpop.f32.mrb[163].mxu0  ;;  %v3068_v54 = vpop.f32.mrb[163].mxu1 }
 0x23e   : > { %v6115_v55 = vpack.c.bf16 %v4325_v48, %v4324_v47  ;;  %v3969_v56 = vmax.f32 %v3699_v42, %v3700_v49  ;;  %v3702_v8 = vmax.f32 %v1456_v53, %v3068_v54  ;;  %v6613_v47 = vld [vmem:[%s6729_s11 + $0x230] sm:$0xff]  }
 0x23f   : > { %1719 = vmatmul.mubr.bf16.gmra.mrb[12].mxu0 %v6606_v45  ;;  %3331 = vmatmul.mubr.bf16.gmra.mrb[12].mxu1 %v6607_v46  ;;  %v6612_v46 = vld [vmem:[%s6723_s8 + $0x230] sm:$0xff]  }
 0x240   : > { %6390 = vst [vmem:[%s6883_s12 + $0x138] sm:$0xff] %v6115_v55   ;;  %v4151_v58 = vadd.f32 %v7167_v57, %v3969_v56  ;;  %v3970_v59 = vmax.f32 %v3701_v52, %v3702_v8  ;;  %1728 = vmatprep.mubr.bf16.mxu0 %v6660_v2  ;;  %3340 = vmatprep.mubr.bf16.mxu1 %v6660_v2 }
 0x242   : > { %v4152_v60 = vadd.f32 %v7167_v57, %v3970_v59  ;;  %v1460_v61 = vpop.f32.mrb[164].mxu0  ;;  %v3072_v62 = vpop.f32.mrb[164].mxu1  ;;  %v4326_v5 = vmax.f32 %v4151_v58, 0.0 }
 0x243   : > { %v3703_v63 = vmax.f32 %v1460_v61, %v3072_v62  ;;  %v1462_v0 = vpop.f32.mrb[165].mxu0  ;;  %v3074_v1 = vpop.f32.mrb[165].mxu1 }
 0x244   : > { %v4327_v6 = vmax.f32 %v4152_v60, 0.0  ;;  %v3704_v7 = vmax.f32 %v1462_v0, %v3074_v1  ;;  %v1464_v18 = vpop.f32.mrb[166].mxu0  ;;  %v3076_v9 = vpop.f32.mrb[166].mxu1 }
 0x245   : > { %v3705_v10 = vmax.f32 %v1464_v18, %v3076_v9  ;;  %v1466_v11 = vpop.f32.mrb[167].mxu0  ;;  %v3078_v12 = vpop.f32.mrb[167].mxu1 }
 0x246   : > { %v6120_v13 = vpack.c.bf16 %v4327_v6, %v4326_v5  ;;  %v3971_v14 = vmax.f32 %v3703_v63, %v3704_v7  ;;  %v3706_v15 = vmax.f32 %v1466_v11, %v3078_v12  ;;  %v6615_v5 = vld [vmem:[%s6729_s11 + $0x238] sm:$0xff]  }
 0x247   : > { %1729 = vmatmul.mubr.bf16.gmra.mrb[16].mxu0 %v6608_v3  ;;  %3341 = vmatmul.mubr.bf16.gmra.mrb[16].mxu1 %v6609_v4  ;;  %v6614_v4 = vld [vmem:[%s6723_s8 + $0x238] sm:$0xff]  }
 0x248   : > { %6391 = vst [vmem:[%s6883_s12 + $0x140] sm:$0xff] %v6120_v13   ;;  %v4153_v16 = vadd.f32 %v7167_v57, %v3971_v14  ;;  %v3972_v17 = vmax.f32 %v3705_v10, %v3706_v15  ;;  %1738 = vmatprep.mubr.bf16.mxu0 %v6660_v2  ;;  %3350 = vmatprep.mubr.bf16.mxu1 %v6660_v2 }
 0x24a   : > { %v4154_v19 = vadd.f32 %v7167_v57, %v3972_v17  ;;  %v1470_v20 = vpop.f32.mrb[168].mxu0  ;;  %v3082_v21 = vpop.f32.mrb[168].mxu1  ;;  %v4328_v27 = vmax.f32 %v4153_v16, 0.0 }
 0x24b   : > { %v3707_v22 = vmax.f32 %v1470_v20, %v3082_v21  ;;  %v1472_v23 = vpop.f32.mrb[169].mxu0  ;;  %v3084_v24 = vpop.f32.mrb[169].mxu1 }
 0x24c   : > { %v4329_v28 = vmax.f32 %v4154_v19, 0.0  ;;  %v3708_v29 = vmax.f32 %v1472_v23, %v3084_v24  ;;  %v1474_v30 = vpop.f32.mrb[170].mxu0  ;;  %v3086_v31 = vpop.f32.mrb[170].mxu1 }
 0x24d   : > { %v3709_v32 = vmax.f32 %v1474_v30, %v3086_v31  ;;  %v1476_v33 = vpop.f32.mrb[171].mxu0  ;;  %v3088_v34 = vpop.f32.mrb[171].mxu1 }
 0x24e   : > { %v6125_v35 = vpack.c.bf16 %v4329_v28, %v4328_v27  ;;  %v3973_v36 = vmax.f32 %v3707_v22, %v3708_v29  ;;  %v3710_v37 = vmax.f32 %v1476_v33, %v3088_v34  ;;  %v6617_v27 = vld [vmem:[%s6729_s11 + $0x240] sm:$0xff]  }
 0x24f   : > { %1739 = vmatmul.mubr.bf16.gmra.mrb[20].mxu0 %v6610_v25  ;;  %3351 = vmatmul.mubr.bf16.gmra.mrb[20].mxu1 %v6611_v26  ;;  %v6616_v26 = vld [vmem:[%s6723_s8 + $0x240] sm:$0xff]  }
 0x250   : > { %6392 = vst [vmem:[%s6883_s12 + $0x148] sm:$0xff] %v6125_v35   ;;  %v4155_v38 = vadd.f32 %v7167_v57, %v3973_v36  ;;  %v3974_v39 = vmax.f32 %v3709_v32, %v3710_v37  ;;  %1748 = vmatprep.mubr.bf16.mxu0 %v6660_v2  ;;  %3360 = vmatprep.mubr.bf16.mxu1 %v6660_v2 }
 0x252   : > { %v4156_v40 = vadd.f32 %v7167_v57, %v3974_v39  ;;  %v1480_v41 = vpop.f32.mrb[172].mxu0  ;;  %v3092_v42 = vpop.f32.mrb[172].mxu1  ;;  %v4330_v48 = vmax.f32 %v4155_v38, 0.0 }
 0x253   : > { %v3711_v43 = vmax.f32 %v1480_v41, %v3092_v42  ;;  %v1482_v44 = vpop.f32.mrb[173].mxu0  ;;  %v3094_v45 = vpop.f32.mrb[173].mxu1 }
 0x254   : > { %v4331_v49 = vmax.f32 %v4156_v40, 0.0  ;;  %v3712_v50 = vmax.f32 %v1482_v44, %v3094_v45  ;;  %v1484_v51 = vpop.f32.mrb[174].mxu0  ;;  %v3096_v52 = vpop.f32.mrb[174].mxu1 }
 0x255   : > { %v3713_v53 = vmax.f32 %v1484_v51, %v3096_v52  ;;  %v1486_v54 = vpop.f32.mrb[175].mxu0  ;;  %v3098_v55 = vpop.f32.mrb[175].mxu1 }
 0x256   : > { %v6130_v56 = vpack.c.bf16 %v4331_v49, %v4330_v48  ;;  %v3975_v8 = vmax.f32 %v3711_v43, %v3712_v50  ;;  %v3714_v58 = vmax.f32 %v1486_v54, %v3098_v55  ;;  %v6619_v48 = vld [vmem:[%s6729_s11 + $0x248] sm:$0xff]  }
 0x257   : > { %1749 = vmatmul.mubr.bf16.gmra.mrb[24].mxu0 %v6612_v46  ;;  %3361 = vmatmul.mubr.bf16.gmra.mrb[24].mxu1 %v6613_v47  ;;  %v6618_v47 = vld [vmem:[%s6723_s8 + $0x248] sm:$0xff]  }
 0x258   : > { %6393 = vst [vmem:[%s6883_s12 + $0x150] sm:$0xff] %v6130_v56   ;;  %v4157_v59 = vadd.f32 %v7167_v57, %v3975_v8  ;;  %v3976_v60 = vmax.f32 %v3713_v53, %v3714_v58  ;;  %1758 = vmatprep.mubr.bf16.mxu0 %v6660_v2  ;;  %3370 = vmatprep.mubr.bf16.mxu1 %v6660_v2 }
 0x25a   : > { %v4158_v61 = vadd.f32 %v7167_v57, %v3976_v60  ;;  %v1490_v62 = vpop.f32.mrb[176].mxu0  ;;  %v3102_v63 = vpop.f32.mrb[176].mxu1  ;;  %v4332_v6 = vmax.f32 %v4157_v59, 0.0 }
 0x25b   : > { %v3715_v0 = vmax.f32 %v1490_v62, %v3102_v63  ;;  %v1492_v1 = vpop.f32.mrb[177].mxu0  ;;  %v3104_v3 = vpop.f32.mrb[177].mxu1 }
 0x25c   : > { %v4333_v7 = vmax.f32 %v4158_v61, 0.0  ;;  %v3716_v18 = vmax.f32 %v1492_v1, %v3104_v3  ;;  %v1494_v9 = vpop.f32.mrb[178].mxu0  ;;  %v3106_v10 = vpop.f32.mrb[178].mxu1 }
 0x25d   : > { %v3717_v11 = vmax.f32 %v1494_v9, %v3106_v10  ;;  %v1496_v12 = vpop.f32.mrb[179].mxu0  ;;  %v3108_v13 = vpop.f32.mrb[179].mxu1 }
 0x25e   : > { %v6135_v14 = vpack.c.bf16 %v4333_v7, %v4332_v6  ;;  %v3977_v15 = vmax.f32 %v3715_v0, %v3716_v18  ;;  %v3718_v16 = vmax.f32 %v1496_v12, %v3108_v13  ;;  %v6621_v6 = vld [vmem:[%s6729_s11 + $0x250] sm:$0xff]  }
 0x25f   : > { %1759 = vmatmul.mubr.bf16.gmra.mrb[28].mxu0 %v6614_v4  ;;  %3371 = vmatmul.mubr.bf16.gmra.mrb[28].mxu1 %v6615_v5  ;;  %v6620_v5 = vld [vmem:[%s6723_s8 + $0x250] sm:$0xff]  }
 0x260   : > { %6394 = vst [vmem:[%s6883_s12 + $0x158] sm:$0xff] %v6135_v14   ;;  %v4159_v17 = vadd.f32 %v7167_v57, %v3977_v15  ;;  %v3978_v19 = vmax.f32 %v3717_v11, %v3718_v16  ;;  %1768 = vmatprep.mubr.bf16.mxu0 %v6660_v2  ;;  %3380 = vmatprep.mubr.bf16.mxu1 %v6660_v2 }
 0x262   : > { %v4160_v20 = vadd.f32 %v7167_v57, %v3978_v19  ;;  %v1500_v21 = vpop.f32.mrb[180].mxu0  ;;  %v3112_v22 = vpop.f32.mrb[180].mxu1  ;;  %v4334_v28 = vmax.f32 %v4159_v17, 0.0 }
 0x263   : > { %v3719_v23 = vmax.f32 %v1500_v21, %v3112_v22  ;;  %v1502_v24 = vpop.f32.mrb[181].mxu0  ;;  %v3114_v25 = vpop.f32.mrb[181].mxu1 }
 0x264   : > { %v4335_v29 = vmax.f32 %v4160_v20, 0.0  ;;  %v3720_v30 = vmax.f32 %v1502_v24, %v3114_v25  ;;  %v1504_v31 = vpop.f32.mrb[182].mxu0  ;;  %v3116_v32 = vpop.f32.mrb[182].mxu1 }
 0x265   : > { %v3721_v33 = vmax.f32 %v1504_v31, %v3116_v32  ;;  %v1506_v34 = vpop.f32.mrb[183].mxu0  ;;  %v3118_v35 = vpop.f32.mrb[183].mxu1 }
 0x266   : > { %v6140_v36 = vpack.c.bf16 %v4335_v29, %v4334_v28  ;;  %v3979_v37 = vmax.f32 %v3719_v23, %v3720_v30  ;;  %v3722_v38 = vmax.f32 %v1506_v34, %v3118_v35  ;;  %v6623_v28 = vld [vmem:[%s6729_s11 + $0x258] sm:$0xff]  }
 0x267   : > { %1769 = vmatmul.mubr.bf16.gmra.mrb[32].mxu0 %v6616_v26  ;;  %3381 = vmatmul.mubr.bf16.gmra.mrb[32].mxu1 %v6617_v27  ;;  %v6622_v27 = vld [vmem:[%s6723_s8 + $0x258] sm:$0xff]  }
 0x268   : > { %6395 = vst [vmem:[%s6883_s12 + $0x160] sm:$0xff] %v6140_v36   ;;  %v4161_v39 = vadd.f32 %v7167_v57, %v3979_v37  ;;  %v3980_v40 = vmax.f32 %v3721_v33, %v3722_v38  ;;  %1778 = vmatprep.mubr.bf16.mxu0 %v6660_v2  ;;  %3390 = vmatprep.mubr.bf16.mxu1 %v6660_v2 }
 0x26a   : > { %v4162_v41 = vadd.f32 %v7167_v57, %v3980_v40  ;;  %v1510_v42 = vpop.f32.mrb[184].mxu0  ;;  %v3122_v43 = vpop.f32.mrb[184].mxu1  ;;  %v4336_v49 = vmax.f32 %v4161_v39, 0.0 }
 0x26b   : > { %v3723_v44 = vmax.f32 %v1510_v42, %v3122_v43  ;;  %v1512_v45 = vpop.f32.mrb[185].mxu0  ;;  %v3124_v46 = vpop.f32.mrb[185].mxu1 }
 0x26c   : > { %v4337_v50 = vmax.f32 %v4162_v41, 0.0  ;;  %v3724_v51 = vmax.f32 %v1512_v45, %v3124_v46  ;;  %v1514_v52 = vpop.f32.mrb[186].mxu0  ;;  %v3126_v53 = vpop.f32.mrb[186].mxu1 }
 0x26d   : > { %v3725_v54 = vmax.f32 %v1514_v52, %v3126_v53  ;;  %v1516_v55 = vpop.f32.mrb[187].mxu0  ;;  %v3128_v56 = vpop.f32.mrb[187].mxu1 }
 0x26e   : > { %v6145_v8 = vpack.c.bf16 %v4337_v50, %v4336_v49  ;;  %v3981_v58 = vmax.f32 %v3723_v44, %v3724_v51  ;;  %v3726_v59 = vmax.f32 %v1516_v55, %v3128_v56  ;;  %v6625_v49 = vld [vmem:[%s6729_s11 + $0x260] sm:$0xff]  }
 0x26f   : > { %1779 = vmatmul.mubr.bf16.gmra.mrb[36].mxu0 %v6618_v47  ;;  %3391 = vmatmul.mubr.bf16.gmra.mrb[36].mxu1 %v6619_v48  ;;  %v6624_v48 = vld [vmem:[%s6723_s8 + $0x260] sm:$0xff]  }
 0x270   : > { %6396 = vst [vmem:[%s6883_s12 + $0x168] sm:$0xff] %v6145_v8   ;;  %v4163_v60 = vadd.f32 %v7167_v57, %v3981_v58  ;;  %v3982_v61 = vmax.f32 %v3725_v54, %v3726_v59  ;;  %1788 = vmatprep.mubr.bf16.mxu0 %v6660_v2  ;;  %3400 = vmatprep.mubr.bf16.mxu1 %v6660_v2 }
 0x272   : > { %v4164_v62 = vadd.f32 %v7167_v57, %v3982_v61  ;;  %v1520_v63 = vpop.f32.mrb[188].mxu0  ;;  %v3132_v0 = vpop.f32.mrb[188].mxu1  ;;  %v4338_v7 = vmax.f32 %v4163_v60, 0.0 }
 0x273   : > { %v3727_v1 = vmax.f32 %v1520_v63, %v3132_v0  ;;  %v1522_v3 = vpop.f32.mrb[189].mxu0  ;;  %v3134_v4 = vpop.f32.mrb[189].mxu1 }
 0x274   : > { %v4339_v18 = vmax.f32 %v4164_v62, 0.0  ;;  %v3728_v9 = vmax.f32 %v1522_v3, %v3134_v4  ;;  %v1524_v10 = vpop.f32.mrb[190].mxu0  ;;  %v3136_v11 = vpop.f32.mrb[190].mxu1 }
 0x275   : > { %v3729_v12 = vmax.f32 %v1524_v10, %v3136_v11  ;;  %v1526_v13 = vpop.f32.mrb[191].mxu0  ;;  %v3138_v14 = vpop.f32.mrb[191].mxu1 }
 0x276   : > { %v6150_v15 = vpack.c.bf16 %v4339_v18, %v4338_v7  ;;  %v3983_v16 = vmax.f32 %v3727_v1, %v3728_v9  ;;  %v3730_v17 = vmax.f32 %v1526_v13, %v3138_v14  ;;  %v6627_v7 = vld [vmem:[%s6729_s11 + $0x268] sm:$0xff]  }
 0x277   : > { %1789 = vmatmul.mubr.bf16.gmra.mrb[40].mxu0 %v6620_v5  ;;  %3401 = vmatmul.mubr.bf16.gmra.mrb[40].mxu1 %v6621_v6  ;;  %v6626_v6 = vld [vmem:[%s6723_s8 + $0x268] sm:$0xff]  }
 0x278   : > { %6397 = vst [vmem:[%s6883_s12 + $0x170] sm:$0xff] %v6150_v15   ;;  %v4165_v19 = vadd.f32 %v7167_v57, %v3983_v16  ;;  %v3984_v20 = vmax.f32 %v3729_v12, %v3730_v17  ;;  %1798 = vmatprep.mubr.bf16.mxu0 %v6660_v2  ;;  %3410 = vmatprep.mubr.bf16.mxu1 %v6660_v2 }
 0x27a   : > { %v4166_v21 = vadd.f32 %v7167_v57, %v3984_v20  ;;  %v1530_v22 = vpop.f32.mrb[192].mxu0  ;;  %v3142_v23 = vpop.f32.mrb[192].mxu1  ;;  %v4340_v29 = vmax.f32 %v4165_v19, 0.0 }
 0x27b   : > { %v3731_v24 = vmax.f32 %v1530_v22, %v3142_v23  ;;  %v1532_v25 = vpop.f32.mrb[193].mxu0  ;;  %v3144_v26 = vpop.f32.mrb[193].mxu1 }
 0x27c   : > { %v4341_v30 = vmax.f32 %v4166_v21, 0.0  ;;  %v3732_v31 = vmax.f32 %v1532_v25, %v3144_v26  ;;  %v1534_v32 = vpop.f32.mrb[194].mxu0  ;;  %v3146_v33 = vpop.f32.mrb[194].mxu1 }
 0x27d   : > { %v3733_v34 = vmax.f32 %v1534_v32, %v3146_v33  ;;  %v1536_v35 = vpop.f32.mrb[195].mxu0  ;;  %v3148_v36 = vpop.f32.mrb[195].mxu1 }
 0x27e   : > { %v6155_v37 = vpack.c.bf16 %v4341_v30, %v4340_v29  ;;  %v3985_v38 = vmax.f32 %v3731_v24, %v3732_v31  ;;  %v3734_v39 = vmax.f32 %v1536_v35, %v3148_v36  ;;  %v6629_v29 = vld [vmem:[%s6729_s11 + $0x270] sm:$0xff]  }
 0x27f   : > { %1799 = vmatmul.mubr.bf16.gmra.mrb[44].mxu0 %v6622_v27  ;;  %3411 = vmatmul.mubr.bf16.gmra.mrb[44].mxu1 %v6623_v28  ;;  %v6628_v28 = vld [vmem:[%s6723_s8 + $0x270] sm:$0xff]  }
 0x280   : > { %6398 = vst [vmem:[%s6883_s12 + $0x178] sm:$0xff] %v6155_v37   ;;  %v4167_v40 = vadd.f32 %v7167_v57, %v3985_v38  ;;  %v3986_v41 = vmax.f32 %v3733_v34, %v3734_v39  ;;  %1808 = vmatprep.mubr.bf16.mxu0 %v6660_v2  ;;  %3420 = vmatprep.mubr.bf16.mxu1 %v6660_v2 }
 0x282   : > { %v4168_v42 = vadd.f32 %v7167_v57, %v3986_v41  ;;  %v1540_v43 = vpop.f32.mrb[196].mxu0  ;;  %v3152_v44 = vpop.f32.mrb[196].mxu1  ;;  %v4342_v50 = vmax.f32 %v4167_v40, 0.0 }
 0x283   : > { %v3735_v45 = vmax.f32 %v1540_v43, %v3152_v44  ;;  %v1542_v46 = vpop.f32.mrb[197].mxu0  ;;  %v3154_v47 = vpop.f32.mrb[197].mxu1 }
 0x284   : > { %v4343_v51 = vmax.f32 %v4168_v42, 0.0  ;;  %v3736_v52 = vmax.f32 %v1542_v46, %v3154_v47  ;;  %v1544_v53 = vpop.f32.mrb[198].mxu0  ;;  %v3156_v54 = vpop.f32.mrb[198].mxu1 }
 0x285   : > { %v3737_v55 = vmax.f32 %v1544_v53, %v3156_v54  ;;  %v1546_v56 = vpop.f32.mrb[199].mxu0  ;;  %v3158_v8 = vpop.f32.mrb[199].mxu1 }
 0x286   : > { %v6160_v58 = vpack.c.bf16 %v4343_v51, %v4342_v50  ;;  %v3987_v59 = vmax.f32 %v3735_v45, %v3736_v52  ;;  %v3738_v60 = vmax.f32 %v1546_v56, %v3158_v8  ;;  %v6631_v50 = vld [vmem:[%s6729_s11 + $0x278] sm:$0xff]  }
 0x287   : > { %1809 = vmatmul.mubr.bf16.gmra.mrb[48].mxu0 %v6624_v48  ;;  %3421 = vmatmul.mubr.bf16.gmra.mrb[48].mxu1 %v6625_v49  ;;  %v6630_v49 = vld [vmem:[%s6723_s8 + $0x278] sm:$0xff]  }
 0x288   : > { %6399 = vst [vmem:[%s6883_s12 + $0x180] sm:$0xff] %v6160_v58   ;;  %v4169_v61 = vadd.f32 %v7167_v57, %v3987_v59  ;;  %v3988_v62 = vmax.f32 %v3737_v55, %v3738_v60  ;;  %1818 = vmatprep.mubr.bf16.mxu0 %v6660_v2  ;;  %3430 = vmatprep.mubr.bf16.mxu1 %v6660_v2 }
 0x28a   : > { %v4170_v63 = vadd.f32 %v7167_v57, %v3988_v62  ;;  %v1550_v0 = vpop.f32.mrb[200].mxu0  ;;  %v3162_v1 = vpop.f32.mrb[200].mxu1  ;;  %v4344_v18 = vmax.f32 %v4169_v61, 0.0 }
 0x28b   : > { %v3739_v3 = vmax.f32 %v1550_v0, %v3162_v1  ;;  %v1552_v4 = vpop.f32.mrb[201].mxu0  ;;  %v3164_v5 = vpop.f32.mrb[201].mxu1 }
 0x28c   : > { %v4345_v9 = vmax.f32 %v4170_v63, 0.0  ;;  %v3740_v10 = vmax.f32 %v1552_v4, %v3164_v5  ;;  %v1554_v11 = vpop.f32.mrb[202].mxu0  ;;  %v3166_v12 = vpop.f32.mrb[202].mxu1 }
 0x28d   : > { %v3741_v13 = vmax.f32 %v1554_v11, %v3166_v12  ;;  %v1556_v14 = vpop.f32.mrb[203].mxu0  ;;  %v3168_v15 = vpop.f32.mrb[203].mxu1 }
 0x28e   : > { %v6165_v16 = vpack.c.bf16 %v4345_v9, %v4344_v18  ;;  %v3989_v17 = vmax.f32 %v3739_v3, %v3740_v10  ;;  %v3742_v19 = vmax.f32 %v1556_v14, %v3168_v15  ;;  %v6633_v18 = vld [vmem:[%s6729_s11 + $0x280] sm:$0xff]  }
 0x28f   : > { %1819 = vmatmul.mubr.bf16.gmra.mrb[52].mxu0 %v6626_v6  ;;  %3431 = vmatmul.mubr.bf16.gmra.mrb[52].mxu1 %v6627_v7  ;;  %v6632_v7 = vld [vmem:[%s6723_s8 + $0x280] sm:$0xff]  }
 0x290   : > { %6400 = vst [vmem:[%s6883_s12 + $0x188] sm:$0xff] %v6165_v16   ;;  %v4171_v20 = vadd.f32 %v7167_v57, %v3989_v17  ;;  %v3990_v21 = vmax.f32 %v3741_v13, %v3742_v19  ;;  %1828 = vmatprep.mubr.bf16.mxu0 %v6660_v2  ;;  %3440 = vmatprep.mubr.bf16.mxu1 %v6660_v2 }
 0x292   : > { %v4172_v22 = vadd.f32 %v7167_v57, %v3990_v21  ;;  %v1560_v23 = vpop.f32.mrb[204].mxu0  ;;  %v3172_v24 = vpop.f32.mrb[204].mxu1  ;;  %v4346_v30 = vmax.f32 %v4171_v20, 0.0 }
 0x293   : > { %v3743_v25 = vmax.f32 %v1560_v23, %v3172_v24  ;;  %v1562_v26 = vpop.f32.mrb[205].mxu0  ;;  %v3174_v27 = vpop.f32.mrb[205].mxu1 }
 0x294   : > { %v4347_v31 = vmax.f32 %v4172_v22, 0.0  ;;  %v3744_v32 = vmax.f32 %v1562_v26, %v3174_v27  ;;  %v1564_v33 = vpop.f32.mrb[206].mxu0  ;;  %v3176_v34 = vpop.f32.mrb[206].mxu1 }
 0x295   : > { %v3745_v35 = vmax.f32 %v1564_v33, %v3176_v34  ;;  %v1566_v36 = vpop.f32.mrb[207].mxu0  ;;  %v3178_v37 = vpop.f32.mrb[207].mxu1 }
 0x296   : > { %v6170_v38 = vpack.c.bf16 %v4347_v31, %v4346_v30  ;;  %v3991_v39 = vmax.f32 %v3743_v25, %v3744_v32  ;;  %v3746_v40 = vmax.f32 %v1566_v36, %v3178_v37  ;;  %v6635_v30 = vld [vmem:[%s6729_s11 + $0x288] sm:$0xff]  }
 0x297   : > { %1829 = vmatmul.mubr.bf16.gmra.mrb[56].mxu0 %v6628_v28  ;;  %3441 = vmatmul.mubr.bf16.gmra.mrb[56].mxu1 %v6629_v29  ;;  %v6634_v29 = vld [vmem:[%s6723_s8 + $0x288] sm:$0xff]  }
 0x298   : > { %6401 = vst [vmem:[%s6883_s12 + $0x190] sm:$0xff] %v6170_v38   ;;  %v4173_v41 = vadd.f32 %v7167_v57, %v3991_v39  ;;  %v3992_v42 = vmax.f32 %v3745_v35, %v3746_v40  ;;  %1838 = vmatprep.mubr.bf16.mxu0 %v6660_v2  ;;  %3450 = vmatprep.mubr.bf16.mxu1 %v6660_v2 }
 0x29a   : > { %v4174_v43 = vadd.f32 %v7167_v57, %v3992_v42  ;;  %v1570_v44 = vpop.f32.mrb[208].mxu0  ;;  %v3182_v45 = vpop.f32.mrb[208].mxu1  ;;  %v4348_v51 = vmax.f32 %v4173_v41, 0.0 }
 0x29b   : > { %v3747_v46 = vmax.f32 %v1570_v44, %v3182_v45  ;;  %v1572_v47 = vpop.f32.mrb[209].mxu0  ;;  %v3184_v48 = vpop.f32.mrb[209].mxu1 }
 0x29c   : > { %v4349_v52 = vmax.f32 %v4174_v43, 0.0  ;;  %v3748_v53 = vmax.f32 %v1572_v47, %v3184_v48  ;;  %v1574_v54 = vpop.f32.mrb[210].mxu0  ;;  %v3186_v55 = vpop.f32.mrb[210].mxu1 }
 0x29d   : > { %v3749_v56 = vmax.f32 %v1574_v54, %v3186_v55  ;;  %v1576_v8 = vpop.f32.mrb[211].mxu0  ;;  %v3188_v58 = vpop.f32.mrb[211].mxu1 }
 0x29e   : > { %v6175_v59 = vpack.c.bf16 %v4349_v52, %v4348_v51  ;;  %v3993_v60 = vmax.f32 %v3747_v46, %v3748_v53  ;;  %v3750_v61 = vmax.f32 %v1576_v8, %v3188_v58  ;;  %v6637_v51 = vld [vmem:[%s6729_s11 + $0x290] sm:$0xff]  }
 0x29f   : > { %1839 = vmatmul.mubr.bf16.gmra.mrb[60].mxu0 %v6630_v49  ;;  %3451 = vmatmul.mubr.bf16.gmra.mrb[60].mxu1 %v6631_v50  ;;  %v6636_v50 = vld [vmem:[%s6723_s8 + $0x290] sm:$0xff]  }
 0x2a0   : > { %6402 = vst [vmem:[%s6883_s12 + $0x198] sm:$0xff] %v6175_v59   ;;  %v4175_v62 = vadd.f32 %v7167_v57, %v3993_v60  ;;  %v3994_v63 = vmax.f32 %v3749_v56, %v3750_v61  ;;  %1848 = vmatprep.mubr.bf16.mxu0 %v6660_v2  ;;  %3460 = vmatprep.mubr.bf16.mxu1 %v6660_v2 }
 0x2a2   : > { %v4176_v0 = vadd.f32 %v7167_v57, %v3994_v63  ;;  %v1580_v1 = vpop.f32.mrb[212].mxu0  ;;  %v3192_v3 = vpop.f32.mrb[212].mxu1  ;;  %v4350_v9 = vmax.f32 %v4175_v62, 0.0 }
 0x2a3   : > { %v3751_v4 = vmax.f32 %v1580_v1, %v3192_v3  ;;  %v1582_v5 = vpop.f32.mrb[213].mxu0  ;;  %v3194_v6 = vpop.f32.mrb[213].mxu1 }
 0x2a4   : > { %v4351_v10 = vmax.f32 %v4176_v0, 0.0  ;;  %v3752_v11 = vmax.f32 %v1582_v5, %v3194_v6  ;;  %v1584_v12 = vpop.f32.mrb[214].mxu0  ;;  %v3196_v13 = vpop.f32.mrb[214].mxu1 }
 0x2a5   : > { %v3753_v14 = vmax.f32 %v1584_v12, %v3196_v13  ;;  %v1586_v15 = vpop.f32.mrb[215].mxu0  ;;  %v3198_v16 = vpop.f32.mrb[215].mxu1 }
 0x2a6   : > { %v6180_v17 = vpack.c.bf16 %v4351_v10, %v4350_v9  ;;  %v3995_v19 = vmax.f32 %v3751_v4, %v3752_v11  ;;  %v3754_v20 = vmax.f32 %v1586_v15, %v3198_v16  ;;  %v6639_v9 = vld [vmem:[%s6729_s11 + $0x298] sm:$0xff]  }
 0x2a7   : > { %1849 = vmatmul.mubr.bf16.gmra.mrb[64].mxu0 %v6632_v7  ;;  %3461 = vmatmul.mubr.bf16.gmra.mrb[64].mxu1 %v6633_v18  ;;  %v6638_v18 = vld [vmem:[%s6723_s8 + $0x298] sm:$0xff]  }
 0x2a8   : > { %6403 = vst [vmem:[%s6883_s12 + $0x1a0] sm:$0xff] %v6180_v17   ;;  %v4177_v21 = vadd.f32 %v7167_v57, %v3995_v19  ;;  %v3996_v22 = vmax.f32 %v3753_v14, %v3754_v20  ;;  %1858 = vmatprep.mubr.bf16.mxu0 %v6660_v2  ;;  %3470 = vmatprep.mubr.bf16.mxu1 %v6660_v2 }
 0x2aa   : > { %v4178_v23 = vadd.f32 %v7167_v57, %v3996_v22  ;;  %v1590_v24 = vpop.f32.mrb[216].mxu0  ;;  %v3202_v25 = vpop.f32.mrb[216].mxu1  ;;  %v4352_v31 = vmax.f32 %v4177_v21, 0.0 }
 0x2ab   : > { %v3755_v26 = vmax.f32 %v1590_v24, %v3202_v25  ;;  %v1592_v27 = vpop.f32.mrb[217].mxu0  ;;  %v3204_v28 = vpop.f32.mrb[217].mxu1 }
 0x2ac   : > { %v4353_v32 = vmax.f32 %v4178_v23, 0.0  ;;  %v3756_v33 = vmax.f32 %v1592_v27, %v3204_v28  ;;  %v1594_v34 = vpop.f32.mrb[218].mxu0  ;;  %v3206_v35 = vpop.f32.mrb[218].mxu1 }
 0x2ad   : > { %v3757_v36 = vmax.f32 %v1594_v34, %v3206_v35  ;;  %v1596_v37 = vpop.f32.mrb[219].mxu0  ;;  %v3208_v38 = vpop.f32.mrb[219].mxu1 }
 0x2ae   : > { %v6185_v39 = vpack.c.bf16 %v4353_v32, %v4352_v31  ;;  %v3997_v40 = vmax.f32 %v3755_v26, %v3756_v33  ;;  %v3758_v41 = vmax.f32 %v1596_v37, %v3208_v38  ;;  %v6641_v31 = vld [vmem:[%s6729_s11 + $0x2a0] sm:$0xff]  }
 0x2af   : > { %1859 = vmatmul.mubr.bf16.gmra.mrb[68].mxu0 %v6634_v29  ;;  %3471 = vmatmul.mubr.bf16.gmra.mrb[68].mxu1 %v6635_v30  ;;  %v6640_v30 = vld [vmem:[%s6723_s8 + $0x2a0] sm:$0xff]  }
 0x2b0   : > { %6404 = vst [vmem:[%s6883_s12 + $0x1a8] sm:$0xff] %v6185_v39   ;;  %v4179_v42 = vadd.f32 %v7167_v57, %v3997_v40  ;;  %v3998_v43 = vmax.f32 %v3757_v36, %v3758_v41  ;;  %1868 = vmatprep.mubr.bf16.mxu0 %v6660_v2  ;;  %3480 = vmatprep.mubr.bf16.mxu1 %v6660_v2 }
 0x2b2   : > { %v4180_v44 = vadd.f32 %v7167_v57, %v3998_v43  ;;  %v1600_v45 = vpop.f32.mrb[220].mxu0  ;;  %v3212_v46 = vpop.f32.mrb[220].mxu1  ;;  %v4354_v52 = vmax.f32 %v4179_v42, 0.0 }
 0x2b3   : > { %v3759_v47 = vmax.f32 %v1600_v45, %v3212_v46  ;;  %v1602_v48 = vpop.f32.mrb[221].mxu0  ;;  %v3214_v49 = vpop.f32.mrb[221].mxu1 }
 0x2b4   : > { %v4355_v53 = vmax.f32 %v4180_v44, 0.0  ;;  %v3760_v54 = vmax.f32 %v1602_v48, %v3214_v49  ;;  %v1604_v55 = vpop.f32.mrb[222].mxu0  ;;  %v3216_v56 = vpop.f32.mrb[222].mxu1 }
 0x2b5   : > { %v3761_v8 = vmax.f32 %v1604_v55, %v3216_v56  ;;  %v1606_v58 = vpop.f32.mrb[223].mxu0  ;;  %v3218_v59 = vpop.f32.mrb[223].mxu1 }
 0x2b6   : > { %v6190_v60 = vpack.c.bf16 %v4355_v53, %v4354_v52  ;;  %v3999_v61 = vmax.f32 %v3759_v47, %v3760_v54  ;;  %v3762_v62 = vmax.f32 %v1606_v58, %v3218_v59  ;;  %v6643_v52 = vld [vmem:[%s6729_s11 + $0x2a8] sm:$0xff]  }
 0x2b7   : > { %1869 = vmatmul.mubr.bf16.gmra.mrb[72].mxu0 %v6636_v50  ;;  %3481 = vmatmul.mubr.bf16.gmra.mrb[72].mxu1 %v6637_v51  ;;  %v6642_v51 = vld [vmem:[%s6723_s8 + $0x2a8] sm:$0xff]  }
 0x2b8   : > { %6405 = vst [vmem:[%s6883_s12 + $0x1b0] sm:$0xff] %v6190_v60   ;;  %v4181_v63 = vadd.f32 %v7167_v57, %v3999_v61  ;;  %v4000_v0 = vmax.f32 %v3761_v8, %v3762_v62  ;;  %1878 = vmatprep.mubr.bf16.mxu0 %v6660_v2  ;;  %3490 = vmatprep.mubr.bf16.mxu1 %v6660_v2 }
 0x2ba   : > { %v4182_v1 = vadd.f32 %v7167_v57, %v4000_v0  ;;  %v1610_v3 = vpop.f32.mrb[224].mxu0  ;;  %v3222_v4 = vpop.f32.mrb[224].mxu1  ;;  %v4356_v10 = vmax.f32 %v4181_v63, 0.0 }
 0x2bb   : > { %v3763_v5 = vmax.f32 %v1610_v3, %v3222_v4  ;;  %v1612_v6 = vpop.f32.mrb[225].mxu0  ;;  %v3224_v7 = vpop.f32.mrb[225].mxu1 }
 0x2bc   : > { %v4357_v11 = vmax.f32 %v4182_v1, 0.0  ;;  %v3764_v12 = vmax.f32 %v1612_v6, %v3224_v7  ;;  %v1614_v13 = vpop.f32.mrb[226].mxu0  ;;  %v3226_v14 = vpop.f32.mrb[226].mxu1 }
 0x2bd   : > { %v3765_v15 = vmax.f32 %v1614_v13, %v3226_v14  ;;  %v1616_v16 = vpop.f32.mrb[227].mxu0  ;;  %v3228_v17 = vpop.f32.mrb[227].mxu1 }
 0x2be   : > { %v6195_v19 = vpack.c.bf16 %v4357_v11, %v4356_v10  ;;  %v4001_v20 = vmax.f32 %v3763_v5, %v3764_v12  ;;  %v3766_v21 = vmax.f32 %v1616_v16, %v3228_v17  ;;  %v6645_v10 = vld [vmem:[%s6729_s11 + $0x2b0] sm:$0xff]  }
 0x2bf   : > { %1879 = vmatmul.mubr.bf16.gmra.mrb[76].mxu0 %v6638_v18  ;;  %3491 = vmatmul.mubr.bf16.gmra.mrb[76].mxu1 %v6639_v9  ;;  %v6644_v9 = vld [vmem:[%s6723_s8 + $0x2b0] sm:$0xff]  }
 0x2c0   : > { %6406 = vst [vmem:[%s6883_s12 + $0x1b8] sm:$0xff] %v6195_v19   ;;  %v4183_v22 = vadd.f32 %v7167_v57, %v4001_v20  ;;  %v4002_v23 = vmax.f32 %v3765_v15, %v3766_v21  ;;  %1888 = vmatprep.mubr.bf16.mxu0 %v6660_v2  ;;  %3500 = vmatprep.mubr.bf16.mxu1 %v6660_v2 }
 0x2c2   : > { %v4184_v24 = vadd.f32 %v7167_v57, %v4002_v23  ;;  %v1620_v25 = vpop.f32.mrb[228].mxu0  ;;  %v3232_v26 = vpop.f32.mrb[228].mxu1  ;;  %v4358_v32 = vmax.f32 %v4183_v22, 0.0 }
 0x2c3   : > { %v3767_v27 = vmax.f32 %v1620_v25, %v3232_v26  ;;  %v1622_v28 = vpop.f32.mrb[229].mxu0  ;;  %v3234_v29 = vpop.f32.mrb[229].mxu1 }
 0x2c4   : > { %v4359_v33 = vmax.f32 %v4184_v24, 0.0  ;;  %v3768_v34 = vmax.f32 %v1622_v28, %v3234_v29  ;;  %v1624_v35 = vpop.f32.mrb[230].mxu0  ;;  %v3236_v36 = vpop.f32.mrb[230].mxu1 }
 0x2c5   : > { %v3769_v37 = vmax.f32 %v1624_v35, %v3236_v36  ;;  %v1626_v38 = vpop.f32.mrb[231].mxu0  ;;  %v3238_v39 = vpop.f32.mrb[231].mxu1 }
 0x2c6   : > { %v6200_v40 = vpack.c.bf16 %v4359_v33, %v4358_v32  ;;  %v4003_v41 = vmax.f32 %v3767_v27, %v3768_v34  ;;  %v3770_v42 = vmax.f32 %v1626_v38, %v3238_v39  ;;  %v6647_v32 = vld [vmem:[%s6729_s11 + $0x2b8] ss:$0 sps:$4 sm:$0xff]  }
 0x2c7   : > { %1889 = vmatmul.mubr.bf16.gmra.mrb[80].mxu0 %v6640_v30  ;;  %3501 = vmatmul.mubr.bf16.gmra.mrb[80].mxu1 %v6641_v31  ;;  %v6646_v31 = vld [vmem:[%s6723_s8 + $0x2b8] ss:$0 sps:$4 sm:$0xff]  }
 0x2c8   : > { %6407 = vst [vmem:[%s6883_s12 + $0x1c0] sm:$0xff] %v6200_v40   ;;  %v4185_v43 = vadd.f32 %v7167_v57, %v4003_v41  ;;  %v4004_v44 = vmax.f32 %v3769_v37, %v3770_v42  ;;  %1898 = vmatprep.mubr.bf16.mxu0 %v6660_v2  ;;  %3510 = vmatprep.mubr.bf16.mxu1 %v6660_v2 }
 0x2ca   : > { %v4186_v45 = vadd.f32 %v7167_v57, %v4004_v44  ;;  %v1630_v46 = vpop.f32.mrb[232].mxu0  ;;  %v3242_v47 = vpop.f32.mrb[232].mxu1  ;;  %v4360_v53 = vmax.f32 %v4185_v43, 0.0 }
 0x2cb   : > { %v3771_v48 = vmax.f32 %v1630_v46, %v3242_v47  ;;  %v1632_v49 = vpop.f32.mrb[233].mxu0  ;;  %v3244_v50 = vpop.f32.mrb[233].mxu1 }
 0x2cc   : > { %v4361_v54 = vmax.f32 %v4186_v45, 0.0  ;;  %v3772_v55 = vmax.f32 %v1632_v49, %v3244_v50  ;;  %v1634_v56 = vpop.f32.mrb[234].mxu0  ;;  %v3246_v8 = vpop.f32.mrb[234].mxu1 }
 0x2cd   : > { %v3773_v58 = vmax.f32 %v1634_v56, %v3246_v8  ;;  %v1636_v59 = vpop.f32.mrb[235].mxu0  ;;  %v3248_v60 = vpop.f32.mrb[235].mxu1 }
 0x2ce   : > { %v6205_v61 = vpack.c.bf16 %v4361_v54, %v4360_v53  ;;  %v4005_v62 = vmax.f32 %v3771_v48, %v3772_v55  ;;  %v3774_v63 = vmax.f32 %v1636_v59, %v3248_v60 }
 0x2cf   : > { %1899 = vmatmul.mubr.bf16.gmra.mrb[84].mxu0 %v6642_v51  ;;  %3511 = vmatmul.mubr.bf16.gmra.mrb[84].mxu1 %v6643_v52 }
 0x2d0   : > { %6408 = vst [vmem:[%s6883_s12 + $0x1c8] sm:$0xff] %v6205_v61   ;;  %v4187_v0 = vadd.f32 %v7167_v57, %v4005_v62  ;;  %v4006_v1 = vmax.f32 %v3773_v58, %v3774_v63  ;;  %1908 = vmatprep.mubr.bf16.mxu0 %v6660_v2  ;;  %3520 = vmatprep.mubr.bf16.mxu1 %v6660_v2 }
 0x2d2   : > { %v4188_v3 = vadd.f32 %v7167_v57, %v4006_v1  ;;  %v1640_v4 = vpop.f32.mrb[236].mxu0  ;;  %v3252_v5 = vpop.f32.mrb[236].mxu1  ;;  %v4362_v11 = vmax.f32 %v4187_v0, 0.0 }
 0x2d3   : > { %v3775_v6 = vmax.f32 %v1640_v4, %v3252_v5  ;;  %v1642_v7 = vpop.f32.mrb[237].mxu0  ;;  %v3254_v18 = vpop.f32.mrb[237].mxu1 }
 0x2d4   : > { %v4363_v12 = vmax.f32 %v4188_v3, 0.0  ;;  %v3776_v13 = vmax.f32 %v1642_v7, %v3254_v18  ;;  %v1644_v14 = vpop.f32.mrb[238].mxu0  ;;  %v3256_v15 = vpop.f32.mrb[238].mxu1 }
 0x2d5   : > { %v3777_v16 = vmax.f32 %v1644_v14, %v3256_v15  ;;  %v1646_v17 = vpop.f32.mrb[239].mxu0  ;;  %v3258_v19 = vpop.f32.mrb[239].mxu1 }
 0x2d6   : > { %v6210_v20 = vpack.c.bf16 %v4363_v12, %v4362_v11  ;;  %v4007_v21 = vmax.f32 %v3775_v6, %v3776_v13  ;;  %v3778_v22 = vmax.f32 %v1646_v17, %v3258_v19 }
 0x2d7   : > { %1909 = vmatmul.mubr.bf16.gmra.mrb[88].mxu0 %v6644_v9  ;;  %3521 = vmatmul.mubr.bf16.gmra.mrb[88].mxu1 %v6645_v10 }
 0x2d8   : > { %6409 = vst [vmem:[%s6883_s12 + $0x1d0] sm:$0xff] %v6210_v20   ;;  %v4189_v23 = vadd.f32 %v7167_v57, %v4007_v21  ;;  %v4008_v24 = vmax.f32 %v3777_v16, %v3778_v22  ;;  %1918 = vmatprep.mubr.bf16.mxu0 %v6660_v2  ;;  %3530 = vmatprep.mubr.bf16.mxu1 %v6660_v2 }
 0x2da   : > { %v4190_v25 = vadd.f32 %v7167_v57, %v4008_v24  ;;  %v1650_v26 = vpop.f32.mrb[240].mxu0  ;;  %v3262_v27 = vpop.f32.mrb[240].mxu1  ;;  %v4364_v33 = vmax.f32 %v4189_v23, 0.0  ;;  %v7312_v57 = vld [vmem:[%s7403_s3] ss:$0 sm:$0xff] }
 0x2db   : > { %v3779_v28 = vmax.f32 %v1650_v26, %v3262_v27  ;;  %v1652_v29 = vpop.f32.mrb[241].mxu0  ;;  %v3264_v30 = vpop.f32.mrb[241].mxu1 }
 0x2dc   : > { %v4365_v34 = vmax.f32 %v4190_v25, 0.0  ;;  %v3780_v35 = vmax.f32 %v1652_v29, %v3264_v30  ;;  %v1654_v36 = vpop.f32.mrb[242].mxu0  ;;  %v3266_v37 = vpop.f32.mrb[242].mxu1 }
 0x2dd   : > { %v3781_v38 = vmax.f32 %v1654_v36, %v3266_v37  ;;  %v1656_v39 = vpop.f32.mrb[243].mxu0  ;;  %v3268_v40 = vpop.f32.mrb[243].mxu1 }
 0x2de   : > { %v6215_v41 = vpack.c.bf16 %v4365_v34, %v4364_v33  ;;  %v4009_v2 = vmax.f32 %v3779_v28, %v3780_v35  ;;  %v3782_v42 = vmax.f32 %v1656_v39, %v3268_v40 }
 0x2df   : > { %1919 = vmatmul.mubr.bf16.gmra.mrb[92].mxu0 %v6646_v31  ;;  %3531 = vmatmul.mubr.bf16.gmra.mrb[92].mxu1 %v6647_v32 }
 0x2e0   : > { %6410 = vst [vmem:[%s6883_s12 + $0x1d8] sm:$0xff] %v6215_v41   ;;  %v4191_v43 = vadd.f32 %v7312_v57, %v4009_v2  ;;  %v4010_v44 = vmax.f32 %v3781_v38, %v3782_v42 }
 0x2e2   : > { %v4192_v45 = vadd.f32 %v7312_v57, %v4010_v44  ;;  %v1660_v46 = vpop.f32.mrb[244].mxu0  ;;  %v3272_v47 = vpop.f32.mrb[244].mxu1  ;;  %v4366_v51 = vmax.f32 %v4191_v43, 0.0 }
 0x2e3   : > { %v3783_v48 = vmax.f32 %v1660_v46, %v3272_v47  ;;  %v1662_v49 = vpop.f32.mrb[245].mxu0  ;;  %v3274_v50 = vpop.f32.mrb[245].mxu1 }
 0x2e4   : > { %v4367_v52 = vmax.f32 %v4192_v45, 0.0  ;;  %v3784_v53 = vmax.f32 %v1662_v49, %v3274_v50  ;;  %v1664_v54 = vpop.f32.mrb[246].mxu0  ;;  %v3276_v55 = vpop.f32.mrb[246].mxu1 }
 0x2e5   : > { %v3785_v56 = vmax.f32 %v1664_v54, %v3276_v55  ;;  %v1666_v8 = vpop.f32.mrb[247].mxu0  ;;  %v3278_v58 = vpop.f32.mrb[247].mxu1 }
 0x2e6   : > { %v6220_v59 = vpack.c.bf16 %v4367_v52, %v4366_v51  ;;  %v4011_v60 = vmax.f32 %v3783_v48, %v3784_v53  ;;  %v3786_v61 = vmax.f32 %v1666_v8, %v3278_v58 }
 0x2e8   : > { %6411 = vst [vmem:[%s6883_s12 + $0x1e0] sm:$0xff] %v6220_v59   ;;  %v4193_v62 = vadd.f32 %v7312_v57, %v4011_v60  ;;  %v4012_v63 = vmax.f32 %v3785_v56, %v3786_v61 }
 0x2ea   : > { %v4194_v0 = vadd.f32 %v7312_v57, %v4012_v63  ;;  %v1670_v1 = vpop.f32.mrb[248].mxu0  ;;  %v3282_v3 = vpop.f32.mrb[248].mxu1  ;;  %v4368_v7 = vmax.f32 %v4193_v62, 0.0 }
 0x2eb   : > { %v3787_v4 = vmax.f32 %v1670_v1, %v3282_v3  ;;  %v1672_v5 = vpop.f32.mrb[249].mxu0  ;;  %v3284_v6 = vpop.f32.mrb[249].mxu1 }
 0x2ec   : > { %v4369_v18 = vmax.f32 %v4194_v0, 0.0  ;;  %v3788_v9 = vmax.f32 %v1672_v5, %v3284_v6  ;;  %v1674_v10 = vpop.f32.mrb[250].mxu0  ;;  %v3286_v11 = vpop.f32.mrb[250].mxu1 }
 0x2ed   : > { %v3789_v12 = vmax.f32 %v1674_v10, %v3286_v11  ;;  %v1676_v13 = vpop.f32.mrb[251].mxu0  ;;  %v3288_v14 = vpop.f32.mrb[251].mxu1 }
 0x2ee   : > { %v6225_v15 = vpack.c.bf16 %v4369_v18, %v4368_v7  ;;  %v4013_v16 = vmax.f32 %v3787_v4, %v3788_v9  ;;  %v3790_v17 = vmax.f32 %v1676_v13, %v3288_v14 }
 0x2f0   : > { %6412 = vst [vmem:[%s6883_s12 + $0x1e8] sm:$0xff] %v6225_v15   ;;  %v4195_v19 = vadd.f32 %v7312_v57, %v4013_v16  ;;  %v4014_v20 = vmax.f32 %v3789_v12, %v3790_v17 }
 0x2f2   : > { %v4196_v21 = vadd.f32 %v7312_v57, %v4014_v20  ;;  %v1680_v22 = vpop.f32.mrb[252].mxu0  ;;  %v3292_v23 = vpop.f32.mrb[252].mxu1  ;;  %v4370_v27 = vmax.f32 %v4195_v19, 0.0 }
 0x2f3   : > { %v3791_v24 = vmax.f32 %v1680_v22, %v3292_v23  ;;  %v1682_v25 = vpop.f32.mrb[253].mxu0  ;;  %v3294_v26 = vpop.f32.mrb[253].mxu1 }
 0x2f4   : > { %v4371_v28 = vmax.f32 %v4196_v21, 0.0  ;;  %v3792_v29 = vmax.f32 %v1682_v25, %v3294_v26  ;;  %v1684_v30 = vpop.f32.mrb[254].mxu0  ;;  %v3296_v31 = vpop.f32.mrb[254].mxu1 }
 0x2f5   : > { %v3793_v32 = vmax.f32 %v1684_v30, %v3296_v31  ;;  %v1686_v33 = vpop.f32.mrb[255].mxu0  ;;  %v3298_v34 = vpop.f32.mrb[255].mxu1 }
 0x2f6   : > { %v6230_v35 = vpack.c.bf16 %v4371_v28, %v4370_v27  ;;  %v4015_v36 = vmax.f32 %v3791_v24, %v3792_v29  ;;  %v3794_v37 = vmax.f32 %v1686_v33, %v3298_v34 }
 0x2f8   : > { %6413 = vst [vmem:[%s6883_s12 + $0x1f0] sm:$0xff] %v6230_v35   ;;  %v4197_v38 = vadd.f32 %v7312_v57, %v4015_v36  ;;  %v4016_v39 = vmax.f32 %v3793_v32, %v3794_v37 }
 0x2fa   : > { %v4198_v40 = vadd.f32 %v7312_v57, %v4016_v39  ;;  %v1690_v41 = vpop.f32.mrb[0].mxu0  ;;  %v3302_v2 = vpop.f32.mrb[0].mxu1  ;;  %v4372_v45 = vmax.f32 %v4197_v38, 0.0 }
 0x2fb   : > { %v3795_v42 = vmax.f32 %v1690_v41, %v3302_v2  ;;  %v1692_v43 = vpop.f32.mrb[1].mxu0  ;;  %v3304_v44 = vpop.f32.mrb[1].mxu1 }
 0x2fc   : > { %v4373_v46 = vmax.f32 %v4198_v40, 0.0  ;;  %v3796_v47 = vmax.f32 %v1692_v43, %v3304_v44  ;;  %v1694_v48 = vpop.f32.mrb[2].mxu0  ;;  %v3306_v49 = vpop.f32.mrb[2].mxu1 }
 0x2fd   : > { %v3797_v50 = vmax.f32 %v1694_v48, %v3306_v49  ;;  %v1696_v51 = vpop.f32.mrb[3].mxu0  ;;  %v3308_v52 = vpop.f32.mrb[3].mxu1 }
 0x2fe   : > { %v6235_v53 = vpack.c.bf16 %v4373_v46, %v4372_v45  ;;  %v4017_v54 = vmax.f32 %v3795_v42, %v3796_v47  ;;  %v3798_v55 = vmax.f32 %v1696_v51, %v3308_v52 }
 0x300   : > { %6414 = vst [vmem:[%s6883_s12 + $0x1f8] sm:$0xff] %v6235_v53   ;;  %v4199_v56 = vadd.f32 %v7312_v57, %v4017_v54  ;;  %v4018_v8 = vmax.f32 %v3797_v50, %v3798_v55 }
 0x302   : > { %v4200_v58 = vadd.f32 %v7312_v57, %v4018_v8  ;;  %v1700_v59 = vpop.f32.mrb[4].mxu0  ;;  %v3312_v60 = vpop.f32.mrb[4].mxu1  ;;  %v4374_v0 = vmax.f32 %v4199_v56, 0.0 }
 0x303   : > { %v3799_v61 = vmax.f32 %v1700_v59, %v3312_v60  ;;  %v1702_v62 = vpop.f32.mrb[5].mxu0  ;;  %v3314_v63 = vpop.f32.mrb[5].mxu1 }
 0x304   : > { %v4375_v1 = vmax.f32 %v4200_v58, 0.0  ;;  %v3800_v3 = vmax.f32 %v1702_v62, %v3314_v63  ;;  %v1704_v4 = vpop.f32.mrb[6].mxu0  ;;  %v3316_v5 = vpop.f32.mrb[6].mxu1 }
 0x305   : > { %v3801_v6 = vmax.f32 %v1704_v4, %v3316_v5  ;;  %v1706_v7 = vpop.f32.mrb[7].mxu0  ;;  %v3318_v18 = vpop.f32.mrb[7].mxu1 }
 0x306   : > { %v6240_v9 = vpack.c.bf16 %v4375_v1, %v4374_v0  ;;  %v4019_v10 = vmax.f32 %v3799_v61, %v3800_v3  ;;  %v3802_v11 = vmax.f32 %v1706_v7, %v3318_v18 }
 0x308   : > { %6415 = vst [vmem:[%s6883_s12 + $0x200] sm:$0xff] %v6240_v9   ;;  %v4201_v12 = vadd.f32 %v7312_v57, %v4019_v10  ;;  %v4020_v13 = vmax.f32 %v3801_v6, %v3802_v11 }
 0x30a   : > { %v4202_v14 = vadd.f32 %v7312_v57, %v4020_v13  ;;  %v1710_v15 = vpop.f32.mrb[8].mxu0  ;;  %v3322_v16 = vpop.f32.mrb[8].mxu1  ;;  %v4376_v21 = vmax.f32 %v4201_v12, 0.0 }
 0x30b   : > { %v3803_v17 = vmax.f32 %v1710_v15, %v3322_v16  ;;  %v1712_v19 = vpop.f32.mrb[9].mxu0  ;;  %v3324_v20 = vpop.f32.mrb[9].mxu1 }
 0x30c   : > { %v4377_v22 = vmax.f32 %v4202_v14, 0.0  ;;  %v3804_v23 = vmax.f32 %v1712_v19, %v3324_v20  ;;  %v1714_v24 = vpop.f32.mrb[10].mxu0  ;;  %v3326_v25 = vpop.f32.mrb[10].mxu1 }
 0x30d   : > { %v3805_v26 = vmax.f32 %v1714_v24, %v3326_v25  ;;  %v1716_v27 = vpop.f32.mrb[11].mxu0  ;;  %v3328_v28 = vpop.f32.mrb[11].mxu1 }
 0x30e   : > { %v6245_v29 = vpack.c.bf16 %v4377_v22, %v4376_v21  ;;  %v4021_v30 = vmax.f32 %v3803_v17, %v3804_v23  ;;  %v3806_v31 = vmax.f32 %v1716_v27, %v3328_v28 }
 0x310   : > { %6416 = vst [vmem:[%s6883_s12 + $0x208] sm:$0xff] %v6245_v29   ;;  %v4203_v32 = vadd.f32 %v7312_v57, %v4021_v30  ;;  %v4022_v33 = vmax.f32 %v3805_v26, %v3806_v31 }
 0x312   : > { %v4204_v34 = vadd.f32 %v7312_v57, %v4022_v33  ;;  %v1720_v35 = vpop.f32.mrb[12].mxu0  ;;  %v3332_v36 = vpop.f32.mrb[12].mxu1  ;;  %v4378_v40 = vmax.f32 %v4203_v32, 0.0 }
 0x313   : > { %v3807_v37 = vmax.f32 %v1720_v35, %v3332_v36  ;;  %v1722_v38 = vpop.f32.mrb[13].mxu0  ;;  %v3334_v39 = vpop.f32.mrb[13].mxu1 }
 0x314   : > { %v4379_v41 = vmax.f32 %v4204_v34, 0.0  ;;  %v3808_v2 = vmax.f32 %v1722_v38, %v3334_v39  ;;  %v1724_v42 = vpop.f32.mrb[14].mxu0  ;;  %v3336_v43 = vpop.f32.mrb[14].mxu1 }
 0x315   : > { %v3809_v44 = vmax.f32 %v1724_v42, %v3336_v43  ;;  %v1726_v45 = vpop.f32.mrb[15].mxu0  ;;  %v3338_v46 = vpop.f32.mrb[15].mxu1 }
 0x316   : > { %v6250_v47 = vpack.c.bf16 %v4379_v41, %v4378_v40  ;;  %v4023_v48 = vmax.f32 %v3807_v37, %v3808_v2  ;;  %v3810_v49 = vmax.f32 %v1726_v45, %v3338_v46 }
 0x318   : > { %6417 = vst [vmem:[%s6883_s12 + $0x210] sm:$0xff] %v6250_v47   ;;  %v4205_v50 = vadd.f32 %v7312_v57, %v4023_v48  ;;  %v4024_v51 = vmax.f32 %v3809_v44, %v3810_v49 }
 0x31a   : > { %v4206_v52 = vadd.f32 %v7312_v57, %v4024_v51  ;;  %v1730_v53 = vpop.f32.mrb[16].mxu0  ;;  %v3342_v54 = vpop.f32.mrb[16].mxu1  ;;  %v4380_v58 = vmax.f32 %v4205_v50, 0.0 }
 0x31b   : > { %v3811_v55 = vmax.f32 %v1730_v53, %v3342_v54  ;;  %v1732_v56 = vpop.f32.mrb[17].mxu0  ;;  %v3344_v8 = vpop.f32.mrb[17].mxu1 }
 0x31c   : > { %v4381_v59 = vmax.f32 %v4206_v52, 0.0  ;;  %v3812_v60 = vmax.f32 %v1732_v56, %v3344_v8  ;;  %v1734_v61 = vpop.f32.mrb[18].mxu0  ;;  %v3346_v62 = vpop.f32.mrb[18].mxu1 }
 0x31d   : > { %v3813_v63 = vmax.f32 %v1734_v61, %v3346_v62  ;;  %v1736_v0 = vpop.f32.mrb[19].mxu0  ;;  %v3348_v1 = vpop.f32.mrb[19].mxu1 }
 0x31e   : > { %v6255_v3 = vpack.c.bf16 %v4381_v59, %v4380_v58  ;;  %v4025_v4 = vmax.f32 %v3811_v55, %v3812_v60  ;;  %v3814_v5 = vmax.f32 %v1736_v0, %v3348_v1 }
 0x320   : > { %6418 = vst [vmem:[%s6883_s12 + $0x218] sm:$0xff] %v6255_v3   ;;  %v4207_v6 = vadd.f32 %v7312_v57, %v4025_v4  ;;  %v4026_v7 = vmax.f32 %v3813_v63, %v3814_v5 }
 0x322   : > { %v4208_v18 = vadd.f32 %v7312_v57, %v4026_v7  ;;  %v1740_v9 = vpop.f32.mrb[20].mxu0  ;;  %v3352_v10 = vpop.f32.mrb[20].mxu1  ;;  %v4382_v14 = vmax.f32 %v4207_v6, 0.0 }
 0x323   : > { %v3815_v11 = vmax.f32 %v1740_v9, %v3352_v10  ;;  %v1742_v12 = vpop.f32.mrb[21].mxu0  ;;  %v3354_v13 = vpop.f32.mrb[21].mxu1 }
 0x324   : > { %v4383_v15 = vmax.f32 %v4208_v18, 0.0  ;;  %v3816_v16 = vmax.f32 %v1742_v12, %v3354_v13  ;;  %v1744_v17 = vpop.f32.mrb[22].mxu0  ;;  %v3356_v19 = vpop.f32.mrb[22].mxu1 }
 0x325   : > { %v3817_v20 = vmax.f32 %v1744_v17, %v3356_v19  ;;  %v1746_v21 = vpop.f32.mrb[23].mxu0  ;;  %v3358_v22 = vpop.f32.mrb[23].mxu1 }
 0x326   : > { %v6260_v23 = vpack.c.bf16 %v4383_v15, %v4382_v14  ;;  %v4027_v24 = vmax.f32 %v3815_v11, %v3816_v16  ;;  %v3818_v25 = vmax.f32 %v1746_v21, %v3358_v22 }
 0x328   : > { %6419 = vst [vmem:[%s6883_s12 + $0x220] sm:$0xff] %v6260_v23   ;;  %v4209_v26 = vadd.f32 %v7312_v57, %v4027_v24  ;;  %v4028_v27 = vmax.f32 %v3817_v20, %v3818_v25 }
 0x32a   : > { %v4210_v28 = vadd.f32 %v7312_v57, %v4028_v27  ;;  %v1750_v29 = vpop.f32.mrb[24].mxu0  ;;  %v3362_v30 = vpop.f32.mrb[24].mxu1  ;;  %v4384_v34 = vmax.f32 %v4209_v26, 0.0 }
 0x32b   : > { %v3819_v31 = vmax.f32 %v1750_v29, %v3362_v30  ;;  %v1752_v32 = vpop.f32.mrb[25].mxu0  ;;  %v3364_v33 = vpop.f32.mrb[25].mxu1 }
 0x32c   : > { %v4385_v35 = vmax.f32 %v4210_v28, 0.0  ;;  %v3820_v36 = vmax.f32 %v1752_v32, %v3364_v33  ;;  %v1754_v37 = vpop.f32.mrb[26].mxu0  ;;  %v3366_v38 = vpop.f32.mrb[26].mxu1 }
 0x32d   : > { %v3821_v39 = vmax.f32 %v1754_v37, %v3366_v38  ;;  %v1756_v40 = vpop.f32.mrb[27].mxu0  ;;  %v3368_v41 = vpop.f32.mrb[27].mxu1 }
 0x32e   : > { %v6265_v2 = vpack.c.bf16 %v4385_v35, %v4384_v34  ;;  %v4029_v42 = vmax.f32 %v3819_v31, %v3820_v36  ;;  %v3822_v43 = vmax.f32 %v1756_v40, %v3368_v41 }
 0x330   : > { %6420 = vst [vmem:[%s6883_s12 + $0x228] sm:$0xff] %v6265_v2   ;;  %v4211_v44 = vadd.f32 %v7312_v57, %v4029_v42  ;;  %v4030_v45 = vmax.f32 %v3821_v39, %v3822_v43 }
 0x332   : > { %v4212_v46 = vadd.f32 %v7312_v57, %v4030_v45  ;;  %v1760_v47 = vpop.f32.mrb[28].mxu0  ;;  %v3372_v48 = vpop.f32.mrb[28].mxu1  ;;  %v4386_v52 = vmax.f32 %v4211_v44, 0.0 }
 0x333   : > { %v3823_v49 = vmax.f32 %v1760_v47, %v3372_v48  ;;  %v1762_v50 = vpop.f32.mrb[29].mxu0  ;;  %v3374_v51 = vpop.f32.mrb[29].mxu1 }
 0x334   : > { %v4387_v53 = vmax.f32 %v4212_v46, 0.0  ;;  %v3824_v54 = vmax.f32 %v1762_v50, %v3374_v51  ;;  %v1764_v55 = vpop.f32.mrb[30].mxu0  ;;  %v3376_v56 = vpop.f32.mrb[30].mxu1 }
 0x335   : > { %v3825_v8 = vmax.f32 %v1764_v55, %v3376_v56  ;;  %v1766_v58 = vpop.f32.mrb[31].mxu0  ;;  %v3378_v59 = vpop.f32.mrb[31].mxu1 }
 0x336   : > { %v6270_v60 = vpack.c.bf16 %v4387_v53, %v4386_v52  ;;  %v4031_v61 = vmax.f32 %v3823_v49, %v3824_v54  ;;  %v3826_v62 = vmax.f32 %v1766_v58, %v3378_v59 }
 0x338   : > { %6421 = vst [vmem:[%s6883_s12 + $0x230] sm:$0xff] %v6270_v60   ;;  %v4213_v63 = vadd.f32 %v7312_v57, %v4031_v61  ;;  %v4032_v0 = vmax.f32 %v3825_v8, %v3826_v62 }
 0x33a   : > { %v4214_v1 = vadd.f32 %v7312_v57, %v4032_v0  ;;  %v1770_v3 = vpop.f32.mrb[32].mxu0  ;;  %v3382_v4 = vpop.f32.mrb[32].mxu1  ;;  %v4388_v18 = vmax.f32 %v4213_v63, 0.0 }
 0x33b   : > { %v3827_v5 = vmax.f32 %v1770_v3, %v3382_v4  ;;  %v1772_v6 = vpop.f32.mrb[33].mxu0  ;;  %v3384_v7 = vpop.f32.mrb[33].mxu1 }
 0x33c   : > { %v4389_v9 = vmax.f32 %v4214_v1, 0.0  ;;  %v3828_v10 = vmax.f32 %v1772_v6, %v3384_v7  ;;  %v1774_v11 = vpop.f32.mrb[34].mxu0  ;;  %v3386_v12 = vpop.f32.mrb[34].mxu1 }
 0x33d   : > { %v3829_v13 = vmax.f32 %v1774_v11, %v3386_v12  ;;  %v1776_v14 = vpop.f32.mrb[35].mxu0  ;;  %v3388_v15 = vpop.f32.mrb[35].mxu1 }
 0x33e   : > { %v6275_v16 = vpack.c.bf16 %v4389_v9, %v4388_v18  ;;  %v4033_v17 = vmax.f32 %v3827_v5, %v3828_v10  ;;  %v3830_v19 = vmax.f32 %v1776_v14, %v3388_v15 }
 0x340   : > { %6422 = vst [vmem:[%s6883_s12 + $0x238] sm:$0xff] %v6275_v16   ;;  %v4215_v20 = vadd.f32 %v7312_v57, %v4033_v17  ;;  %v4034_v21 = vmax.f32 %v3829_v13, %v3830_v19 }
 0x342   : > { %v4216_v22 = vadd.f32 %v7312_v57, %v4034_v21  ;;  %v1780_v23 = vpop.f32.mrb[36].mxu0  ;;  %v3392_v24 = vpop.f32.mrb[36].mxu1  ;;  %v4390_v28 = vmax.f32 %v4215_v20, 0.0 }
 0x343   : > { %v3831_v25 = vmax.f32 %v1780_v23, %v3392_v24  ;;  %v1782_v26 = vpop.f32.mrb[37].mxu0  ;;  %v3394_v27 = vpop.f32.mrb[37].mxu1 }
 0x344   : > { %v4391_v29 = vmax.f32 %v4216_v22, 0.0  ;;  %v3832_v30 = vmax.f32 %v1782_v26, %v3394_v27  ;;  %v1784_v31 = vpop.f32.mrb[38].mxu0  ;;  %v3396_v32 = vpop.f32.mrb[38].mxu1 }
 0x345   : > { %v3833_v33 = vmax.f32 %v1784_v31, %v3396_v32  ;;  %v1786_v34 = vpop.f32.mrb[39].mxu0  ;;  %v3398_v35 = vpop.f32.mrb[39].mxu1 }
 0x346   : > { %v6280_v36 = vpack.c.bf16 %v4391_v29, %v4390_v28  ;;  %v4035_v37 = vmax.f32 %v3831_v25, %v3832_v30  ;;  %v3834_v38 = vmax.f32 %v1786_v34, %v3398_v35 }
 0x348   : > { %6423 = vst [vmem:[%s6883_s12 + $0x240] sm:$0xff] %v6280_v36   ;;  %v4217_v39 = vadd.f32 %v7312_v57, %v4035_v37  ;;  %v4036_v40 = vmax.f32 %v3833_v33, %v3834_v38 }
 0x34a   : > { %v4218_v41 = vadd.f32 %v7312_v57, %v4036_v40  ;;  %v1790_v2 = vpop.f32.mrb[40].mxu0  ;;  %v3402_v42 = vpop.f32.mrb[40].mxu1  ;;  %v4392_v46 = vmax.f32 %v4217_v39, 0.0 }
 0x34b   : > { %v3835_v43 = vmax.f32 %v1790_v2, %v3402_v42  ;;  %v1792_v44 = vpop.f32.mrb[41].mxu0  ;;  %v3404_v45 = vpop.f32.mrb[41].mxu1 }
 0x34c   : > { %v4393_v47 = vmax.f32 %v4218_v41, 0.0  ;;  %v3836_v48 = vmax.f32 %v1792_v44, %v3404_v45  ;;  %v1794_v49 = vpop.f32.mrb[42].mxu0  ;;  %v3406_v50 = vpop.f32.mrb[42].mxu1 }
 0x34d   : > { %v3837_v51 = vmax.f32 %v1794_v49, %v3406_v50  ;;  %v1796_v52 = vpop.f32.mrb[43].mxu0  ;;  %v3408_v53 = vpop.f32.mrb[43].mxu1 }
 0x34e   : > { %v6285_v54 = vpack.c.bf16 %v4393_v47, %v4392_v46  ;;  %v4037_v55 = vmax.f32 %v3835_v43, %v3836_v48  ;;  %v3838_v56 = vmax.f32 %v1796_v52, %v3408_v53 }
 0x350   : > { %6424 = vst [vmem:[%s6883_s12 + $0x248] sm:$0xff] %v6285_v54   ;;  %v4219_v8 = vadd.f32 %v7312_v57, %v4037_v55  ;;  %v4038_v58 = vmax.f32 %v3837_v51, %v3838_v56 }
 0x352   : > { %v4220_v59 = vadd.f32 %v7312_v57, %v4038_v58  ;;  %v1800_v60 = vpop.f32.mrb[44].mxu0  ;;  %v3412_v61 = vpop.f32.mrb[44].mxu1  ;;  %v4394_v1 = vmax.f32 %v4219_v8, 0.0 }
 0x353   : > { %v3839_v62 = vmax.f32 %v1800_v60, %v3412_v61  ;;  %v1802_v63 = vpop.f32.mrb[45].mxu0  ;;  %v3414_v0 = vpop.f32.mrb[45].mxu1 }
 0x354   : > { %v4395_v3 = vmax.f32 %v4220_v59, 0.0  ;;  %v3840_v4 = vmax.f32 %v1802_v63, %v3414_v0  ;;  %v1804_v5 = vpop.f32.mrb[46].mxu0  ;;  %v3416_v6 = vpop.f32.mrb[46].mxu1 }
 0x355   : > { %v3841_v7 = vmax.f32 %v1804_v5, %v3416_v6  ;;  %v1806_v18 = vpop.f32.mrb[47].mxu0  ;;  %v3418_v9 = vpop.f32.mrb[47].mxu1 }
 0x356   : > { %v6290_v10 = vpack.c.bf16 %v4395_v3, %v4394_v1  ;;  %v4039_v11 = vmax.f32 %v3839_v62, %v3840_v4  ;;  %v3842_v12 = vmax.f32 %v1806_v18, %v3418_v9 }
 0x358   : > { %6425 = vst [vmem:[%s6883_s12 + $0x250] sm:$0xff] %v6290_v10   ;;  %v4221_v13 = vadd.f32 %v7312_v57, %v4039_v11  ;;  %v4040_v14 = vmax.f32 %v3841_v7, %v3842_v12 }
 0x35a   : > { %v4222_v15 = vadd.f32 %v7312_v57, %v4040_v14  ;;  %v1810_v16 = vpop.f32.mrb[48].mxu0  ;;  %v3422_v17 = vpop.f32.mrb[48].mxu1  ;;  %v4396_v22 = vmax.f32 %v4221_v13, 0.0 }
 0x35b   : > { %v3843_v19 = vmax.f32 %v1810_v16, %v3422_v17  ;;  %v1812_v20 = vpop.f32.mrb[49].mxu0  ;;  %v3424_v21 = vpop.f32.mrb[49].mxu1 }
 0x35c   : > { %v4397_v23 = vmax.f32 %v4222_v15, 0.0  ;;  %v3844_v24 = vmax.f32 %v1812_v20, %v3424_v21  ;;  %v1814_v25 = vpop.f32.mrb[50].mxu0  ;;  %v3426_v26 = vpop.f32.mrb[50].mxu1 }
 0x35d   : > { %v3845_v27 = vmax.f32 %v1814_v25, %v3426_v26  ;;  %v1816_v28 = vpop.f32.mrb[51].mxu0  ;;  %v3428_v29 = vpop.f32.mrb[51].mxu1 }
 0x35e   : > { %v6295_v30 = vpack.c.bf16 %v4397_v23, %v4396_v22  ;;  %v4041_v31 = vmax.f32 %v3843_v19, %v3844_v24  ;;  %v3846_v32 = vmax.f32 %v1816_v28, %v3428_v29 }
 0x360   : > { %6426 = vst [vmem:[%s6883_s12 + $0x258] sm:$0xff] %v6295_v30   ;;  %v4223_v33 = vadd.f32 %v7312_v57, %v4041_v31  ;;  %v4042_v34 = vmax.f32 %v3845_v27, %v3846_v32 }
 0x362   : > { %v4224_v35 = vadd.f32 %v7312_v57, %v4042_v34  ;;  %v1820_v36 = vpop.f32.mrb[52].mxu0  ;;  %v3432_v37 = vpop.f32.mrb[52].mxu1  ;;  %v4398_v41 = vmax.f32 %v4223_v33, 0.0 }
 0x363   : > { %v3847_v38 = vmax.f32 %v1820_v36, %v3432_v37  ;;  %v1822_v39 = vpop.f32.mrb[53].mxu0  ;;  %v3434_v40 = vpop.f32.mrb[53].mxu1 }
 0x364   : > { %v4399_v2 = vmax.f32 %v4224_v35, 0.0  ;;  %v3848_v42 = vmax.f32 %v1822_v39, %v3434_v40  ;;  %v1824_v43 = vpop.f32.mrb[54].mxu0  ;;  %v3436_v44 = vpop.f32.mrb[54].mxu1 }
 0x365   : > { %v3849_v45 = vmax.f32 %v1824_v43, %v3436_v44  ;;  %v1826_v46 = vpop.f32.mrb[55].mxu0  ;;  %v3438_v47 = vpop.f32.mrb[55].mxu1 }
 0x366   : > { %v6300_v48 = vpack.c.bf16 %v4399_v2, %v4398_v41  ;;  %v4043_v49 = vmax.f32 %v3847_v38, %v3848_v42  ;;  %v3850_v50 = vmax.f32 %v1826_v46, %v3438_v47 }
 0x368   : > { %6427 = vst [vmem:[%s6883_s12 + $0x260] sm:$0xff] %v6300_v48   ;;  %v4225_v51 = vadd.f32 %v7312_v57, %v4043_v49  ;;  %v4044_v52 = vmax.f32 %v3849_v45, %v3850_v50 }
 0x36a   : > { %v4226_v53 = vadd.f32 %v7312_v57, %v4044_v52  ;;  %v1830_v54 = vpop.f32.mrb[56].mxu0  ;;  %v3442_v55 = vpop.f32.mrb[56].mxu1  ;;  %v4400_v59 = vmax.f32 %v4225_v51, 0.0 }
 0x36b   : > { %v3851_v56 = vmax.f32 %v1830_v54, %v3442_v55  ;;  %v1832_v8 = vpop.f32.mrb[57].mxu0  ;;  %v3444_v58 = vpop.f32.mrb[57].mxu1 }
 0x36c   : > { %v4401_v60 = vmax.f32 %v4226_v53, 0.0  ;;  %v3852_v61 = vmax.f32 %v1832_v8, %v3444_v58  ;;  %v1834_v62 = vpop.f32.mrb[58].mxu0  ;;  %v3446_v63 = vpop.f32.mrb[58].mxu1 }
 0x36d   : > { %v3853_v0 = vmax.f32 %v1834_v62, %v3446_v63  ;;  %v1836_v1 = vpop.f32.mrb[59].mxu0  ;;  %v3448_v3 = vpop.f32.mrb[59].mxu1 }
 0x36e   : > { %v6305_v4 = vpack.c.bf16 %v4401_v60, %v4400_v59  ;;  %v4045_v5 = vmax.f32 %v3851_v56, %v3852_v61  ;;  %v3854_v6 = vmax.f32 %v1836_v1, %v3448_v3 }
 0x370   : > { %6428 = vst [vmem:[%s6883_s12 + $0x268] sm:$0xff] %v6305_v4   ;;  %v4227_v7 = vadd.f32 %v7312_v57, %v4045_v5  ;;  %v4046_v18 = vmax.f32 %v3853_v0, %v3854_v6 }
 0x372   : > { %v4228_v9 = vadd.f32 %v7312_v57, %v4046_v18  ;;  %v1840_v10 = vpop.f32.mrb[60].mxu0  ;;  %v3452_v11 = vpop.f32.mrb[60].mxu1  ;;  %v4402_v15 = vmax.f32 %v4227_v7, 0.0 }
 0x373   : > { %v3855_v12 = vmax.f32 %v1840_v10, %v3452_v11  ;;  %v1842_v13 = vpop.f32.mrb[61].mxu0  ;;  %v3454_v14 = vpop.f32.mrb[61].mxu1 }
 0x374   : > { %v4403_v16 = vmax.f32 %v4228_v9, 0.0  ;;  %v3856_v17 = vmax.f32 %v1842_v13, %v3454_v14  ;;  %v1844_v19 = vpop.f32.mrb[62].mxu0  ;;  %v3456_v20 = vpop.f32.mrb[62].mxu1 }
 0x375   : > { %v3857_v21 = vmax.f32 %v1844_v19, %v3456_v20  ;;  %v1846_v22 = vpop.f32.mrb[63].mxu0  ;;  %v3458_v23 = vpop.f32.mrb[63].mxu1 }
 0x376   : > { %v6310_v24 = vpack.c.bf16 %v4403_v16, %v4402_v15  ;;  %v4047_v25 = vmax.f32 %v3855_v12, %v3856_v17  ;;  %v3858_v26 = vmax.f32 %v1846_v22, %v3458_v23 }
 0x378   : > { %6429 = vst [vmem:[%s6883_s12 + $0x270] sm:$0xff] %v6310_v24   ;;  %v4229_v27 = vadd.f32 %v7312_v57, %v4047_v25  ;;  %v4048_v28 = vmax.f32 %v3857_v21, %v3858_v26 }
 0x37a   : > { %v4230_v29 = vadd.f32 %v7312_v57, %v4048_v28  ;;  %v1850_v30 = vpop.f32.mrb[64].mxu0  ;;  %v3462_v31 = vpop.f32.mrb[64].mxu1  ;;  %v4404_v35 = vmax.f32 %v4229_v27, 0.0 }
 0x37b   : > { %v3859_v32 = vmax.f32 %v1850_v30, %v3462_v31  ;;  %v1852_v33 = vpop.f32.mrb[65].mxu0  ;;  %v3464_v34 = vpop.f32.mrb[65].mxu1 }
 0x37c   : > { %v4405_v36 = vmax.f32 %v4230_v29, 0.0  ;;  %v3860_v37 = vmax.f32 %v1852_v33, %v3464_v34  ;;  %v1854_v38 = vpop.f32.mrb[66].mxu0  ;;  %v3466_v39 = vpop.f32.mrb[66].mxu1 }
 0x37d   : > { %v3861_v40 = vmax.f32 %v1854_v38, %v3466_v39  ;;  %v1856_v41 = vpop.f32.mrb[67].mxu0  ;;  %v3468_v2 = vpop.f32.mrb[67].mxu1 }
 0x37e   : > { %v6315_v42 = vpack.c.bf16 %v4405_v36, %v4404_v35  ;;  %v4049_v43 = vmax.f32 %v3859_v32, %v3860_v37  ;;  %v3862_v44 = vmax.f32 %v1856_v41, %v3468_v2 }
 0x380   : > { %6430 = vst [vmem:[%s6883_s12 + $0x278] sm:$0xff] %v6315_v42   ;;  %v4231_v45 = vadd.f32 %v7312_v57, %v4049_v43  ;;  %v4050_v46 = vmax.f32 %v3861_v40, %v3862_v44 }
 0x382   : > { %v4232_v47 = vadd.f32 %v7312_v57, %v4050_v46  ;;  %v1860_v48 = vpop.f32.mrb[68].mxu0  ;;  %v3472_v49 = vpop.f32.mrb[68].mxu1  ;;  %v4406_v53 = vmax.f32 %v4231_v45, 0.0 }
 0x383   : > { %v3863_v50 = vmax.f32 %v1860_v48, %v3472_v49  ;;  %v1862_v51 = vpop.f32.mrb[69].mxu0  ;;  %v3474_v52 = vpop.f32.mrb[69].mxu1 }
 0x384   : > { %v4407_v54 = vmax.f32 %v4232_v47, 0.0  ;;  %v3864_v55 = vmax.f32 %v1862_v51, %v3474_v52  ;;  %v1864_v56 = vpop.f32.mrb[70].mxu0  ;;  %v3476_v8 = vpop.f32.mrb[70].mxu1 }
 0x385   : > { %v3865_v58 = vmax.f32 %v1864_v56, %v3476_v8  ;;  %v1866_v59 = vpop.f32.mrb[71].mxu0  ;;  %v3478_v60 = vpop.f32.mrb[71].mxu1 }
 0x386   : > { %v6320_v61 = vpack.c.bf16 %v4407_v54, %v4406_v53  ;;  %v4051_v62 = vmax.f32 %v3863_v50, %v3864_v55  ;;  %v3866_v63 = vmax.f32 %v1866_v59, %v3478_v60 }
 0x388   : > { %6431 = vst [vmem:[%s6883_s12 + $0x280] sm:$0xff] %v6320_v61   ;;  %v4233_v0 = vadd.f32 %v7312_v57, %v4051_v62  ;;  %v4052_v1 = vmax.f32 %v3865_v58, %v3866_v63 }
 0x38a   : > { %v4234_v3 = vadd.f32 %v7312_v57, %v4052_v1  ;;  %v1870_v4 = vpop.f32.mrb[72].mxu0  ;;  %v3482_v5 = vpop.f32.mrb[72].mxu1  ;;  %v4408_v9 = vmax.f32 %v4233_v0, 0.0 }
 0x38b   : > { %v3867_v6 = vmax.f32 %v1870_v4, %v3482_v5  ;;  %v1872_v7 = vpop.f32.mrb[73].mxu0  ;;  %v3484_v18 = vpop.f32.mrb[73].mxu1 }
 0x38c   : > { %v4409_v10 = vmax.f32 %v4234_v3, 0.0  ;;  %v3868_v11 = vmax.f32 %v1872_v7, %v3484_v18  ;;  %v1874_v12 = vpop.f32.mrb[74].mxu0  ;;  %v3486_v13 = vpop.f32.mrb[74].mxu1 }
 0x38d   : > { %v3869_v14 = vmax.f32 %v1874_v12, %v3486_v13  ;;  %v1876_v15 = vpop.f32.mrb[75].mxu0  ;;  %v3488_v16 = vpop.f32.mrb[75].mxu1 }
 0x38e   : > { %v6325_v17 = vpack.c.bf16 %v4409_v10, %v4408_v9  ;;  %v4053_v19 = vmax.f32 %v3867_v6, %v3868_v11  ;;  %v3870_v20 = vmax.f32 %v1876_v15, %v3488_v16 }
 0x390   : > { %6432 = vst [vmem:[%s6883_s12 + $0x288] sm:$0xff] %v6325_v17   ;;  %v4235_v21 = vadd.f32 %v7312_v57, %v4053_v19  ;;  %v4054_v22 = vmax.f32 %v3869_v14, %v3870_v20 }
 0x392   : > { %v4236_v23 = vadd.f32 %v7312_v57, %v4054_v22  ;;  %v1880_v24 = vpop.f32.mrb[76].mxu0  ;;  %v3492_v25 = vpop.f32.mrb[76].mxu1  ;;  %v4410_v29 = vmax.f32 %v4235_v21, 0.0 }
 0x393   : > { %v3871_v26 = vmax.f32 %v1880_v24, %v3492_v25  ;;  %v1882_v27 = vpop.f32.mrb[77].mxu0  ;;  %v3494_v28 = vpop.f32.mrb[77].mxu1 }
 0x394   : > { %v4411_v30 = vmax.f32 %v4236_v23, 0.0  ;;  %v3872_v31 = vmax.f32 %v1882_v27, %v3494_v28  ;;  %v1884_v32 = vpop.f32.mrb[78].mxu0  ;;  %v3496_v33 = vpop.f32.mrb[78].mxu1 }
 0x395   : > { %v3873_v34 = vmax.f32 %v1884_v32, %v3496_v33  ;;  %v1886_v35 = vpop.f32.mrb[79].mxu0  ;;  %v3498_v36 = vpop.f32.mrb[79].mxu1 }
 0x396   : > { %v6330_v37 = vpack.c.bf16 %v4411_v30, %v4410_v29  ;;  %v4055_v38 = vmax.f32 %v3871_v26, %v3872_v31  ;;  %v3874_v39 = vmax.f32 %v1886_v35, %v3498_v36 }
 0x398   : > { %6433 = vst [vmem:[%s6883_s12 + $0x290] sm:$0xff] %v6330_v37   ;;  %v4237_v40 = vadd.f32 %v7312_v57, %v4055_v38  ;;  %v4056_v41 = vmax.f32 %v3873_v34, %v3874_v39 }
 0x39a   : > { %v4238_v2 = vadd.f32 %v7312_v57, %v4056_v41  ;;  %v1890_v42 = vpop.f32.mrb[80].mxu0  ;;  %v3502_v43 = vpop.f32.mrb[80].mxu1  ;;  %v4412_v47 = vmax.f32 %v4237_v40, 0.0 }
 0x39b   : > { %v3875_v44 = vmax.f32 %v1890_v42, %v3502_v43  ;;  %v1892_v45 = vpop.f32.mrb[81].mxu0  ;;  %v3504_v46 = vpop.f32.mrb[81].mxu1 }
 0x39c   : > { %v4413_v48 = vmax.f32 %v4238_v2, 0.0  ;;  %v3876_v49 = vmax.f32 %v1892_v45, %v3504_v46  ;;  %v1894_v50 = vpop.f32.mrb[82].mxu0  ;;  %v3506_v51 = vpop.f32.mrb[82].mxu1 }
 0x39d   : > { %v3877_v52 = vmax.f32 %v1894_v50, %v3506_v51  ;;  %v1896_v53 = vpop.f32.mrb[83].mxu0  ;;  %v3508_v54 = vpop.f32.mrb[83].mxu1 }
 0x39e   : > { %v6335_v55 = vpack.c.bf16 %v4413_v48, %v4412_v47  ;;  %v4057_v56 = vmax.f32 %v3875_v44, %v3876_v49  ;;  %v3878_v8 = vmax.f32 %v1896_v53, %v3508_v54 }
 0x3a0   : > { %6434 = vst [vmem:[%s6883_s12 + $0x298] sm:$0xff] %v6335_v55   ;;  %v4239_v58 = vadd.f32 %v7312_v57, %v4057_v56  ;;  %v4058_v59 = vmax.f32 %v3877_v52, %v3878_v8 }
 0x3a2   : > { %v4240_v60 = vadd.f32 %v7312_v57, %v4058_v59  ;;  %v1900_v61 = vpop.f32.mrb[84].mxu0  ;;  %v3512_v62 = vpop.f32.mrb[84].mxu1  ;;  %v4414_v3 = vmax.f32 %v4239_v58, 0.0 }
 0x3a3   : > { %v3879_v63 = vmax.f32 %v1900_v61, %v3512_v62  ;;  %v1902_v0 = vpop.f32.mrb[85].mxu0  ;;  %v3514_v1 = vpop.f32.mrb[85].mxu1 }
 0x3a4   : > { %v4415_v4 = vmax.f32 %v4240_v60, 0.0  ;;  %v3880_v5 = vmax.f32 %v1902_v0, %v3514_v1  ;;  %v1904_v6 = vpop.f32.mrb[86].mxu0  ;;  %v3516_v7 = vpop.f32.mrb[86].mxu1 }
 0x3a5   : > { %v3881_v18 = vmax.f32 %v1904_v6, %v3516_v7  ;;  %v1906_v9 = vpop.f32.mrb[87].mxu0  ;;  %v3518_v10 = vpop.f32.mrb[87].mxu1 }
 0x3a6   : > { %v6340_v11 = vpack.c.bf16 %v4415_v4, %v4414_v3  ;;  %v4059_v12 = vmax.f32 %v3879_v63, %v3880_v5  ;;  %v3882_v13 = vmax.f32 %v1906_v9, %v3518_v10 }
 0x3a8   : > { %6435 = vst [vmem:[%s6883_s12 + $0x2a0] sm:$0xff] %v6340_v11   ;;  %v4241_v14 = vadd.f32 %v7312_v57, %v4059_v12  ;;  %v4060_v15 = vmax.f32 %v3881_v18, %v3882_v13 }
 0x3aa   : > { %v4242_v16 = vadd.f32 %v7312_v57, %v4060_v15  ;;  %v1910_v17 = vpop.f32.mrb[88].mxu0  ;;  %v3522_v19 = vpop.f32.mrb[88].mxu1  ;;  %v4416_v23 = vmax.f32 %v4241_v14, 0.0  ;;  %v6651_v57 = vld [vmem:[%s7403_s3] ss:$0 sm:$0xff] }
 0x3ab   : > { %v3883_v20 = vmax.f32 %v1910_v17, %v3522_v19  ;;  %v1912_v21 = vpop.f32.mrb[89].mxu0  ;;  %v3524_v22 = vpop.f32.mrb[89].mxu1 }
 0x3ac   : > { %v4417_v24 = vmax.f32 %v4242_v16, 0.0  ;;  %v3884_v25 = vmax.f32 %v1912_v21, %v3524_v22  ;;  %v1914_v26 = vpop.f32.mrb[90].mxu0  ;;  %v3526_v27 = vpop.f32.mrb[90].mxu1 }
 0x3ad   : > { %v3885_v28 = vmax.f32 %v1914_v26, %v3526_v27  ;;  %v1916_v29 = vpop.f32.mrb[91].mxu0  ;;  %v3528_v30 = vpop.f32.mrb[91].mxu1 }
 0x3ae   : > { %v6345_v31 = vpack.c.bf16 %v4417_v24, %v4416_v23  ;;  %v4061_v32 = vmax.f32 %v3883_v20, %v3884_v25  ;;  %v3886_v33 = vmax.f32 %v1916_v29, %v3528_v30 }
 0x3b0   : > { %6436 = vst [vmem:[%s6883_s12 + $0x2a8] sm:$0xff] %v6345_v31   ;;  %v4243_v34 = vadd.f32 %v6651_v57, %v4061_v32  ;;  %v4062_v35 = vmax.f32 %v3885_v28, %v3886_v33 }
 0x3b2   : > { %v4244_v36 = vadd.f32 %v6651_v57, %v4062_v35  ;;  %v1920_v37 = vpop.f32.mrb[92].mxu0  ;;  %v3532_v38 = vpop.f32.mrb[92].mxu1  ;;  %v4418_v2 = vmax.f32 %v4243_v34, 0.0 }
 0x3b3   : > { %v3887_v39 = vmax.f32 %v1920_v37, %v3532_v38  ;;  %v1922_v40 = vpop.f32.mrb[93].mxu0  ;;  %v3534_v41 = vpop.f32.mrb[93].mxu1 }
 0x3b4   : > { %v4419_v42 = vmax.f32 %v4244_v36, 0.0  ;;  %v3888_v43 = vmax.f32 %v1922_v40, %v3534_v41  ;;  %v1924_v44 = vpop.f32.mrb[94].mxu0  ;;  %v3536_v45 = vpop.f32.mrb[94].mxu1 }
 0x3b5   : > { %v1925_v46 = vpop.f32.mrb[95].mxu0  ;;  %v3537_v47 = vpop.f32.mrb[95].mxu1 }
 0x3b6   : > { %v6350_v48 = vpack.c.bf16 %v4419_v42, %v4418_v2  ;;  %v4063_v49 = vmax.f32 %v3887_v39, %v3888_v43 }
 0x3b8   : > { %6437 = vst [vmem:[%s6883_s12 + $0x2b0] sm:$0xff] %v6350_v48   ;;  %v4245_v50 = vadd.f32 %v6651_v57, %v4063_v49 }
 0x3ba   : > { %v4420_v51 = vmax.f32 %v4245_v50, 0.0 }
 0x3bc   : > { %v5916_v52 = vpack.c.bf16 %v4420_v51, %v4420_v51 }
 0x3be   : > { %5296 = vst [vmem:[%s6883_s12 + $0x2b8] sm:$0xf] %v5916_v52 }
 0x3bf PF: > { %s14_s15 = sadd.s32 1, %s6658_s15  }
 0x3c0   : > { %p11_p4 = scmp.ge.s32.totalorder %s14_s15, 4  }
 0x3c2   :  { %13 = sbr.rel (!%p11_p4) target bundleno = 1 (0x1), region = 69 }

// kernel: lenet_forward.5
= control target key start
LH: loop header
LB: loop body
LE: loop exit
PB: predicated region body
PF: predicated region fallthrough
CT: control target
= control target key end

     0   :  { %s3001_s15 = smov 0   ;;  %s3356_s0 = inlined_call_operand.vmem [shape: bf16[2,256,384], index: 0, kind: input, shape index: {}]   ;;  %s3357_s1 = inlined_call_operand.vmem [shape: bf16[2,256,384], index: 1, kind: input, shape index: {}]   ;;  %s3358_s2 = inlined_call_operand.vmem [shape: bf16[384,256], index: 2, kind: input, shape index: {}]   ;;  %s3359_s3 = inlined_call_operand.vmem [shape: f32[1,128], index: 3, kind: input, shape index: {}]   ;;  %s3360_s4 = inlined_call_operand.vmem [shape: bf16[2,256,128], index: 4, kind: output, shape index: {}]  }
   0x1 LB: > { %s2313_s16 = sadd.s32 4294967295, %s2973_s15   ;;  %p2317_p0 = scmp.ge.s32.totalorder %s2973_s15, 1  ;;  %s2973_s15 = sphi %s3001_s15, %s14_s15  }
   0x2   : > { %p172_p1 = scmp.lt.s32.totalorder %s2973_s15, 3 }
   0x4   : > { %p173_p2 = pnand %p2317_p0, %p172_p1 }
   0x5   : > { %v2767_v0 = vld [vmem:[%s3358_s2 + $0x4] ss:$8 sps:$4 sm:$0xff] (!%p173_p2)   ;;  %v2769_v1 = vld [vmem:[%s3358_s2] ss:$8 sps:$4 sm:$0xff] (!%p173_p2)   ;;  %v2770_v2 = vld [vmem:[%s3358_s2 + $0x14] ss:$8 sps:$4 sm:$0xff] (!%p173_p2)  }
   0x6   : > { %176 = sbr.rel (%p173_p2) target bundleno = 544 (0x220), region = 36  ;;  %827 = vmatprep.subr.bf16.mxu0 (!%p173_p2), %v2767_v0  ;;  %1533 = vmatprep.subr.bf16.mxu1 (!%p173_p2), %v2767_v0  ;;  %v2772_v3 = vld [vmem:[%s3358_s2 + $0x10] ss:$8 sps:$4 sm:$0xff] (!%p173_p2)   ;;  %v2773_v4 = vld [vmem:[%s3358_s2 + $0x24] ss:$8 sps:$4 sm:$0xff] (!%p173_p2)   ;;  %p203_p3 = scmp.lt.s32.totalorder (!%p173_p2), %s2313_s16, 1 }
   0x7   : > { %828 = vmatpush1.bf16.msra.mxu0 (!%p173_p2), %v2769_v1  ;;  %1534 = vmatpush1.bf16.msra.mxu1 (!%p173_p2), %v2769_v1  ;;  %v2775_v5 = vld [vmem:[%s3358_s2 + $0x20] ss:$8 sps:$4 sm:$0xff] (!%p173_p2)   ;;  %v2776_v6 = vld [vmem:[%s3358_s2 + $0x34] ss:$8 sps:$4 sm:$0xff] (!%p173_p2)   ;;  %v2778_v7 = vld [vmem:[%s3358_s2 + $0x30] ss:$8 sps:$4 sm:$0xff] (!%p173_p2)  }
   0x8   : > { %829 = vmatprep.subr.bf16.mxu0 (!%p173_p2), %v2770_v2  ;;  %1535 = vmatprep.subr.bf16.mxu1 (!%p173_p2), %v2770_v2  ;;  %v2779_v8 = vld [vmem:[%s3358_s2 + $0x44] ss:$8 sps:$4 sm:$0xff] (!%p173_p2)   ;;  %v2781_v9 = vld [vmem:[%s3358_s2 + $0x40] ss:$8 sps:$4 sm:$0xff] (!%p173_p2)   ;;  %v2782_v10 = vld [vmem:[%s3358_s2 + $0x54] ss:$8 sps:$4 sm:$0xff] (!%p173_p2)  }
   0x9   : > { %v2784_v11 = vld [vmem:[%s3358_s2 + $0x50] ss:$8 sps:$4 sm:$0xff] (!%p173_p2)   ;;  %v2785_v12 = vld [vmem:[%s3358_s2 + $0x64] ss:$8 sps:$4 sm:$0xff] (!%p173_p2)   ;;  %v2787_v14 = vld [vmem:[%s3358_s2 + $0x60] ss:$8 sps:$4 sm:$0xff] (!%p173_p2)  }
   0xa   : > { %v2788_v16 = vld [vmem:[%s3358_s2 + $0x74] ss:$8 sps:$4 sm:$0xff] (!%p173_p2)   ;;  %v2790_v17 = vld [vmem:[%s3358_s2 + $0x70] ss:$8 sps:$4 sm:$0xff] (!%p173_p2)   ;;  %v2791_v18 = vld [vmem:[%s3358_s2 + $0x84] ss:$8 sps:$4 sm:$0xff] (!%p173_p2)  }
   0xb   : > { %830 = vmatpush1.bf16.msra.mxu0 (!%p173_p2), %v2772_v3  ;;  %1536 = vmatpush1.bf16.msra.mxu1 (!%p173_p2), %v2772_v3  ;;  %v2793_v19 = vld [vmem:[%s3358_s2 + $0x80] ss:$8 sps:$4 sm:$0xff] (!%p173_p2)   ;;  %v2794_v20 = vld [vmem:[%s3358_s2 + $0x94] ss:$8 sps:$4 sm:$0xff] (!%p173_p2)   ;;  %v2796_v21 = vld [vmem:[%s3358_s2 + $0x90] ss:$8 sps:$4 sm:$0xff] (!%p173_p2)  }
   0xc   : > { %831 = vmatprep.subr.bf16.mxu0 (!%p173_p2), %v2773_v4  ;;  %1537 = vmatprep.subr.bf16.mxu1 (!%p173_p2), %v2773_v4  ;;  %v2797_v22 = vld [vmem:[%s3358_s2 + $0xa4] ss:$8 sps:$4 sm:$0xff] (!%p173_p2)   ;;  %v2799_v23 = vld [vmem:[%s3358_s2 + $0xa0] ss:$8 sps:$4 sm:$0xff] (!%p173_p2)   ;;  %v2800_v24 = vld [vmem:[%s3358_s2 + $0xb4] ss:$8 sps:$4 sm:$0xff] (!%p173_p2)  }
   0xd   : > { %s3362_s16 = smov (!%p203_p3, %s2313_s16), 1  ;;  %v2802_v25 = vld [vmem:[%s3358_s2 + $0xb0] ss:$8 sps:$4 sm:$0xff]   ;;  %v2803_v26 = vld [vmem:[%s3358_s2 + $0xc4] ss:$8 sps:$4 sm:$0xff]  }
   0xe   : > { %s2757_s11 = smul.u32 384, %s3362_s16  ;;  %v2805_v27 = vld [vmem:[%s3358_s2 + $0xc0] ss:$8 sps:$4 sm:$0xff]   ;;  %v2806_v28 = vld [vmem:[%s3358_s2 + $0xd4] ss:$8 sps:$4 sm:$0xff]  }
   0xf   : > { %832 = vmatpush1.bf16.msra.mxu0 %v2775_v5  ;;  %1538 = vmatpush1.bf16.msra.mxu1 %v2775_v5  ;;  %v2808_v29 = vld [vmem:[%s3358_s2 + $0xd0] ss:$8 sps:$4 sm:$0xff]   ;;  %v2809_v30 = vld [vmem:[%s3358_s2 + $0xe4] ss:$8 sps:$4 sm:$0xff]   ;;  %v2811_v31 = vld [vmem:[%s3358_s2 + $0xe0] ss:$8 sps:$4 sm:$0xff]  }
  0x10   : > { %833 = vmatprep.subr.bf16.mxu0 %v2776_v6  ;;  %1539 = vmatprep.subr.bf16.mxu1 %v2776_v6  ;;  %s3051_s20 = scalar_lea.vmem %s3356_s0, %s2757_s11  ;;  %s3059_s25 = scalar_lea.vmem %s3357_s1, %s2757_s11  ;;  %v2812_v32 = vld [vmem:[%s3358_s2 + $0xf4] ss:$8 sps:$4 sm:$0xff]   ;;  %v2814_v33 = vld [vmem:[%s3358_s2 + $0xf0] ss:$8 sps:$4 sm:$0xff]   ;;  %v2823_v34 = vld [vmem:[%s3358_s2 + $0x104] ss:$8 sps:$4 sm:$0xff]  }
  0x11   : > { %v2817_v13 = vld [vmem:[%s3051_s20 + $0x4] ss:$12 sps:$4 sm:$0xff]   ;;  %v2815_v35 = vld [vmem:[%s3051_s20] ss:$12 sps:$4 sm:$0xff]   ;;  %v2824_v38 = vld [vmem:[%s3051_s20 + $0x1c] ss:$12 sps:$4 sm:$0xff]  }
  0x12   : > { %v2820_v15 = vld [vmem:[%s3059_s25 + $0x4] ss:$12 sps:$4 sm:$0xff]   ;;  %859 = vmatprep.mubr.bf16.mxu0 %v2817_v13  ;;  %v2818_v36 = vld [vmem:[%s3059_s25] ss:$12 sps:$4 sm:$0xff]   ;;  %v2826_v39 = vld [vmem:[%s3059_s25 + $0x1c] ss:$12 sps:$4 sm:$0xff]  }
  0x13   : > { %834 = vmatpush1.bf16.msra.mxu0 %v2778_v7  ;;  %1540 = vmatpush1.bf16.msra.mxu1 %v2778_v7  ;;  %v2821_v37 = vld [vmem:[%s3358_s2 + $0x100] ss:$8 sps:$4 sm:$0xff]   ;;  %v2837_v40 = vld [vmem:[%s3358_s2 + $0x114] ss:$8 sps:$4 sm:$0xff]   ;;  %v2835_v41 = vld [vmem:[%s3358_s2 + $0x110] ss:$8 sps:$4 sm:$0xff]  }
  0x14   : > { %835 = vmatprep.subr.bf16.mxu0 %v2779_v8  ;;  %1541 = vmatprep.subr.bf16.mxu1 %v2779_v8  ;;  %v2852_v42 = vld [vmem:[%s3358_s2 + $0x124] ss:$8 sps:$4 sm:$0xff]   ;;  %v2830_v45 = vld [vmem:[%s3051_s20 + $0x34] ss:$12 sps:$4 sm:$0xff]   ;;  %v2834_v49 = vld [vmem:[%s3051_s20 + $0x30] ss:$12 sps:$4 sm:$0xff]  }
  0x15   : > { %1565 = vmatprep.mubr.bf16.mxu1 %v2820_v15  ;;  %v2828_v43 = vld [vmem:[%s3051_s20 + $0x18] ss:$12 sps:$4 sm:$0xff]   ;;  %v2832_v46 = vld [vmem:[%s3059_s25 + $0x34] ss:$12 sps:$4 sm:$0xff]   ;;  %v2838_v50 = vld [vmem:[%s3059_s25 + $0x30] ss:$12 sps:$4 sm:$0xff]  }
  0x16   : > { %v2829_v44 = vld [vmem:[%s3059_s25 + $0x18] ss:$12 sps:$4 sm:$0xff]   ;;  %v2850_v47 = vld [vmem:[%s3358_s2 + $0x120] ss:$8 sps:$4 sm:$0xff]   ;;  %v2867_v48 = vld [vmem:[%s3358_s2 + $0x134] ss:$8 sps:$4 sm:$0xff]  }
  0x17   : > { %836 = vmatpush1.bf16.msra.mxu0 %v2781_v9  ;;  %1542 = vmatpush1.bf16.msra.mxu1 %v2781_v9  ;;  %v2865_v51 = vld [vmem:[%s3358_s2 + $0x130] ss:$8 sps:$4 sm:$0xff]   ;;  %v2882_v53 = vld [vmem:[%s3358_s2 + $0x144] ss:$8 sps:$4 sm:$0xff]   ;;  %v2880_v55 = vld [vmem:[%s3358_s2 + $0x140] ss:$8 sps:$4 sm:$0xff]  }
  0x18   : > { %837 = vmatprep.subr.bf16.mxu0 %v2782_v10  ;;  %1543 = vmatprep.subr.bf16.mxu1 %v2782_v10  ;;  %v2839_v52 = vld [vmem:[%s3051_s20 + $0x4c] ss:$12 sps:$4 sm:$0xff]   ;;  %v2897_v56 = vld [vmem:[%s3358_s2 + $0x154] ss:$8 sps:$4 sm:$0xff]   ;;  %v2845_v61 = vld [vmem:[%s3051_s20 + $0x64] ss:$12 sps:$4 sm:$0xff]  }
  0x19   : > { %v2841_v54 = vld [vmem:[%s3059_s25 + $0x4c] ss:$12 sps:$4 sm:$0xff]   ;;  %v2843_v59 = vld [vmem:[%s3051_s20 + $0x48] ss:$12 sps:$4 sm:$0xff]   ;;  %v2847_v62 = vld [vmem:[%s3059_s25 + $0x64] ss:$12 sps:$4 sm:$0xff]  }
  0x1a   : > { %v2895_v57 = vld [vmem:[%s3358_s2 + $0x150] ss:$8 sps:$4 sm:$0xff]   ;;  %v2912_v58 = vld [vmem:[%s3358_s2 + $0x164] ss:$8 sps:$4 sm:$0xff]   ;;  %v2844_v60 = vld [vmem:[%s3059_s25 + $0x48] ss:$12 sps:$4 sm:$0xff]  }
  0x1b   : > { %838 = vmatpush1.bf16.msra.mxu0 %v2784_v11  ;;  %1544 = vmatpush1.bf16.msra.mxu1 %v2784_v11  ;;  %v2910_v63 = vld [vmem:[%s3358_s2 + $0x160] ss:$8 sps:$4 sm:$0xff]   ;;  %v2927_v0 = vld [vmem:[%s3358_s2 + $0x174] ss:$8 sps:$4 sm:$0xff]   ;;  %v2925_v1 = vld [vmem:[%s3358_s2 + $0x170] ss:$8 sps:$4 sm:$0xff]  }
  0x1c   : > { %839 = vmatprep.subr.bf16.mxu0 %v2785_v12  ;;  %1545 = vmatprep.subr.bf16.mxu1 %v2785_v12  ;;  %v2849_v2 = vld [vmem:[%s3051_s20 + $0x60] ss:$12 sps:$4 sm:$0xff]   ;;  %v2854_v4 = vld [vmem:[%s3051_s20 + $0x7c] ss:$12 sps:$4 sm:$0xff]   ;;  %v2858_v6 = vld [vmem:[%s3051_s20 + $0x78] ss:$12 sps:$4 sm:$0xff]  }
  0x1d   : > { %v2853_v3 = vld [vmem:[%s3059_s25 + $0x60] ss:$12 sps:$4 sm:$0xff]   ;;  %v2856_v5 = vld [vmem:[%s3059_s25 + $0x7c] ss:$12 sps:$4 sm:$0xff]   ;;  %v2859_v7 = vld [vmem:[%s3059_s25 + $0x78] ss:$12 sps:$4 sm:$0xff]  }
  0x1e   : > { %v2860_v8 = vld [vmem:[%s3051_s20 + $0x94] ss:$12 sps:$4 sm:$0xff]   ;;  %v2864_v10 = vld [vmem:[%s3051_s20 + $0x90] ss:$12 sps:$4 sm:$0xff]   ;;  %v2869_v12 = vld [vmem:[%s3051_s20 + $0xac] ss:$12 sps:$4 sm:$0xff]  }
  0x1f   : > { %840 = vmatpush1.bf16.msra.mxu0 %v2787_v14  ;;  %1546 = vmatpush1.bf16.msra.mxu1 %v2787_v14  ;;  %v2862_v9 = vld [vmem:[%s3059_s25 + $0x94] ss:$12 sps:$4 sm:$0xff]   ;;  %v2868_v11 = vld [vmem:[%s3059_s25 + $0x90] ss:$12 sps:$4 sm:$0xff]   ;;  %v2871_v13 = vld [vmem:[%s3059_s25 + $0xac] ss:$12 sps:$4 sm:$0xff]  }
  0x20   : > { %841 = vmatprep.subr.bf16.mxu0 %v2788_v16  ;;  %1547 = vmatprep.subr.bf16.mxu1 %v2788_v16  ;;  %v2873_v14 = vld [vmem:[%s3051_s20 + $0xa8] ss:$12 sps:$4 sm:$0xff]   ;;  %v2875_v16 = vld [vmem:[%s3051_s20 + $0xc4] ss:$12 sps:$4 sm:$0xff]  }
  0x21   : > { %v2874_v15 = vld [vmem:[%s3059_s25 + $0xa8] ss:$12 sps:$4 sm:$0xff]  }
  0x23   : > { %842 = vmatpush1.bf16.msra.mxu0 %v2790_v17  ;;  %1548 = vmatpush1.bf16.msra.mxu1 %v2790_v17  ;;  %v2877_v17 = vld [vmem:[%s3059_s25 + $0xc4] ss:$12 sps:$4 sm:$0xff]  }
  0x24   : > { %843 = vmatprep.subr.bf16.mxu0 %v2791_v18  ;;  %1549 = vmatprep.subr.bf16.mxu1 %v2791_v18  ;;  %v2879_v18 = vld [vmem:[%s3051_s20 + $0xc0] ss:$12 sps:$4 sm:$0xff]  }
  0x27   : > { %844 = vmatpush1.bf16.msra.mxu0 %v2793_v19  ;;  %1550 = vmatpush1.bf16.msra.mxu1 %v2793_v19  ;;  %v2883_v19 = vld [vmem:[%s3059_s25 + $0xc0] ss:$12 sps:$4 sm:$0xff]  }
  0x28   : > { %845 = vmatprep.subr.bf16.mxu0 %v2794_v20  ;;  %1551 = vmatprep.subr.bf16.mxu1 %v2794_v20  ;;  %v2884_v20 = vld [vmem:[%s3051_s20 + $0xdc] ss:$12 sps:$4 sm:$0xff]  }
  0x2b   : > { %846 = vmatpush1.bf16.msra.mxu0 %v2796_v21  ;;  %1552 = vmatpush1.bf16.msra.mxu1 %v2796_v21  ;;  %v2886_v21 = vld [vmem:[%s3059_s25 + $0xdc] ss:$12 sps:$4 sm:$0xff]  }
  0x2c   : > { %847 = vmatprep.subr.bf16.mxu0 %v2797_v22  ;;  %1553 = vmatprep.subr.bf16.mxu1 %v2797_v22  ;;  %v2888_v22 = vld [vmem:[%s3051_s20 + $0xd8] ss:$12 sps:$4 sm:$0xff]  }
  0x2f   : > { %848 = vmatpush1.bf16.msra.mxu0 %v2799_v23  ;;  %1554 = vmatpush1.bf16.msra.mxu1 %v2799_v23  ;;  %v2889_v23 = vld [vmem:[%s3059_s25 + $0xd8] ss:$12 sps:$4 sm:$0xff]  }
  0x30   : > { %849 = vmatprep.subr.bf16.mxu0 %v2800_v24  ;;  %1555 = vmatprep.subr.bf16.mxu1 %v2800_v24  ;;  %v2890_v24 = vld [vmem:[%s3051_s20 + $0xf4] ss:$12 sps:$4 sm:$0xff]  }
  0x33   : > { %850 = vmatpush1.bf16.msra.mxu0 %v2802_v25  ;;  %1556 = vmatpush1.bf16.msra.mxu1 %v2802_v25  ;;  %v2892_v25 = vld [vmem:[%s3059_s25 + $0xf4] ss:$12 sps:$4 sm:$0xff]  }
  0x34   : > { %851 = vmatprep.subr.bf16.mxu0 %v2803_v26  ;;  %1557 = vmatprep.subr.bf16.mxu1 %v2803_v26  ;;  %v2894_v26 = vld [vmem:[%s3051_s20 + $0xf0] ss:$12 sps:$4 sm:$0xff]  }
  0x37   : > { %852 = vmatpush1.bf16.msra.mxu0 %v2805_v27  ;;  %1558 = vmatpush1.bf16.msra.mxu1 %v2805_v27  ;;  %v2898_v27 = vld [vmem:[%s3059_s25 + $0xf0] ss:$12 sps:$4 sm:$0xff]  }
  0x38   : > { %853 = vmatprep.subr.bf16.mxu0 %v2806_v28  ;;  %1559 = vmatprep.subr.bf16.mxu1 %v2806_v28  ;;  %v2899_v28 = vld [vmem:[%s3051_s20 + $0x10c] ss:$12 sps:$4 sm:$0xff]  }
  0x3b   : > { %854 = vmatpush1.bf16.msra.mxu0 %v2808_v29  ;;  %1560 = vmatpush1.bf16.msra.mxu1 %v2808_v29  ;;  %v2901_v29 = vld [vmem:[%s3059_s25 + $0x10c] ss:$12 sps:$4 sm:$0xff]  }
  0x3c   : > { %855 = vmatprep.subr.bf16.mxu0 %v2809_v30  ;;  %1561 = vmatprep.subr.bf16.mxu1 %v2809_v30  ;;  %v2903_v30 = vld [vmem:[%s3051_s20 + $0x108] ss:$12 sps:$4 sm:$0xff]  }
  0x3f   : > { %856 = vmatpush1.bf16.msra.mxu0 %v2811_v31  ;;  %1562 = vmatpush1.bf16.msra.mxu1 %v2811_v31  ;;  %v2904_v31 = vld [vmem:[%s3059_s25 + $0x108] ss:$12 sps:$4 sm:$0xff]  }
  0x40   : > { %857 = vmatprep.subr.bf16.mxu0 %v2812_v32  ;;  %1563 = vmatprep.subr.bf16.mxu1 %v2812_v32  ;;  %v2905_v32 = vld [vmem:[%s3051_s20 + $0x124] ss:$12 sps:$4 sm:$0xff]  }
  0x43   : > { %858 = vmatpush1.bf16.msra.mxu0 %v2814_v33  ;;  %1564 = vmatpush1.bf16.msra.mxu1 %v2814_v33  ;;  %v2907_v33 = vld [vmem:[%s3059_s25 + $0x124] ss:$12 sps:$4 sm:$0xff]  }
  0x44   : > { %1020 = vmatprep.subr.bf16.mxu0 %v2823_v34  ;;  %1726 = vmatprep.subr.bf16.mxu1 %v2823_v34  ;;  %v2909_v34 = vld [vmem:[%s3051_s20 + $0x120] ss:$12 sps:$4 sm:$0xff]  }
  0x46   : > { %860 = vmatmul.mubr.bf16.vlgmr.msra.gmra.mrb[0].mxu0 %v2815_v35  ;;  %1566 = vmatmul.mubr.bf16.vlgmr.msra.gmra.mrb[0].mxu1 %v2818_v36  ;;  %v2913_v35 = vld [vmem:[%s3059_s25 + $0x120] ss:$12 sps:$4 sm:$0xff]   ;;  %v2914_v36 = vld [vmem:[%s3051_s20 + $0x13c] ss:$12 sps:$4 sm:$0xff]  }
  0x47   : > { %1021 = vmatpush1.bf16.msra.mxu0 %v2821_v37  ;;  %1727 = vmatpush1.bf16.msra.mxu1 %v2821_v37  ;;  %v2916_v37 = vld [vmem:[%s3059_s25 + $0x13c] ss:$12 sps:$4 sm:$0xff]  }
  0x48   : > { %869 = vmatprep.mubr.bf16.mxu0 %v2824_v38  ;;  %1575 = vmatprep.mubr.bf16.mxu1 %v2826_v39  ;;  %v2918_v38 = vld [vmem:[%s3051_s20 + $0x138] ss:$12 sps:$4 sm:$0xff]  }
  0x49   : > { %1022 = vmatprep.subr.bf16.mxu0 %v2837_v40  ;;  %1728 = vmatprep.subr.bf16.mxu1 %v2837_v40  ;;  %v2919_v39 = vld [vmem:[%s3059_s25 + $0x138] ss:$12 sps:$4 sm:$0xff]   ;;  %v2920_v40 = vld [vmem:[%s3051_s20 + $0x154] ss:$12 sps:$4 sm:$0xff]  }
  0x4b   : > { %1023 = vmatpush1.bf16.msra.mxu0 %v2835_v41  ;;  %1729 = vmatpush1.bf16.msra.mxu1 %v2835_v41  ;;  %v2922_v41 = vld [vmem:[%s3059_s25 + $0x154] ss:$12 sps:$4 sm:$0xff]  }
  0x4c   : > { %1024 = vmatprep.subr.bf16.mxu0 %v2852_v42  ;;  %1730 = vmatprep.subr.bf16.mxu1 %v2852_v42  ;;  %v2924_v42 = vld [vmem:[%s3051_s20 + $0x150] ss:$12 sps:$4 sm:$0xff]  }
  0x4e   : > { %870 = vmatmul.mubr.bf16.gmra.mrb[4].mxu0 %v2828_v43  ;;  %1576 = vmatmul.mubr.bf16.gmra.mrb[4].mxu1 %v2829_v44  ;;  %v2928_v43 = vld [vmem:[%s3059_s25 + $0x150] ss:$12 sps:$4 sm:$0xff]   ;;  %v2929_v44 = vld [vmem:[%s3051_s20 + $0x16c] ss:$12 sps:$4 sm:$0xff]  }
  0x4f   : > { %879 = vmatprep.mubr.bf16.mxu0 %v2830_v45  ;;  %1585 = vmatprep.mubr.bf16.mxu1 %v2832_v46  ;;  %v2931_v45 = vld [vmem:[%s3059_s25 + $0x16c] ss:$12 sps:$4 sm:$0xff]   ;;  %v2933_v46 = vld [vmem:[%s3051_s20 + $0x168] ss:$12 sps:$4 sm:$0xff]  }
  0x50   : > { %1025 = vmatpush1.bf16.msra.mxu0 %v2850_v47  ;;  %1731 = vmatpush1.bf16.msra.mxu1 %v2850_v47  ;;  %v2934_v47 = vld [vmem:[%s3059_s25 + $0x168] ss:$12 sps:$4 sm:$0xff]  }
  0x51   : > { %1026 = vmatprep.subr.bf16.mxu0 %v2867_v48  ;;  %1732 = vmatprep.subr.bf16.mxu1 %v2867_v48  ;;  %v2975_v48 = vmov 0  }
  0x54   : > { %1027 = vmatpush1.bf16.msra.mxu0 %v2865_v51  ;;  %1733 = vmatpush1.bf16.msra.mxu1 %v2865_v51  ;;  %v2937_v51 = vld [vmem:[%s3051_s20 + $0x20] ss:$12 sps:$4 sm:$0xff]  }
  0x55   : > { %1028 = vmatprep.subr.bf16.mxu0 %v2882_v53  ;;  %1734 = vmatprep.subr.bf16.mxu1 %v2882_v53  ;;  %v2939_v53 = vld [vmem:[%s3051_s20 + $0x38] ss:$12 sps:$4 sm:$0xff]  }
  0x56   : > { %880 = vmatmul.mubr.bf16.gmra.mrb[8].mxu0 %v2834_v49  ;;  %1586 = vmatmul.mubr.bf16.gmra.mrb[8].mxu1 %v2838_v50  ;;  %v2935_v49 = vld [vmem:[%s3051_s20 + $0x8] ss:$12 sps:$4 sm:$0xff]  }
  0x57   : > { %889 = vmatprep.mubr.bf16.mxu0 %v2839_v52  ;;  %1595 = vmatprep.mubr.bf16.mxu1 %v2841_v54  ;;  %v2936_v50 = vld [vmem:[%s3059_s25 + $0x8] ss:$12 sps:$4 sm:$0xff]   ;;  %v2938_v52 = vld [vmem:[%s3059_s25 + $0x20] ss:$12 sps:$4 sm:$0xff]   ;;  %v2940_v54 = vld [vmem:[%s3059_s25 + $0x38] ss:$12 sps:$4 sm:$0xff]  }
  0x58   : > { %1029 = vmatpush1.bf16.msra.mxu0 %v2880_v55  ;;  %1735 = vmatpush1.bf16.msra.mxu1 %v2880_v55  ;;  %v2941_v55 = vld [vmem:[%s3051_s20 + $0x50] ss:$12 sps:$4 sm:$0xff]  }
  0x59   : > { %1030 = vmatprep.subr.bf16.mxu0 %v2897_v56  ;;  %1736 = vmatprep.subr.bf16.mxu1 %v2897_v56  ;;  %v2942_v56 = vld [vmem:[%s3059_s25 + $0x50] ss:$12 sps:$4 sm:$0xff]  }
  0x5c   : > { %1031 = vmatpush1.bf16.msra.mxu0 %v2895_v57  ;;  %1737 = vmatpush1.bf16.msra.mxu1 %v2895_v57  ;;  %v2943_v57 = vld [vmem:[%s3051_s20 + $0x68] ss:$12 sps:$4 sm:$0xff]  }
  0x5d   : > { %1032 = vmatprep.subr.bf16.mxu0 %v2912_v58  ;;  %1738 = vmatprep.subr.bf16.mxu1 %v2912_v58  ;;  %v2944_v58 = vld [vmem:[%s3059_s25 + $0x68] ss:$12 sps:$4 sm:$0xff]  }
  0x5e   : > { %890 = vmatmul.mubr.bf16.gmra.mrb[12].mxu0 %v2843_v59  ;;  %1596 = vmatmul.mubr.bf16.gmra.mrb[12].mxu1 %v2844_v60  ;;  %v2945_v59 = vld [vmem:[%s3051_s20 + $0x80] ss:$12 sps:$4 sm:$0xff]  }
  0x5f   : > { %899 = vmatprep.mubr.bf16.mxu0 %v2845_v61  ;;  %1605 = vmatprep.mubr.bf16.mxu1 %v2847_v62  ;;  %v2946_v60 = vld [vmem:[%s3059_s25 + $0x80] ss:$12 sps:$4 sm:$0xff]   ;;  %v2947_v61 = vld [vmem:[%s3051_s20 + $0x98] ss:$12 sps:$4 sm:$0xff]  }
  0x60   : > { %1033 = vmatpush1.bf16.msra.mxu0 %v2910_v63  ;;  %1739 = vmatpush1.bf16.msra.mxu1 %v2910_v63  ;;  %v2948_v62 = vld [vmem:[%s3059_s25 + $0x98] ss:$12 sps:$4 sm:$0xff]   ;;  %v2949_v63 = vld [vmem:[%s3051_s20 + $0xb0] ss:$12 sps:$4 sm:$0xff]  }
  0x61   : > { %1034 = vmatprep.subr.bf16.mxu0 %v2927_v0  ;;  %1740 = vmatprep.subr.bf16.mxu1 %v2927_v0  ;;  %v2950_v0 = vld [vmem:[%s3059_s25 + $0xb0] ss:$12 sps:$4 sm:$0xff]  }
  0x64   : > { %1035 = vmatpush1.bf16.msra.mxu0 %v2925_v1  ;;  %1741 = vmatpush1.bf16.msra.mxu1 %v2925_v1  ;;  %v2951_v1 = vld [vmem:[%s3051_s20 + $0xc8] ss:$12 sps:$4 sm:$0xff]  }
  0x66   : > { %900 = vmatmul.mubr.bf16.gmra.mrb[16].mxu0 %v2849_v2  ;;  %1606 = vmatmul.mubr.bf16.gmra.mrb[16].mxu1 %v2853_v3  ;;  %v2952_v2 = vld [vmem:[%s3059_s25 + $0xc8] ss:$12 sps:$4 sm:$0xff]   ;;  %v2953_v3 = vld [vmem:[%s3051_s20 + $0xe0] ss:$12 sps:$4 sm:$0xff]  }
  0x67   : > { %909 = vmatprep.mubr.bf16.mxu0 %v2854_v4  ;;  %1615 = vmatprep.mubr.bf16.mxu1 %v2856_v5  ;;  %v2954_v4 = vld [vmem:[%s3059_s25 + $0xe0] ss:$12 sps:$4 sm:$0xff]   ;;  %v2955_v5 = vld [vmem:[%s3051_s20 + $0xf8] ss:$12 sps:$4 sm:$0xff]  }
  0x6e   : > { %910 = vmatmul.mubr.bf16.gmra.mrb[20].mxu0 %v2858_v6  ;;  %1616 = vmatmul.mubr.bf16.gmra.mrb[20].mxu1 %v2859_v7  ;;  %v2956_v6 = vld [vmem:[%s3059_s25 + $0xf8] ss:$12 sps:$4 sm:$0xff]   ;;  %v2957_v7 = vld [vmem:[%s3051_s20 + $0x110] ss:$12 sps:$4 sm:$0xff]  }
  0x6f   : > { %919 = vmatprep.mubr.bf16.mxu0 %v2860_v8  ;;  %1625 = vmatprep.mubr.bf16.mxu1 %v2862_v9  ;;  %v2958_v8 = vld [vmem:[%s3059_s25 + $0x110] ss:$12 sps:$4 sm:$0xff]   ;;  %v2959_v9 = vld [vmem:[%s3051_s20 + $0x128] ss:$12 sps:$4 sm:$0xff]  }
  0x76   : > { %920 = vmatmul.mubr.bf16.gmra.mrb[24].mxu0 %v2864_v10  ;;  %1626 = vmatmul.mubr.bf16.gmra.mrb[24].mxu1 %v2868_v11  ;;  %v2960_v10 = vld [vmem:[%s3059_s25 + $0x128] ss:$12 sps:$4 sm:$0xff]   ;;  %v2961_v11 = vld [vmem:[%s3051_s20 + $0x140] ss:$12 sps:$4 sm:$0xff]  }
  0x77   : > { %929 = vmatprep.mubr.bf16.mxu0 %v2869_v12  ;;  %1635 = vmatprep.mubr.bf16.mxu1 %v2871_v13  ;;  %v2962_v12 = vld [vmem:[%s3059_s25 + $0x140] ss:$12 sps:$4 sm:$0xff]   ;;  %v2963_v13 = vld [vmem:[%s3051_s20 + $0x158] ss:$12 sps:$4 sm:$0xff]  }
  0x7e   : > { %930 = vmatmul.mubr.bf16.gmra.mrb[28].mxu0 %v2873_v14  ;;  %1636 = vmatmul.mubr.bf16.gmra.mrb[28].mxu1 %v2874_v15  ;;  %v2964_v14 = vld [vmem:[%s3059_s25 + $0x158] ss:$12 sps:$4 sm:$0xff]   ;;  %v2965_v15 = vld [vmem:[%s3051_s20 + $0x170] ss:$12 sps:$4 sm:$0xff]   ;;  %s2501_s20 = sshll.u32 %s3362_s16, 7 }
  0x7f   : > { %939 = vmatprep.mubr.bf16.mxu0 %v2875_v16  ;;  %1645 = vmatprep.mubr.bf16.mxu1 %v2877_v17  ;;  %v2966_v16 = vld [vmem:[%s3059_s25 + $0x170] ss:$12 sps:$4 sm:$0xff]   ;;  %s3305_s7 = scalar_lea.vmem %s3360_s4, %s2501_s20 }
  0x86   : > { %940 = vmatmul.mubr.bf16.gmra.mrb[32].mxu0 %v2879_v18  ;;  %1646 = vmatmul.mubr.bf16.gmra.mrb[32].mxu1 %v2883_v19 }
  0x87   : > { %949 = vmatprep.mubr.bf16.mxu0 %v2884_v20  ;;  %1655 = vmatprep.mubr.bf16.mxu1 %v2886_v21 }
  0x8e   : > { %950 = vmatmul.mubr.bf16.gmra.mrb[36].mxu0 %v2888_v22  ;;  %1656 = vmatmul.mubr.bf16.gmra.mrb[36].mxu1 %v2889_v23 }
  0x8f   : > { %959 = vmatprep.mubr.bf16.mxu0 %v2890_v24  ;;  %1665 = vmatprep.mubr.bf16.mxu1 %v2892_v25  ;;  %v3297_v25 = vld [vmem:[%s3359_s3] ss:$0 sm:$0xff] }
  0x96   : > { %960 = vmatmul.mubr.bf16.gmra.mrb[40].mxu0 %v2894_v26  ;;  %1666 = vmatmul.mubr.bf16.gmra.mrb[40].mxu1 %v2898_v27 }
  0x97   : > { %969 = vmatprep.mubr.bf16.mxu0 %v2899_v28  ;;  %1675 = vmatprep.mubr.bf16.mxu1 %v2901_v29 }
  0x9e   : > { %970 = vmatmul.mubr.bf16.gmra.mrb[44].mxu0 %v2903_v30  ;;  %1676 = vmatmul.mubr.bf16.gmra.mrb[44].mxu1 %v2904_v31 }
  0x9f   : > { %979 = vmatprep.mubr.bf16.mxu0 %v2905_v32  ;;  %1685 = vmatprep.mubr.bf16.mxu1 %v2907_v33 }
  0xa6   : > { %980 = vmatmul.mubr.bf16.gmra.mrb[48].mxu0 %v2909_v34  ;;  %1686 = vmatmul.mubr.bf16.gmra.mrb[48].mxu1 %v2913_v35 }
  0xa7   : > { %989 = vmatprep.mubr.bf16.mxu0 %v2914_v36  ;;  %1695 = vmatprep.mubr.bf16.mxu1 %v2916_v37 }
  0xae   : > { %990 = vmatmul.mubr.bf16.gmra.mrb[52].mxu0 %v2918_v38  ;;  %1696 = vmatmul.mubr.bf16.gmra.mrb[52].mxu1 %v2919_v39 }
  0xaf   : > { %999 = vmatprep.mubr.bf16.mxu0 %v2920_v40  ;;  %1705 = vmatprep.mubr.bf16.mxu1 %v2922_v41 }
  0xb6   : > { %1000 = vmatmul.mubr.bf16.gmra.mrb[56].mxu0 %v2924_v42  ;;  %1706 = vmatmul.mubr.bf16.gmra.mrb[56].mxu1 %v2928_v43 }
  0xb7   : > { %1009 = vmatprep.mubr.bf16.mxu0 %v2929_v44  ;;  %1715 = vmatprep.mubr.bf16.mxu1 %v2931_v45 }
  0xbe   : > { %1010 = vmatmul.mubr.bf16.gmra.mrb[60].mxu0 %v2933_v46  ;;  %1716 = vmatmul.mubr.bf16.gmra.mrb[60].mxu1 %v2934_v47 }
  0xbf   : > { %1052 = vmatprep.mubr.bf16.mxu0 %v2975_v48  ;;  %1758 = vmatprep.mubr.bf16.mxu1 %v2975_v48 }
  0xc6   : > { %1053 = vmatmul.mubr.bf16.vlgmr.msra.gmra.mrb[0].mxu0 %v2935_v49  ;;  %1759 = vmatmul.mubr.bf16.vlgmr.msra.gmra.mrb[0].mxu1 %v2936_v50 }
  0xc7   : > { %1062 = vmatprep.mubr.bf16.mxu0 %v2975_v48  ;;  %1768 = vmatprep.mubr.bf16.mxu1 %v2975_v48 }
  0xce   : > { %1063 = vmatmul.mubr.bf16.gmra.mrb[4].mxu0 %v2937_v51  ;;  %1769 = vmatmul.mubr.bf16.gmra.mrb[4].mxu1 %v2938_v52 }
  0xcf   : > { %1072 = vmatprep.mubr.bf16.mxu0 %v2975_v48  ;;  %1778 = vmatprep.mubr.bf16.mxu1 %v2975_v48 }
  0xd6   : > { %1073 = vmatmul.mubr.bf16.gmra.mrb[8].mxu0 %v2939_v53  ;;  %1779 = vmatmul.mubr.bf16.gmra.mrb[8].mxu1 %v2940_v54 }
  0xd7   : > { %1082 = vmatprep.mubr.bf16.mxu0 %v2975_v48  ;;  %1788 = vmatprep.mubr.bf16.mxu1 %v2975_v48 }
  0xde   : > { %1083 = vmatmul.mubr.bf16.gmra.mrb[12].mxu0 %v2941_v55  ;;  %1789 = vmatmul.mubr.bf16.gmra.mrb[12].mxu1 %v2942_v56 }
  0xdf   : > { %1092 = vmatprep.mubr.bf16.mxu0 %v2975_v48  ;;  %1798 = vmatprep.mubr.bf16.mxu1 %v2975_v48 }
  0xe6   : > { %1093 = vmatmul.mubr.bf16.gmra.mrb[16].mxu0 %v2943_v57  ;;  %1799 = vmatmul.mubr.bf16.gmra.mrb[16].mxu1 %v2944_v58 }
  0xe7   : > { %1102 = vmatprep.mubr.bf16.mxu0 %v2975_v48  ;;  %1808 = vmatprep.mubr.bf16.mxu1 %v2975_v48 }
  0xee   : > { %1103 = vmatmul.mubr.bf16.gmra.mrb[20].mxu0 %v2945_v59  ;;  %1809 = vmatmul.mubr.bf16.gmra.mrb[20].mxu1 %v2946_v60 }
  0xef   : > { %1112 = vmatprep.mubr.bf16.mxu0 %v2975_v48  ;;  %1818 = vmatprep.mubr.bf16.mxu1 %v2975_v48 }
  0xf6   : > { %1113 = vmatmul.mubr.bf16.gmra.mrb[24].mxu0 %v2947_v61  ;;  %1819 = vmatmul.mubr.bf16.gmra.mrb[24].mxu1 %v2948_v62 }
  0xf7   : > { %1122 = vmatprep.mubr.bf16.mxu0 %v2975_v48  ;;  %1828 = vmatprep.mubr.bf16.mxu1 %v2975_v48 }
  0xfe   : > { %1123 = vmatmul.mubr.bf16.gmra.mrb[28].mxu0 %v2949_v63  ;;  %1829 = vmatmul.mubr.bf16.gmra.mrb[28].mxu1 %v2950_v0 }
  0xff   : > { %1132 = vmatprep.mubr.bf16.mxu0 %v2975_v48  ;;  %1838 = vmatprep.mubr.bf16.mxu1 %v2975_v48 }
 0x106   : > { %1133 = vmatmul.mubr.bf16.gmra.mrb[32].mxu0 %v2951_v1  ;;  %1839 = vmatmul.mubr.bf16.gmra.mrb[32].mxu1 %v2952_v2 }
 0x107   : > { %1142 = vmatprep.mubr.bf16.mxu0 %v2975_v48  ;;  %1848 = vmatprep.mubr.bf16.mxu1 %v2975_v48 }
 0x10e   : > { %1143 = vmatmul.mubr.bf16.gmra.mrb[36].mxu0 %v2953_v3  ;;  %1849 = vmatmul.mubr.bf16.gmra.mrb[36].mxu1 %v2954_v4 }
 0x10f   : > { %1152 = vmatprep.mubr.bf16.mxu0 %v2975_v48  ;;  %1858 = vmatprep.mubr.bf16.mxu1 %v2975_v48 }
 0x116   : > { %1153 = vmatmul.mubr.bf16.gmra.mrb[40].mxu0 %v2955_v5  ;;  %1859 = vmatmul.mubr.bf16.gmra.mrb[40].mxu1 %v2956_v6 }
 0x117   : > { %1162 = vmatprep.mubr.bf16.mxu0 %v2975_v48  ;;  %1868 = vmatprep.mubr.bf16.mxu1 %v2975_v48 }
 0x11e   : > { %1163 = vmatmul.mubr.bf16.gmra.mrb[44].mxu0 %v2957_v7  ;;  %1869 = vmatmul.mubr.bf16.gmra.mrb[44].mxu1 %v2958_v8 }
 0x11f   : > { %1172 = vmatprep.mubr.bf16.mxu0 %v2975_v48  ;;  %1878 = vmatprep.mubr.bf16.mxu1 %v2975_v48 }
 0x126   : > { %1173 = vmatmul.mubr.bf16.gmra.mrb[48].mxu0 %v2959_v9  ;;  %1879 = vmatmul.mubr.bf16.gmra.mrb[48].mxu1 %v2960_v10 }
 0x127   : > { %1182 = vmatprep.mubr.bf16.mxu0 %v2975_v48  ;;  %1888 = vmatprep.mubr.bf16.mxu1 %v2975_v48 }
 0x12e   : > { %1183 = vmatmul.mubr.bf16.gmra.mrb[52].mxu0 %v2961_v11  ;;  %1889 = vmatmul.mubr.bf16.gmra.mrb[52].mxu1 %v2962_v12 }
 0x12f   : > { %1192 = vmatprep.mubr.bf16.mxu0 %v2975_v48  ;;  %1898 = vmatprep.mubr.bf16.mxu1 %v2975_v48 }
 0x136   : > { %1193 = vmatmul.mubr.bf16.gmra.mrb[56].mxu0 %v2963_v13  ;;  %1899 = vmatmul.mubr.bf16.gmra.mrb[56].mxu1 %v2964_v14 }
 0x137   : > { %1202 = vmatprep.mubr.bf16.mxu0 %v2975_v48  ;;  %1908 = vmatprep.mubr.bf16.mxu1 %v2975_v48 }
 0x13e   : > { %1203 = vmatmul.mubr.bf16.gmra.mrb[60].mxu0 %v2965_v15  ;;  %1909 = vmatmul.mubr.bf16.gmra.mrb[60].mxu1 %v2966_v16 }
 0x199   : > { %v1054_v17 = vpop.f32.mrb[0].mxu0  ;;  %v1760_v18 = vpop.f32.mrb[0].mxu1 }
 0x19a   : > { %v1919_v19 = vmax.f32 %v1054_v17, %v1760_v18  ;;  %v1056_v20 = vpop.f32.mrb[1].mxu0  ;;  %v1762_v21 = vpop.f32.mrb[1].mxu1 }
 0x19b   : > { %v1920_v22 = vmax.f32 %v1056_v20, %v1762_v21  ;;  %v1058_v23 = vpop.f32.mrb[2].mxu0  ;;  %v1764_v24 = vpop.f32.mrb[2].mxu1 }
 0x19c   : > { %v1921_v26 = vmax.f32 %v1058_v23, %v1764_v24  ;;  %v1060_v27 = vpop.f32.mrb[3].mxu0  ;;  %v1766_v28 = vpop.f32.mrb[3].mxu1 }
 0x19d   : > { %v1983_v29 = vmax.f32 %v1919_v19, %v1920_v22  ;;  %v1922_v30 = vmax.f32 %v1060_v27, %v1766_v28 }
 0x19f   : > { %v2022_v31 = vadd.f32 %v3297_v25, %v1983_v29  ;;  %v1984_v32 = vmax.f32 %v1921_v26, %v1922_v30 }
 0x1a1   : > { %v2023_v33 = vadd.f32 %v3297_v25, %v1984_v32  ;;  %v1064_v34 = vpop.f32.mrb[4].mxu0  ;;  %v1770_v35 = vpop.f32.mrb[4].mxu1  ;;  %v2054_v39 = vmax.f32 %v2022_v31, 0.0 }
 0x1a2   : > { %v1923_v36 = vmax.f32 %v1064_v34, %v1770_v35  ;;  %v1066_v37 = vpop.f32.mrb[5].mxu0  ;;  %v1772_v38 = vpop.f32.mrb[5].mxu1 }
 0x1a3   : > { %v2055_v40 = vmax.f32 %v2023_v33, 0.0  ;;  %v1924_v41 = vmax.f32 %v1066_v37, %v1772_v38  ;;  %v1068_v42 = vpop.f32.mrb[6].mxu0  ;;  %v1774_v43 = vpop.f32.mrb[6].mxu1 }
 0x1a4   : > { %v1925_v44 = vmax.f32 %v1068_v42, %v1774_v43  ;;  %v1070_v45 = vpop.f32.mrb[7].mxu0  ;;  %v1776_v46 = vpop.f32.mrb[7].mxu1 }
 0x1a5   : > { %v2537_v47 = vpack.c.bf16 %v2055_v40, %v2054_v39  ;;  %v1985_v48 = vmax.f32 %v1923_v36, %v1924_v41  ;;  %v1926_v49 = vmax.f32 %v1070_v45, %v1776_v46 }
 0x1a7   : > { %2538 = vst [vmem:[%s3305_s7] sm:$0xff] %v2537_v47   ;;  %v2024_v50 = vadd.f32 %v3297_v25, %v1985_v48  ;;  %v1986_v51 = vmax.f32 %v1925_v44, %v1926_v49 }
 0x1a9   : > { %v2025_v52 = vadd.f32 %v3297_v25, %v1986_v51  ;;  %v1074_v53 = vpop.f32.mrb[8].mxu0  ;;  %v1780_v54 = vpop.f32.mrb[8].mxu1  ;;  %v2056_v58 = vmax.f32 %v2024_v50, 0.0 }
 0x1aa   : > { %v1927_v55 = vmax.f32 %v1074_v53, %v1780_v54  ;;  %v1076_v56 = vpop.f32.mrb[9].mxu0  ;;  %v1782_v57 = vpop.f32.mrb[9].mxu1 }
 0x1ab   : > { %v2057_v59 = vmax.f32 %v2025_v52, 0.0  ;;  %v1928_v60 = vmax.f32 %v1076_v56, %v1782_v57  ;;  %v1078_v61 = vpop.f32.mrb[10].mxu0  ;;  %v1784_v62 = vpop.f32.mrb[10].mxu1 }
 0x1ac   : > { %v1929_v63 = vmax.f32 %v1078_v61, %v1784_v62  ;;  %v1080_v0 = vpop.f32.mrb[11].mxu0  ;;  %v1786_v1 = vpop.f32.mrb[11].mxu1 }
 0x1ad   : > { %v2542_v2 = vpack.c.bf16 %v2057_v59, %v2056_v58  ;;  %v1987_v3 = vmax.f32 %v1927_v55, %v1928_v60  ;;  %v1930_v4 = vmax.f32 %v1080_v0, %v1786_v1 }
 0x1af   : > { %2614 = vst [vmem:[%s3305_s7 + $0x8] sm:$0xff] %v2542_v2   ;;  %v2026_v5 = vadd.f32 %v3297_v25, %v1987_v3  ;;  %v1988_v6 = vmax.f32 %v1929_v63, %v1930_v4 }
 0x1b1   : > { %v2027_v7 = vadd.f32 %v3297_v25, %v1988_v6  ;;  %v1084_v8 = vpop.f32.mrb[12].mxu0  ;;  %v1790_v9 = vpop.f32.mrb[12].mxu1  ;;  %v2058_v13 = vmax.f32 %v2026_v5, 0.0 }
 0x1b2   : > { %v1931_v10 = vmax.f32 %v1084_v8, %v1790_v9  ;;  %v1086_v11 = vpop.f32.mrb[13].mxu0  ;;  %v1792_v12 = vpop.f32.mrb[13].mxu1 }
 0x1b3   : > { %v2059_v14 = vmax.f32 %v2027_v7, 0.0  ;;  %v1932_v15 = vmax.f32 %v1086_v11, %v1792_v12  ;;  %v1088_v16 = vpop.f32.mrb[14].mxu0  ;;  %v1794_v17 = vpop.f32.mrb[14].mxu1 }
 0x1b4   : > { %v1933_v18 = vmax.f32 %v1088_v16, %v1794_v17  ;;  %v1090_v19 = vpop.f32.mrb[15].mxu0  ;;  %v1796_v20 = vpop.f32.mrb[15].mxu1 }
 0x1b5   : > { %v2547_v21 = vpack.c.bf16 %v2059_v14, %v2058_v13  ;;  %v1989_v22 = vmax.f32 %v1931_v10, %v1932_v15  ;;  %v1934_v23 = vmax.f32 %v1090_v19, %v1796_v20 }
 0x1b7   : > { %2615 = vst [vmem:[%s3305_s7 + $0x10] sm:$0xff] %v2547_v21   ;;  %v2028_v24 = vadd.f32 %v3297_v25, %v1989_v22  ;;  %v1990_v26 = vmax.f32 %v1933_v18, %v1934_v23 }
 0x1b9   : > { %v2029_v27 = vadd.f32 %v3297_v25, %v1990_v26  ;;  %v1094_v28 = vpop.f32.mrb[16].mxu0  ;;  %v1800_v29 = vpop.f32.mrb[16].mxu1  ;;  %v2060_v33 = vmax.f32 %v2028_v24, 0.0 }
 0x1ba   : > { %v1935_v30 = vmax.f32 %v1094_v28, %v1800_v29  ;;  %v1096_v31 = vpop.f32.mrb[17].mxu0  ;;  %v1802_v32 = vpop.f32.mrb[17].mxu1 }
 0x1bb   : > { %v2061_v34 = vmax.f32 %v2029_v27, 0.0  ;;  %v1936_v35 = vmax.f32 %v1096_v31, %v1802_v32  ;;  %v1098_v36 = vpop.f32.mrb[18].mxu0  ;;  %v1804_v37 = vpop.f32.mrb[18].mxu1 }
 0x1bc   : > { %v1937_v38 = vmax.f32 %v1098_v36, %v1804_v37  ;;  %v1100_v39 = vpop.f32.mrb[19].mxu0  ;;  %v1806_v40 = vpop.f32.mrb[19].mxu1 }
 0x1bd   : > { %v2552_v41 = vpack.c.bf16 %v2061_v34, %v2060_v33  ;;  %v1991_v42 = vmax.f32 %v1935_v30, %v1936_v35  ;;  %v1938_v43 = vmax.f32 %v1100_v39, %v1806_v40 }
 0x1bf   : > { %2616 = vst [vmem:[%s3305_s7 + $0x18] sm:$0xff] %v2552_v41   ;;  %v2030_v44 = vadd.f32 %v3297_v25, %v1991_v42  ;;  %v1992_v45 = vmax.f32 %v1937_v38, %v1938_v43 }
 0x1c1   : > { %v2031_v46 = vadd.f32 %v3297_v25, %v1992_v45  ;;  %v1104_v47 = vpop.f32.mrb[20].mxu0  ;;  %v1810_v48 = vpop.f32.mrb[20].mxu1  ;;  %v2062_v52 = vmax.f32 %v2030_v44, 0.0 }
 0x1c2   : > { %v1939_v49 = vmax.f32 %v1104_v47, %v1810_v48  ;;  %v1106_v50 = vpop.f32.mrb[21].mxu0  ;;  %v1812_v51 = vpop.f32.mrb[21].mxu1 }
 0x1c3   : > { %v2063_v53 = vmax.f32 %v2031_v46, 0.0  ;;  %v1940_v54 = vmax.f32 %v1106_v50, %v1812_v51  ;;  %v1108_v55 = vpop.f32.mrb[22].mxu0  ;;  %v1814_v56 = vpop.f32.mrb[22].mxu1 }
 0x1c4   : > { %v1941_v57 = vmax.f32 %v1108_v55, %v1814_v56  ;;  %v1110_v58 = vpop.f32.mrb[23].mxu0  ;;  %v1816_v59 = vpop.f32.mrb[23].mxu1 }
 0x1c5   : > { %v2557_v60 = vpack.c.bf16 %v2063_v53, %v2062_v52  ;;  %v1993_v61 = vmax.f32 %v1939_v49, %v1940_v54  ;;  %v1942_v62 = vmax.f32 %v1110_v58, %v1816_v59 }
 0x1c7   : > { %2617 = vst [vmem:[%s3305_s7 + $0x20] sm:$0xff] %v2557_v60   ;;  %v2032_v63 = vadd.f32 %v3297_v25, %v1993_v61  ;;  %v1994_v0 = vmax.f32 %v1941_v57, %v1942_v62 }
 0x1c9   : > { %v2033_v1 = vadd.f32 %v3297_v25, %v1994_v0  ;;  %v1114_v2 = vpop.f32.mrb[24].mxu0  ;;  %v1820_v3 = vpop.f32.mrb[24].mxu1  ;;  %v2064_v7 = vmax.f32 %v2032_v63, 0.0 }
 0x1ca   : > { %v1943_v4 = vmax.f32 %v1114_v2, %v1820_v3  ;;  %v1116_v5 = vpop.f32.mrb[25].mxu0  ;;  %v1822_v6 = vpop.f32.mrb[25].mxu1 }
 0x1cb   : > { %v2065_v8 = vmax.f32 %v2033_v1, 0.0  ;;  %v1944_v9 = vmax.f32 %v1116_v5, %v1822_v6  ;;  %v1118_v10 = vpop.f32.mrb[26].mxu0  ;;  %v1824_v11 = vpop.f32.mrb[26].mxu1 }
 0x1cc   : > { %v1945_v12 = vmax.f32 %v1118_v10, %v1824_v11  ;;  %v1120_v13 = vpop.f32.mrb[27].mxu0  ;;  %v1826_v14 = vpop.f32.mrb[27].mxu1 }
 0x1cd   : > { %v2562_v15 = vpack.c.bf16 %v2065_v8, %v2064_v7  ;;  %v1995_v16 = vmax.f32 %v1943_v4, %v1944_v9  ;;  %v1946_v17 = vmax.f32 %v1120_v13, %v1826_v14 }
 0x1cf   : > { %2618 = vst [vmem:[%s3305_s7 + $0x28] sm:$0xff] %v2562_v15   ;;  %v2034_v18 = vadd.f32 %v3297_v25, %v1995_v16  ;;  %v1996_v19 = vmax.f32 %v1945_v12, %v1946_v17 }
 0x1d1   : > { %v2035_v20 = vadd.f32 %v3297_v25, %v1996_v19  ;;  %v1124_v21 = vpop.f32.mrb[28].mxu0  ;;  %v1830_v22 = vpop.f32.mrb[28].mxu1  ;;  %v2066_v27 = vmax.f32 %v2034_v18, 0.0 }
 0x1d2   : > { %v1947_v23 = vmax.f32 %v1124_v21, %v1830_v22  ;;  %v1126_v24 = vpop.f32.mrb[29].mxu0  ;;  %v1832_v26 = vpop.f32.mrb[29].mxu1 }
 0x1d3   : > { %v2067_v28 = vmax.f32 %v2035_v20, 0.0  ;;  %v1948_v29 = vmax.f32 %v1126_v24, %v1832_v26  ;;  %v1128_v30 = vpop.f32.mrb[30].mxu0  ;;  %v1834_v31 = vpop.f32.mrb[30].mxu1 }
 0x1d4   : > { %v1949_v32 = vmax.f32 %v1128_v30, %v1834_v31  ;;  %v1130_v33 = vpop.f32.mrb[31].mxu0  ;;  %v1836_v34 = vpop.f32.mrb[31].mxu1 }
 0x1d5   : > { %v2567_v35 = vpack.c.bf16 %v2067_v28, %v2066_v27  ;;  %v1997_v36 = vmax.f32 %v1947_v23, %v1948_v29  ;;  %v1950_v37 = vmax.f32 %v1130_v33, %v1836_v34 }
 0x1d7   : > { %2619 = vst [vmem:[%s3305_s7 + $0x30] sm:$0xff] %v2567_v35   ;;  %v2036_v38 = vadd.f32 %v3297_v25, %v1997_v36  ;;  %v1998_v39 = vmax.f32 %v1949_v32, %v1950_v37 }
 0x1d9   : > { %v2037_v40 = vadd.f32 %v3297_v25, %v1998_v39  ;;  %v1134_v41 = vpop.f32.mrb[32].mxu0  ;;  %v1840_v42 = vpop.f32.mrb[32].mxu1  ;;  %v2068_v46 = vmax.f32 %v2036_v38, 0.0 }
 0x1da   : > { %v1951_v43 = vmax.f32 %v1134_v41, %v1840_v42  ;;  %v1136_v44 = vpop.f32.mrb[33].mxu0  ;;  %v1842_v45 = vpop.f32.mrb[33].mxu1 }
 0x1db   : > { %v2069_v47 = vmax.f32 %v2037_v40, 0.0  ;;  %v1952_v48 = vmax.f32 %v1136_v44, %v1842_v45  ;;  %v1138_v49 = vpop.f32.mrb[34].mxu0  ;;  %v1844_v50 = vpop.f32.mrb[34].mxu1 }
 0x1dc   : > { %v1953_v51 = vmax.f32 %v1138_v49, %v1844_v50  ;;  %v1140_v52 = vpop.f32.mrb[35].mxu0  ;;  %v1846_v53 = vpop.f32.mrb[35].mxu1 }
 0x1dd   : > { %v2572_v54 = vpack.c.bf16 %v2069_v47, %v2068_v46  ;;  %v1999_v55 = vmax.f32 %v1951_v43, %v1952_v48  ;;  %v1954_v56 = vmax.f32 %v1140_v52, %v1846_v53 }
 0x1df   : > { %2620 = vst [vmem:[%s3305_s7 + $0x38] sm:$0xff] %v2572_v54   ;;  %v2038_v57 = vadd.f32 %v3297_v25, %v1999_v55  ;;  %v2000_v58 = vmax.f32 %v1953_v51, %v1954_v56 }
 0x1e1   : > { %v2039_v59 = vadd.f32 %v3297_v25, %v2000_v58  ;;  %v1144_v60 = vpop.f32.mrb[36].mxu0  ;;  %v1850_v61 = vpop.f32.mrb[36].mxu1  ;;  %v2070_v1 = vmax.f32 %v2038_v57, 0.0 }
 0x1e2   : > { %v1955_v62 = vmax.f32 %v1144_v60, %v1850_v61  ;;  %v1146_v63 = vpop.f32.mrb[37].mxu0  ;;  %v1852_v0 = vpop.f32.mrb[37].mxu1 }
 0x1e3   : > { %v2071_v2 = vmax.f32 %v2039_v59, 0.0  ;;  %v1956_v3 = vmax.f32 %v1146_v63, %v1852_v0  ;;  %v1148_v4 = vpop.f32.mrb[38].mxu0  ;;  %v1854_v5 = vpop.f32.mrb[38].mxu1 }
 0x1e4   : > { %v1957_v6 = vmax.f32 %v1148_v4, %v1854_v5  ;;  %v1150_v7 = vpop.f32.mrb[39].mxu0  ;;  %v1856_v8 = vpop.f32.mrb[39].mxu1 }
 0x1e5   : > { %v2577_v9 = vpack.c.bf16 %v2071_v2, %v2070_v1  ;;  %v2001_v10 = vmax.f32 %v1955_v62, %v1956_v3  ;;  %v1958_v11 = vmax.f32 %v1150_v7, %v1856_v8 }
 0x1e7   : > { %2621 = vst [vmem:[%s3305_s7 + $0x40] sm:$0xff] %v2577_v9   ;;  %v2040_v12 = vadd.f32 %v3297_v25, %v2001_v10  ;;  %v2002_v13 = vmax.f32 %v1957_v6, %v1958_v11 }
 0x1e9   : > { %v2041_v14 = vadd.f32 %v3297_v25, %v2002_v13  ;;  %v1154_v15 = vpop.f32.mrb[40].mxu0  ;;  %v1860_v16 = vpop.f32.mrb[40].mxu1  ;;  %v2072_v20 = vmax.f32 %v2040_v12, 0.0 }
 0x1ea   : > { %v1959_v17 = vmax.f32 %v1154_v15, %v1860_v16  ;;  %v1156_v18 = vpop.f32.mrb[41].mxu0  ;;  %v1862_v19 = vpop.f32.mrb[41].mxu1 }
 0x1eb   : > { %v2073_v21 = vmax.f32 %v2041_v14, 0.0  ;;  %v1960_v22 = vmax.f32 %v1156_v18, %v1862_v19  ;;  %v1158_v23 = vpop.f32.mrb[42].mxu0  ;;  %v1864_v24 = vpop.f32.mrb[42].mxu1 }
 0x1ec   : > { %v1961_v26 = vmax.f32 %v1158_v23, %v1864_v24  ;;  %v1160_v27 = vpop.f32.mrb[43].mxu0  ;;  %v1866_v28 = vpop.f32.mrb[43].mxu1 }
 0x1ed   : > { %v2582_v29 = vpack.c.bf16 %v2073_v21, %v2072_v20  ;;  %v2003_v30 = vmax.f32 %v1959_v17, %v1960_v22  ;;  %v1962_v31 = vmax.f32 %v1160_v27, %v1866_v28 }
 0x1ef   : > { %2622 = vst [vmem:[%s3305_s7 + $0x48] sm:$0xff] %v2582_v29   ;;  %v2042_v32 = vadd.f32 %v3297_v25, %v2003_v30  ;;  %v2004_v33 = vmax.f32 %v1961_v26, %v1962_v31 }
 0x1f1   : > { %v2043_v34 = vadd.f32 %v3297_v25, %v2004_v33  ;;  %v1164_v35 = vpop.f32.mrb[44].mxu0  ;;  %v1870_v36 = vpop.f32.mrb[44].mxu1  ;;  %v2074_v40 = vmax.f32 %v2042_v32, 0.0 }
 0x1f2   : > { %v1963_v37 = vmax.f32 %v1164_v35, %v1870_v36  ;;  %v1166_v38 = vpop.f32.mrb[45].mxu0  ;;  %v1872_v39 = vpop.f32.mrb[45].mxu1 }
 0x1f3   : > { %v2075_v41 = vmax.f32 %v2043_v34, 0.0  ;;  %v1964_v42 = vmax.f32 %v1166_v38, %v1872_v39  ;;  %v1168_v43 = vpop.f32.mrb[46].mxu0  ;;  %v1874_v44 = vpop.f32.mrb[46].mxu1 }
 0x1f4   : > { %v1965_v45 = vmax.f32 %v1168_v43, %v1874_v44  ;;  %v1170_v46 = vpop.f32.mrb[47].mxu0  ;;  %v1876_v47 = vpop.f32.mrb[47].mxu1 }
 0x1f5   : > { %v2587_v48 = vpack.c.bf16 %v2075_v41, %v2074_v40  ;;  %v2005_v49 = vmax.f32 %v1963_v37, %v1964_v42  ;;  %v1966_v50 = vmax.f32 %v1170_v46, %v1876_v47 }
 0x1f7   : > { %2623 = vst [vmem:[%s3305_s7 + $0x50] sm:$0xff] %v2587_v48   ;;  %v2044_v51 = vadd.f32 %v3297_v25, %v2005_v49  ;;  %v2006_v52 = vmax.f32 %v1965_v45, %v1966_v50 }
 0x1f9   : > { %v2045_v53 = vadd.f32 %v3297_v25, %v2006_v52  ;;  %v1174_v54 = vpop.f32.mrb[48].mxu0  ;;  %v1880_v55 = vpop.f32.mrb[48].mxu1  ;;  %v2076_v59 = vmax.f32 %v2044_v51, 0.0 }
 0x1fa   : > { %v1967_v56 = vmax.f32 %v1174_v54, %v1880_v55  ;;  %v1176_v57 = vpop.f32.mrb[49].mxu0  ;;  %v1882_v58 = vpop.f32.mrb[49].mxu1 }
 0x1fb   : > { %v2077_v60 = vmax.f32 %v2045_v53, 0.0  ;;  %v1968_v61 = vmax.f32 %v1176_v57, %v1882_v58  ;;  %v1178_v62 = vpop.f32.mrb[50].mxu0  ;;  %v1884_v63 = vpop.f32.mrb[50].mxu1 }
 0x1fc   : > { %v1969_v0 = vmax.f32 %v1178_v62, %v1884_v63  ;;  %v1180_v1 = vpop.f32.mrb[51].mxu0  ;;  %v1886_v2 = vpop.f32.mrb[51].mxu1 }
 0x1fd   : > { %v2592_v3 = vpack.c.bf16 %v2077_v60, %v2076_v59  ;;  %v2007_v4 = vmax.f32 %v1967_v56, %v1968_v61  ;;  %v1970_v5 = vmax.f32 %v1180_v1, %v1886_v2 }
 0x1ff   : > { %2624 = vst [vmem:[%s3305_s7 + $0x58] sm:$0xff] %v2592_v3   ;;  %v2046_v6 = vadd.f32 %v3297_v25, %v2007_v4  ;;  %v2008_v7 = vmax.f32 %v1969_v0, %v1970_v5 }
 0x201   : > { %v2047_v8 = vadd.f32 %v3297_v25, %v2008_v7  ;;  %v1184_v9 = vpop.f32.mrb[52].mxu0  ;;  %v1890_v10 = vpop.f32.mrb[52].mxu1  ;;  %v2078_v14 = vmax.f32 %v2046_v6, 0.0 }
 0x202   : > { %v1971_v11 = vmax.f32 %v1184_v9, %v1890_v10  ;;  %v1186_v12 = vpop.f32.mrb[53].mxu0  ;;  %v1892_v13 = vpop.f32.mrb[53].mxu1 }
 0x203   : > { %v2079_v15 = vmax.f32 %v2047_v8, 0.0  ;;  %v1972_v16 = vmax.f32 %v1186_v12, %v1892_v13  ;;  %v1188_v17 = vpop.f32.mrb[54].mxu0  ;;  %v1894_v18 = vpop.f32.mrb[54].mxu1 }
 0x204   : > { %v1973_v19 = vmax.f32 %v1188_v17, %v1894_v18  ;;  %v1190_v20 = vpop.f32.mrb[55].mxu0  ;;  %v1896_v21 = vpop.f32.mrb[55].mxu1 }
 0x205   : > { %v2597_v22 = vpack.c.bf16 %v2079_v15, %v2078_v14  ;;  %v2009_v23 = vmax.f32 %v1971_v11, %v1972_v16  ;;  %v1974_v24 = vmax.f32 %v1190_v20, %v1896_v21 }
 0x207   : > { %2625 = vst [vmem:[%s3305_s7 + $0x60] sm:$0xff] %v2597_v22   ;;  %v2048_v26 = vadd.f32 %v3297_v25, %v2009_v23  ;;  %v2010_v27 = vmax.f32 %v1973_v19, %v1974_v24 }
 0x209   : > { %v2049_v28 = vadd.f32 %v3297_v25, %v2010_v27  ;;  %v1194_v29 = vpop.f32.mrb[56].mxu0  ;;  %v1900_v30 = vpop.f32.mrb[56].mxu1  ;;  %v2080_v34 = vmax.f32 %v2048_v26, 0.0 }
 0x20a   : > { %v1975_v31 = vmax.f32 %v1194_v29, %v1900_v30  ;;  %v1196_v32 = vpop.f32.mrb[57].mxu0  ;;  %v1902_v33 = vpop.f32.mrb[57].mxu1 }
 0x20b   : > { %v2081_v35 = vmax.f32 %v2049_v28, 0.0  ;;  %v1976_v36 = vmax.f32 %v1196_v32, %v1902_v33  ;;  %v1198_v37 = vpop.f32.mrb[58].mxu0  ;;  %v1904_v38 = vpop.f32.mrb[58].mxu1 }
 0x20c   : > { %v1977_v39 = vmax.f32 %v1198_v37, %v1904_v38  ;;  %v1200_v40 = vpop.f32.mrb[59].mxu0  ;;  %v1906_v41 = vpop.f32.mrb[59].mxu1 }
 0x20d   : > { %v2602_v42 = vpack.c.bf16 %v2081_v35, %v2080_v34  ;;  %v2011_v43 = vmax.f32 %v1975_v31, %v1976_v36  ;;  %v1978_v44 = vmax.f32 %v1200_v40, %v1906_v41 }
 0x20f   : > { %2626 = vst [vmem:[%s3305_s7 + $0x68] sm:$0xff] %v2602_v42   ;;  %v2050_v45 = vadd.f32 %v3297_v25, %v2011_v43  ;;  %v2012_v46 = vmax.f32 %v1977_v39, %v1978_v44 }
 0x211   : > { %v2051_v47 = vadd.f32 %v3297_v25, %v2012_v46  ;;  %v1204_v48 = vpop.f32.mrb[60].mxu0  ;;  %v1910_v49 = vpop.f32.mrb[60].mxu1  ;;  %v2082_v53 = vmax.f32 %v2050_v45, 0.0 }
 0x212   : > { %v1979_v50 = vmax.f32 %v1204_v48, %v1910_v49  ;;  %v1206_v51 = vpop.f32.mrb[61].mxu0  ;;  %v1912_v52 = vpop.f32.mrb[61].mxu1 }
 0x213   : > { %v2083_v54 = vmax.f32 %v2051_v47, 0.0  ;;  %v1980_v55 = vmax.f32 %v1206_v51, %v1912_v52  ;;  %v1208_v56 = vpop.f32.mrb[62].mxu0  ;;  %v1914_v57 = vpop.f32.mrb[62].mxu1 }
 0x214   : > { %v1981_v58 = vmax.f32 %v1208_v56, %v1914_v57  ;;  %v1210_v59 = vpop.f32.mrb[63].mxu0  ;;  %v1916_v60 = vpop.f32.mrb[63].mxu1 }
 0x215   : > { %v2607_v61 = vpack.c.bf16 %v2083_v54, %v2082_v53  ;;  %v2013_v62 = vmax.f32 %v1979_v50, %v1980_v55  ;;  %v1982_v63 = vmax.f32 %v1210_v59, %v1916_v60 }
 0x217   : > { %2627 = vst [vmem:[%s3305_s7 + $0x70] sm:$0xff] %v2607_v61   ;;  %v2052_v0 = vadd.f32 %v3297_v25, %v2013_v62  ;;  %v2014_v1 = vmax.f32 %v1981_v58, %v1982_v63 }
 0x219   : > { %v2053_v2 = vadd.f32 %v3297_v25, %v2014_v1  ;;  %v2084_v3 = vmax.f32 %v2052_v0, 0.0 }
 0x21b   : > { %v2085_v4 = vmax.f32 %v2053_v2, 0.0 }
 0x21d   : > { %v2612_v5 = vpack.c.bf16 %v2085_v4, %v2084_v3 }
 0x21f   : > { %2628 = vst [vmem:[%s3305_s7 + $0x78] sm:$0xff] %v2612_v5  }
 0x220 PF: > { %s14_s15 = sadd.s32 1, %s2973_s15  }
 0x221   : > { %p11_p4 = scmp.ge.s32.totalorder %s14_s15, 4  }
 0x223   :  { %13 = sbr.rel (!%p11_p4) target bundleno = 1 (0x1), region = 69 }

// kernel: lenet_forward.6
= control target key start
LH: loop header
LB: loop body
LE: loop exit
PB: predicated region body
PF: predicated region fallthrough
CT: control target
= control target key end

     0   :  { %s1375_s15 = smov 0   ;;  %s1587_s0 = inlined_call_operand.vmem [shape: bf16[2,56,384], index: 0, kind: input, shape index: {}]   ;;  %s1588_s1 = inlined_call_operand.vmem [shape: bf16[2,56,384], index: 1, kind: input, shape index: {}]   ;;  %s1589_s2 = inlined_call_operand.vmem [shape: bf16[384,256], index: 2, kind: input, shape index: {}]   ;;  %s1590_s3 = inlined_call_operand.vmem [shape: f32[1,128], index: 3, kind: input, shape index: {}]   ;;  %s1591_s4 = inlined_call_operand.vmem [shape: bf16[2,56,128], index: 4, kind: output, shape index: {}]  }
   0x1 LB: > { %s1082_s16 = sadd.s32 4294967295, %s1347_s15   ;;  %p1086_p0 = scmp.ge.s32.totalorder %s1347_s15, 1  ;;  %s1347_s15 = sphi %s1375_s15, %s14_s15  }
   0x2   : > { %p172_p1 = scmp.lt.s32.totalorder %s1347_s15, 3 }
   0x4   : > { %p173_p2 = pnand %p1086_p0, %p172_p1 }
   0x5   : > { %v1239_v0 = vld [vmem:[%s1589_s2 + $0x4] ss:$8 sps:$4 sm:$0xff] (!%p173_p2)   ;;  %v1241_v1 = vld [vmem:[%s1589_s2] ss:$8 sps:$4 sm:$0xff] (!%p173_p2)   ;;  %v1242_v2 = vld [vmem:[%s1589_s2 + $0x14] ss:$8 sps:$4 sm:$0xff] (!%p173_p2)  }
   0x6   : > { %176 = sbr.rel (%p173_p2) target bundleno = 350 (0x15e), region = 36  ;;  %580 = vmatprep.subr.bf16.mxu0 (!%p173_p2), %v1239_v0  ;;  %795 = vmatprep.subr.bf16.mxu1 (!%p173_p2), %v1239_v0  ;;  %v1244_v3 = vld [vmem:[%s1589_s2 + $0x10] ss:$8 sps:$4 sm:$0xff] (!%p173_p2)   ;;  %v1245_v4 = vld [vmem:[%s1589_s2 + $0x24] ss:$8 sps:$4 sm:$0xff] (!%p173_p2)   ;;  %p203_p3 = scmp.lt.s32.totalorder (!%p173_p2), %s1082_s16, 1 }
   0x7   : > { %581 = vmatpush1.bf16.msra.mxu0 (!%p173_p2), %v1241_v1  ;;  %796 = vmatpush1.bf16.msra.mxu1 (!%p173_p2), %v1241_v1  ;;  %v1247_v5 = vld [vmem:[%s1589_s2 + $0x20] ss:$8 sps:$4 sm:$0xff] (!%p173_p2)   ;;  %v1248_v6 = vld [vmem:[%s1589_s2 + $0x34] ss:$8 sps:$4 sm:$0xff] (!%p173_p2)   ;;  %v1250_v7 = vld [vmem:[%s1589_s2 + $0x30] ss:$8 sps:$4 sm:$0xff] (!%p173_p2)  }
   0x8   : > { %582 = vmatprep.subr.bf16.mxu0 (!%p173_p2), %v1242_v2  ;;  %797 = vmatprep.subr.bf16.mxu1 (!%p173_p2), %v1242_v2  ;;  %v1251_v8 = vld [vmem:[%s1589_s2 + $0x44] ss:$8 sps:$4 sm:$0xff] (!%p173_p2)   ;;  %v1253_v9 = vld [vmem:[%s1589_s2 + $0x40] ss:$8 sps:$4 sm:$0xff] (!%p173_p2)   ;;  %v1254_v10 = vld [vmem:[%s1589_s2 + $0x54] ss:$8 sps:$4 sm:$0xff] (!%p173_p2)  }
   0x9   : > { %v1256_v11 = vld [vmem:[%s1589_s2 + $0x50] ss:$8 sps:$4 sm:$0xff] (!%p173_p2)   ;;  %v1257_v12 = vld [vmem:[%s1589_s2 + $0x64] ss:$8 sps:$4 sm:$0xff] (!%p173_p2)   ;;  %v1259_v14 = vld [vmem:[%s1589_s2 + $0x60] ss:$8 sps:$4 sm:$0xff] (!%p173_p2)  }
   0xa   : > { %v1260_v16 = vld [vmem:[%s1589_s2 + $0x74] ss:$8 sps:$4 sm:$0xff] (!%p173_p2)   ;;  %v1262_v17 = vld [vmem:[%s1589_s2 + $0x70] ss:$8 sps:$4 sm:$0xff] (!%p173_p2)   ;;  %v1263_v18 = vld [vmem:[%s1589_s2 + $0x84] ss:$8 sps:$4 sm:$0xff] (!%p173_p2)  }
   0xb   : > { %583 = vmatpush1.bf16.msra.mxu0 (!%p173_p2), %v1244_v3  ;;  %798 = vmatpush1.bf16.msra.mxu1 (!%p173_p2), %v1244_v3  ;;  %v1265_v19 = vld [vmem:[%s1589_s2 + $0x80] ss:$8 sps:$4 sm:$0xff] (!%p173_p2)   ;;  %v1266_v20 = vld [vmem:[%s1589_s2 + $0x94] ss:$8 sps:$4 sm:$0xff] (!%p173_p2)   ;;  %v1268_v21 = vld [vmem:[%s1589_s2 + $0x90] ss:$8 sps:$4 sm:$0xff] (!%p173_p2)  }
   0xc   : > { %584 = vmatprep.subr.bf16.mxu0 (!%p173_p2), %v1245_v4  ;;  %799 = vmatprep.subr.bf16.mxu1 (!%p173_p2), %v1245_v4  ;;  %v1269_v22 = vld [vmem:[%s1589_s2 + $0xa4] ss:$8 sps:$4 sm:$0xff] (!%p173_p2)   ;;  %v1271_v23 = vld [vmem:[%s1589_s2 + $0xa0] ss:$8 sps:$4 sm:$0xff] (!%p173_p2)   ;;  %v1272_v24 = vld [vmem:[%s1589_s2 + $0xb4] ss:$8 sps:$4 sm:$0xff] (!%p173_p2)  }
   0xd   : > { %s1593_s16 = smov (!%p203_p3, %s1082_s16), 1  ;;  %v1274_v25 = vld [vmem:[%s1589_s2 + $0xb0] ss:$8 sps:$4 sm:$0xff]   ;;  %v1275_v26 = vld [vmem:[%s1589_s2 + $0xc4] ss:$8 sps:$4 sm:$0xff]   ;;  %v1349_v2 = vmov 0  }
   0xe   : > { %s1228_s11 = smul.u32 84, %s1593_s16  ;;  %v1277_v27 = vld [vmem:[%s1589_s2 + $0xc0] ss:$8 sps:$4 sm:$0xff]   ;;  %v1278_v28 = vld [vmem:[%s1589_s2 + $0xd4] ss:$8 sps:$4 sm:$0xff]  }
   0xf   : > { %585 = vmatpush1.bf16.msra.mxu0 %v1247_v5  ;;  %800 = vmatpush1.bf16.msra.mxu1 %v1247_v5  ;;  %v1280_v29 = vld [vmem:[%s1589_s2 + $0xd0] ss:$8 sps:$4 sm:$0xff]   ;;  %v1281_v30 = vld [vmem:[%s1589_s2 + $0xe4] ss:$8 sps:$4 sm:$0xff]   ;;  %v1283_v31 = vld [vmem:[%s1589_s2 + $0xe0] ss:$8 sps:$4 sm:$0xff]  }
  0x10   : > { %586 = vmatprep.subr.bf16.mxu0 %v1248_v6  ;;  %801 = vmatprep.subr.bf16.mxu1 %v1248_v6  ;;  %s1425_s20 = scalar_lea.vmem %s1587_s0, %s1228_s11  ;;  %s1433_s25 = scalar_lea.vmem %s1588_s1, %s1228_s11  ;;  %v1284_v32 = vld [vmem:[%s1589_s2 + $0xf4] ss:$8 sps:$4 sm:$0xff]   ;;  %v1286_v33 = vld [vmem:[%s1589_s2 + $0xf0] ss:$8 sps:$4 sm:$0xff]   ;;  %v1295_v34 = vld [vmem:[%s1589_s2 + $0x104] ss:$8 sps:$4 sm:$0xff]  }
  0x11   : > { %v1289_v13 = vld [vmem:[%s1425_s20 + $0x4] ss:$12 sps:$4 sm:$0xff]   ;;  %v1287_v35 = vld [vmem:[%s1425_s20] ss:$12 sps:$4 sm:$0xff]   ;;  %v1298_v38 = vld [vmem:[%s1589_s2 + $0x114] ss:$8 sps:$4 sm:$0xff]  }
  0x12   : > { %v1292_v15 = vld [vmem:[%s1433_s25 + $0x4] ss:$12 sps:$4 sm:$0xff]   ;;  %612 = vmatprep.mubr.bf16.mxu0 %v1289_v13  ;;  %v1290_v36 = vld [vmem:[%s1433_s25] ss:$12 sps:$4 sm:$0xff]   ;;  %v1299_v39 = vld [vmem:[%s1425_s20 + $0x1c] ss:$12 sps:$4 sm:$0xff]  }
  0x13   : > { %587 = vmatpush1.bf16.msra.mxu0 %v1250_v7  ;;  %802 = vmatpush1.bf16.msra.mxu1 %v1250_v7  ;;  %v1293_v37 = vld [vmem:[%s1589_s2 + $0x100] ss:$8 sps:$4 sm:$0xff]   ;;  %v1296_v41 = vld [vmem:[%s1589_s2 + $0x110] ss:$8 sps:$4 sm:$0xff]   ;;  %v1306_v42 = vld [vmem:[%s1589_s2 + $0x124] ss:$8 sps:$4 sm:$0xff]  }
  0x14   : > { %588 = vmatprep.subr.bf16.mxu0 %v1251_v8  ;;  %803 = vmatprep.subr.bf16.mxu1 %v1251_v8  ;;  %v1301_v40 = vld [vmem:[%s1433_s25 + $0x1c] ss:$12 sps:$4 sm:$0xff]   ;;  %v1303_v43 = vld [vmem:[%s1425_s20 + $0x18] ss:$12 sps:$4 sm:$0xff]   ;;  %v1311_v47 = vld [vmem:[%s1425_s20 + $0x34] ss:$12 sps:$4 sm:$0xff]  }
  0x15   : > { %827 = vmatprep.mubr.bf16.mxu1 %v1292_v15  ;;  %v1307_v44 = vld [vmem:[%s1433_s25 + $0x18] ss:$12 sps:$4 sm:$0xff]   ;;  %v1304_v45 = vld [vmem:[%s1589_s2 + $0x120] ss:$8 sps:$4 sm:$0xff]   ;;  %v1310_v46 = vld [vmem:[%s1589_s2 + $0x134] ss:$8 sps:$4 sm:$0xff]  }
  0x16   : > { %v1313_v48 = vld [vmem:[%s1433_s25 + $0x34] ss:$12 sps:$4 sm:$0xff]   ;;  %v1308_v49 = vld [vmem:[%s1589_s2 + $0x130] ss:$8 sps:$4 sm:$0xff]   ;;  %v1318_v50 = vld [vmem:[%s1589_s2 + $0x144] ss:$8 sps:$4 sm:$0xff]  }
  0x17   : > { %589 = vmatpush1.bf16.msra.mxu0 %v1253_v9  ;;  %804 = vmatpush1.bf16.msra.mxu1 %v1253_v9  ;;  %v1315_v51 = vld [vmem:[%s1425_s20 + $0x30] ss:$12 sps:$4 sm:$0xff]   ;;  %v231_v53 = vld [vmem:[%s1425_s20 + $0x48] sm:$0xff]  ;;  %v1337_v7 = vld [vmem:[%s1425_s20 + $0x38] ss:$12 sps:$4 sm:$0xff]  }
  0x18   : > { %590 = vmatprep.subr.bf16.mxu0 %v1254_v10  ;;  %805 = vmatprep.subr.bf16.mxu1 %v1254_v10  ;;  %v1319_v52 = vld [vmem:[%s1433_s25 + $0x30] ss:$12 sps:$4 sm:$0xff]   ;;  %v734_v54 = vld [vmem:[%s1433_s25 + $0x48] sm:$0xff]  ;;  %v1100_v57 = vcombine.high %v231_v53, %v231_v53  ;;  %v1099_v61 = vcombine.low %v231_v53, %v231_v53  ;;  %v1338_v8 = vld [vmem:[%s1433_s25 + $0x38] ss:$12 sps:$4 sm:$0xff]  }
  0x19   : > { %v1316_v55 = vld [vmem:[%s1589_s2 + $0x140] ss:$8 sps:$4 sm:$0xff]   ;;  %v1322_v56 = vld [vmem:[%s1589_s2 + $0x154] ss:$8 sps:$4 sm:$0xff]   ;;  %v1160_v58 = vcombine.high %v734_v54, %v734_v54  ;;  %v1320_v59 = vld [vmem:[%s1589_s2 + $0x150] ss:$8 sps:$4 sm:$0xff]   ;;  %v1159_v62 = vcombine.low %v734_v54, %v734_v54 }
  0x1a   : > { %v1328_v60 = vld [vmem:[%s1589_s2 + $0x164] ss:$8 sps:$4 sm:$0xff]   ;;  %v1326_v63 = vld [vmem:[%s1589_s2 + $0x160] ss:$8 sps:$4 sm:$0xff]   ;;  %v1332_v0 = vld [vmem:[%s1589_s2 + $0x174] ss:$8 sps:$4 sm:$0xff]  }
  0x1b   : > { %591 = vmatpush1.bf16.msra.mxu0 %v1256_v11  ;;  %806 = vmatpush1.bf16.msra.mxu1 %v1256_v11  ;;  %v1330_v1 = vld [vmem:[%s1589_s2 + $0x170] ss:$8 sps:$4 sm:$0xff]   ;;  %v1333_v3 = vld [vmem:[%s1425_s20 + $0x8] ss:$12 sps:$4 sm:$0xff]   ;;  %v1335_v5 = vld [vmem:[%s1425_s20 + $0x20] ss:$12 sps:$4 sm:$0xff]  }
  0x1c   : > { %592 = vmatprep.subr.bf16.mxu0 %v1257_v12  ;;  %807 = vmatprep.subr.bf16.mxu1 %v1257_v12  ;;  %v1334_v4 = vld [vmem:[%s1433_s25 + $0x8] ss:$12 sps:$4 sm:$0xff]   ;;  %v1336_v6 = vld [vmem:[%s1433_s25 + $0x20] ss:$12 sps:$4 sm:$0xff]   ;;  %v1339_v9 = vld [vmem:[%s1425_s20 + $0x50] ss:$0 sps:$4 sm:$0xff]  }
  0x1d   : > { %v1340_v10 = vld [vmem:[%s1433_s25 + $0x50] ss:$0 sps:$4 sm:$0xff]   ;;  %s1229_s20 = smul.u32 28, %s1593_s16 }
  0x1f   : > { %593 = vmatpush1.bf16.msra.mxu0 %v1259_v14  ;;  %808 = vmatpush1.bf16.msra.mxu1 %v1259_v14  ;;  %s1573_s7 = scalar_lea.vmem %s1591_s4, %s1229_s20 }
  0x20   : > { %594 = vmatprep.subr.bf16.mxu0 %v1260_v16  ;;  %809 = vmatprep.subr.bf16.mxu1 %v1260_v16 }
  0x23   : > { %595 = vmatpush1.bf16.msra.mxu0 %v1262_v17  ;;  %810 = vmatpush1.bf16.msra.mxu1 %v1262_v17 }
  0x24   : > { %596 = vmatprep.subr.bf16.mxu0 %v1263_v18  ;;  %811 = vmatprep.subr.bf16.mxu1 %v1263_v18 }
  0x27   : > { %597 = vmatpush1.bf16.msra.mxu0 %v1265_v19  ;;  %812 = vmatpush1.bf16.msra.mxu1 %v1265_v19  ;;  %v1565_v19 = vld [vmem:[%s1590_s3] ss:$0 sm:$0xff] }
  0x28   : > { %598 = vmatprep.subr.bf16.mxu0 %v1266_v20  ;;  %813 = vmatprep.subr.bf16.mxu1 %v1266_v20 }
  0x2b   : > { %599 = vmatpush1.bf16.msra.mxu0 %v1268_v21  ;;  %814 = vmatpush1.bf16.msra.mxu1 %v1268_v21 }
  0x2c   : > { %600 = vmatprep.subr.bf16.mxu0 %v1269_v22  ;;  %815 = vmatprep.subr.bf16.mxu1 %v1269_v22 }
  0x2f   : > { %601 = vmatpush1.bf16.msra.mxu0 %v1271_v23  ;;  %816 = vmatpush1.bf16.msra.mxu1 %v1271_v23 }
  0x30   : > { %602 = vmatprep.subr.bf16.mxu0 %v1272_v24  ;;  %817 = vmatprep.subr.bf16.mxu1 %v1272_v24 }
  0x33   : > { %603 = vmatpush1.bf16.msra.mxu0 %v1274_v25  ;;  %818 = vmatpush1.bf16.msra.mxu1 %v1274_v25 }
  0x34   : > { %604 = vmatprep.subr.bf16.mxu0 %v1275_v26  ;;  %819 = vmatprep.subr.bf16.mxu1 %v1275_v26 }
  0x37   : > { %605 = vmatpush1.bf16.msra.mxu0 %v1277_v27  ;;  %820 = vmatpush1.bf16.msra.mxu1 %v1277_v27 }
  0x38   : > { %606 = vmatprep.subr.bf16.mxu0 %v1278_v28  ;;  %821 = vmatprep.subr.bf16.mxu1 %v1278_v28 }
  0x3b   : > { %607 = vmatpush1.bf16.msra.mxu0 %v1280_v29  ;;  %822 = vmatpush1.bf16.msra.mxu1 %v1280_v29 }
  0x3c   : > { %608 = vmatprep.subr.bf16.mxu0 %v1281_v30  ;;  %823 = vmatprep.subr.bf16.mxu1 %v1281_v30 }
  0x3f   : > { %609 = vmatpush1.bf16.msra.mxu0 %v1283_v31  ;;  %824 = vmatpush1.bf16.msra.mxu1 %v1283_v31 }
  0x40   : > { %610 = vmatprep.subr.bf16.mxu0 %v1284_v32  ;;  %825 = vmatprep.subr.bf16.mxu1 %v1284_v32 }
  0x43   : > { %611 = vmatpush1.bf16.msra.mxu0 %v1286_v33  ;;  %826 = vmatpush1.bf16.msra.mxu1 %v1286_v33 }
  0x44   : > { %651 = vmatprep.subr.bf16.mxu0 %v1295_v34  ;;  %866 = vmatprep.subr.bf16.mxu1 %v1295_v34 }
  0x46   : > { %613 = vmatmul.mubr.bf16.vlgmr.msra.gmra.mrb[0].mxu0 %v1287_v35  ;;  %828 = vmatmul.mubr.bf16.vlgmr.msra.gmra.mrb[0].mxu1 %v1290_v36 }
  0x47   : > { %652 = vmatpush1.bf16.msra.mxu0 %v1293_v37  ;;  %867 = vmatpush1.bf16.msra.mxu1 %v1293_v37 }
  0x48   : > { %653 = vmatprep.subr.bf16.mxu0 %v1298_v38  ;;  %868 = vmatprep.subr.bf16.mxu1 %v1298_v38 }
  0x49   : > { %622 = vmatprep.mubr.bf16.mxu0 %v1299_v39  ;;  %837 = vmatprep.mubr.bf16.mxu1 %v1301_v40 }
  0x4b   : > { %654 = vmatpush1.bf16.msra.mxu0 %v1296_v41  ;;  %869 = vmatpush1.bf16.msra.mxu1 %v1296_v41 }
  0x4c   : > { %655 = vmatprep.subr.bf16.mxu0 %v1306_v42  ;;  %870 = vmatprep.subr.bf16.mxu1 %v1306_v42 }
  0x4e   : > { %623 = vmatmul.mubr.bf16.gmra.mrb[4].mxu0 %v1303_v43  ;;  %838 = vmatmul.mubr.bf16.gmra.mrb[4].mxu1 %v1307_v44 }
  0x4f   : > { %656 = vmatpush1.bf16.msra.mxu0 %v1304_v45  ;;  %871 = vmatpush1.bf16.msra.mxu1 %v1304_v45 }
  0x50   : > { %657 = vmatprep.subr.bf16.mxu0 %v1310_v46  ;;  %872 = vmatprep.subr.bf16.mxu1 %v1310_v46 }
  0x51   : > { %632 = vmatprep.mubr.bf16.mxu0 %v1311_v47  ;;  %847 = vmatprep.mubr.bf16.mxu1 %v1313_v48 }
  0x53   : > { %658 = vmatpush1.bf16.msra.mxu0 %v1308_v49  ;;  %873 = vmatpush1.bf16.msra.mxu1 %v1308_v49 }
  0x54   : > { %659 = vmatprep.subr.bf16.mxu0 %v1318_v50  ;;  %874 = vmatprep.subr.bf16.mxu1 %v1318_v50 }
  0x56   : > { %633 = vmatmul.mubr.bf16.gmra.mrb[8].mxu0 %v1315_v51  ;;  %848 = vmatmul.mubr.bf16.gmra.mrb[8].mxu1 %v1319_v52 }
  0x57   : > { %660 = vmatpush1.bf16.msra.mxu0 %v1316_v55  ;;  %875 = vmatpush1.bf16.msra.mxu1 %v1316_v55 }
  0x58   : > { %661 = vmatprep.subr.bf16.mxu0 %v1322_v56  ;;  %876 = vmatprep.subr.bf16.mxu1 %v1322_v56 }
  0x59   : > { %642 = vmatprep.mubr.bf16.mxu0 %v1100_v57  ;;  %857 = vmatprep.mubr.bf16.mxu1 %v1160_v58 }
  0x5b   : > { %662 = vmatpush1.bf16.msra.mxu0 %v1320_v59  ;;  %877 = vmatpush1.bf16.msra.mxu1 %v1320_v59 }
  0x5c   : > { %663 = vmatprep.subr.bf16.mxu0 %v1328_v60  ;;  %878 = vmatprep.subr.bf16.mxu1 %v1328_v60 }
  0x5e   : > { %643 = vmatmul.mubr.bf16.gmra.mrb[12].mxu0 %v1099_v61  ;;  %858 = vmatmul.mubr.bf16.gmra.mrb[12].mxu1 %v1159_v62 }
  0x5f   : > { %664 = vmatpush1.bf16.msra.mxu0 %v1326_v63  ;;  %879 = vmatpush1.bf16.msra.mxu1 %v1326_v63 }
  0x60   : > { %665 = vmatprep.subr.bf16.mxu0 %v1332_v0  ;;  %880 = vmatprep.subr.bf16.mxu1 %v1332_v0 }
  0x61   : > { %683 = vmatprep.mubr.bf16.mxu0 %v1349_v2  ;;  %898 = vmatprep.mubr.bf16.mxu1 %v1349_v2 }
  0x63   : > { %666 = vmatpush1.bf16.msra.mxu0 %v1330_v1  ;;  %881 = vmatpush1.bf16.msra.mxu1 %v1330_v1 }
  0x66   : > { %684 = vmatmul.mubr.bf16.vlgmr.msra.gmra.mrb[0].mxu0 %v1333_v3  ;;  %899 = vmatmul.mubr.bf16.vlgmr.msra.gmra.mrb[0].mxu1 %v1334_v4 }
  0x67   : > { %693 = vmatprep.mubr.bf16.mxu0 %v1349_v2  ;;  %908 = vmatprep.mubr.bf16.mxu1 %v1349_v2 }
  0x6e   : > { %694 = vmatmul.mubr.bf16.gmra.mrb[4].mxu0 %v1335_v5  ;;  %909 = vmatmul.mubr.bf16.gmra.mrb[4].mxu1 %v1336_v6 }
  0x6f   : > { %703 = vmatprep.mubr.bf16.mxu0 %v1349_v2  ;;  %918 = vmatprep.mubr.bf16.mxu1 %v1349_v2 }
  0x76   : > { %704 = vmatmul.mubr.bf16.gmra.mrb[8].mxu0 %v1337_v7  ;;  %919 = vmatmul.mubr.bf16.gmra.mrb[8].mxu1 %v1338_v8 }
  0x77   : > { %713 = vmatprep.mubr.bf16.mxu0 %v1349_v2  ;;  %928 = vmatprep.mubr.bf16.mxu1 %v1349_v2 }
  0x7e   : > { %714 = vmatmul.mubr.bf16.gmra.mrb[12].mxu0 %v1339_v9  ;;  %929 = vmatmul.mubr.bf16.gmra.mrb[12].mxu1 %v1340_v10 }
 0x139   : > { %v685_v11 = vpop.f32.mrb[0].mxu0  ;;  %v900_v12 = vpop.f32.mrb[0].mxu1 }
 0x13a   : > { %v937_v13 = vmax.f32 %v685_v11, %v900_v12  ;;  %v687_v14 = vpop.f32.mrb[1].mxu0  ;;  %v902_v15 = vpop.f32.mrb[1].mxu1 }
 0x13b   : > { %v938_v16 = vmax.f32 %v687_v14, %v902_v15  ;;  %v689_v17 = vpop.f32.mrb[2].mxu0  ;;  %v904_v18 = vpop.f32.mrb[2].mxu1 }
 0x13c   : > { %v939_v20 = vmax.f32 %v689_v17, %v904_v18  ;;  %v691_v21 = vpop.f32.mrb[3].mxu0  ;;  %v906_v22 = vpop.f32.mrb[3].mxu1 }
 0x13d   : > { %v951_v23 = vmax.f32 %v937_v13, %v938_v16  ;;  %v940_v24 = vmax.f32 %v691_v21, %v906_v22 }
 0x13f   : > { %v965_v25 = vadd.f32 %v1565_v19, %v951_v23  ;;  %v952_v26 = vmax.f32 %v939_v20, %v940_v24 }
 0x141   : > { %v966_v27 = vadd.f32 %v1565_v19, %v952_v26  ;;  %v695_v28 = vpop.f32.mrb[4].mxu0  ;;  %v910_v29 = vpop.f32.mrb[4].mxu1  ;;  %v972_v33 = vmax.f32 %v965_v25, 0.0 }
 0x142   : > { %v941_v30 = vmax.f32 %v695_v28, %v910_v29  ;;  %v697_v31 = vpop.f32.mrb[5].mxu0  ;;  %v912_v32 = vpop.f32.mrb[5].mxu1 }
 0x143   : > { %v973_v34 = vmax.f32 %v966_v27, 0.0  ;;  %v942_v35 = vmax.f32 %v697_v31, %v912_v32  ;;  %v699_v36 = vpop.f32.mrb[6].mxu0  ;;  %v914_v37 = vpop.f32.mrb[6].mxu1 }
 0x144   : > { %v943_v38 = vmax.f32 %v699_v36, %v914_v37  ;;  %v701_v39 = vpop.f32.mrb[7].mxu0  ;;  %v916_v40 = vpop.f32.mrb[7].mxu1 }
 0x145   : > { %v1182_v41 = vpack.c.bf16 %v973_v34, %v972_v33  ;;  %v953_v42 = vmax.f32 %v941_v30, %v942_v35  ;;  %v944_v43 = vmax.f32 %v701_v39, %v916_v40 }
 0x147   : > { %1183 = vst [vmem:[%s1573_s7] sm:$0xff] %v1182_v41   ;;  %v967_v44 = vadd.f32 %v1565_v19, %v953_v42  ;;  %v954_v45 = vmax.f32 %v943_v38, %v944_v43 }
 0x149   : > { %v968_v46 = vadd.f32 %v1565_v19, %v954_v45  ;;  %v705_v47 = vpop.f32.mrb[8].mxu0  ;;  %v920_v48 = vpop.f32.mrb[8].mxu1  ;;  %v974_v52 = vmax.f32 %v967_v44, 0.0 }
 0x14a   : > { %v945_v49 = vmax.f32 %v705_v47, %v920_v48  ;;  %v707_v50 = vpop.f32.mrb[9].mxu0  ;;  %v922_v51 = vpop.f32.mrb[9].mxu1 }
 0x14b   : > { %v975_v53 = vmax.f32 %v968_v46, 0.0  ;;  %v946_v54 = vmax.f32 %v707_v50, %v922_v51  ;;  %v709_v55 = vpop.f32.mrb[10].mxu0  ;;  %v924_v56 = vpop.f32.mrb[10].mxu1 }
 0x14c   : > { %v947_v57 = vmax.f32 %v709_v55, %v924_v56  ;;  %v711_v58 = vpop.f32.mrb[11].mxu0  ;;  %v926_v59 = vpop.f32.mrb[11].mxu1 }
 0x14d   : > { %v1187_v60 = vpack.c.bf16 %v975_v53, %v974_v52  ;;  %v955_v61 = vmax.f32 %v945_v49, %v946_v54  ;;  %v948_v62 = vmax.f32 %v711_v58, %v926_v59 }
 0x14f   : > { %1194 = vst [vmem:[%s1573_s7 + $0x8] sm:$0xff] %v1187_v60   ;;  %v969_v63 = vadd.f32 %v1565_v19, %v955_v61  ;;  %v956_v0 = vmax.f32 %v947_v57, %v948_v62 }
 0x151   : > { %v970_v1 = vadd.f32 %v1565_v19, %v956_v0  ;;  %v715_v2 = vpop.f32.mrb[12].mxu0  ;;  %v930_v3 = vpop.f32.mrb[12].mxu1  ;;  %v976_v7 = vmax.f32 %v969_v63, 0.0 }
 0x152   : > { %v949_v4 = vmax.f32 %v715_v2, %v930_v3  ;;  %v717_v5 = vpop.f32.mrb[13].mxu0  ;;  %v932_v6 = vpop.f32.mrb[13].mxu1 }
 0x153   : > { %v977_v8 = vmax.f32 %v970_v1, 0.0  ;;  %v950_v9 = vmax.f32 %v717_v5, %v932_v6  ;;  %v719_v10 = vpop.f32.mrb[14].mxu0  ;;  %v934_v11 = vpop.f32.mrb[14].mxu1 }
 0x154   : > { %v720_v12 = vpop.f32.mrb[15].mxu0  ;;  %v935_v13 = vpop.f32.mrb[15].mxu1 }
 0x155   : > { %v1192_v14 = vpack.c.bf16 %v977_v8, %v976_v7  ;;  %v957_v15 = vmax.f32 %v949_v4, %v950_v9 }
 0x157   : > { %1195 = vst [vmem:[%s1573_s7 + $0x10] sm:$0xff] %v1192_v14   ;;  %v971_v16 = vadd.f32 %v1565_v19, %v957_v15 }
 0x159   : > { %v978_v17 = vmax.f32 %v971_v16, 0.0 }
 0x15b   : > { %v1178_v18 = vpack.c.bf16 %v978_v17, %v978_v17 }
 0x15d   : > { %1014 = vst [vmem:[%s1573_s7 + $0x18] sm:$0xf] %v1178_v18 }
 0x15e PF: > { %s14_s15 = sadd.s32 1, %s1347_s15  }
 0x15f   : > { %p11_p4 = scmp.ge.s32.totalorder %s14_s15, 4  }
 0x161   :  { %13 = sbr.rel (!%p11_p4) target bundleno = 1 (0x1), region = 69 }

// kernel: lenet_forward.7
= control target key start
LH: loop header
LB: loop body
LE: loop exit
PB: predicated region body
PF: predicated region fallthrough
CT: control target
= control target key end

     0   :  { %v834_v36 = vlaneseq  ;;  %v7626_v37 = vmov 1966171168   ;;  %s9831_s0 = inlined_call_operand.vmem [shape: bf16[2,3200], index: 0, kind: input, shape index: {}]   ;;  %s9832_s1 = inlined_call_operand.vmem [shape: bf16[3200,384], index: 1, kind: input, shape index: {}]   ;;  %s9833_s2 = inlined_call_operand.vmem [shape: f32[1,384], index: 2, kind: input, shape index: {}]   ;;  %s9834_s3 = inlined_call_operand.vmem [shape: bf16[384,128], index: 3, kind: input, shape index: {}]   ;;  %s9835_s4 = inlined_call_operand.vmem [shape: f32[1,128], index: 4, kind: input, shape index: {}]   ;;  %s9836_s5 = inlined_call_operand.vmem [shape: bf16[128,128], index: 5, kind: input, shape index: {}]   ;;  %s9837_s6 = inlined_call_operand.vmem [shape: f32[1,128], index: 6, kind: input, shape index: {}]   ;;  %s9838_s7 = inlined_call_operand.hbm [shape: f32[2,128], index: 7, kind: output, shape index: {}]  }
   0x1   :  { %v6766_v0 = vld [vmem:[%s9832_s1 + $0x4] ss:$12 sps:$4 sm:$0xff]   ;;  %v6770_v2 = vld [vmem:[%s9832_s1] ss:$12 sps:$4 sm:$0xff]   ;;  %v6772_v4 = vld [vmem:[%s9832_s1 + $0x1c] ss:$12 sps:$4 sm:$0xff]   ;;  %v855_v38 = vunpack.c.l.s4 %v7626_v37 }
   0x2   :  { %v6768_v1 = vld [vmem:[%s9832_s1 + $0x304] ss:$12 sps:$4 sm:$0xff]   ;;  %4239 = vmatprep.subr.bf16.mxu1 %v6766_v0  ;;  %v6771_v3 = vld [vmem:[%s9832_s1 + $0x300] ss:$12 sps:$4 sm:$0xff]   ;;  %v6774_v5 = vld [vmem:[%s9832_s1 + $0x31c] ss:$12 sps:$4 sm:$0xff]  }
   0x3   :  { %4321 = vmatprep.subr.bf16.mxu0 %v6768_v1  ;;  %4240 = vmatpush1.bf16.msra.mxu1 %v6770_v2  ;;  %v6776_v6 = vld [vmem:[%s9832_s1 + $0x18] ss:$12 sps:$4 sm:$0xff]   ;;  %v6778_v8 = vld [vmem:[%s9832_s1 + $0x34] ss:$12 sps:$4 sm:$0xff]   ;;  %v6782_v10 = vld [vmem:[%s9832_s1 + $0x30] ss:$12 sps:$4 sm:$0xff]   ;;  %v856_v43 = vunpack.c.0.s8 %v855_v38 }
   0x4   :  { %4322 = vmatpush1.bf16.msra.mxu0 %v6771_v3  ;;  %4241 = vmatprep.subr.bf16.mxu1 %v6772_v4  ;;  %v6777_v7 = vld [vmem:[%s9832_s1 + $0x318] ss:$12 sps:$4 sm:$0xff]   ;;  %v6780_v9 = vld [vmem:[%s9832_s1 + $0x334] ss:$12 sps:$4 sm:$0xff]   ;;  %v6783_v11 = vld [vmem:[%s9832_s1 + $0x330] ss:$12 sps:$4 sm:$0xff]  }
   0x5   :  { %4323 = vmatprep.subr.bf16.mxu0 %v6774_v5  ;;  %v6784_v12 = vld [vmem:[%s9832_s1 + $0x4c] ss:$12 sps:$4 sm:$0xff]   ;;  %v6788_v14 = vld [vmem:[%s9832_s1 + $0x48] ss:$12 sps:$4 sm:$0xff]   ;;  %v6790_v16 = vld [vmem:[%s9832_s1 + $0x64] ss:$12 sps:$4 sm:$0xff]  }
   0x6   :  { %v6786_v13 = vld [vmem:[%s9832_s1 + $0x34c] ss:$12 sps:$4 sm:$0xff]   ;;  %v6789_v15 = vld [vmem:[%s9832_s1 + $0x348] ss:$12 sps:$4 sm:$0xff]   ;;  %v6792_v17 = vld [vmem:[%s9832_s1 + $0x364] ss:$12 sps:$4 sm:$0xff]  }
   0x7   :  { %4242 = vmatpush1.bf16.msra.mxu1 %v6776_v6  ;;  %v6794_v18 = vld [vmem:[%s9832_s1 + $0x60] ss:$12 sps:$4 sm:$0xff]   ;;  %v6796_v20 = vld [vmem:[%s9832_s1 + $0x7c] ss:$12 sps:$4 sm:$0xff]   ;;  %v6800_v22 = vld [vmem:[%s9832_s1 + $0x78] ss:$12 sps:$4 sm:$0xff]  }
   0x8   :  { %4324 = vmatpush1.bf16.msra.mxu0 %v6777_v7  ;;  %4243 = vmatprep.subr.bf16.mxu1 %v6778_v8  ;;  %v6795_v19 = vld [vmem:[%s9832_s1 + $0x360] ss:$12 sps:$4 sm:$0xff]   ;;  %v6798_v21 = vld [vmem:[%s9832_s1 + $0x37c] ss:$12 sps:$4 sm:$0xff]   ;;  %v6801_v23 = vld [vmem:[%s9832_s1 + $0x378] ss:$12 sps:$4 sm:$0xff]  }
   0x9   :  { %4325 = vmatprep.subr.bf16.mxu0 %v6780_v9  ;;  %v6802_v24 = vld [vmem:[%s9832_s1 + $0x94] ss:$12 sps:$4 sm:$0xff]   ;;  %v6806_v26 = vld [vmem:[%s9832_s1 + $0x90] ss:$12 sps:$4 sm:$0xff]   ;;  %v6808_v28 = vld [vmem:[%s9832_s1 + $0xac] ss:$12 sps:$4 sm:$0xff]  }
   0xa   :  { %v6804_v25 = vld [vmem:[%s9832_s1 + $0x394] ss:$12 sps:$4 sm:$0xff]   ;;  %v6807_v27 = vld [vmem:[%s9832_s1 + $0x390] ss:$12 sps:$4 sm:$0xff]   ;;  %v6810_v29 = vld [vmem:[%s9832_s1 + $0x3ac] ss:$12 sps:$4 sm:$0xff]  }
   0xb   :  { %4244 = vmatpush1.bf16.msra.mxu1 %v6782_v10  ;;  %v6812_v30 = vld [vmem:[%s9832_s1 + $0xa8] ss:$12 sps:$4 sm:$0xff]   ;;  %v6814_v32 = vld [vmem:[%s9832_s1 + $0xc4] ss:$12 sps:$4 sm:$0xff]   ;;  %v6818_v34 = vld [vmem:[%s9832_s1 + $0xc0] ss:$12 sps:$4 sm:$0xff]  }
   0xc   :  { %4326 = vmatpush1.bf16.msra.mxu0 %v6783_v11  ;;  %4245 = vmatprep.subr.bf16.mxu1 %v6784_v12  ;;  %v6813_v31 = vld [vmem:[%s9832_s1 + $0x3a8] ss:$12 sps:$4 sm:$0xff]   ;;  %v6816_v33 = vld [vmem:[%s9832_s1 + $0x3c4] ss:$12 sps:$4 sm:$0xff]   ;;  %v6819_v35 = vld [vmem:[%s9832_s1 + $0x3c0] ss:$12 sps:$4 sm:$0xff]  }
   0xd   :  { %4327 = vmatprep.subr.bf16.mxu0 %v6786_v13  ;;  %v6820_v39 = vld [vmem:[%s9832_s1 + $0xdc] ss:$12 sps:$4 sm:$0xff]   ;;  %v6824_v41 = vld [vmem:[%s9832_s1 + $0xd8] ss:$12 sps:$4 sm:$0xff]   ;;  %v7788_v42 = vshrl.u32 %v834_v36, 7 }
   0xe   :  { %v6822_v40 = vld [vmem:[%s9832_s1 + $0x3dc] ss:$12 sps:$4 sm:$0xff]   ;;  %v6825_v44 = vld [vmem:[%s9832_s1 + $0x3d8] ss:$12 sps:$4 sm:$0xff]   ;;  %v6826_v45 = vld [vmem:[%s9832_s1 + $0xf4] ss:$12 sps:$4 sm:$0xff]  }
   0xf   :  { %4246 = vmatpush1.bf16.msra.mxu1 %v6788_v14  ;;  %v6828_v46 = vld [vmem:[%s9832_s1 + $0x3f4] ss:$12 sps:$4 sm:$0xff]   ;;  %v6830_v47 = vld [vmem:[%s9832_s1 + $0xf0] ss:$12 sps:$4 sm:$0xff]   ;;  %v7806_v49 = vsub.s32 %v856_v43, %v7788_v42  ;;  %v6832_v50 = vld [vmem:[%s9832_s1 + $0x10c] ss:$12 sps:$4 sm:$0xff]  }
  0x10   :  { %4328 = vmatpush1.bf16.msra.mxu0 %v6789_v15  ;;  %4247 = vmatprep.subr.bf16.mxu1 %v6790_v16  ;;  %v6831_v48 = vld [vmem:[%s9832_s1 + $0x3f0] ss:$12 sps:$4 sm:$0xff]   ;;  %v6834_v51 = vld [vmem:[%s9832_s1 + $0x40c] ss:$12 sps:$4 sm:$0xff]   ;;  %v28_v52 = vld [vmem:[%s9831_s0] sm:$0xff] }
  0x11   :  { %4329 = vmatprep.subr.bf16.mxu0 %v6792_v17  ;;  %v6836_v53 = vld [vmem:[%s9832_s1 + $0x108] ss:$12 sps:$4 sm:$0xff]   ;;  %v860_v54 = vrot.slane %v28_v52, %v7806_v49  ;;  %v853_v55 = vcombine.high %v28_v52, %v28_v52  ;;  %v6838_v57 = vld [vmem:[%s9832_s1 + $0x124] ss:$12 sps:$4 sm:$0xff]   ;;  %v6842_v61 = vld [vmem:[%s9832_s1 + $0x120] ss:$12 sps:$4 sm:$0xff]  }
  0x12   :  { %v6837_v56 = vld [vmem:[%s9832_s1 + $0x408] ss:$12 sps:$4 sm:$0xff]   ;;  %v6840_v58 = vld [vmem:[%s9832_s1 + $0x424] ss:$12 sps:$4 sm:$0xff]   ;;  %v6843_v0 = vld [vmem:[%s9832_s1 + $0x420] ss:$12 sps:$4 sm:$0xff]  }
  0x13   :  { %4248 = vmatpush1.bf16.msra.mxu1 %v6794_v18  ;;  %v868_v59 = vcombine.high %v860_v54, %v860_v54  ;;  %v867_v60 = vrot.slane %v853_v55, %v7806_v49  ;;  %v6844_v1 = vld [vmem:[%s9832_s1 + $0x13c] ss:$12 sps:$4 sm:$0xff]   ;;  %v6848_v4 = vld [vmem:[%s9832_s1 + $0x138] ss:$12 sps:$4 sm:$0xff]   ;;  %v6850_v6 = vld [vmem:[%s9832_s1 + $0x154] ss:$12 sps:$4 sm:$0xff]   ;;  %v7891_v17 = vrot.slane %v860_v54, %v7806_v49 }
  0x14   :  { %4330 = vmatpush1.bf16.msra.mxu0 %v6795_v19  ;;  %4249 = vmatprep.subr.bf16.mxu1 %v6796_v20  ;;  %v6846_v2 = vld [vmem:[%s9832_s1 + $0x43c] ss:$12 sps:$4 sm:$0xff]   ;;  %v6849_v5 = vld [vmem:[%s9832_s1 + $0x438] ss:$12 sps:$4 sm:$0xff]   ;;  %v6852_v7 = vld [vmem:[%s9832_s1 + $0x454] ss:$12 sps:$4 sm:$0xff]  }
  0x15   :  { %4331 = vmatprep.subr.bf16.mxu0 %v6798_v21  ;;  %v7835_v62 = vrot.slane %v868_v59, %v7806_v49  ;;  %v869_v63 = vcombine.high %v867_v60, %v867_v60  ;;  %v6854_v8 = vld [vmem:[%s9832_s1 + $0x150] ss:$12 sps:$4 sm:$0xff]   ;;  %v6856_v10 = vld [vmem:[%s9832_s1 + $0x16c] ss:$12 sps:$4 sm:$0xff]   ;;  %v6860_v12 = vld [vmem:[%s9832_s1 + $0x168] ss:$12 sps:$4 sm:$0xff]   ;;  %v7894_v18 = vrot.slane %v867_v60, %v7806_v49 }
  0x16   :  { %v6855_v9 = vld [vmem:[%s9832_s1 + $0x450] ss:$12 sps:$4 sm:$0xff]   ;;  %v6858_v11 = vld [vmem:[%s9832_s1 + $0x46c] ss:$12 sps:$4 sm:$0xff]   ;;  %v6861_v13 = vld [vmem:[%s9832_s1 + $0x468] ss:$12 sps:$4 sm:$0xff]  }
  0x17   :  { %4250 = vmatpush1.bf16.msra.mxu1 %v6800_v22  ;;  %v7847_v3 = vrot.slane %v869_v63, %v7806_v49  ;;  %4271 = vmatprep.mubr.bf16.mxu1 %v7835_v62  ;;  %v6864_v14 = vld [vmem:[%s9832_s1 + $0x184] ss:$12 sps:$4 sm:$0xff]   ;;  %v6862_v16 = vld [vmem:[%s9832_s1 + $0x180] ss:$12 sps:$4 sm:$0xff]   ;;  %v6871_v20 = vld [vmem:[%s9832_s1 + $0x19c] ss:$12 sps:$4 sm:$0xff]   ;;  %v7907_v22 = vcombine.high %v7835_v62, %v7835_v62 }
  0x18   :  { %4332 = vmatpush1.bf16.msra.mxu0 %v6801_v23  ;;  %4251 = vmatprep.subr.bf16.mxu1 %v6802_v24  ;;  %v6868_v15 = vld [vmem:[%s9832_s1 + $0x484] ss:$12 sps:$4 sm:$0xff]   ;;  %v6866_v19 = vld [vmem:[%s9832_s1 + $0x480] ss:$12 sps:$4 sm:$0xff]   ;;  %v6874_v21 = vld [vmem:[%s9832_s1 + $0x49c] ss:$12 sps:$4 sm:$0xff]  }
  0x19   :  { %4333 = vmatprep.subr.bf16.mxu0 %v6804_v25  ;;  %4353 = vmatprep.mubr.bf16.mxu0 %v7847_v3  ;;  %v7911_v23 = vcombine.high %v7847_v3, %v7847_v3  ;;  %v6869_v24 = vld [vmem:[%s9832_s1 + $0x198] ss:$12 sps:$4 sm:$0xff]   ;;  %v6887_v36 = vld [vmem:[%s9832_s1 + $0x1e0] ss:$12 sps:$4 sm:$0xff]   ;;  %v6895_v38 = vld [vmem:[%s9832_s1 + $0x1fc] ss:$12 sps:$4 sm:$0xff]  }
  0x1a   :  { %v6872_v25 = vld [vmem:[%s9832_s1 + $0x498] ss:$12 sps:$4 sm:$0xff]   ;;  %v6890_v37 = vld [vmem:[%s9832_s1 + $0x4e0] ss:$12 sps:$4 sm:$0xff]   ;;  %v6923_v63 = vld [vmem:[%s9832_s1 + $0x270] ss:$12 sps:$4 sm:$0xff]  }
  0x1b   :  { %4252 = vmatpush1.bf16.msra.mxu1 %v6806_v26  ;;  %v6877_v26 = vld [vmem:[%s9832_s1 + $0x1b4] ss:$12 sps:$4 sm:$0xff]   ;;  %v6913_v52 = vld [vmem:[%s9832_s1 + $0x244] ss:$12 sps:$4 sm:$0xff]  }
  0x1c   :  { %4334 = vmatpush1.bf16.msra.mxu0 %v6807_v27  ;;  %4253 = vmatprep.subr.bf16.mxu1 %v6808_v28  ;;  %v6880_v27 = vld [vmem:[%s9832_s1 + $0x4b4] ss:$12 sps:$4 sm:$0xff]   ;;  %v6875_v28 = vld [vmem:[%s9832_s1 + $0x1b0] ss:$12 sps:$4 sm:$0xff]   ;;  %v6920_v59 = vld [vmem:[%s9832_s1 + $0x558] ss:$12 sps:$4 sm:$0xff]  }
  0x1d   :  { %4335 = vmatprep.subr.bf16.mxu0 %v6810_v29  ;;  %v6878_v29 = vld [vmem:[%s9832_s1 + $0x4b0] ss:$12 sps:$4 sm:$0xff]   ;;  %v6901_v43 = vld [vmem:[%s9832_s1 + $0x214] ss:$12 sps:$4 sm:$0xff]  }
  0x1e   :  { %v6911_v54 = vld [vmem:[%s9832_s1 + $0x240] ss:$12 sps:$4 sm:$0xff]  }
  0x1f   :  { %4254 = vmatpush1.bf16.msra.mxu1 %v6812_v30  ;;  %v6883_v30 = vld [vmem:[%s9832_s1 + $0x1cc] ss:$12 sps:$4 sm:$0xff]   ;;  %v6925_v60 = vld [vmem:[%s9832_s1 + $0x274] ss:$12 sps:$4 sm:$0xff]  }
  0x20   :  { %4336 = vmatpush1.bf16.msra.mxu0 %v6813_v31  ;;  %4255 = vmatprep.subr.bf16.mxu1 %v6814_v32  ;;  %v6886_v31 = vld [vmem:[%s9832_s1 + $0x4cc] ss:$12 sps:$4 sm:$0xff]   ;;  %v6881_v32 = vld [vmem:[%s9832_s1 + $0x1c8] ss:$12 sps:$4 sm:$0xff]  }
  0x21   :  { %4337 = vmatprep.subr.bf16.mxu0 %v6816_v33  ;;  %v6884_v33 = vld [vmem:[%s9832_s1 + $0x4c8] ss:$12 sps:$4 sm:$0xff]   ;;  %v6914_v55 = vld [vmem:[%s9832_s1 + $0x540] ss:$12 sps:$4 sm:$0xff]  }
  0x23   :  { %4256 = vmatpush1.bf16.msra.mxu1 %v6818_v34  ;;  %v6889_v34 = vld [vmem:[%s9832_s1 + $0x1e4] ss:$12 sps:$4 sm:$0xff]  }
  0x24   :  { %4338 = vmatpush1.bf16.msra.mxu0 %v6819_v35  ;;  %4257 = vmatprep.subr.bf16.mxu1 %v6820_v39  ;;  %v6892_v35 = vld [vmem:[%s9832_s1 + $0x4e4] ss:$12 sps:$4 sm:$0xff]   ;;  %v6898_v39 = vld [vmem:[%s9832_s1 + $0x4fc] ss:$12 sps:$4 sm:$0xff]  }
  0x25   :  { %4339 = vmatprep.subr.bf16.mxu0 %v6822_v40  ;;  %v6893_v40 = vld [vmem:[%s9832_s1 + $0x1f8] ss:$12 sps:$4 sm:$0xff]  }
  0x27   :  { %4258 = vmatpush1.bf16.msra.mxu1 %v6824_v41  ;;  %v6896_v41 = vld [vmem:[%s9832_s1 + $0x4f8] ss:$12 sps:$4 sm:$0xff]  }
  0x28   :  { %4340 = vmatpush1.bf16.msra.mxu0 %v6825_v44  ;;  %4259 = vmatprep.subr.bf16.mxu1 %v6826_v45  ;;  %v6904_v44 = vld [vmem:[%s9832_s1 + $0x514] ss:$12 sps:$4 sm:$0xff]   ;;  %v6899_v45 = vld [vmem:[%s9832_s1 + $0x210] ss:$12 sps:$4 sm:$0xff]  }
  0x29   :  { %4341 = vmatprep.subr.bf16.mxu0 %v6828_v46  ;;  %v6902_v46 = vld [vmem:[%s9832_s1 + $0x510] ss:$12 sps:$4 sm:$0xff]  }
  0x2b   :  { %4260 = vmatpush1.bf16.msra.mxu1 %v6830_v47  ;;  %v6907_v47 = vld [vmem:[%s9832_s1 + $0x22c] ss:$12 sps:$4 sm:$0xff]  }
  0x2c   :  { %4342 = vmatpush1.bf16.msra.mxu0 %v6831_v48  ;;  %4261 = vmatprep.subr.bf16.mxu1 %v6832_v50  ;;  %v6910_v48 = vld [vmem:[%s9832_s1 + $0x52c] ss:$12 sps:$4 sm:$0xff]   ;;  %v6905_v50 = vld [vmem:[%s9832_s1 + $0x228] ss:$12 sps:$4 sm:$0xff]  }
  0x2d   :  { %4343 = vmatprep.subr.bf16.mxu0 %v6834_v51  ;;  %v6908_v51 = vld [vmem:[%s9832_s1 + $0x528] ss:$12 sps:$4 sm:$0xff]  }
  0x2f   :  { %4262 = vmatpush1.bf16.msra.mxu1 %v6836_v53  ;;  %v6916_v53 = vld [vmem:[%s9832_s1 + $0x544] ss:$12 sps:$4 sm:$0xff]  }
  0x30   :  { %4344 = vmatpush1.bf16.msra.mxu0 %v6837_v56  ;;  %4263 = vmatprep.subr.bf16.mxu1 %v6838_v57  ;;  %v6919_v56 = vld [vmem:[%s9832_s1 + $0x25c] ss:$12 sps:$4 sm:$0xff]  }
  0x31   :  { %4345 = vmatprep.subr.bf16.mxu0 %v6840_v58  ;;  %v6922_v57 = vld [vmem:[%s9832_s1 + $0x55c] ss:$12 sps:$4 sm:$0xff]   ;;  %v6917_v58 = vld [vmem:[%s9832_s1 + $0x258] ss:$12 sps:$4 sm:$0xff]  }
  0x33   :  { %4264 = vmatpush1.bf16.msra.mxu1 %v6842_v61  ;;  %v6928_v61 = vld [vmem:[%s9832_s1 + $0x574] ss:$12 sps:$4 sm:$0xff]  }
  0x34   :  { %4346 = vmatpush1.bf16.msra.mxu0 %v6843_v0  ;;  %4265 = vmatprep.subr.bf16.mxu1 %v6844_v1  ;;  %v6926_v0 = vld [vmem:[%s9832_s1 + $0x570] ss:$12 sps:$4 sm:$0xff]   ;;  %v6931_v1 = vld [vmem:[%s9832_s1 + $0x28c] ss:$12 sps:$4 sm:$0xff]  }
  0x35   :  { %4347 = vmatprep.subr.bf16.mxu0 %v6846_v2  ;;  %v6934_v2 = vld [vmem:[%s9832_s1 + $0x58c] ss:$12 sps:$4 sm:$0xff]  }
  0x37   :  { %4266 = vmatpush1.bf16.msra.mxu1 %v6848_v4  ;;  %v6929_v4 = vld [vmem:[%s9832_s1 + $0x288] ss:$12 sps:$4 sm:$0xff]  }
  0x38   :  { %4348 = vmatpush1.bf16.msra.mxu0 %v6849_v5  ;;  %4267 = vmatprep.subr.bf16.mxu1 %v6850_v6  ;;  %v6932_v5 = vld [vmem:[%s9832_s1 + $0x588] ss:$12 sps:$4 sm:$0xff]   ;;  %v6937_v6 = vld [vmem:[%s9832_s1 + $0x2a4] ss:$12 sps:$4 sm:$0xff]  }
  0x39   :  { %4349 = vmatprep.subr.bf16.mxu0 %v6852_v7  ;;  %v6940_v7 = vld [vmem:[%s9832_s1 + $0x5a4] ss:$12 sps:$4 sm:$0xff]  }
  0x3b   :  { %4268 = vmatpush1.bf16.msra.mxu1 %v6854_v8  ;;  %v6935_v8 = vld [vmem:[%s9832_s1 + $0x2a0] ss:$12 sps:$4 sm:$0xff]  }
  0x3c   :  { %4350 = vmatpush1.bf16.msra.mxu0 %v6855_v9  ;;  %4269 = vmatprep.subr.bf16.mxu1 %v6856_v10  ;;  %v6938_v9 = vld [vmem:[%s9832_s1 + $0x5a0] ss:$12 sps:$4 sm:$0xff]   ;;  %v6943_v10 = vld [vmem:[%s9832_s1 + $0x2bc] ss:$12 sps:$4 sm:$0xff]  }
  0x3d   :  { %4351 = vmatprep.subr.bf16.mxu0 %v6858_v11  ;;  %v6946_v11 = vld [vmem:[%s9832_s1 + $0x5bc] ss:$12 sps:$4 sm:$0xff]  }
  0x3f   :  { %4270 = vmatpush1.bf16.msra.mxu1 %v6860_v12  ;;  %v6941_v12 = vld [vmem:[%s9832_s1 + $0x2b8] ss:$12 sps:$4 sm:$0xff]  }
  0x40   :  { %4352 = vmatpush1.bf16.msra.mxu0 %v6861_v13  ;;  %4280 = vmatprep.subr.bf16.mxu1 %v6864_v14  ;;  %v6944_v13 = vld [vmem:[%s9832_s1 + $0x5b8] ss:$12 sps:$4 sm:$0xff]   ;;  %v6949_v14 = vld [vmem:[%s9832_s1 + $0x2d4] ss:$12 sps:$4 sm:$0xff]  }
  0x41   :  { %4362 = vmatprep.subr.bf16.mxu0 %v6868_v15  ;;  %v6952_v15 = vld [vmem:[%s9832_s1 + $0x5d4] ss:$12 sps:$4 sm:$0xff]  }
  0x42   :  { %4272 = vmatmul.mubr.bf16.vlgmr.msra.gmra.mrb[0].mxu1 %v7891_v17 }
  0x43   :  { %4354 = vmatmul.mubr.bf16.vlgmr.msra.gmra.mrb[0].mxu0 %v7894_v18  ;;  %4281 = vmatpush1.bf16.msra.mxu1 %v6862_v16  ;;  %v6947_v16 = vld [vmem:[%s9832_s1 + $0x2d0] ss:$12 sps:$4 sm:$0xff]  }
  0x44   :  { %4363 = vmatpush1.bf16.msra.mxu0 %v6866_v19  ;;  %4282 = vmatprep.subr.bf16.mxu1 %v6871_v20  ;;  %v6950_v19 = vld [vmem:[%s9832_s1 + $0x5d0] ss:$12 sps:$4 sm:$0xff]   ;;  %v6955_v20 = vld [vmem:[%s9832_s1 + $0x2ec] ss:$12 sps:$4 sm:$0xff]  }
  0x45   :  { %4364 = vmatprep.subr.bf16.mxu0 %v6874_v21  ;;  %4312 = vmatprep.mubr.bf16.mxu1 %v7907_v22  ;;  %v6958_v21 = vld [vmem:[%s9832_s1 + $0x5ec] ss:$12 sps:$4 sm:$0xff]  }
  0x46   :  { %4394 = vmatprep.mubr.bf16.mxu0 %v7911_v23 }
  0x47   :  { %4283 = vmatpush1.bf16.msra.mxu1 %v6869_v24  ;;  %v6953_v24 = vld [vmem:[%s9832_s1 + $0x2e8] ss:$12 sps:$4 sm:$0xff]  }
  0x48   :  { %4365 = vmatpush1.bf16.msra.mxu0 %v6872_v25  ;;  %4284 = vmatprep.subr.bf16.mxu1 %v6877_v26  ;;  %v6956_v25 = vld [vmem:[%s9832_s1 + $0x5e8] ss:$12 sps:$4 sm:$0xff]   ;;  %v6961_v26 = vld [vmem:[%s9832_s1 + $0x604] ss:$12 sps:$4 sm:$0xff]  }
  0x49   :  { %4366 = vmatprep.subr.bf16.mxu0 %v6880_v27  ;;  %v6962_v27 = vld [vmem:[%s9832_s1 + $0xc8] ss:$12 sps:$4 sm:$0xff]  }
  0x4b   :  { %4285 = vmatpush1.bf16.msra.mxu1 %v6875_v28  ;;  %v6959_v28 = vld [vmem:[%s9832_s1 + $0x600] ss:$12 sps:$4 sm:$0xff]  }
  0x4c   :  { %4367 = vmatpush1.bf16.msra.mxu0 %v6878_v29  ;;  %4286 = vmatprep.subr.bf16.mxu1 %v6883_v30  ;;  %v8102_v29 = vcombine.high %v7891_v17, %v7891_v17  ;;  %v8106_v30 = vcombine.high %v7894_v18, %v7894_v18 }
  0x4d   :  { %4368 = vmatprep.subr.bf16.mxu0 %v6886_v31  ;;  %v6963_v31 = vld [vmem:[%s9832_s1 + $0x8] ss:$12 sps:$4 sm:$0xff]  }
  0x4f   :  { %4287 = vmatpush1.bf16.msra.mxu1 %v6881_v32  ;;  %v6966_v32 = vld [vmem:[%s9832_s1 + $0x61c] ss:$12 sps:$4 sm:$0xff]  }
  0x50   :  { %4369 = vmatpush1.bf16.msra.mxu0 %v6884_v33  ;;  %4288 = vmatprep.subr.bf16.mxu1 %v6889_v34  ;;  %v6967_v33 = vld [vmem:[%s9832_s1 + $0xe0] ss:$12 sps:$4 sm:$0xff]   ;;  %v6964_v34 = vld [vmem:[%s9832_s1 + $0x618] ss:$12 sps:$4 sm:$0xff]  }
  0x51   :  { %4370 = vmatprep.subr.bf16.mxu0 %v6892_v35  ;;  %v6968_v35 = vld [vmem:[%s9832_s1 + $0x20] ss:$12 sps:$4 sm:$0xff]  }
  0x53   :  { %4289 = vmatpush1.bf16.msra.mxu1 %v6887_v36  ;;  %v6971_v36 = vld [vmem:[%s9832_s1 + $0x634] ss:$12 sps:$4 sm:$0xff]  }
  0x54   :  { %4371 = vmatpush1.bf16.msra.mxu0 %v6890_v37  ;;  %4290 = vmatprep.subr.bf16.mxu1 %v6895_v38  ;;  %v6972_v37 = vld [vmem:[%s9832_s1 + $0xf8] ss:$12 sps:$4 sm:$0xff]   ;;  %v6969_v38 = vld [vmem:[%s9832_s1 + $0x630] ss:$12 sps:$4 sm:$0xff]  }
  0x55   :  { %4372 = vmatprep.subr.bf16.mxu0 %v6898_v39  ;;  %v6973_v39 = vld [vmem:[%s9832_s1 + $0x38] ss:$12 sps:$4 sm:$0xff]  }
  0x57   :  { %4291 = vmatpush1.bf16.msra.mxu1 %v6893_v40  ;;  %v6976_v40 = vld [vmem:[%s9832_s1 + $0x64c] ss:$12 sps:$4 sm:$0xff]  }
  0x58   :  { %4373 = vmatpush1.bf16.msra.mxu0 %v6896_v41  ;;  %4292 = vmatprep.subr.bf16.mxu1 %v6901_v43  ;;  %v6974_v41 = vld [vmem:[%s9832_s1 + $0x648] ss:$12 sps:$4 sm:$0xff]  }
  0x59   :  { %4374 = vmatprep.subr.bf16.mxu0 %v6904_v44  ;;  %v8150_v43 = vld [vmem:[%s9831_s0 + $0x8] sm:$0xff]  ;;  %v6978_v44 = vld [vmem:[%s9832_s1 + $0x50] ss:$12 sps:$4 sm:$0xff]  }
  0x5b   :  { %4293 = vmatpush1.bf16.msra.mxu1 %v6899_v45  ;;  %v6981_v45 = vld [vmem:[%s9832_s1 + $0x664] ss:$12 sps:$4 sm:$0xff]  }
  0x5c   :  { %4375 = vmatpush1.bf16.msra.mxu0 %v6902_v46  ;;  %4294 = vmatprep.subr.bf16.mxu1 %v6907_v47  ;;  %v8160_v46 = vrot.slane %v8150_v43, %v7806_v49  ;;  %v6982_v47 = vld [vmem:[%s9832_s1 + $0x128] ss:$12 sps:$4 sm:$0xff]  }
  0x5d   :  { %4376 = vmatprep.subr.bf16.mxu0 %v6910_v48 }
  0x5e   :  { %v917_v48 = vcombine.high %v8160_v46, %v8160_v46 }
  0x5f   :  { %4295 = vmatpush1.bf16.msra.mxu1 %v6905_v50  ;;  %v6979_v50 = vld [vmem:[%s9832_s1 + $0x660] ss:$12 sps:$4 sm:$0xff]  }
  0x60   :  { %4377 = vmatpush1.bf16.msra.mxu0 %v6908_v51  ;;  %4296 = vmatprep.subr.bf16.mxu1 %v6913_v52  ;;  %v6983_v51 = vld [vmem:[%s9832_s1 + $0x68] ss:$12 sps:$4 sm:$0xff]  }
  0x61   :  { %4378 = vmatprep.subr.bf16.mxu0 %v6916_v53  ;;  %v6986_v52 = vld [vmem:[%s9832_s1 + $0x67c] ss:$12 sps:$4 sm:$0xff]   ;;  %v8177_v53 = vrot.slane %v917_v48, %v7806_v49 }
  0x63   :  { %4297 = vmatpush1.bf16.msra.mxu1 %v6911_v54  ;;  %v6987_v54 = vld [vmem:[%s9832_s1 + $0x140] ss:$12 sps:$4 sm:$0xff]   ;;  %v8338_v48 = vcombine.high %v8177_v53, %v8177_v53 }
  0x64   :  { %4379 = vmatpush1.bf16.msra.mxu0 %v6914_v55  ;;  %4298 = vmatprep.subr.bf16.mxu1 %v6919_v56  ;;  %v6984_v55 = vld [vmem:[%s9832_s1 + $0x678] ss:$12 sps:$4 sm:$0xff]   ;;  %v6988_v56 = vld [vmem:[%s9832_s1 + $0x80] ss:$12 sps:$4 sm:$0xff]  }
  0x65   :  { %4380 = vmatprep.subr.bf16.mxu0 %v6922_v57  ;;  %v6991_v57 = vld [vmem:[%s9832_s1 + $0x694] ss:$12 sps:$4 sm:$0xff]  }
  0x67   :  { %4299 = vmatpush1.bf16.msra.mxu1 %v6917_v58  ;;  %v6992_v58 = vld [vmem:[%s9832_s1 + $0x158] ss:$12 sps:$4 sm:$0xff]  }
  0x68   :  { %4381 = vmatpush1.bf16.msra.mxu0 %v6920_v59  ;;  %4300 = vmatprep.subr.bf16.mxu1 %v6925_v60  ;;  %v6989_v59 = vld [vmem:[%s9832_s1 + $0x690] ss:$12 sps:$4 sm:$0xff]   ;;  %v6993_v60 = vld [vmem:[%s9832_s1 + $0x98] ss:$12 sps:$4 sm:$0xff]  }
  0x69   :  { %4382 = vmatprep.subr.bf16.mxu0 %v6928_v61  ;;  %v6996_v61 = vld [vmem:[%s9832_s1 + $0x6ac] ss:$12 sps:$4 sm:$0xff]  }
  0x6b   :  { %4301 = vmatpush1.bf16.msra.mxu1 %v6923_v63  ;;  %v6997_v63 = vld [vmem:[%s9832_s1 + $0x170] ss:$12 sps:$4 sm:$0xff]  }
  0x6c   :  { %4383 = vmatpush1.bf16.msra.mxu0 %v6926_v0  ;;  %4302 = vmatprep.subr.bf16.mxu1 %v6931_v1  ;;  %v6994_v0 = vld [vmem:[%s9832_s1 + $0x6a8] ss:$12 sps:$4 sm:$0xff]   ;;  %v6998_v1 = vld [vmem:[%s9832_s1 + $0xb0] ss:$12 sps:$4 sm:$0xff]  }
  0x6d   :  { %4384 = vmatprep.subr.bf16.mxu0 %v6934_v2  ;;  %v7001_v2 = vld [vmem:[%s9832_s1 + $0x6c4] ss:$12 sps:$4 sm:$0xff]  }
  0x6f   :  { %4303 = vmatpush1.bf16.msra.mxu1 %v6929_v4  ;;  %v7002_v4 = vld [vmem:[%s9832_s1 + $0x248] ss:$12 sps:$4 sm:$0xff]  }
  0x70   :  { %4385 = vmatpush1.bf16.msra.mxu0 %v6932_v5  ;;  %4304 = vmatprep.subr.bf16.mxu1 %v6937_v6  ;;  %v6999_v5 = vld [vmem:[%s9832_s1 + $0x6c0] ss:$12 sps:$4 sm:$0xff]   ;;  %v7003_v6 = vld [vmem:[%s9832_s1 + $0x188] ss:$12 sps:$4 sm:$0xff]  }
  0x71   :  { %4386 = vmatprep.subr.bf16.mxu0 %v6940_v7  ;;  %v7006_v7 = vld [vmem:[%s9832_s1 + $0x6dc] ss:$12 sps:$4 sm:$0xff]  }
  0x73   :  { %4305 = vmatpush1.bf16.msra.mxu1 %v6935_v8  ;;  %v7007_v8 = vld [vmem:[%s9832_s1 + $0x260] ss:$12 sps:$4 sm:$0xff]  }
  0x74   :  { %4387 = vmatpush1.bf16.msra.mxu0 %v6938_v9  ;;  %4306 = vmatprep.subr.bf16.mxu1 %v6943_v10  ;;  %v7004_v9 = vld [vmem:[%s9832_s1 + $0x6d8] ss:$12 sps:$4 sm:$0xff]   ;;  %v7008_v10 = vld [vmem:[%s9832_s1 + $0x1a0] ss:$12 sps:$4 sm:$0xff]  }
  0x75   :  { %4388 = vmatprep.subr.bf16.mxu0 %v6946_v11  ;;  %v7011_v11 = vld [vmem:[%s9832_s1 + $0x6f4] ss:$12 sps:$4 sm:$0xff]  }
  0x77   :  { %4307 = vmatpush1.bf16.msra.mxu1 %v6941_v12  ;;  %v7009_v12 = vld [vmem:[%s9832_s1 + $0x6f0] ss:$12 sps:$4 sm:$0xff]  }
  0x78   :  { %4389 = vmatpush1.bf16.msra.mxu0 %v6944_v13  ;;  %4308 = vmatprep.subr.bf16.mxu1 %v6949_v14  ;;  %v7013_v13 = vld [vmem:[%s9832_s1 + $0x1b8] ss:$12 sps:$4 sm:$0xff]  }
  0x79   :  { %4390 = vmatprep.subr.bf16.mxu0 %v6952_v15  ;;  %v7016_v14 = vld [vmem:[%s9832_s1 + $0x70c] ss:$12 sps:$4 sm:$0xff]   ;;  %v7017_v15 = vld [vmem:[%s9832_s1 + $0x290] ss:$12 sps:$4 sm:$0xff]  }
  0x7b   :  { %4309 = vmatpush1.bf16.msra.mxu1 %v6947_v16  ;;  %v7018_v16 = vld [vmem:[%s9832_s1 + $0x1d0] ss:$12 sps:$4 sm:$0xff]  }
  0x7c   :  { %4391 = vmatpush1.bf16.msra.mxu0 %v6950_v19  ;;  %4310 = vmatprep.subr.bf16.mxu1 %v6955_v20  ;;  %v7021_v19 = vld [vmem:[%s9832_s1 + $0x724] ss:$12 sps:$4 sm:$0xff]   ;;  %v7022_v20 = vld [vmem:[%s9832_s1 + $0x2a8] ss:$12 sps:$4 sm:$0xff]  }
  0x7d   :  { %4392 = vmatprep.subr.bf16.mxu0 %v6958_v21  ;;  %v7019_v21 = vld [vmem:[%s9832_s1 + $0x720] ss:$12 sps:$4 sm:$0xff]  }
  0x7f   :  { %4311 = vmatpush1.bf16.msra.mxu1 %v6953_v24  ;;  %v7023_v24 = vld [vmem:[%s9832_s1 + $0x1e8] ss:$12 sps:$4 sm:$0xff]  }
  0x80   :  { %4393 = vmatpush1.bf16.msra.mxu0 %v6956_v25  ;;  %6340 = vmatprep.subr.bf16.mxu1 %v6962_v27  ;;  %v7026_v25 = vld [vmem:[%s9832_s1 + $0x73c] ss:$12 sps:$4 sm:$0xff]   ;;  %v7024_v27 = vld [vmem:[%s9832_s1 + $0x738] ss:$12 sps:$4 sm:$0xff]  }
  0x81   :  { %4403 = vmatprep.subr.bf16.mxu0 %v6961_v26  ;;  %v7027_v26 = vld [vmem:[%s9832_s1 + $0x2c0] ss:$12 sps:$4 sm:$0xff]  }
  0x82   :  { %4313 = vmatmul.mubr.bf16.vlgmr.msra.gmra.mrb[0].mxu1 %v8102_v29 }
  0x83   :  { %4395 = vmatmul.mubr.bf16.vlgmr.msra.gmra.mrb[0].mxu0 %v8106_v30  ;;  %6341 = vmatpush3.bf16.msra.mxu1 %v6963_v31  ;;  %v7031_v31 = vld [vmem:[%s9832_s1 + $0x754] ss:$12 sps:$4 sm:$0xff]  }
  0x84   :  { %4404 = vmatpush1.bf16.msra.mxu0 %v6959_v28  ;;  %6342 = vmatprep.subr.bf16.mxu1 %v6967_v33  ;;  %v7028_v28 = vld [vmem:[%s9832_s1 + $0x200] ss:$12 sps:$4 sm:$0xff]   ;;  %v7029_v33 = vld [vmem:[%s9832_s1 + $0x750] ss:$12 sps:$4 sm:$0xff]  }
  0x85   :  { %4405 = vmatprep.subr.bf16.mxu0 %v6966_v32  ;;  %4804 = vmatprep.mubr.bf16.mxu1 %v7835_v62  ;;  %v6977_v62 = vld [vmem:[%s9832_s1 + $0x110] ss:$12 sps:$4 sm:$0xff]   ;;  %v7032_v32 = vld [vmem:[%s9832_s1 + $0x2d8] ss:$12 sps:$4 sm:$0xff]  }
  0x86   :  { %4435 = vmatprep.mubr.bf16.mxu0 %v8177_v53 }
  0x87   :  { %6343 = vmatpush3.bf16.msra.mxu1 %v6968_v35  ;;  %v7036_v35 = vld [vmem:[%s9832_s1 + $0x76c] ss:$12 sps:$4 sm:$0xff]  }
  0x88   :  { %4406 = vmatpush1.bf16.msra.mxu0 %v6964_v34  ;;  %6344 = vmatprep.subr.bf16.mxu1 %v6972_v37  ;;  %v7033_v34 = vld [vmem:[%s9832_s1 + $0x218] ss:$12 sps:$4 sm:$0xff]   ;;  %v7034_v37 = vld [vmem:[%s9832_s1 + $0x768] ss:$12 sps:$4 sm:$0xff]  }
  0x89   :  { %4407 = vmatprep.subr.bf16.mxu0 %v6971_v36  ;;  %v7037_v36 = vld [vmem:[%s9832_s1 + $0x2f0] ss:$12 sps:$4 sm:$0xff]  }
  0x8b   :  { %6345 = vmatpush3.bf16.msra.mxu1 %v6973_v39  ;;  %v7041_v39 = vld [vmem:[%s9832_s1 + $0x784] ss:$12 sps:$4 sm:$0xff]  }
  0x8c   :  { %4408 = vmatpush1.bf16.msra.mxu0 %v6969_v38  ;;  %6346 = vmatprep.subr.bf16.mxu1 %v6977_v62  ;;  %v7038_v38 = vld [vmem:[%s9832_s1 + $0x230] ss:$12 sps:$4 sm:$0xff]   ;;  %v7039_v62 = vld [vmem:[%s9832_s1 + $0x780] ss:$12 sps:$4 sm:$0xff]  }
  0x8d   :  { %4409 = vmatprep.subr.bf16.mxu0 %v6976_v40  ;;  %v7042_v40 = vld [vmem:[%s9832_s1 + $0x3c8] ss:$12 sps:$4 sm:$0xff]  }
  0x8f   :  { %6347 = vmatpush3.bf16.msra.mxu1 %v6978_v44  ;;  %v7043_v44 = vld [vmem:[%s9832_s1 + $0x308] ss:$12 sps:$4 sm:$0xff]  }
  0x90   :  { %4410 = vmatpush1.bf16.msra.mxu0 %v6974_v41  ;;  %6348 = vmatprep.subr.bf16.mxu1 %v6982_v47  ;;  %v8322_v41 = vrot.slane %v8160_v46, %v7806_v49  ;;  %v7047_v47 = vld [vmem:[%s9832_s1 + $0x3e0] ss:$12 sps:$4 sm:$0xff]   ;;  %v7044_v46 = vld [vmem:[%s9832_s1 + $0x798] ss:$12 sps:$4 sm:$0xff]  }
  0x91   :  { %4411 = vmatprep.subr.bf16.mxu0 %v6981_v45  ;;  %v7046_v45 = vld [vmem:[%s9832_s1 + $0x79c] ss:$12 sps:$4 sm:$0xff]  }
  0x93   :  { %6349 = vmatpush3.bf16.msra.mxu1 %v6983_v51  ;;  %v7051_v51 = vld [vmem:[%s9832_s1 + $0x7b4] ss:$12 sps:$4 sm:$0xff]  }
  0x94   :  { %4412 = vmatpush1.bf16.msra.mxu0 %v6979_v50  ;;  %6350 = vmatprep.subr.bf16.mxu1 %v6987_v54  ;;  %v7048_v50 = vld [vmem:[%s9832_s1 + $0x320] ss:$12 sps:$4 sm:$0xff]   ;;  %v7053_v54 = vld [vmem:[%s9832_s1 + $0x338] ss:$12 sps:$4 sm:$0xff]  }
  0x95   :  { %4413 = vmatprep.subr.bf16.mxu0 %v6986_v52  ;;  %v7052_v52 = vld [vmem:[%s9832_s1 + $0x3f8] ss:$12 sps:$4 sm:$0xff]  }
  0x97   :  { %6351 = vmatpush3.bf16.msra.mxu1 %v6988_v56  ;;  %v7054_v56 = vld [vmem:[%s9832_s1 + $0x7c8] ss:$12 sps:$4 sm:$0xff]  }
  0x98   :  { %4414 = vmatpush1.bf16.msra.mxu0 %v6984_v55  ;;  %6352 = vmatprep.subr.bf16.mxu1 %v6992_v58  ;;  %v7056_v55 = vld [vmem:[%s9832_s1 + $0x7cc] ss:$12 sps:$4 sm:$0xff]   ;;  %v7061_v58 = vld [vmem:[%s9832_s1 + $0x7e4] ss:$12 sps:$4 sm:$0xff]  }
  0x99   :  { %4415 = vmatprep.subr.bf16.mxu0 %v6991_v57  ;;  %v7058_v57 = vld [vmem:[%s9832_s1 + $0x350] ss:$12 sps:$4 sm:$0xff]  }
  0x9b   :  { %6353 = vmatpush3.bf16.msra.mxu1 %v6993_v60  ;;  %v7059_v60 = vld [vmem:[%s9832_s1 + $0x7e0] ss:$12 sps:$4 sm:$0xff]  }
  0x9c   :  { %4416 = vmatpush1.bf16.msra.mxu0 %v6989_v59  ;;  %6354 = vmatprep.subr.bf16.mxu1 %v6997_v63  ;;  %v7062_v59 = vld [vmem:[%s9832_s1 + $0x428] ss:$12 sps:$4 sm:$0xff]  }
  0x9d   :  { %4417 = vmatprep.subr.bf16.mxu0 %v6996_v61  ;;  %v7063_v61 = vld [vmem:[%s9832_s1 + $0x368] ss:$12 sps:$4 sm:$0xff]  }
  0x9e   :  { %v7066_v63 = vld [vmem:[%s9832_s1 + $0x7fc] ss:$12 sps:$4 sm:$0xff]  }
  0x9f   :  { %6355 = vmatpush3.bf16.msra.mxu1 %v6998_v1  ;;  %v7064_v1 = vld [vmem:[%s9832_s1 + $0x7f8] ss:$12 sps:$4 sm:$0xff]  }
  0xa0   :  { %4418 = vmatpush1.bf16.msra.mxu0 %v6994_v0  ;;  %6362 = vmatprep.subr.bf16.mxu1 %v7002_v4  ;;  %v7067_v0 = vld [vmem:[%s9832_s1 + $0x440] ss:$12 sps:$4 sm:$0xff]  }
  0xa1   :  { %4419 = vmatprep.subr.bf16.mxu0 %v7001_v2  ;;  %v7068_v2 = vld [vmem:[%s9832_s1 + $0x380] ss:$12 sps:$4 sm:$0xff]  }
  0xa2   :  { %4805 = vmatmul.mubr.bf16.vlgmr.msra.gmra.mrb[4].mxu1 %v7891_v17  ;;  %v7012_v17 = vld [vmem:[%s9832_s1 + $0x278] ss:$12 sps:$4 sm:$0xff]   ;;  %v7071_v4 = vld [vmem:[%s9832_s1 + $0x814] ss:$12 sps:$4 sm:$0xff]  }
  0xa3   :  { %6363 = vmatpush3.bf16.msra.mxu1 %v7003_v6  ;;  %4844 = vmatprep.mubr.bf16.mxu1 %v7907_v22  ;;  %v7014_v22 = vld [vmem:[%s9832_s1 + $0x708] ss:$12 sps:$4 sm:$0xff]   ;;  %v7069_v6 = vld [vmem:[%s9832_s1 + $0x810] ss:$12 sps:$4 sm:$0xff]  }
  0xa4   :  { %4420 = vmatpush1.bf16.msra.mxu0 %v6999_v5  ;;  %6364 = vmatprep.subr.bf16.mxu1 %v7007_v8  ;;  %v7072_v5 = vld [vmem:[%s9832_s1 + $0x458] ss:$12 sps:$4 sm:$0xff]  }
  0xa5   :  { %4421 = vmatprep.subr.bf16.mxu0 %v7006_v7  ;;  %v7073_v7 = vld [vmem:[%s9832_s1 + $0x398] ss:$12 sps:$4 sm:$0xff]  }
  0xa6   :  { %v7076_v8 = vld [vmem:[%s9832_s1 + $0x82c] ss:$12 sps:$4 sm:$0xff]  }
  0xa7   :  { %6365 = vmatpush3.bf16.msra.mxu1 %v7008_v10  ;;  %v7074_v10 = vld [vmem:[%s9832_s1 + $0x828] ss:$12 sps:$4 sm:$0xff]  }
  0xa8   :  { %4422 = vmatpush1.bf16.msra.mxu0 %v7004_v9  ;;  %6366 = vmatprep.subr.bf16.mxu1 %v7012_v17  ;;  %v7077_v9 = vld [vmem:[%s9832_s1 + $0x470] ss:$12 sps:$4 sm:$0xff]  }
  0xa9   :  { %4423 = vmatprep.subr.bf16.mxu0 %v7011_v11  ;;  %v7078_v11 = vld [vmem:[%s9832_s1 + $0x3b0] ss:$12 sps:$4 sm:$0xff]  }
  0xaa   :  { %v7081_v17 = vld [vmem:[%s9832_s1 + $0x844] ss:$12 sps:$4 sm:$0xff]  }
  0xab   :  { %6367 = vmatpush3.bf16.msra.mxu1 %v7013_v13  ;;  %v7079_v13 = vld [vmem:[%s9832_s1 + $0x840] ss:$12 sps:$4 sm:$0xff]  }
  0xac   :  { %4424 = vmatpush1.bf16.msra.mxu0 %v7009_v12  ;;  %6368 = vmatprep.subr.bf16.mxu1 %v7017_v15  ;;  %v7082_v12 = vld [vmem:[%s9832_s1 + $0x548] ss:$12 sps:$4 sm:$0xff]  }
  0xad   :  { %4425 = vmatprep.subr.bf16.mxu0 %v7016_v14  ;;  %v7083_v14 = vld [vmem:[%s9832_s1 + $0x488] ss:$12 sps:$4 sm:$0xff]  }
  0xae   :  { %v7086_v15 = vld [vmem:[%s9832_s1 + $0x85c] ss:$12 sps:$4 sm:$0xff]  }
  0xaf   :  { %6369 = vmatpush3.bf16.msra.mxu1 %v7018_v16  ;;  %v7084_v16 = vld [vmem:[%s9832_s1 + $0x858] ss:$12 sps:$4 sm:$0xff]  }
  0xb0   :  { %4426 = vmatpush1.bf16.msra.mxu0 %v7014_v22  ;;  %6370 = vmatprep.subr.bf16.mxu1 %v7022_v20  ;;  %v7087_v22 = vld [vmem:[%s9832_s1 + $0x560] ss:$12 sps:$4 sm:$0xff]  }
  0xb1   :  { %4427 = vmatprep.subr.bf16.mxu0 %v7021_v19  ;;  %v7088_v19 = vld [vmem:[%s9832_s1 + $0x4a0] ss:$12 sps:$4 sm:$0xff]  }
  0xb2   :  { %v7091_v20 = vld [vmem:[%s9832_s1 + $0x874] ss:$12 sps:$4 sm:$0xff]  }
  0xb3   :  { %6371 = vmatpush3.bf16.msra.mxu1 %v7023_v24  ;;  %v7093_v24 = vld [vmem:[%s9832_s1 + $0x4b8] ss:$12 sps:$4 sm:$0xff]  }
  0xb4   :  { %4428 = vmatpush1.bf16.msra.mxu0 %v7019_v21  ;;  %6372 = vmatprep.subr.bf16.mxu1 %v7027_v26  ;;  %v7092_v21 = vld [vmem:[%s9832_s1 + $0x578] ss:$12 sps:$4 sm:$0xff]   ;;  %v7094_v26 = vld [vmem:[%s9832_s1 + $0x888] ss:$12 sps:$4 sm:$0xff]  }
  0xb5   :  { %4429 = vmatprep.subr.bf16.mxu0 %v7026_v25  ;;  %v7096_v25 = vld [vmem:[%s9832_s1 + $0x88c] ss:$12 sps:$4 sm:$0xff]  }
  0xb7   :  { %6373 = vmatpush3.bf16.msra.mxu1 %v7028_v28  ;;  %v7101_v28 = vld [vmem:[%s9832_s1 + $0x8a4] ss:$12 sps:$4 sm:$0xff]  }
  0xb8   :  { %4430 = vmatpush1.bf16.msra.mxu0 %v7024_v27  ;;  %6374 = vmatprep.subr.bf16.mxu1 %v7032_v32  ;;  %v7098_v27 = vld [vmem:[%s9832_s1 + $0x4d0] ss:$12 sps:$4 sm:$0xff]   ;;  %v7099_v32 = vld [vmem:[%s9832_s1 + $0x8a0] ss:$12 sps:$4 sm:$0xff]  }
  0xb9   :  { %4431 = vmatprep.subr.bf16.mxu0 %v7031_v31  ;;  %v7102_v31 = vld [vmem:[%s9832_s1 + $0x5a8] ss:$12 sps:$4 sm:$0xff]  }
  0xbb   :  { %6375 = vmatpush3.bf16.msra.mxu1 %v7033_v34  ;;  %v7106_v34 = vld [vmem:[%s9832_s1 + $0x8bc] ss:$12 sps:$4 sm:$0xff]  }
  0xbc   :  { %4432 = vmatpush1.bf16.msra.mxu0 %v7029_v33  ;;  %6376 = vmatprep.subr.bf16.mxu1 %v7037_v36  ;;  %v7103_v33 = vld [vmem:[%s9832_s1 + $0x4e8] ss:$12 sps:$4 sm:$0xff]   ;;  %v7104_v36 = vld [vmem:[%s9832_s1 + $0x8b8] ss:$12 sps:$4 sm:$0xff]  }
  0xbd   :  { %4433 = vmatprep.subr.bf16.mxu0 %v7036_v35  ;;  %v7107_v35 = vld [vmem:[%s9832_s1 + $0x5c0] ss:$12 sps:$4 sm:$0xff]  }
  0xbf   :  { %6377 = vmatpush3.bf16.msra.mxu1 %v7038_v38  ;;  %v7111_v38 = vld [vmem:[%s9832_s1 + $0x8d4] ss:$12 sps:$4 sm:$0xff]  }
  0xc0   :  { %4434 = vmatpush1.bf16.msra.mxu0 %v7034_v37  ;;  %6384 = vmatprep.subr.bf16.mxu1 %v7042_v40  ;;  %v7108_v37 = vld [vmem:[%s9832_s1 + $0x500] ss:$12 sps:$4 sm:$0xff]   ;;  %v7109_v40 = vld [vmem:[%s9832_s1 + $0x8d0] ss:$12 sps:$4 sm:$0xff]  }
  0xc1   :  { %4444 = vmatprep.subr.bf16.mxu0 %v7041_v39  ;;  %v7112_v39 = vld [vmem:[%s9832_s1 + $0x5d8] ss:$12 sps:$4 sm:$0xff]  }
  0xc2   :  { %4845 = vmatmul.mubr.bf16.vlgmr.msra.gmra.mrb[8].mxu1 %v8102_v29  ;;  %v7049_v29 = vld [vmem:[%s9832_s1 + $0x7b0] ss:$12 sps:$4 sm:$0xff]  }
  0xc3   :  { %4436 = vmatmul.mubr.bf16.vlgmr.msra.gmra.mrb[0].mxu0 %v8322_v41  ;;  %6385 = vmatpush3.bf16.msra.mxu1 %v7043_v44  ;;  %v7113_v44 = vld [vmem:[%s9832_s1 + $0x518] ss:$12 sps:$4 sm:$0xff]  }
  0xc4   :  { %4445 = vmatpush1.bf16.msra.mxu0 %v7039_v62  ;;  %6386 = vmatprep.subr.bf16.mxu1 %v7047_v47  ;;  %v902_v62 = vcombine.high %v8150_v43, %v8150_v43  ;;  %v7117_v47 = vld [vmem:[%s9832_s1 + $0x5f0] ss:$12 sps:$4 sm:$0xff]   ;;  %v7114_v43 = vld [vmem:[%s9832_s1 + $0x8e8] ss:$12 sps:$4 sm:$0xff]  }
  0xc5   :  { %4446 = vmatprep.subr.bf16.mxu0 %v7046_v45  ;;  %4884 = vmatprep.mubr.bf16.mxu1 %v7847_v3  ;;  %v7057_v3 = vld [vmem:[%s9832_s1 + $0x410] ss:$12 sps:$4 sm:$0xff]   ;;  %v7116_v45 = vld [vmem:[%s9832_s1 + $0x8ec] ss:$12 sps:$4 sm:$0xff]  }
  0xc6   :  { %4476 = vmatprep.mubr.bf16.mxu0 %v8338_v48 }
  0xc7   :  { %6387 = vmatpush3.bf16.msra.mxu1 %v7048_v50  ;;  %v7118_v50 = vld [vmem:[%s9832_s1 + $0x530] ss:$12 sps:$4 sm:$0xff]  }
  0xc8   :  { %4447 = vmatpush1.bf16.msra.mxu0 %v7044_v46  ;;  %6388 = vmatprep.subr.bf16.mxu1 %v7052_v52  ;;  %v8514_v46 = vrot.slane %v902_v62, %v7806_v49  ;;  %v7122_v52 = vld [vmem:[%s9832_s1 + $0x6c8] ss:$12 sps:$4 sm:$0xff]  }
  0xc9   :  { %4448 = vmatprep.subr.bf16.mxu0 %v7051_v51  ;;  %v7121_v51 = vld [vmem:[%s9832_s1 + $0x904] ss:$12 sps:$4 sm:$0xff]   ;;  %v7186_v62 = vld [vmem:[%s9832_s1 + $0xa3c] ss:$12 sps:$4 sm:$0xff]  }
  0xcb   :  { %6389 = vmatpush3.bf16.msra.mxu1 %v7053_v54  ;;  %v918_v54 = vcombine.high %v8514_v46, %v8514_v46 }
  0xcc   :  { %4449 = vmatpush1.bf16.msra.mxu0 %v7049_v29  ;;  %6390 = vmatprep.subr.bf16.mxu1 %v7057_v3  ;;  %v7119_v29 = vld [vmem:[%s9832_s1 + $0x900] ss:$12 sps:$4 sm:$0xff]   ;;  %v7123_v3 = vld [vmem:[%s9832_s1 + $0x608] ss:$12 sps:$4 sm:$0xff]  }
  0xcd   :  { %4450 = vmatprep.subr.bf16.mxu0 %v7056_v55  ;;  %v8535_v55 = vcombine.high %v8322_v41, %v8322_v41 }
  0xcf   :  { %6391 = vmatpush3.bf16.msra.mxu1 %v7058_v57  ;;  %v7127_v57 = vld [vmem:[%s9832_s1 + $0x6e0] ss:$12 sps:$4 sm:$0xff]  }
  0xd0   :  { %4451 = vmatpush1.bf16.msra.mxu0 %v7054_v56  ;;  %6392 = vmatprep.subr.bf16.mxu1 %v7062_v59  ;;  %v7126_v56 = vld [vmem:[%s9832_s1 + $0x91c] ss:$12 sps:$4 sm:$0xff]   ;;  %v7124_v59 = vld [vmem:[%s9832_s1 + $0x918] ss:$12 sps:$4 sm:$0xff]  }
  0xd1   :  { %4452 = vmatprep.subr.bf16.mxu0 %v7061_v58  ;;  %v8547_v58 = vrot.slane %v918_v54, %v7806_v49  ;;  %v7197_v54 = vld [vmem:[%s9832_s1 + $0x8f0] ss:$12 sps:$4 sm:$0xff]  }
  0xd3   :  { %6393 = vmatpush3.bf16.msra.mxu1 %v7063_v61  ;;  %v7131_v61 = vld [vmem:[%s9832_s1 + $0x934] ss:$12 sps:$4 sm:$0xff]  }
  0xd4   :  { %4453 = vmatpush1.bf16.msra.mxu0 %v7059_v60  ;;  %6394 = vmatprep.subr.bf16.mxu1 %v7067_v0  ;;  %v7128_v60 = vld [vmem:[%s9832_s1 + $0x620] ss:$12 sps:$4 sm:$0xff]   ;;  %v7133_v0 = vld [vmem:[%s9832_s1 + $0x638] ss:$12 sps:$4 sm:$0xff]  }
  0xd5   :  { %4454 = vmatprep.subr.bf16.mxu0 %v7066_v63  ;;  %v7129_v63 = vld [vmem:[%s9832_s1 + $0x930] ss:$12 sps:$4 sm:$0xff]  }
  0xd7   :  { %6395 = vmatpush3.bf16.msra.mxu1 %v7068_v2  ;;  %v7134_v2 = vld [vmem:[%s9832_s1 + $0x948] ss:$12 sps:$4 sm:$0xff]  }
  0xd8   :  { %4455 = vmatpush1.bf16.msra.mxu0 %v7064_v1  ;;  %6396 = vmatprep.subr.bf16.mxu1 %v7072_v5  ;;  %v7136_v1 = vld [vmem:[%s9832_s1 + $0x94c] ss:$12 sps:$4 sm:$0xff]   ;;  %v7141_v5 = vld [vmem:[%s9832_s1 + $0x964] ss:$12 sps:$4 sm:$0xff]  }
  0xd9   :  { %4456 = vmatprep.subr.bf16.mxu0 %v7071_v4  ;;  %v7138_v4 = vld [vmem:[%s9832_s1 + $0x650] ss:$12 sps:$4 sm:$0xff]  }
  0xdb   :  { %6397 = vmatpush3.bf16.msra.mxu1 %v7073_v7  ;;  %v7139_v7 = vld [vmem:[%s9832_s1 + $0x960] ss:$12 sps:$4 sm:$0xff]  }
  0xdc   :  { %4457 = vmatpush1.bf16.msra.mxu0 %v7069_v6  ;;  %6398 = vmatprep.subr.bf16.mxu1 %v7077_v9  ;;  %v7142_v6 = vld [vmem:[%s9832_s1 + $0x728] ss:$12 sps:$4 sm:$0xff]  }
  0xdd   :  { %4458 = vmatprep.subr.bf16.mxu0 %v7076_v8  ;;  %v7143_v8 = vld [vmem:[%s9832_s1 + $0x668] ss:$12 sps:$4 sm:$0xff]  }
  0xde   :  { %v7146_v9 = vld [vmem:[%s9832_s1 + $0x97c] ss:$12 sps:$4 sm:$0xff]  }
  0xdf   :  { %6399 = vmatpush3.bf16.msra.mxu1 %v7078_v11  ;;  %v7144_v11 = vld [vmem:[%s9832_s1 + $0x978] ss:$12 sps:$4 sm:$0xff]  }
  0xe0   :  { %4459 = vmatpush1.bf16.msra.mxu0 %v7074_v10  ;;  %6406 = vmatprep.subr.bf16.mxu1 %v7082_v12  ;;  %v7147_v10 = vld [vmem:[%s9832_s1 + $0x740] ss:$12 sps:$4 sm:$0xff]  }
  0xe1   :  { %4460 = vmatprep.subr.bf16.mxu0 %v7081_v17  ;;  %v7148_v17 = vld [vmem:[%s9832_s1 + $0x680] ss:$12 sps:$4 sm:$0xff]  }
  0xe2   :  { %4885 = vmatmul.mubr.bf16.vlgmr.msra.gmra.mrb[12].mxu1 %v7894_v18  ;;  %v7089_v18 = vld [vmem:[%s9832_s1 + $0x870] ss:$12 sps:$4 sm:$0xff]   ;;  %v7151_v12 = vld [vmem:[%s9832_s1 + $0x994] ss:$12 sps:$4 sm:$0xff]  }
  0xe3   :  { %6407 = vmatpush3.bf16.msra.mxu1 %v7083_v14  ;;  %4924 = vmatprep.mubr.bf16.mxu1 %v7911_v23  ;;  %v7097_v23 = vld [vmem:[%s9832_s1 + $0x590] ss:$12 sps:$4 sm:$0xff]  }
  0xe4   :  { %4461 = vmatpush1.bf16.msra.mxu0 %v7079_v13  ;;  %6408 = vmatprep.subr.bf16.mxu1 %v7087_v22  ;;  %v7152_v13 = vld [vmem:[%s9832_s1 + $0x758] ss:$12 sps:$4 sm:$0xff]   ;;  %v7149_v14 = vld [vmem:[%s9832_s1 + $0x990] ss:$12 sps:$4 sm:$0xff]  }
  0xe5   :  { %4462 = vmatprep.subr.bf16.mxu0 %v7086_v15  ;;  %v7153_v15 = vld [vmem:[%s9832_s1 + $0x698] ss:$12 sps:$4 sm:$0xff]  }
  0xe6   :  { %v7156_v22 = vld [vmem:[%s9832_s1 + $0x9ac] ss:$12 sps:$4 sm:$0xff]  }
  0xe7   :  { %6409 = vmatpush3.bf16.msra.mxu1 %v7088_v19  ;;  %v7154_v19 = vld [vmem:[%s9832_s1 + $0x9a8] ss:$12 sps:$4 sm:$0xff]  }
  0xe8   :  { %4463 = vmatpush1.bf16.msra.mxu0 %v7084_v16  ;;  %6410 = vmatprep.subr.bf16.mxu1 %v7092_v21  ;;  %v7157_v16 = vld [vmem:[%s9832_s1 + $0x770] ss:$12 sps:$4 sm:$0xff]  }
  0xe9   :  { %4464 = vmatprep.subr.bf16.mxu0 %v7091_v20  ;;  %v7158_v20 = vld [vmem:[%s9832_s1 + $0x6b0] ss:$12 sps:$4 sm:$0xff]  }
  0xea   :  { %v7161_v21 = vld [vmem:[%s9832_s1 + $0x9c4] ss:$12 sps:$4 sm:$0xff]  }
  0xeb   :  { %6411 = vmatpush3.bf16.msra.mxu1 %v7093_v24  ;;  %v7159_v24 = vld [vmem:[%s9832_s1 + $0x9c0] ss:$12 sps:$4 sm:$0xff]  }
  0xec   :  { %4465 = vmatpush1.bf16.msra.mxu0 %v7089_v18  ;;  %6412 = vmatprep.subr.bf16.mxu1 %v7097_v23  ;;  %v7162_v18 = vld [vmem:[%s9832_s1 + $0x848] ss:$12 sps:$4 sm:$0xff]  }
  0xed   :  { %4466 = vmatprep.subr.bf16.mxu0 %v7096_v25  ;;  %v7163_v25 = vld [vmem:[%s9832_s1 + $0x788] ss:$12 sps:$4 sm:$0xff]  }
  0xee   :  { %v7166_v23 = vld [vmem:[%s9832_s1 + $0x9dc] ss:$12 sps:$4 sm:$0xff]  }
  0xef   :  { %6413 = vmatpush3.bf16.msra.mxu1 %v7098_v27  ;;  %v7164_v27 = vld [vmem:[%s9832_s1 + $0x9d8] ss:$12 sps:$4 sm:$0xff]  }
  0xf0   :  { %4467 = vmatpush1.bf16.msra.mxu0 %v7094_v26  ;;  %6414 = vmatprep.subr.bf16.mxu1 %v7102_v31  ;;  %v7167_v26 = vld [vmem:[%s9832_s1 + $0x860] ss:$12 sps:$4 sm:$0xff]  }
  0xf1   :  { %4468 = vmatprep.subr.bf16.mxu0 %v7101_v28  ;;  %v7168_v28 = vld [vmem:[%s9832_s1 + $0x7a0] ss:$12 sps:$4 sm:$0xff]  }
  0xf2   :  { %v7171_v31 = vld [vmem:[%s9832_s1 + $0x9f4] ss:$12 sps:$4 sm:$0xff]  }
  0xf3   :  { %6415 = vmatpush3.bf16.msra.mxu1 %v7103_v33  ;;  %v7173_v33 = vld [vmem:[%s9832_s1 + $0x7b8] ss:$12 sps:$4 sm:$0xff]  }
  0xf4   :  { %4469 = vmatpush1.bf16.msra.mxu0 %v7099_v32  ;;  %6416 = vmatprep.subr.bf16.mxu1 %v7107_v35  ;;  %v7169_v32 = vld [vmem:[%s9832_s1 + $0x9f0] ss:$12 sps:$4 sm:$0xff]  }
  0xf5   :  { %4470 = vmatprep.subr.bf16.mxu0 %v7106_v34  ;;  %v7176_v34 = vld [vmem:[%s9832_s1 + $0xa0c] ss:$12 sps:$4 sm:$0xff]   ;;  %v7177_v35 = vld [vmem:[%s9832_s1 + $0x890] ss:$12 sps:$4 sm:$0xff]  }
  0xf7   :  { %6417 = vmatpush3.bf16.msra.mxu1 %v7108_v37  ;;  %v7181_v37 = vld [vmem:[%s9832_s1 + $0xa24] ss:$12 sps:$4 sm:$0xff]  }
  0xf8   :  { %4471 = vmatpush1.bf16.msra.mxu0 %v7104_v36  ;;  %6418 = vmatprep.subr.bf16.mxu1 %v7112_v39  ;;  %v7178_v36 = vld [vmem:[%s9832_s1 + $0x7d0] ss:$12 sps:$4 sm:$0xff]   ;;  %v7179_v39 = vld [vmem:[%s9832_s1 + $0xa20] ss:$12 sps:$4 sm:$0xff]  }
  0xf9   :  { %4472 = vmatprep.subr.bf16.mxu0 %v7111_v38  ;;  %v7182_v38 = vld [vmem:[%s9832_s1 + $0x8a8] ss:$12 sps:$4 sm:$0xff]  }
  0xfb   :  { %6419 = vmatpush3.bf16.msra.mxu1 %v7113_v44  ;;  %v7187_v44 = vld [vmem:[%s9832_s1 + $0x8c0] ss:$12 sps:$4 sm:$0xff]  }
  0xfc   :  { %4473 = vmatpush1.bf16.msra.mxu0 %v7109_v40  ;;  %6420 = vmatprep.subr.bf16.mxu1 %v7117_v47  ;;  %v7183_v40 = vld [vmem:[%s9832_s1 + $0x7e8] ss:$12 sps:$4 sm:$0xff]   ;;  %v7188_v47 = vld [vmem:[%s9832_s1 + $0x800] ss:$12 sps:$4 sm:$0xff]  }
  0xfd   :  { %4474 = vmatprep.subr.bf16.mxu0 %v7116_v45  ;;  %v7184_v45 = vld [vmem:[%s9832_s1 + $0xa38] ss:$12 sps:$4 sm:$0xff]  }
  0xff   :  { %6421 = vmatpush3.bf16.msra.mxu1 %v7118_v50  ;;  %v7192_v50 = vld [vmem:[%s9832_s1 + $0x8d8] ss:$12 sps:$4 sm:$0xff]  }
 0x100   :  { %4475 = vmatpush1.bf16.msra.mxu0 %v7114_v43  ;;  %6428 = vmatprep.subr.bf16.mxu1 %v7122_v52  ;;  %v7191_v43 = vld [vmem:[%s9832_s1 + $0xa54] ss:$12 sps:$4 sm:$0xff]   ;;  %v7193_v52 = vld [vmem:[%s9832_s1 + $0x818] ss:$12 sps:$4 sm:$0xff]  }
 0x101   :  { %4485 = vmatprep.subr.bf16.mxu0 %v7121_v51  ;;  %v7189_v51 = vld [vmem:[%s9832_s1 + $0xa50] ss:$12 sps:$4 sm:$0xff]  }
 0x102   :  { %4925 = vmatmul.mubr.bf16.vlgmr.msra.gmra.mrb[16].mxu1 %v8106_v30  ;;  %v7132_v30 = vld [vmem:[%s9832_s1 + $0x6f8] ss:$12 sps:$4 sm:$0xff]  }
 0x103   :  { %4477 = vmatmul.mubr.bf16.vlgmr.msra.gmra.mrb[0].mxu0 %v8535_v55  ;;  %6429 = vmatpush3.bf16.msra.mxu1 %v7123_v3  ;;  %v7194_v3 = vld [vmem:[%s9832_s1 + $0xa68] ss:$12 sps:$4 sm:$0xff]  }
 0x104   :  { %4486 = vmatpush1.bf16.msra.mxu0 %v7119_v29  ;;  %6430 = vmatprep.subr.bf16.mxu1 %v7127_v57  ;;  %v7196_v29 = vld [vmem:[%s9832_s1 + $0xa6c] ss:$12 sps:$4 sm:$0xff]   ;;  %v7202_v57 = vld [vmem:[%s9832_s1 + $0xa84] ss:$12 sps:$4 sm:$0xff]  }
 0x105   :  { %4487 = vmatprep.subr.bf16.mxu0 %v7126_v56  ;;  %4964 = vmatprep.mubr.bf16.mxu1 %v8177_v53  ;;  %v7137_v53 = vld [vmem:[%s9832_s1 + $0x710] ss:$12 sps:$4 sm:$0xff]  }
 0x106   :  { %4517 = vmatprep.mubr.bf16.mxu0 %v8547_v58  ;;  %v7198_v56 = vld [vmem:[%s9832_s1 + $0x830] ss:$12 sps:$4 sm:$0xff]  }
 0x107   :  { %6431 = vmatpush3.bf16.msra.mxu1 %v7128_v60  ;;  %v7200_v60 = vld [vmem:[%s9832_s1 + $0xa80] ss:$12 sps:$4 sm:$0xff]  }
 0x108   :  { %4488 = vmatpush1.bf16.msra.mxu0 %v7124_v59  ;;  %6432 = vmatprep.subr.bf16.mxu1 %v7132_v30  ;;  %v7203_v59 = vld [vmem:[%s9832_s1 + $0x9c8] ss:$12 sps:$4 sm:$0xff]  }
 0x109   :  { %4489 = vmatprep.subr.bf16.mxu0 %v7131_v61  ;;  %v8740_v61 = vrot.slane %v8514_v46, %v7806_v49  ;;  %v7204_v30 = vld [vmem:[%s9832_s1 + $0x908] ss:$12 sps:$4 sm:$0xff]   ;;  %v8753_v46 = vcombine.high %v8547_v58, %v8547_v58 }
 0x10b   :  { %6433 = vmatpush3.bf16.msra.mxu1 %v7133_v0  ;;  %v7208_v0 = vld [vmem:[%s9832_s1 + $0x9e0] ss:$12 sps:$4 sm:$0xff]  }
 0x10c   :  { %4490 = vmatpush1.bf16.msra.mxu0 %v7129_v63  ;;  %6434 = vmatprep.subr.bf16.mxu1 %v7137_v53  ;;  %v7207_v63 = vld [vmem:[%s9832_s1 + $0xa9c] ss:$12 sps:$4 sm:$0xff]   ;;  %v7209_v53 = vld [vmem:[%s9832_s1 + $0x920] ss:$12 sps:$4 sm:$0xff]  }
 0x10d   :  { %4491 = vmatprep.subr.bf16.mxu0 %v7136_v1  ;;  %v7205_v1 = vld [vmem:[%s9832_s1 + $0xa98] ss:$12 sps:$4 sm:$0xff]  }
 0x10f   :  { %6435 = vmatpush3.bf16.msra.mxu1 %v7138_v4  ;;  %v7210_v4 = vld [vmem:[%s9832_s1 + $0xab0] ss:$12 sps:$4 sm:$0xff]  }
 0x110   :  { %4492 = vmatpush1.bf16.msra.mxu0 %v7134_v2  ;;  %6436 = vmatprep.subr.bf16.mxu1 %v7142_v6  ;;  %v7212_v2 = vld [vmem:[%s9832_s1 + $0xab4] ss:$12 sps:$4 sm:$0xff]   ;;  %v7217_v6 = vld [vmem:[%s9832_s1 + $0xacc] ss:$12 sps:$4 sm:$0xff]  }
 0x111   :  { %4493 = vmatprep.subr.bf16.mxu0 %v7141_v5  ;;  %v7214_v5 = vld [vmem:[%s9832_s1 + $0x938] ss:$12 sps:$4 sm:$0xff]  }
 0x113   :  { %6437 = vmatpush3.bf16.msra.mxu1 %v7143_v8  ;;  %v7219_v8 = vld [vmem:[%s9832_s1 + $0x950] ss:$12 sps:$4 sm:$0xff]  }
 0x114   :  { %4494 = vmatpush1.bf16.msra.mxu0 %v7139_v7  ;;  %6438 = vmatprep.subr.bf16.mxu1 %v7147_v10  ;;  %v7215_v7 = vld [vmem:[%s9832_s1 + $0xac8] ss:$12 sps:$4 sm:$0xff]  }
 0x115   :  { %4495 = vmatprep.subr.bf16.mxu0 %v7146_v9  ;;  %v7222_v9 = vld [vmem:[%s9832_s1 + $0xae4] ss:$12 sps:$4 sm:$0xff]   ;;  %v7223_v10 = vld [vmem:[%s9832_s1 + $0xa28] ss:$12 sps:$4 sm:$0xff]  }
 0x117   :  { %6439 = vmatpush3.bf16.msra.mxu1 %v7148_v17  ;;  %v7224_v17 = vld [vmem:[%s9832_s1 + $0x968] ss:$12 sps:$4 sm:$0xff]  }
 0x118   :  { %4496 = vmatpush1.bf16.msra.mxu0 %v7144_v11  ;;  %6440 = vmatprep.subr.bf16.mxu1 %v7152_v13  ;;  %v7220_v11 = vld [vmem:[%s9832_s1 + $0xae0] ss:$12 sps:$4 sm:$0xff]  }
 0x119   :  { %4497 = vmatprep.subr.bf16.mxu0 %v7151_v12  ;;  %v7227_v12 = vld [vmem:[%s9832_s1 + $0xafc] ss:$12 sps:$4 sm:$0xff]   ;;  %v7228_v13 = vld [vmem:[%s9832_s1 + $0xa40] ss:$12 sps:$4 sm:$0xff]  }
 0x11b   :  { %6441 = vmatpush3.bf16.msra.mxu1 %v7153_v15  ;;  %v7229_v15 = vld [vmem:[%s9832_s1 + $0x980] ss:$12 sps:$4 sm:$0xff]  }
 0x11c   :  { %4498 = vmatpush1.bf16.msra.mxu0 %v7149_v14  ;;  %6442 = vmatprep.subr.bf16.mxu1 %v7157_v16  ;;  %v7225_v14 = vld [vmem:[%s9832_s1 + $0xaf8] ss:$12 sps:$4 sm:$0xff]  }
 0x11d   :  { %4499 = vmatprep.subr.bf16.mxu0 %v7156_v22  ;;  %v7232_v22 = vld [vmem:[%s9832_s1 + $0xb14] ss:$12 sps:$4 sm:$0xff]   ;;  %v7233_v16 = vld [vmem:[%s9832_s1 + $0xa58] ss:$12 sps:$4 sm:$0xff]  }
 0x11f   :  { %6443 = vmatpush3.bf16.msra.mxu1 %v7158_v20  ;;  %v7234_v20 = vld [vmem:[%s9832_s1 + $0x998] ss:$12 sps:$4 sm:$0xff]  }
 0x120   :  { %4500 = vmatpush1.bf16.msra.mxu0 %v7154_v19  ;;  %6450 = vmatprep.subr.bf16.mxu1 %v7162_v18  ;;  %v7230_v19 = vld [vmem:[%s9832_s1 + $0xb10] ss:$12 sps:$4 sm:$0xff]   ;;  %v7237_v18 = vld [vmem:[%s9832_s1 + $0xb2c] ss:$12 sps:$4 sm:$0xff]  }
 0x121   :  { %4501 = vmatprep.subr.bf16.mxu0 %v7161_v21 }
 0x122   :  { %4965 = vmatmul.mubr.bf16.vlgmr.msra.gmra.mrb[20].mxu1 %v8322_v41  ;;  %v7172_v41 = vld [vmem:[%s9832_s1 + $0x878] ss:$12 sps:$4 sm:$0xff]  }
 0x123   :  { %6451 = vmatpush3.bf16.msra.mxu1 %v7163_v25  ;;  %5004 = vmatprep.mubr.bf16.mxu1 %v8338_v48  ;;  %v7174_v48 = vld [vmem:[%s9832_s1 + $0xa08] ss:$12 sps:$4 sm:$0xff]  }
 0x124   :  { %4502 = vmatpush1.bf16.msra.mxu0 %v7159_v24  ;;  %6452 = vmatprep.subr.bf16.mxu1 %v7167_v26  ;;  %v7238_v24 = vld [vmem:[%s9832_s1 + $0xa70] ss:$12 sps:$4 sm:$0xff]  }
 0x125   :  { %4503 = vmatprep.subr.bf16.mxu0 %v7166_v23 }
 0x127   :  { %6453 = vmatpush3.bf16.msra.mxu1 %v7168_v28  ;;  %v7239_v28 = vld [vmem:[%s9832_s1 + $0x9b0] ss:$12 sps:$4 sm:$0xff]  }
 0x128   :  { %4504 = vmatpush1.bf16.msra.mxu0 %v7164_v27  ;;  %6454 = vmatprep.subr.bf16.mxu1 %v7172_v41  ;;  %v7235_v27 = vld [vmem:[%s9832_s1 + $0xb28] ss:$12 sps:$4 sm:$0xff]  }
 0x129   :  { %4505 = vmatprep.subr.bf16.mxu0 %v7171_v31  ;;  %v7242_v31 = vld [vmem:[%s9832_s1 + $0xb44] ss:$12 sps:$4 sm:$0xff]   ;;  %v7243_v41 = vld [vmem:[%s9832_s1 + $0xb48] ss:$12 sps:$4 sm:$0xff]  }
 0x12b   :  { %6455 = vmatpush3.bf16.msra.mxu1 %v7173_v33  ;;  %v7244_v33 = vld [vmem:[%s9832_s1 + $0xa88] ss:$12 sps:$4 sm:$0xff]  }
 0x12c   :  { %4506 = vmatpush1.bf16.msra.mxu0 %v7169_v32  ;;  %6456 = vmatprep.subr.bf16.mxu1 %v7177_v35  ;;  %v7240_v32 = vld [vmem:[%s9832_s1 + $0xb40] ss:$12 sps:$4 sm:$0xff]  }
 0x12d   :  { %4507 = vmatprep.subr.bf16.mxu0 %v7176_v34  ;;  %v7247_v34 = vld [vmem:[%s9832_s1 + $0xb5c] ss:$12 sps:$4 sm:$0xff]   ;;  %v7248_v35 = vld [vmem:[%s9832_s1 + $0xb60] ss:$12 sps:$4 sm:$0xff]  }
 0x12f   :  { %6457 = vmatpush3.bf16.msra.mxu1 %v7178_v36  ;;  %v7249_v36 = vld [vmem:[%s9832_s1 + $0xaa0] ss:$12 sps:$4 sm:$0xff]  }
 0x130   :  { %4508 = vmatpush1.bf16.msra.mxu0 %v7174_v48  ;;  %6458 = vmatprep.subr.bf16.mxu1 %v7182_v38  ;;  %v7245_v48 = vld [vmem:[%s9832_s1 + $0xb58] ss:$12 sps:$4 sm:$0xff]  }
 0x131   :  { %4509 = vmatprep.subr.bf16.mxu0 %v7181_v37  ;;  %v7252_v37 = vld [vmem:[%s9832_s1 + $0xb74] ss:$12 sps:$4 sm:$0xff]   ;;  %v7253_v38 = vld [vmem:[%s9832_s1 + $0xb78] ss:$12 sps:$4 sm:$0xff]  }
 0x133   :  { %6459 = vmatpush3.bf16.msra.mxu1 %v7183_v40  ;;  %v7254_v40 = vld [vmem:[%s9832_s1 + $0xab8] ss:$12 sps:$4 sm:$0xff]  }
 0x134   :  { %4510 = vmatpush1.bf16.msra.mxu0 %v7179_v39  ;;  %6460 = vmatprep.subr.bf16.mxu1 %v7187_v44  ;;  %v7250_v39 = vld [vmem:[%s9832_s1 + $0xb70] ss:$12 sps:$4 sm:$0xff]  }
 0x135   :  { %4511 = vmatprep.subr.bf16.mxu0 %v7186_v62  ;;  %v7257_v62 = vld [vmem:[%s9832_s1 + $0xb8c] ss:$12 sps:$4 sm:$0xff]   ;;  %v7258_v44 = vld [vmem:[%s9832_s1 + $0xb90] ss:$12 sps:$4 sm:$0xff]  }
 0x137   :  { %6461 = vmatpush3.bf16.msra.mxu1 %v7188_v47  ;;  %v7259_v47 = vld [vmem:[%s9832_s1 + $0xad0] ss:$12 sps:$4 sm:$0xff]  }
 0x138   :  { %4512 = vmatpush1.bf16.msra.mxu0 %v7184_v45  ;;  %6462 = vmatprep.subr.bf16.mxu1 %v7192_v50  ;;  %v7255_v45 = vld [vmem:[%s9832_s1 + $0xb88] ss:$12 sps:$4 sm:$0xff]  }
 0x139   :  { %4513 = vmatprep.subr.bf16.mxu0 %v7191_v43  ;;  %v7262_v43 = vld [vmem:[%s9832_s1 + $0xba4] ss:$12 sps:$4 sm:$0xff]   ;;  %v7263_v50 = vld [vmem:[%s9832_s1 + $0xba8] ss:$12 sps:$4 sm:$0xff]  }
 0x13b   :  { %6463 = vmatpush3.bf16.msra.mxu1 %v7193_v52  ;;  %v7264_v52 = vld [vmem:[%s9832_s1 + $0xae8] ss:$12 sps:$4 sm:$0xff]  }
 0x13c   :  { %4514 = vmatpush1.bf16.msra.mxu0 %v7189_v51  ;;  %6464 = vmatprep.subr.bf16.mxu1 %v7197_v54  ;;  %v7260_v51 = vld [vmem:[%s9832_s1 + $0xba0] ss:$12 sps:$4 sm:$0xff]  }
 0x13d   :  { %4515 = vmatprep.subr.bf16.mxu0 %v7196_v29  ;;  %v7267_v29 = vld [vmem:[%s9832_s1 + $0xbbc] ss:$12 sps:$4 sm:$0xff]   ;;  %v7268_v54 = vld [vmem:[%s9832_s1 + $0xbc0] ss:$12 sps:$4 sm:$0xff]  }
 0x13f   :  { %6465 = vmatpush3.bf16.msra.mxu1 %v7198_v56  ;;  %v7269_v56 = vld [vmem:[%s9832_s1 + $0xb00] ss:$12 sps:$4 sm:$0xff]  }
 0x140   :  { %4516 = vmatpush1.bf16.msra.mxu0 %v7194_v3  ;;  %6472 = vmatprep.subr.bf16.mxu1 %v7203_v59  ;;  %v7265_v3 = vld [vmem:[%s9832_s1 + $0xbb8] ss:$12 sps:$4 sm:$0xff]  }
 0x141   :  { %4526 = vmatprep.subr.bf16.mxu0 %v7202_v57  ;;  %v7272_v57 = vld [vmem:[%s9832_s1 + $0xbd4] ss:$12 sps:$4 sm:$0xff]   ;;  %v7273_v59 = vld [vmem:[%s9832_s1 + $0xbd8] ss:$12 sps:$4 sm:$0xff]  }
 0x142   :  { %5005 = vmatmul.mubr.bf16.vlgmr.msra.gmra.mrb[24].mxu1 %v8535_v55  ;;  %v7213_v55 = vld [vmem:[%s9832_s1 + $0x9f8] ss:$12 sps:$4 sm:$0xff]  }
 0x143   :  { %4518 = vmatmul.mubr.bf16.vlgmr.msra.gmra.mrb[0].mxu0 %v8740_v61  ;;  %6473 = vmatpush3.bf16.msra.mxu1 %v7204_v30  ;;  %v8927_v30 = vld [vmem:[%s9831_s0 + $0x10] sm:$0xff] }
 0x144   :  { %4527 = vmatpush1.bf16.msra.mxu0 %v7200_v60  ;;  %6474 = vmatprep.subr.bf16.mxu1 %v7208_v0  ;;  %v7270_v60 = vld [vmem:[%s9832_s1 + $0xbd0] ss:$12 sps:$4 sm:$0xff]   ;;  %v7277_v0 = vld [vmem:[%s9832_s1 + $0xbec] ss:$12 sps:$4 sm:$0xff]  }
 0x145   :  { %4528 = vmatprep.subr.bf16.mxu0 %v7207_v63  ;;  %5044 = vmatprep.mubr.bf16.mxu1 %v8547_v58  ;;  %v7218_v58 = vld [vmem:[%s9832_s1 + $0xa10] ss:$12 sps:$4 sm:$0xff]   ;;  %v7274_v63 = vld [vmem:[%s9832_s1 + $0xb18] ss:$12 sps:$4 sm:$0xff]  }
 0x146   :  { %4558 = vmatprep.mubr.bf16.mxu0 %v8753_v46 }
 0x147   :  { %6475 = vmatpush3.bf16.msra.mxu1 %v7209_v53  ;;  %v8943_v53 = vrot.slane %v8927_v30, %v7806_v49 }
 0x148   :  { %4529 = vmatpush1.bf16.msra.mxu0 %v7205_v1  ;;  %6476 = vmatprep.subr.bf16.mxu1 %v7213_v55  ;;  %v7275_v1 = vld [vmem:[%s9832_s1 + $0xbe8] ss:$12 sps:$4 sm:$0xff]   ;;  %v7282_v55 = vld [vmem:[%s9832_s1 + $0xc04] ss:$12 sps:$4 sm:$0xff]  }
 0x149   :  { %4530 = vmatprep.subr.bf16.mxu0 %v7212_v2  ;;  %v7279_v2 = vld [vmem:[%s9832_s1 + $0xb30] ss:$12 sps:$4 sm:$0xff]  }
 0x14b   :  { %6477 = vmatpush3.bf16.msra.mxu1 %v7214_v5  ;;  %v966_v5 = vcombine.high %v8943_v53, %v8943_v53 }
 0x14c   :  { %4531 = vmatpush1.bf16.msra.mxu0 %v7210_v4  ;;  %6478 = vmatprep.subr.bf16.mxu1 %v7218_v58  ;;  %v7283_v4 = vld [vmem:[%s9832_s1 + $0xcc8] ss:$12 sps:$4 sm:$0xff]   ;;  %v948_v58 = vcombine.high %v8740_v61, %v8740_v61 }
 0x14d   :  { %4532 = vmatprep.subr.bf16.mxu0 %v7217_v6  ;;  %v7280_v6 = vld [vmem:[%s9832_s1 + $0xc00] ss:$12 sps:$4 sm:$0xff]  }
 0x14f   :  { %6479 = vmatpush3.bf16.msra.mxu1 %v7219_v8  ;;  %v7287_v8 = vld [vmem:[%s9832_s1 + $0xc1c] ss:$12 sps:$4 sm:$0xff]  }
 0x150   :  { %4533 = vmatpush1.bf16.msra.mxu0 %v7215_v7  ;;  %6480 = vmatprep.subr.bf16.mxu1 %v7223_v10  ;;  %v7284_v7 = vld [vmem:[%s9832_s1 + $0xc08] ss:$12 sps:$4 sm:$0xff]   ;;  %v8971_v10 = vrot.slane %v966_v5, %v7806_v49  ;;  %v7333_v5 = vld [vmem:[%s9832_s1 + $0xe78] ss:$12 sps:$4 sm:$0xff]  }
 0x151   :  { %4534 = vmatprep.subr.bf16.mxu0 %v7222_v9  ;;  %v7288_v9 = vld [vmem:[%s9832_s1 + $0xce0] ss:$12 sps:$4 sm:$0xff]  }
 0x153   :  { %6481 = vmatpush3.bf16.msra.mxu1 %v7224_v17  ;;  %v7292_v17 = vld [vmem:[%s9832_s1 + $0xc34] ss:$12 sps:$4 sm:$0xff]  }
 0x154   :  { %4535 = vmatpush1.bf16.msra.mxu0 %v7220_v11  ;;  %6482 = vmatprep.subr.bf16.mxu1 %v7228_v13  ;;  %v7289_v11 = vld [vmem:[%s9832_s1 + $0xc20] ss:$12 sps:$4 sm:$0xff]   ;;  %v7290_v13 = vld [vmem:[%s9832_s1 + $0xc30] ss:$12 sps:$4 sm:$0xff]  }
 0x155   :  { %4536 = vmatprep.subr.bf16.mxu0 %v7227_v12  ;;  %v8825_v21 = vpop.f32.mrb[0].mxu1  ;;  %v7293_v12 = vld [vmem:[%s9832_s1 + $0xcf8] ss:$12 sps:$4 sm:$0xff]  }
 0x156   :  { %v8833_v25 = vpop.f32.mrb[1].mxu1 }
 0x157   :  { %6483 = vmatpush3.bf16.msra.mxu1 %v7229_v15  ;;  %v4318_v23 = vpop.f32.mrb[2].mxu1  ;;  %v7297_v15 = vld [vmem:[%s9832_s1 + $0xc4c] ss:$12 sps:$4 sm:$0xff]  }
 0x158   :  { %4537 = vmatpush1.bf16.msra.mxu0 %v7225_v14  ;;  %6484 = vmatprep.subr.bf16.mxu1 %v7233_v16  ;;  %v4319_v26 = vpop.f32.mrb[3].mxu1  ;;  %v7294_v14 = vld [vmem:[%s9832_s1 + $0xc38] ss:$12 sps:$4 sm:$0xff]   ;;  %v7295_v16 = vld [vmem:[%s9832_s1 + $0xc48] ss:$12 sps:$4 sm:$0xff]  }
 0x159   :  { %4538 = vmatprep.subr.bf16.mxu0 %v7232_v22  ;;  %v7298_v22 = vld [vmem:[%s9832_s1 + $0xd10] ss:$12 sps:$4 sm:$0xff]   ;;  %v7300_v23 = vld [vmem:[%s9832_s1 + $0xc60] ss:$12 sps:$4 sm:$0xff]   ;;  %v7304_v26 = vld [vmem:[%s9832_s1 + $0xc68] ss:$12 sps:$4 sm:$0xff]  }
 0x15b   :  { %6485 = vmatpush3.bf16.msra.mxu1 %v7234_v20 }
 0x15c   :  { %4539 = vmatpush1.bf16.msra.mxu0 %v7230_v19  ;;  %6486 = vmatprep.subr.bf16.mxu1 %v7238_v24  ;;  %v7299_v19 = vld [vmem:[%s9832_s1 + $0xc50] ss:$12 sps:$4 sm:$0xff]   ;;  %v7303_v24 = vld [vmem:[%s9832_s1 + $0xd28] ss:$12 sps:$4 sm:$0xff]  }
 0x15d   :  { %4540 = vmatprep.subr.bf16.mxu0 %v7237_v18  ;;  %v7302_v18 = vld [vmem:[%s9832_s1 + $0xc64] ss:$12 sps:$4 sm:$0xff]  }
 0x15f   :  { %6487 = vmatpush3.bf16.msra.mxu1 %v7239_v28  ;;  %v844_v28 = vsub.s32 2, %v7788_v42 }
 0x160   :  { %4541 = vmatpush1.bf16.msra.mxu0 %v7235_v27  ;;  %6494 = vmatprep.subr.bf16.mxu1 %v7243_v41  ;;  %v7307_v27 = vld [vmem:[%s9832_s1 + $0xc7c] ss:$12 sps:$4 sm:$0xff]   ;;  %v7308_v41 = vld [vmem:[%s9832_s1 + $0xd40] ss:$12 sps:$4 sm:$0xff]  }
 0x161   :  { %4542 = vmatprep.subr.bf16.mxu0 %v7242_v31 }
 0x162   :  { %5045 = vmatmul.mubr.bf16.vlgmr.msra.gmra.mrb[28].mxu1 %v8740_v61  ;;  %v7285_v61 = vld [vmem:[%s9832_s1 + $0xc18] ss:$12 sps:$4 sm:$0xff]  }
 0x163   :  { %6495 = vmatpush3.bf16.msra.mxu1 %v7244_v33  ;;  %5084 = vmatprep.mubr.bf16.mxu1 %v8753_v46  ;;  %v7278_v46 = vld [vmem:[%s9832_s1 + $0xbf0] ss:$12 sps:$4 sm:$0xff]   ;;  %v7305_v33 = vld [vmem:[%s9832_s1 + $0xc78] ss:$12 sps:$4 sm:$0xff]  }
 0x164   :  { %4543 = vmatpush1.bf16.msra.mxu0 %v7240_v32  ;;  %6496 = vmatprep.subr.bf16.mxu1 %v7248_v35 }
 0x165   :  { %4544 = vmatprep.subr.bf16.mxu0 %v7247_v34  ;;  %v832_v34 = vld [vmem:[%s9833_s2] sm:$0x7] }
 0x167   :  { %6497 = vmatpush3.bf16.msra.mxu1 %v7249_v36  ;;  %v7312_v36 = vld [vmem:[%s9832_s1 + $0xc94] ss:$12 sps:$4 sm:$0xff]  }
 0x168   :  { %4545 = vmatpush1.bf16.msra.mxu0 %v7245_v48  ;;  %6498 = vmatprep.subr.bf16.mxu1 %v7253_v38  ;;  %v7309_v48 = vld [vmem:[%s9832_s1 + $0xc80] ss:$12 sps:$4 sm:$0xff]   ;;  %v7313_v38 = vld [vmem:[%s9832_s1 + $0xd58] ss:$12 sps:$4 sm:$0xff]  }
 0x169   :  { %4546 = vmatprep.subr.bf16.mxu0 %v7252_v37  ;;  %v845_v37 = vrot.slane %v832_v34, %v844_v28 }
 0x16b   :  { %6499 = vmatpush3.bf16.msra.mxu1 %v7254_v40  ;;  %v7310_v40 = vld [vmem:[%s9832_s1 + $0xc90] ss:$12 sps:$4 sm:$0xff]  }
 0x16c   :  { %4547 = vmatpush1.bf16.msra.mxu0 %v7250_v39  ;;  %6500 = vmatprep.subr.bf16.mxu1 %v7258_v44 }
 0x16d   :  { %4548 = vmatprep.subr.bf16.mxu0 %v7257_v62  ;;  %v7314_v62 = vld [vmem:[%s9832_s1 + $0xc98] ss:$12 sps:$4 sm:$0xff]  }
 0x16f   :  { %6501 = vmatpush3.bf16.msra.mxu1 %v7259_v47 }
 0x170   :  { %4549 = vmatpush1.bf16.msra.mxu0 %v7255_v45  ;;  %6502 = vmatprep.subr.bf16.mxu1 %v7263_v50  ;;  %v7317_v45 = vld [vmem:[%s9832_s1 + $0xcac] ss:$12 sps:$4 sm:$0xff]  }
 0x171   :  { %4550 = vmatprep.subr.bf16.mxu0 %v7262_v43  ;;  %v7318_v43 = vld [vmem:[%s9832_s1 + $0xd70] ss:$12 sps:$4 sm:$0xff]  }
 0x173   :  { %6503 = vmatpush3.bf16.msra.mxu1 %v7264_v52  ;;  %v7315_v52 = vld [vmem:[%s9832_s1 + $0xca8] ss:$12 sps:$4 sm:$0xff]  }
 0x174   :  { %4551 = vmatpush1.bf16.msra.mxu0 %v7260_v51  ;;  %6504 = vmatprep.subr.bf16.mxu1 %v7268_v54  ;;  %v7319_v54 = vld [vmem:[%s9832_s1 + $0xcb0] ss:$12 sps:$4 sm:$0xff]  }
 0x175   :  { %4552 = vmatprep.subr.bf16.mxu0 %v7267_v29  ;;  %v6356_v20 = vpop.f32.mrb[4].mxu1 }
 0x176   :  { %v6357_v31 = vpop.f32.mrb[5].mxu1 }
 0x177   :  { %6505 = vmatpush3.bf16.msra.mxu1 %v7269_v56  ;;  %v6358_v32 = vadd.f32 %v6357_v31, %v6356_v20  ;;  %v6359_v35 = vpop.f32.mrb[6].mxu1  ;;  %v7350_v20 = vld [vmem:[%s9832_s1 + $0xd50] ss:$12 sps:$4 sm:$0xff]  }
 0x178   :  { %4553 = vmatpush1.bf16.msra.mxu0 %v7265_v3  ;;  %6506 = vmatprep.subr.bf16.mxu1 %v7273_v59  ;;  %v6360_v39 = vpop.f32.mrb[7].mxu1  ;;  %v7322_v3 = vld [vmem:[%s9832_s1 + $0xcc4] ss:$12 sps:$4 sm:$0xff]  }
 0x179   :  { %4554 = vmatprep.subr.bf16.mxu0 %v7272_v57  ;;  %v4807_v47 = vadd.f32 %v6358_v32, %v845_v37  ;;  %v7323_v57 = vld [vmem:[%s9832_s1 + $0xe48] ss:$12 sps:$4 sm:$0xff]   ;;  %v7360_v37 = vld [vmem:[%s9832_s1 + $0xd80] ss:$12 sps:$4 sm:$0xff]  }
 0x17b   :  { %6507 = vmatpush3.bf16.msra.mxu1 %v7274_v63  ;;  %v9070_v63 = vrot.slane %v8943_v53, %v7806_v49  ;;  %v9083_v53 = vcombine.high %v8971_v10, %v8971_v10 }
 0x17c   :  { %4555 = vmatpush1.bf16.msra.mxu0 %v7270_v60  ;;  %6508 = vmatprep.subr.bf16.mxu1 %v7278_v46  ;;  %v7320_v60 = vld [vmem:[%s9832_s1 + $0xcc0] ss:$12 sps:$4 sm:$0xff]   ;;  %v7327_v46 = vld [vmem:[%s9832_s1 + $0xcdc] ss:$12 sps:$4 sm:$0xff]  }
 0x17d   :  { %4556 = vmatprep.subr.bf16.mxu0 %v7277_v0  ;;  %v7324_v0 = vld [vmem:[%s9832_s1 + $0xd88] ss:$12 sps:$4 sm:$0xff]  }
 0x17f   :  { %6509 = vmatpush3.bf16.msra.mxu1 %v7279_v2  ;;  %v7325_v2 = vld [vmem:[%s9832_s1 + $0xcd8] ss:$12 sps:$4 sm:$0xff]  }
 0x180   :  { %4557 = vmatpush1.bf16.msra.mxu0 %v7275_v1  ;;  %6516 = vmatprep.subr.bf16.mxu1 %v7283_v4  ;;  %v7328_v1 = vld [vmem:[%s9832_s1 + $0xe60] ss:$12 sps:$4 sm:$0xff]  }
 0x181   :  { %4567 = vmatprep.subr.bf16.mxu0 %v7282_v55  ;;  %v7329_v55 = vld [vmem:[%s9832_s1 + $0xda0] ss:$12 sps:$4 sm:$0xff]  }
 0x182   :  { %5085 = vmatmul.mubr.bf16.vlgmr.msra.gmra.mrb[32].mxu1 %v948_v58  ;;  %v7332_v4 = vld [vmem:[%s9832_s1 + $0xcf4] ss:$12 sps:$4 sm:$0xff]  }
 0x183   :  { %4559 = vmatmul.mubr.bf16.vlgmr.msra.gmra.mrb[0].mxu0 %v948_v58  ;;  %6517 = vmatpush3.bf16.msra.mxu1 %v7284_v7  ;;  %v7334_v58 = vld [vmem:[%s9832_s1 + $0xdb8] ss:$12 sps:$4 sm:$0xff]  }
 0x184   :  { %4568 = vmatpush1.bf16.msra.mxu0 %v7280_v6  ;;  %6518 = vmatprep.subr.bf16.mxu1 %v7288_v9  ;;  %v7330_v6 = vld [vmem:[%s9832_s1 + $0xcf0] ss:$12 sps:$4 sm:$0xff]   ;;  %v7337_v7 = vld [vmem:[%s9832_s1 + $0xd0c] ss:$12 sps:$4 sm:$0xff]   ;;  %v7335_v9 = vld [vmem:[%s9832_s1 + $0xd08] ss:$12 sps:$4 sm:$0xff]  }
 0x185   :  { %4569 = vmatprep.subr.bf16.mxu0 %v7287_v8  ;;  %5124 = vmatprep.mubr.bf16.mxu1 %v8971_v10  ;;  %v7338_v8 = vld [vmem:[%s9832_s1 + $0xe90] ss:$12 sps:$4 sm:$0xff]  }
 0x186   :  { %4599 = vmatprep.mubr.bf16.mxu0 %v8971_v10  ;;  %v7339_v10 = vld [vmem:[%s9832_s1 + $0xdd0] ss:$12 sps:$4 sm:$0xff]  }
 0x187   :  { %6519 = vmatpush3.bf16.msra.mxu1 %v7289_v11  ;;  %v7343_v11 = vld [vmem:[%s9832_s1 + $0xea8] ss:$12 sps:$4 sm:$0xff]  }
 0x188   :  { %4570 = vmatpush1.bf16.msra.mxu0 %v7285_v61  ;;  %6520 = vmatprep.subr.bf16.mxu1 %v7293_v12  ;;  %v7342_v61 = vld [vmem:[%s9832_s1 + $0xd24] ss:$12 sps:$4 sm:$0xff]   ;;  %v7344_v12 = vld [vmem:[%s9832_s1 + $0xde8] ss:$12 sps:$4 sm:$0xff]  }
 0x189   :  { %4571 = vmatprep.subr.bf16.mxu0 %v7292_v17  ;;  %v7340_v17 = vld [vmem:[%s9832_s1 + $0xd20] ss:$12 sps:$4 sm:$0xff]  }
 0x18b   :  { %6521 = vmatpush3.bf16.msra.mxu1 %v7294_v14  ;;  %v7348_v14 = vld [vmem:[%s9832_s1 + $0xec0] ss:$12 sps:$4 sm:$0xff]  }
 0x18c   :  { %4572 = vmatpush1.bf16.msra.mxu0 %v7290_v13  ;;  %6522 = vmatprep.subr.bf16.mxu1 %v7298_v22  ;;  %v7347_v13 = vld [vmem:[%s9832_s1 + $0xd3c] ss:$12 sps:$4 sm:$0xff]   ;;  %v7349_v22 = vld [vmem:[%s9832_s1 + $0xe00] ss:$12 sps:$4 sm:$0xff]  }
 0x18d   :  { %4573 = vmatprep.subr.bf16.mxu0 %v7297_v15  ;;  %v7345_v15 = vld [vmem:[%s9832_s1 + $0xd38] ss:$12 sps:$4 sm:$0xff]  }
 0x18f   :  { %6523 = vmatpush3.bf16.msra.mxu1 %v7299_v19  ;;  %v7353_v19 = vld [vmem:[%s9832_s1 + $0xed8] ss:$12 sps:$4 sm:$0xff]  }
 0x190   :  { %4574 = vmatpush1.bf16.msra.mxu0 %v7295_v16  ;;  %6524 = vmatprep.subr.bf16.mxu1 %v7303_v24  ;;  %v7352_v16 = vld [vmem:[%s9832_s1 + $0xd54] ss:$12 sps:$4 sm:$0xff]   ;;  %v951_v24 = vcombine.high %v8927_v30, %v8927_v30 }
 0x191   :  { %4575 = vmatprep.subr.bf16.mxu0 %v7302_v18  ;;  %v7354_v18 = vld [vmem:[%s9832_s1 + $0xe18] ss:$12 sps:$4 sm:$0xff]   ;;  %v7355_v30 = vld [vmem:[%s9832_s1 + $0xd68] ss:$12 sps:$4 sm:$0xff]  }
 0x192   :  { %v9168_v34 = vrot.slane %v951_v24, %v7806_v49 }
 0x193   :  { %6525 = vmatpush3.bf16.msra.mxu1 %v7304_v26  ;;  %v7357_v26 = vld [vmem:[%s9832_s1 + $0xd6c] ss:$12 sps:$4 sm:$0xff]  }
 0x194   :  { %4576 = vmatpush1.bf16.msra.mxu0 %v7300_v23  ;;  %6526 = vmatprep.subr.bf16.mxu1 %v7308_v41  ;;  %v7358_v41 = vld [vmem:[%s9832_s1 + $0xef0] ss:$12 sps:$4 sm:$0xff]   ;;  %v967_v39 = vcombine.high %v9168_v34, %v9168_v34 }
 0x195   :  { %4577 = vmatprep.subr.bf16.mxu0 %v7307_v27  ;;  %v6378_v44 = vpop.f32.mrb[8].mxu1 }
 0x196   :  { %v6379_v50 = vpop.f32.mrb[9].mxu1 }
 0x197   :  { %6527 = vmatpush3.bf16.msra.mxu1 %v7309_v48  ;;  %v6380_v51 = vadd.f32 %v6379_v50, %v6378_v44  ;;  %v6381_v29 = vpop.f32.mrb[10].mxu1  ;;  %v7362_v48 = vld [vmem:[%s9832_s1 + $0xd84] ss:$12 sps:$4 sm:$0xff]   ;;  %v7368_v44 = vld [vmem:[%s9832_s1 + $0xfe0] ss:$12 sps:$4 sm:$0xff]  }
 0x198   :  { %4578 = vmatpush1.bf16.msra.mxu0 %v7305_v33  ;;  %6528 = vmatprep.subr.bf16.mxu1 %v7313_v38  ;;  %v6382_v59 = vpop.f32.mrb[11].mxu1  ;;  %v7359_v33 = vld [vmem:[%s9832_s1 + $0xe30] ss:$12 sps:$4 sm:$0xff]   ;;  %v7364_v38 = vld [vmem:[%s9832_s1 + $0xf08] ss:$12 sps:$4 sm:$0xff]  }
 0x199   :  { %4579 = vmatprep.subr.bf16.mxu0 %v7312_v36  ;;  %v9060_v56 = vadd.f32 %v6380_v51, %v4807_v47  ;;  %v7363_v36 = vld [vmem:[%s9832_s1 + $0xfc8] ss:$12 sps:$4 sm:$0xff]   ;;  %v7369_v47 = vld [vmem:[%s9832_s1 + $0xf20] ss:$12 sps:$4 sm:$0xff]   ;;  %v7373_v51 = vld [vmem:[%s9832_s1 + $0xff8] ss:$12 sps:$4 sm:$0xff]  }
 0x19a   :  { %v7372_v50 = vld [vmem:[%s9832_s1 + $0xdb4] ss:$12 sps:$4 sm:$0xff]   ;;  %v7374_v29 = vld [vmem:[%s9832_s1 + $0xf38] ss:$12 sps:$4 sm:$0xff]  }
 0x19b   :  { %6529 = vmatpush3.bf16.msra.mxu1 %v7314_v62  ;;  %v7367_v62 = vld [vmem:[%s9832_s1 + $0xd9c] ss:$12 sps:$4 sm:$0xff]   ;;  %v7382_v59 = vld [vmem:[%s9832_s1 + $0xde4] ss:$12 sps:$4 sm:$0xff]  }
 0x19c   :  { %4580 = vmatpush1.bf16.msra.mxu0 %v7310_v40  ;;  %6530 = vmatprep.subr.bf16.mxu1 %v7318_v43  ;;  %v9189_v40 = vcombine.high %v9070_v63, %v9070_v63  ;;  %v9204_v43 = vrot.slane %v967_v39, %v7806_v49 }
 0x19d   :  { %4581 = vmatprep.subr.bf16.mxu0 %v7317_v45  ;;  %v7365_v45 = vld [vmem:[%s9832_s1 + $0xd98] ss:$12 sps:$4 sm:$0xff]  }
 0x19f   :  { %6531 = vmatpush3.bf16.msra.mxu1 %v7319_v54  ;;  %v7377_v54 = vld [vmem:[%s9832_s1 + $0xdcc] ss:$12 sps:$4 sm:$0xff]  }
 0x1a0   :  { %4582 = vmatpush1.bf16.msra.mxu0 %v7315_v52  ;;  %6538 = vmatprep.subr.bf16.mxu1 %v7323_v57  ;;  %v7370_v52 = vld [vmem:[%s9832_s1 + $0xdb0] ss:$12 sps:$4 sm:$0xff]  }
 0x1a1   :  { %4583 = vmatprep.subr.bf16.mxu0 %v7322_v3  ;;  %v7378_v3 = vld [vmem:[%s9832_s1 + $0x1010] ss:$12 sps:$4 sm:$0xff]  }
 0x1a2   :  { %5125 = vmatmul.mubr.bf16.vlgmr.msra.gmra.mrb[36].mxu1 %v9070_v63  ;;  %v7379_v57 = vld [vmem:[%s9832_s1 + $0xf50] ss:$12 sps:$4 sm:$0xff]  }
 0x1a3   :  { %6539 = vmatpush3.bf16.msra.mxu1 %v7324_v0  ;;  %5164 = vmatprep.mubr.bf16.mxu1 %v9083_v53  ;;  %v7384_v0 = vld [vmem:[%s9832_s1 + $0xf68] ss:$12 sps:$4 sm:$0xff]  }
 0x1a4   :  { %4584 = vmatpush1.bf16.msra.mxu0 %v7320_v60  ;;  %6540 = vmatprep.subr.bf16.mxu1 %v7328_v1  ;;  %v7383_v60 = vld [vmem:[%s9832_s1 + $0x1028] ss:$12 sps:$4 sm:$0xff]   ;;  %v7388_v1 = vld [vmem:[%s9832_s1 + $0x1040] ss:$12 sps:$4 sm:$0xff]  }
 0x1a5   :  { %4585 = vmatprep.subr.bf16.mxu0 %v7327_v46  ;;  %v7387_v46 = vld [vmem:[%s9832_s1 + $0xdfc] ss:$12 sps:$4 sm:$0xff]  }
 0x1a7   :  { %6541 = vmatpush3.bf16.msra.mxu1 %v7329_v55  ;;  %v7392_v55 = vld [vmem:[%s9832_s1 + $0xe14] ss:$12 sps:$4 sm:$0xff]  }
 0x1a8   :  { %4586 = vmatpush1.bf16.msra.mxu0 %v7325_v2  ;;  %6542 = vmatprep.subr.bf16.mxu1 %v7333_v5  ;;  %v7389_v2 = vld [vmem:[%s9832_s1 + $0xf80] ss:$12 sps:$4 sm:$0xff]   ;;  %v7390_v5 = vld [vmem:[%s9832_s1 + $0xe10] ss:$12 sps:$4 sm:$0xff]  }
 0x1a9   :  { %4587 = vmatprep.subr.bf16.mxu0 %v7332_v4  ;;  %v7393_v4 = vld [vmem:[%s9832_s1 + $0x1058] ss:$12 sps:$4 sm:$0xff]  }
 0x1ab   :  { %6543 = vmatpush3.bf16.msra.mxu1 %v7334_v58 }
 0x1ac   :  { %4588 = vmatpush1.bf16.msra.mxu0 %v7330_v6  ;;  %6544 = vmatprep.subr.bf16.mxu1 %v7338_v8  ;;  %v7394_v6 = vld [vmem:[%s9832_s1 + $0xf98] ss:$12 sps:$4 sm:$0xff]  }
 0x1ad   :  { %4589 = vmatprep.subr.bf16.mxu0 %v7337_v7  ;;  %v7397_v7 = vld [vmem:[%s9832_s1 + $0xe2c] ss:$12 sps:$4 sm:$0xff]  }
 0x1af   :  { %6545 = vmatpush3.bf16.msra.mxu1 %v7339_v10 }
 0x1b0   :  { %4590 = vmatpush1.bf16.msra.mxu0 %v7335_v9  ;;  %6546 = vmatprep.subr.bf16.mxu1 %v7343_v11 }
 0x1b1   :  { %4591 = vmatprep.subr.bf16.mxu0 %v7342_v61  ;;  %v7398_v61 = vld [vmem:[%s9832_s1 + $0x1070] ss:$12 sps:$4 sm:$0xff]  }
 0x1b3   :  { %6547 = vmatpush3.bf16.msra.mxu1 %v7344_v12  ;;  %v7399_v12 = vld [vmem:[%s9832_s1 + $0xfb0] ss:$12 sps:$4 sm:$0xff]  }
 0x1b4   :  { %4592 = vmatpush1.bf16.msra.mxu0 %v7340_v17  ;;  %6548 = vmatprep.subr.bf16.mxu1 %v7348_v14  ;;  %v7395_v17 = vld [vmem:[%s9832_s1 + $0xe28] ss:$12 sps:$4 sm:$0xff]   ;;  %v7403_v14 = vld [vmem:[%s9832_s1 + $0xe44] ss:$12 sps:$4 sm:$0xff]  }
 0x1b5   :  { %4593 = vmatprep.subr.bf16.mxu0 %v7347_v13  ;;  %v6400_v23 = vpop.f32.mrb[12].mxu1 }
 0x1b6   :  { %v6401_v27 = vpop.f32.mrb[13].mxu1 }
 0x1b7   :  { %6549 = vmatpush3.bf16.msra.mxu1 %v7349_v22  ;;  %v6402_v28 = vadd.f32 %v6401_v27, %v6400_v23  ;;  %v6403_v31 = vpop.f32.mrb[14].mxu1  ;;  %v9293_v22 = vrot.slane %v9168_v34, %v7806_v49 }
 0x1b8   :  { %4594 = vmatpush1.bf16.msra.mxu0 %v7345_v15  ;;  %6550 = vmatprep.subr.bf16.mxu1 %v7353_v19  ;;  %v6404_v32 = vpop.f32.mrb[15].mxu1  ;;  %v7404_v15 = vld [vmem:[%s9832_s1 + $0x1148] ss:$12 sps:$4 sm:$0xff]  }
 0x1b9   :  { %4595 = vmatprep.subr.bf16.mxu0 %v7352_v16  ;;  %v9171_v35 = vadd.f32 %v6402_v28, %v9060_v56  ;;  %v7375_v56 = vld [vmem:[%s9832_s1 + $0xdc8] ss:$12 sps:$4 sm:$0xff]   ;;  %v7401_v16 = vld [vmem:[%s9832_s1 + $0xe40] ss:$12 sps:$4 sm:$0xff]  }
 0x1ba   :  { %v7405_v19 = vld [vmem:[%s9832_s1 + $0x1088] ss:$12 sps:$4 sm:$0xff]  }
 0x1bb   :  { %6551 = vmatpush3.bf16.msra.mxu1 %v7354_v18  ;;  %v7409_v18 = vld [vmem:[%s9832_s1 + $0x1160] ss:$12 sps:$4 sm:$0xff]  }
 0x1bc   :  { %4596 = vmatpush1.bf16.msra.mxu0 %v7350_v20  ;;  %6552 = vmatprep.subr.bf16.mxu1 %v7358_v41  ;;  %v7408_v20 = vld [vmem:[%s9832_s1 + $0xe5c] ss:$12 sps:$4 sm:$0xff]  }
 0x1bd   :  { %4597 = vmatprep.subr.bf16.mxu0 %v7357_v26 }
 0x1bf   :  { %6553 = vmatpush3.bf16.msra.mxu1 %v7359_v33 }
 0x1c0   :  { %4598 = vmatpush1.bf16.msra.mxu0 %v7355_v30  ;;  %6560 = vmatprep.subr.bf16.mxu1 %v7363_v36 }
 0x1c1   :  { %4608 = vmatprep.subr.bf16.mxu0 %v7362_v48 }
 0x1c2   :  { %5165 = vmatmul.mubr.bf16.vlgmr.msra.gmra.mrb[40].mxu1 %v9189_v40 }
 0x1c3   :  { %4600 = vmatmul.mubr.bf16.vlgmr.msra.gmra.mrb[0].mxu0 %v9070_v63  ;;  %6561 = vmatpush3.bf16.msra.mxu1 %v7364_v38  ;;  %v7380_v63 = vld [vmem:[%s9832_s1 + $0xde0] ss:$12 sps:$4 sm:$0xff]  }
 0x1c4   :  { %4609 = vmatpush1.bf16.msra.mxu0 %v7360_v37  ;;  %6562 = vmatprep.subr.bf16.mxu1 %v7368_v44 }
 0x1c5   :  { %4610 = vmatprep.subr.bf16.mxu0 %v7367_v62  ;;  %5204 = vmatprep.mubr.bf16.mxu1 %v9204_v43 }
 0x1c6   :  { %4640 = vmatprep.mubr.bf16.mxu0 %v9083_v53  ;;  %v7385_v53 = vld [vmem:[%s9832_s1 + $0xdf8] ss:$12 sps:$4 sm:$0xff]  }
 0x1c7   :  { %6563 = vmatpush3.bf16.msra.mxu1 %v7369_v47 }
 0x1c8   :  { %4611 = vmatpush1.bf16.msra.mxu0 %v7365_v45  ;;  %6564 = vmatprep.subr.bf16.mxu1 %v7373_v51 }
 0x1c9   :  { %4612 = vmatprep.subr.bf16.mxu0 %v7372_v50 }
 0x1cb   :  { %6565 = vmatpush3.bf16.msra.mxu1 %v7374_v29 }
 0x1cc   :  { %4613 = vmatpush1.bf16.msra.mxu0 %v7370_v52  ;;  %6566 = vmatprep.subr.bf16.mxu1 %v7378_v3 }
 0x1cd   :  { %4614 = vmatprep.subr.bf16.mxu0 %v7377_v54 }
 0x1cf   :  { %6567 = vmatpush3.bf16.msra.mxu1 %v7379_v57 }
 0x1d0   :  { %4615 = vmatpush1.bf16.msra.mxu0 %v7375_v56  ;;  %6568 = vmatprep.subr.bf16.mxu1 %v7383_v60 }
 0x1d1   :  { %4616 = vmatprep.subr.bf16.mxu0 %v7382_v59 }
 0x1d3   :  { %6569 = vmatpush3.bf16.msra.mxu1 %v7384_v0 }
 0x1d4   :  { %4617 = vmatpush1.bf16.msra.mxu0 %v7380_v63  ;;  %6570 = vmatprep.subr.bf16.mxu1 %v7388_v1 }
 0x1d5   :  { %4618 = vmatprep.subr.bf16.mxu0 %v7387_v46  ;;  %v6422_v58 = vpop.f32.mrb[16].mxu1 }
 0x1d6   :  { %v6423_v8 = vpop.f32.mrb[17].mxu1 }
 0x1d7   :  { %6571 = vmatpush3.bf16.msra.mxu1 %v7389_v2  ;;  %v6424_v9 = vadd.f32 %v6423_v8, %v6422_v58  ;;  %v6425_v10 = vpop.f32.mrb[18].mxu1 }
 0x1d8   :  { %4619 = vmatpush1.bf16.msra.mxu0 %v7385_v53  ;;  %6572 = vmatprep.subr.bf16.mxu1 %v7393_v4  ;;  %v6426_v11 = vpop.f32.mrb[19].mxu1 }
 0x1d9   :  { %4620 = vmatprep.subr.bf16.mxu0 %v7392_v55  ;;  %v9283_v13 = vadd.f32 %v6424_v9, %v9171_v35 }
 0x1db   :  { %6573 = vmatpush3.bf16.msra.mxu1 %v7394_v6 }
 0x1dc   :  { %4621 = vmatpush1.bf16.msra.mxu0 %v7390_v5  ;;  %6574 = vmatprep.subr.bf16.mxu1 %v7398_v61 }
 0x1dd   :  { %4622 = vmatprep.subr.bf16.mxu0 %v7397_v7 }
 0x1df   :  { %6575 = vmatpush3.bf16.msra.mxu1 %v7399_v12 }
 0x1e0   :  { %4623 = vmatpush1.bf16.msra.mxu0 %v7395_v17  ;;  %6582 = vmatprep.subr.bf16.mxu1 %v7404_v15 }
 0x1e1   :  { %4624 = vmatprep.subr.bf16.mxu0 %v7403_v14 }
 0x1e2   :  { %12 = vsyncpa [#allocation3], 0  ;;  %v9309_v24 = vcombine.high %v9204_v43, %v9204_v43  ;;  %5205 = vmatmul.mubr.bf16.vlgmr.msra.gmra.mrb[44].mxu1 %v9293_v22  ;;  %v7406_v23 = vld [vmem:[%s9832_s1 + $0xe58] ss:$12 sps:$4 sm:$0xff]   ;;  %v7410_v26 = vld [vmem:[%s9832_s1 + $0x10a0] ss:$12 sps:$4 sm:$0xff]   ;;  %v9399_v1 = vcombine.high %v9293_v22, %v9293_v22 }
 0x1e3   :  { %6583 = vmatpush3.bf16.msra.mxu1 %v7405_v19  ;;  %v7413_v27 = vld [vmem:[%s9832_s1 + $0xe74] ss:$12 sps:$4 sm:$0xff]   ;;  %v7414_v28 = vld [vmem:[%s9832_s1 + $0x1178] ss:$12 sps:$4 sm:$0xff]   ;;  %v7411_v31 = vld [vmem:[%s9832_s1 + $0xe70] ss:$12 sps:$4 sm:$0xff]  }
 0x1e4   :  { %4625 = vmatpush1.bf16.msra.mxu0 %v7401_v16  ;;  %6584 = vmatprep.subr.bf16.mxu1 %v7409_v18  ;;  %v7415_v41 = vld [vmem:[%s9832_s1 + $0x10b8] ss:$12 sps:$4 sm:$0xff]   ;;  %v7419_v30 = vld [vmem:[%s9832_s1 + $0x1190] ss:$12 sps:$4 sm:$0xff]   ;;  %v7416_v33 = vld [vmem:[%s9832_s1 + $0xe88] ss:$12 sps:$4 sm:$0xff]  }
 0x1e5   :  { %4626 = vmatprep.subr.bf16.mxu0 %v7408_v20  ;;  %5244 = vmatprep.mubr.bf16.mxu1 %v9309_v24  ;;  %v7418_v32 = vld [vmem:[%s9832_s1 + $0xe8c] ss:$12 sps:$4 sm:$0xff]   ;;  %v7420_v34 = vld [vmem:[%s9832_s1 + $0x10d0] ss:$12 sps:$4 sm:$0xff]   ;;  %v7424_v48 = vld [vmem:[%s9832_s1 + $0x11a8] ss:$12 sps:$4 sm:$0xff]  }
 0x1e6   :  { %v7423_v35 = vld [vmem:[%s9832_s1 + $0xea4] ss:$12 sps:$4 sm:$0xff]   ;;  %v7421_v36 = vld [vmem:[%s9832_s1 + $0xea0] ss:$12 sps:$4 sm:$0xff]   ;;  %v7425_v37 = vld [vmem:[%s9832_s1 + $0x10e8] ss:$12 sps:$4 sm:$0xff]  }
 0x1e7   :  { %6585 = vmatpush3.bf16.msra.mxu1 %v7410_v26  ;;  %v7428_v38 = vld [vmem:[%s9832_s1 + $0xebc] ss:$12 sps:$4 sm:$0xff]   ;;  %v7429_v39 = vld [vmem:[%s9832_s1 + $0x11c0] ss:$12 sps:$4 sm:$0xff]   ;;  %v7426_v62 = vld [vmem:[%s9832_s1 + $0xeb8] ss:$12 sps:$4 sm:$0xff]  }
 0x1e8   :  { %4627 = vmatpush1.bf16.msra.mxu0 %v7406_v23  ;;  %6586 = vmatprep.subr.bf16.mxu1 %v7414_v28  ;;  %v7430_v44 = vld [vmem:[%s9832_s1 + $0x1100] ss:$12 sps:$4 sm:$0xff]   ;;  %v7434_v47 = vld [vmem:[%s9832_s1 + $0x11d8] ss:$12 sps:$4 sm:$0xff]   ;;  %v7431_v52 = vld [vmem:[%s9832_s1 + $0xed0] ss:$12 sps:$4 sm:$0xff]  }
 0x1e9   :  { %4628 = vmatprep.subr.bf16.mxu0 %v7413_v27  ;;  %v7433_v45 = vld [vmem:[%s9832_s1 + $0xed4] ss:$12 sps:$4 sm:$0xff]   ;;  %v7435_v29 = vld [vmem:[%s9832_s1 + $0x1118] ss:$12 sps:$4 sm:$0xff]   ;;  %v7439_v57 = vld [vmem:[%s9832_s1 + $0x11f0] ss:$12 sps:$4 sm:$0xff]  }
 0x1ea   :  { %v7438_v56 = vld [vmem:[%s9832_s1 + $0xeec] ss:$12 sps:$4 sm:$0xff]   ;;  %v7436_v63 = vld [vmem:[%s9832_s1 + $0xee8] ss:$12 sps:$4 sm:$0xff]   ;;  %v7440_v0 = vld [vmem:[%s9832_s1 + $0x1130] ss:$12 sps:$4 sm:$0xff]  }
 0x1eb   :  { %6587 = vmatpush3.bf16.msra.mxu1 %v7415_v41  ;;  %v7443_v46 = vld [vmem:[%s9832_s1 + $0xf04] ss:$12 sps:$4 sm:$0xff]   ;;  %v7441_v53 = vld [vmem:[%s9832_s1 + $0xf00] ss:$12 sps:$4 sm:$0xff]   ;;  %v7444_v2 = vld [vmem:[%s9832_s1 + $0x1208] ss:$12 sps:$4 sm:$0xff]  }
 0x1ec   :  { %4629 = vmatpush1.bf16.msra.mxu0 %v7411_v31  ;;  %6588 = vmatprep.subr.bf16.mxu1 %v7419_v30  ;;  %v7627_v55 = vmov 0.0   ;;  %v7447_v4 = vld [vmem:[%s9832_s1 + $0xf1c] ss:$12 sps:$4 sm:$0xff]   ;;  %v7445_v5 = vld [vmem:[%s9832_s1 + $0xf18] ss:$12 sps:$4 sm:$0xff]   ;;  %vm7628_vm0 = vmmov 0  }
 0x1ed   :  { %4630 = vmatprep.subr.bf16.mxu0 %v7418_v32  ;;  %v7448_v6 = vld [vmem:[%s9832_s1 + $0x1220] ss:$12 sps:$4 sm:$0xff]   ;;  %v7452_v7 = vld [vmem:[%s9832_s1 + $0x1238] ss:$12 sps:$4 sm:$0xff]   ;;  %v7456_v9 = vld [vmem:[%s9832_s1 + $0x1250] ss:$12 sps:$4 sm:$0xff]  }
 0x1ee   :  { %v7451_v58 = vld [vmem:[%s9832_s1 + $0xf34] ss:$12 sps:$4 sm:$0xff]   ;;  %v7455_v8 = vld [vmem:[%s9832_s1 + $0xf4c] ss:$12 sps:$4 sm:$0xff]   ;;  %v7459_v10 = vld [vmem:[%s9832_s1 + $0xf64] ss:$12 sps:$4 sm:$0xff]  }
 0x1ef   :  { %6589 = vmatpush3.bf16.msra.mxu1 %v7420_v34  ;;  %v7457_v61 = vld [vmem:[%s9832_s1 + $0xf60] ss:$12 sps:$4 sm:$0xff]   ;;  %v7460_v11 = vld [vmem:[%s9832_s1 + $0x1268] ss:$12 sps:$4 sm:$0xff]   ;;  %v7461_v12 = vld [vmem:[%s9832_s1 + $0xf78] ss:$12 sps:$4 sm:$0xff]  }
 0x1f0   :  { %4631 = vmatpush1.bf16.msra.mxu0 %v7416_v33  ;;  %6590 = vmatprep.subr.bf16.mxu1 %v7424_v48  ;;  %v7463_v17 = vld [vmem:[%s9832_s1 + $0xf7c] ss:$12 sps:$4 sm:$0xff]   ;;  %v7467_v14 = vld [vmem:[%s9832_s1 + $0xf94] ss:$12 sps:$4 sm:$0xff]   ;;  %v7468_v20 = vld [vmem:[%s9832_s1 + $0x1298] ss:$12 sps:$4 sm:$0xff]  }
 0x1f1   :  { %4632 = vmatprep.subr.bf16.mxu0 %v7423_v35  ;;  %v7465_v19 = vld [vmem:[%s9832_s1 + $0xf90] ss:$12 sps:$4 sm:$0xff]   ;;  %v7471_v26 = vld [vmem:[%s9832_s1 + $0xfac] ss:$12 sps:$4 sm:$0xff]   ;;  %v7469_v31 = vld [vmem:[%s9832_s1 + $0xfa8] ss:$12 sps:$4 sm:$0xff]  }
 0x1f2   :  { %v7472_v41 = vld [vmem:[%s9832_s1 + $0x12b0] ss:$12 sps:$4 sm:$0xff]   ;;  %v5705_v32 = vld.sshfl [vmem:[%s9831_s0 + $0x18] sm:$0x1 pattern:$0x75316420] }
 0x1f3   :  { %6591 = vmatpush3.bf16.msra.mxu1 %v7425_v37  ;;  %v7475_v30 = vld [vmem:[%s9832_s1 + $0xfc4] ss:$12 sps:$4 sm:$0xff]   ;;  %v9491_v33 = vrot.slane %v5705_v32, %v7806_v49  ;;  %v7473_v34 = vld [vmem:[%s9832_s1 + $0xfc0] ss:$12 sps:$4 sm:$0xff]   ;;  %v7478_v35 = vld [vmem:[%s9832_s1 + $0xfdc] ss:$12 sps:$4 sm:$0xff]  }
 0x1f4   :  { %4633 = vmatpush1.bf16.msra.mxu0 %v7421_v36  ;;  %6592 = vmatprep.subr.bf16.mxu1 %v7429_v39  ;;  %v7476_v48 = vld [vmem:[%s9832_s1 + $0xfd8] ss:$12 sps:$4 sm:$0xff]   ;;  %v7481_v49 = vld [vmem:[%s9832_s1 + $0xff4] ss:$12 sps:$4 sm:$0xff]   ;;  %v7479_v36 = vld [vmem:[%s9832_s1 + $0xff0] ss:$12 sps:$4 sm:$0xff]  }
 0x1f5   :  { %4634 = vmatprep.subr.bf16.mxu0 %v7428_v38  ;;  %v6444_v50 = vpop.f32.mrb[20].mxu1  ;;  %v7484_v37 = vld [vmem:[%s9832_s1 + $0x100c] ss:$12 sps:$4 sm:$0xff]   ;;  %v7482_v38 = vld [vmem:[%s9832_s1 + $0x1008] ss:$12 sps:$4 sm:$0xff]   ;;  %s7630_s25 = smov [#allocation2]  }
 0x1f6   :  { %v6445_v51 = vpop.f32.mrb[21].mxu1  ;;  %v7487_v39 = vld [vmem:[%s9832_s1 + $0x1024] ss:$12 sps:$4 sm:$0xff]   ;;  %s5697_s26 = sshll.u32 %s7630_s25, 4  ;;  %s5698_s26 = int_to_ptr.vmem [resolvable:$true] %s5697_s26 }
 0x1f7   :  { %6593 = vmatpush3.bf16.msra.mxu1 %v7430_v44  ;;  %v6446_v54 = vadd.f32 %v6445_v51, %v6444_v50  ;;  %v6447_v3 = vpop.f32.mrb[22].mxu1  ;;  %v7490_v44 = vld [vmem:[%s9832_s1 + $0x103c] ss:$12 sps:$4 sm:$0xff]   ;;  %p7607_p1 = scmp.lt.s32.totalorder %s5698_s26, %s5698_s26 }
 0x1f8   :  { %4635 = vmatpush1.bf16.msra.mxu0 %v7426_v62  ;;  %6594 = vmatprep.subr.bf16.mxu1 %v7434_v47  ;;  %v6448_v59 = vpop.f32.mrb[23].mxu1  ;;  %v7485_v62 = vld [vmem:[%s9832_s1 + $0x1020] ss:$12 sps:$4 sm:$0xff]  }
 0x1f9   :  { %4636 = vmatprep.subr.bf16.mxu0 %v7433_v45  ;;  %v9386_v60 = vadd.f32 %v6446_v54, %v9283_v13  ;;  %v7464_v13 = vld [vmem:[%s9832_s1 + $0x1280] ss:$12 sps:$4 sm:$0xff]   ;;  %v7488_v45 = vld [vmem:[%s9832_s1 + $0x1038] ss:$12 sps:$4 sm:$0xff]   ;;  %v7494_v59 = vld [vmem:[%s9832_s1 + $0x1068] ss:$12 sps:$4 sm:$0xff]  }
 0x1fa   :  { %v7493_v47 = vld [vmem:[%s9832_s1 + $0x1054] ss:$12 sps:$4 sm:$0xff]   ;;  %v7496_v3 = vld [vmem:[%s9832_s1 + $0x106c] ss:$12 sps:$4 sm:$0xff]  }
 0x1fb   :  { %6595 = vmatpush3.bf16.msra.mxu1 %v7435_v29  ;;  %v7491_v29 = vld [vmem:[%s9832_s1 + $0x1050] ss:$12 sps:$4 sm:$0xff]  }
 0x1fc   :  { %4637 = vmatpush1.bf16.msra.mxu0 %v7431_v52  ;;  %6596 = vmatprep.subr.bf16.mxu1 %v7439_v57 }
 0x1fd   :  { %4638 = vmatprep.subr.bf16.mxu0 %v7438_v56 }
 0x1ff   :  { %6597 = vmatpush3.bf16.msra.mxu1 %v7440_v0  ;;  %v7502_v0 = vld [vmem:[%s9832_s1 + $0x109c] ss:$12 sps:$4 sm:$0xff]  }
 0x200   :  { %4639 = vmatpush1.bf16.msra.mxu0 %v7436_v63  ;;  %6653 = vmatprep.subr.bf16.mxu1 %v7627_v55  ;;  %v7497_v63 = vld [vmem:[%s9832_s1 + $0x1080] ss:$12 sps:$4 sm:$0xff]  }
 0x201   :  { %4649 = vmatprep.subr.bf16.mxu0 %v7443_v46  ;;  %v7500_v46 = vld [vmem:[%s9832_s1 + $0x1098] ss:$12 sps:$4 sm:$0xff]  }
 0x202   :  { %5245 = vmatmul.mubr.bf16.vlgmr.msra.gmra.mrb[48].mxu1 %v9399_v1 }
 0x203   :  { %4641 = vmatmul.mubr.bf16.vlgmr.msra.gmra.mrb[0].mxu0 %v9189_v40  ;;  %6654 = vmatpush3.bf16.msra.mxu1 %v7444_v2  ;;  %v7449_v40 = vld [vmem:[%s9832_s1 + $0xf30] ss:$12 sps:$4 sm:$0xff]  }
 0x204   :  { %4650 = vmatpush1.bf16.msra.mxu0 %v7441_v53  ;;  %6655 = vmatprep.subr.bf16.mxu1 %v7627_v55  ;;  %v7505_v53 = vld [vmem:[%s9832_s1 + $0x10b4] ss:$12 sps:$4 sm:$0xff]   ;;  %v7503_v2 = vld [vmem:[%s9832_s1 + $0x10b0] ss:$12 sps:$4 sm:$0xff]  }
 0x205   :  { %4651 = vmatprep.subr.bf16.mxu0 %v7447_v4  ;;  %6669 = vmatprep.mubr.msk.bf16.mxu1 %vm7628_vm0, %v7627_v55  ;;  %v7511_v4 = vld [vmem:[%s9832_s1 + $0x10e4] ss:$12 sps:$4 sm:$0xff]  }
 0x206   :  { %4681 = vmatprep.mubr.bf16.mxu0 %v9204_v43  ;;  %v7453_v43 = vld [vmem:[%s9832_s1 + $0xf48] ss:$12 sps:$4 sm:$0xff]  }
 0x207   :  { %6656 = vmatpush3.bf16.msra.mxu1 %v7448_v6  ;;  %v7514_v6 = vld [vmem:[%s9832_s1 + $0x10fc] ss:$12 sps:$4 sm:$0xff]  }
 0x208   :  { %4652 = vmatpush1.bf16.msra.mxu0 %v7445_v5  ;;  %6657 = vmatprep.subr.bf16.mxu1 %v7627_v55  ;;  %v7509_v5 = vld [vmem:[%s9832_s1 + $0x10e0] ss:$12 sps:$4 sm:$0xff]  }
 0x209   :  { %4653 = vmatprep.subr.bf16.mxu0 %v7451_v58  ;;  %v7512_v58 = vld [vmem:[%s9832_s1 + $0x10f8] ss:$12 sps:$4 sm:$0xff]  }
 0x20b   :  { %6658 = vmatpush3.bf16.msra.mxu1 %v7452_v7 }
 0x20c   :  { %4654 = vmatpush1.bf16.msra.mxu0 %v7449_v40  ;;  %6659 = vmatprep.subr.bf16.mxu1 %v7627_v55  ;;  %v7517_v40 = vld [vmem:[%s9832_s1 + $0x1114] ss:$12 sps:$4 sm:$0xff]  }
 0x20d   :  { %4655 = vmatprep.subr.bf16.mxu0 %v7455_v8 }
 0x20f   :  { %6660 = vmatpush3.bf16.msra.mxu1 %v7456_v9  ;;  %v7515_v9 = vld [vmem:[%s9832_s1 + $0x1110] ss:$12 sps:$4 sm:$0xff]  }
 0x210   :  { %4656 = vmatpush1.bf16.msra.mxu0 %v7453_v43  ;;  %6661 = vmatprep.subr.bf16.mxu1 %v7627_v55 }
 0x211   :  { %4657 = vmatprep.subr.bf16.mxu0 %v7459_v10 }
 0x213   :  { %6662 = vmatpush3.bf16.msra.mxu1 %v7460_v11 }
 0x214   :  { %4658 = vmatpush1.bf16.msra.mxu0 %v7457_v61  ;;  %6663 = vmatprep.subr.bf16.mxu1 %v7627_v55  ;;  %v7520_v61 = vld [vmem:[%s9832_s1 + $0x112c] ss:$12 sps:$4 sm:$0xff]  }
 0x215   :  { %4659 = vmatprep.subr.bf16.mxu0 %v7463_v17  ;;  %v6466_v15 = vpop.f32.mrb[24].mxu1 }
 0x216   :  { %v6467_v16 = vpop.f32.mrb[25].mxu1 }
 0x217   :  { %6664 = vmatpush3.bf16.msra.mxu1 %v7464_v13  ;;  %v6468_v18 = vadd.f32 %v6467_v16, %v6466_v15  ;;  %v6469_v23 = vpop.f32.mrb[26].mxu1  ;;  %v7523_v13 = vld [vmem:[%s9832_s1 + $0x1144] ss:$12 sps:$4 sm:$0xff]   ;;  %v7526_v15 = vld [vmem:[%s9832_s1 + $0x115c] ss:$12 sps:$4 sm:$0xff]  }
 0x218   :  { %4660 = vmatpush1.bf16.msra.mxu0 %v7461_v12  ;;  %6665 = vmatprep.subr.bf16.mxu1 %v7627_v55  ;;  %v6470_v27 = vpop.f32.mrb[27].mxu1  ;;  %v7518_v12 = vld [vmem:[%s9832_s1 + $0x1128] ss:$12 sps:$4 sm:$0xff]   ;;  %v7524_v16 = vld [vmem:[%s9832_s1 + $0x1158] ss:$12 sps:$4 sm:$0xff]  }
 0x219   :  { %4661 = vmatprep.subr.bf16.mxu0 %v7467_v14  ;;  %v5007_v28 = vadd.f32 %v6468_v18, %v9386_v60  ;;  %v7499_v60 = vld [vmem:[%s9832_s1 + $0x1084] ss:$12 sps:$4 sm:$0xff]   ;;  %v7521_v14 = vld [vmem:[%s9832_s1 + $0x1140] ss:$12 sps:$4 sm:$0xff]   ;;  %v7530_v23 = vld [vmem:[%s9832_s1 + $0x1188] ss:$12 sps:$4 sm:$0xff]  }
 0x21a   :  { %v7532_v18 = vld [vmem:[%s9832_s1 + $0x118c] ss:$12 sps:$4 sm:$0xff]  }
 0x21b   :  { %6666 = vmatpush3.bf16.msra.mxu1 %v7468_v20  ;;  %v7527_v20 = vld [vmem:[%s9832_s1 + $0x1170] ss:$12 sps:$4 sm:$0xff]   ;;  %v7533_v27 = vld [vmem:[%s9832_s1 + $0x11a0] ss:$12 sps:$4 sm:$0xff]  }
 0x21c   :  { %4662 = vmatpush1.bf16.msra.mxu0 %v7465_v19  ;;  %6667 = vmatprep.subr.bf16.mxu1 %v7627_v55  ;;  %v7529_v19 = vld [vmem:[%s9832_s1 + $0x1174] ss:$12 sps:$4 sm:$0xff]  }
 0x21d   :  { %4663 = vmatprep.subr.bf16.mxu0 %v7471_v26  ;;  %v7535_v26 = vld [vmem:[%s9832_s1 + $0x11a4] ss:$12 sps:$4 sm:$0xff]  }
 0x21f   :  { %6668 = vmatpush3.bf16.msra.mxu1 %v7472_v41  ;;  %v7541_v41 = vld [vmem:[%s9832_s1 + $0x11d4] ss:$12 sps:$4 sm:$0xff]  }
 0x220   :  { %4664 = vmatpush1.bf16.msra.mxu0 %v7469_v31  ;;  %v7536_v31 = vld [vmem:[%s9832_s1 + $0x11b8] ss:$12 sps:$4 sm:$0xff]  }
 0x221   :  { %4665 = vmatprep.subr.bf16.mxu0 %v7475_v30 }
 0x222   :  { %6670 = vmatmul.mubr.bf16.vlgmr.msra.gmra.mrb[52].mxu1 %v9491_v33 }
 0x224   :  { %4666 = vmatpush1.bf16.msra.mxu0 %v7473_v34 }
 0x225   :  { %4667 = vmatprep.subr.bf16.mxu0 %v7478_v35  ;;  %v7539_v35 = vld [vmem:[%s9832_s1 + $0x11d0] ss:$12 sps:$4 sm:$0xff]  }
 0x228   :  { %4668 = vmatpush1.bf16.msra.mxu0 %v7476_v48 }
 0x229   :  { %4669 = vmatprep.subr.bf16.mxu0 %v7481_v49  ;;  %v7544_v49 = vld [vmem:[%s9832_s1 + $0x11ec] ss:$12 sps:$4 sm:$0xff]  }
 0x22c   :  { %4670 = vmatpush1.bf16.msra.mxu0 %v7479_v36 }
 0x22d   :  { %4671 = vmatprep.subr.bf16.mxu0 %v7484_v37 }
 0x230   :  { %4672 = vmatpush1.bf16.msra.mxu0 %v7482_v38  ;;  %v7569_v38 = vld [vmem:[%s9834_s3 + $0x40] sm:$0xff]  }
 0x231   :  { %4673 = vmatprep.subr.bf16.mxu0 %v7487_v39  ;;  %v7570_v39 = vld [vmem:[%s9834_s3] sm:$0xff]   ;;  %6613 = vmatprep.subr.bf16.mxu1 %v7569_v38 }
 0x232   :  { %6614 = vmatpush3.bf16.msra.mxu1 %v7570_v39 }
 0x234   :  { %4674 = vmatpush1.bf16.msra.mxu0 %v7485_v62  ;;  %v7571_v62 = vld [vmem:[%s9834_s3 + $0x48] sm:$0xff]  }
 0x235   :  { %4675 = vmatprep.subr.bf16.mxu0 %v7490_v44  ;;  %v6488_v50 = vpop.f32.mrb[28].mxu1  ;;  %v7542_v44 = vld [vmem:[%s9832_s1 + $0x11e8] ss:$12 sps:$4 sm:$0xff]   ;;  %6615 = vmatprep.subr.bf16.mxu1 %v7571_v62 }
 0x236   :  { %v6489_v51 = vpop.f32.mrb[29].mxu1 }
 0x237   :  { %v6490_v52 = vadd.f32 %v6489_v51, %v6488_v50  ;;  %v6491_v54 = vpop.f32.mrb[30].mxu1  ;;  %v7573_v50 = vld [vmem:[%s9834_s3 + $0x50] sm:$0xff]   ;;  %v7545_v51 = vld [vmem:[%s9832_s1 + $0x1200] ss:$12 sps:$4 sm:$0xff]  }
 0x238   :  { %4676 = vmatpush1.bf16.msra.mxu0 %v7488_v45  ;;  %v6492_v56 = vpop.f32.mrb[31].mxu1  ;;  %v7547_v45 = vld [vmem:[%s9832_s1 + $0x1204] ss:$12 sps:$4 sm:$0xff]   ;;  %v7575_v54 = vld [vmem:[%s9834_s3 + $0x58] sm:$0xff]  }
 0x239   :  { %4677 = vmatprep.subr.bf16.mxu0 %v7493_v47  ;;  %v5047_v57 = vadd.f32 %v6490_v52, %v5007_v28  ;;  %v7538_v28 = vld [vmem:[%s9832_s1 + $0x11bc] ss:$12 sps:$4 sm:$0xff]   ;;  %v7629_v56 = vmov 0  }
 0x23a   :  { %v7572_v47 = vld [vmem:[%s9834_s3 + $0x8] sm:$0xff]  }
 0x23b   :  { %v7550_v52 = vld [vmem:[%s9832_s1 + $0x121c] ss:$12 sps:$4 sm:$0xff]   ;;  %6616 = vmatpush3.bf16.msra.mxu1 %v7572_v47 }
 0x23c   :  { %4678 = vmatpush1.bf16.msra.mxu0 %v7491_v29  ;;  %v7574_v29 = vld [vmem:[%s9834_s3 + $0x10] sm:$0xff]   ;;  %6617 = vmatprep.subr.bf16.mxu1 %v7573_v50 }
 0x23d   :  { %4679 = vmatprep.subr.bf16.mxu0 %v7496_v3  ;;  %v7548_v3 = vld [vmem:[%s9832_s1 + $0x1218] ss:$12 sps:$4 sm:$0xff]  }
 0x23f   :  { %6618 = vmatpush3.bf16.msra.mxu1 %v7574_v29 }
 0x240   :  { %4680 = vmatpush1.bf16.msra.mxu0 %v7494_v59  ;;  %6619 = vmatprep.subr.bf16.mxu1 %v7575_v54  ;;  %v7577_v59 = vld [vmem:[%s9834_s3 + $0x60] sm:$0xff]  }
 0x241   :  { %4690 = vmatprep.subr.bf16.mxu0 %v7499_v60  ;;  %v7551_v60 = vld [vmem:[%s9832_s1 + $0x1230] ss:$12 sps:$4 sm:$0xff]  }
 0x243   :  { %4682 = vmatmul.mubr.bf16.vlgmr.msra.gmra.mrb[0].mxu0 %v9293_v22  ;;  %v7508_v22 = vld [vmem:[%s9832_s1 + $0x10cc] ss:$12 sps:$4 sm:$0xff]  }
 0x244   :  { %4691 = vmatpush1.bf16.msra.mxu0 %v7497_v63  ;;  %4722 = vmatprep.mubr.bf16.mxu0 %v9309_v24  ;;  %v7506_v24 = vld [vmem:[%s9832_s1 + $0x10c8] ss:$12 sps:$4 sm:$0xff]   ;;  %v7556_v63 = vld [vmem:[%s9832_s1 + $0x124c] ss:$12 sps:$4 sm:$0xff]  }
 0x245   :  { %4692 = vmatprep.subr.bf16.mxu0 %v7502_v0  ;;  %v7578_v0 = vld [vmem:[%s9834_s3 + $0x20] sm:$0xff]  }
 0x248   :  { %4693 = vmatpush1.bf16.msra.mxu0 %v7500_v46  ;;  %v7579_v46 = vld [vmem:[%s9834_s3 + $0x68] sm:$0xff]  }
 0x249   :  { %4694 = vmatprep.subr.bf16.mxu0 %v7505_v53  ;;  %v7554_v53 = vld [vmem:[%s9832_s1 + $0x1248] ss:$12 sps:$4 sm:$0xff]  }
 0x24c   :  { %4695 = vmatpush1.bf16.msra.mxu0 %v7503_v2  ;;  %v7559_v2 = vld [vmem:[%s9832_s1 + $0x1264] ss:$12 sps:$4 sm:$0xff]  }
 0x24d   :  { %4696 = vmatprep.subr.bf16.mxu0 %v7508_v22  ;;  %v7580_v22 = vld [vmem:[%s9834_s3 + $0x28] sm:$0xff]  }
 0x250   :  { %4697 = vmatpush1.bf16.msra.mxu0 %v7506_v24  ;;  %v7557_v24 = vld [vmem:[%s9832_s1 + $0x1260] ss:$12 sps:$4 sm:$0xff]  }
 0x251   :  { %4698 = vmatprep.subr.bf16.mxu0 %v7511_v4  ;;  %v7562_v4 = vld [vmem:[%s9832_s1 + $0x127c] ss:$12 sps:$4 sm:$0xff]  }
 0x254   :  { %4699 = vmatpush1.bf16.msra.mxu0 %v7509_v5  ;;  %v7560_v5 = vld [vmem:[%s9832_s1 + $0x1278] ss:$12 sps:$4 sm:$0xff]  }
 0x255   :  { %4700 = vmatprep.subr.bf16.mxu0 %v7514_v6  ;;  %v6510_v7 = vpop.f32.mrb[32].mxu1  ;;  %v7565_v6 = vld [vmem:[%s9832_s1 + $0x1294] ss:$12 sps:$4 sm:$0xff]  }
 0x256   :  { %v6511_v8 = vpop.f32.mrb[33].mxu1 }
 0x257   :  { %v6512_v43 = vadd.f32 %v6511_v8, %v6510_v7  ;;  %v6513_v10 = vpop.f32.mrb[34].mxu1  ;;  %v7563_v8 = vld [vmem:[%s9832_s1 + $0x1290] ss:$12 sps:$4 sm:$0xff]  }
 0x258   :  { %4701 = vmatpush1.bf16.msra.mxu0 %v7512_v58  ;;  %v6514_v11 = vpop.f32.mrb[35].mxu1 }
 0x259   :  { %4702 = vmatprep.subr.bf16.mxu0 %v7517_v40  ;;  %v5087_v17 = vadd.f32 %v6512_v43, %v5047_v57  ;;  %v7553_v57 = vld [vmem:[%s9832_s1 + $0x1234] ss:$12 sps:$4 sm:$0xff]  }
 0x25a   :  { %v7566_v11 = vld [vmem:[%s9832_s1 + $0x12a8] ss:$12 sps:$4 sm:$0xff]  }
 0x25c   :  { %4703 = vmatpush1.bf16.msra.mxu0 %v7515_v9  ;;  %v7568_v9 = vld [vmem:[%s9832_s1 + $0x12ac] ss:$12 sps:$4 sm:$0xff]  }
 0x25d   :  { %4704 = vmatprep.subr.bf16.mxu0 %v7520_v61 }
 0x260   :  { %4705 = vmatpush1.bf16.msra.mxu0 %v7518_v12 }
 0x261   :  { %4706 = vmatprep.subr.bf16.mxu0 %v7523_v13 }
 0x264   :  { %4707 = vmatpush1.bf16.msra.mxu0 %v7521_v14 }
 0x265   :  { %4708 = vmatprep.subr.bf16.mxu0 %v7526_v15 }
 0x268   :  { %4709 = vmatpush1.bf16.msra.mxu0 %v7524_v16 }
 0x269   :  { %4710 = vmatprep.subr.bf16.mxu0 %v7529_v19 }
 0x26c   :  { %4711 = vmatpush1.bf16.msra.mxu0 %v7527_v20 }
 0x26d   :  { %4712 = vmatprep.subr.bf16.mxu0 %v7532_v18 }
 0x270   :  { %4713 = vmatpush1.bf16.msra.mxu0 %v7530_v23 }
 0x271   :  { %4714 = vmatprep.subr.bf16.mxu0 %v7535_v26 }
 0x274   :  { %4715 = vmatpush1.bf16.msra.mxu0 %v7533_v27 }
 0x275   :  { %4716 = vmatprep.subr.bf16.mxu0 %v7538_v28  ;;  %v6532_v32 = vpop.f32.mrb[36].mxu1  ;;  %v7581_v28 = vld [vmem:[%s9834_s3 + $0x70] sm:$0xff]  }
 0x276   :  { %v6533_v30 = vpop.f32.mrb[37].mxu1 }
 0x277   :  { %v6534_v34 = vadd.f32 %v6533_v30, %v6532_v32  ;;  %v6535_v48 = vpop.f32.mrb[38].mxu1  ;;  %v7583_v30 = vld [vmem:[%s9834_s3 + $0x78] sm:$0xff]  }
 0x278   :  { %4717 = vmatpush1.bf16.msra.mxu0 %v7536_v31  ;;  %v6536_v36 = vpop.f32.mrb[39].mxu1 }
 0x279   :  { %4718 = vmatprep.subr.bf16.mxu0 %v7541_v41  ;;  %v9634_v37 = vadd.f32 %v6534_v34, %v5087_v17  ;;  %v840_v36 = vsub.s32 1, %v7788_v42 }
 0x27c   :  { %4719 = vmatpush1.bf16.msra.mxu0 %v7539_v35  ;;  %v7584_v35 = vld [vmem:[%s9834_s3 + $0x38] sm:$0xff]  }
 0x27d   :  { %4720 = vmatprep.subr.bf16.mxu0 %v7544_v49  ;;  %v836_v49 = vsub.s32 0, %v7788_v42  ;;  %v7585_v42 = vld [vmem:[%s9834_s3 + $0x80] sm:$0xff]  }
 0x280   :  { %4721 = vmatpush1.bf16.msra.mxu0 %v7542_v44 }
 0x281   :  { %4731 = vmatprep.subr.bf16.mxu0 %v7547_v45 }
 0x283   :  { %4723 = vmatmul.mubr.bf16.vlgmr.msra.gmra.mrb[0].mxu0 %v9399_v1  ;;  %v7576_v1 = vld [vmem:[%s9834_s3 + $0x18] sm:$0xff]  }
 0x284   :  { %4732 = vmatpush1.bf16.msra.mxu0 %v7545_v51  ;;  %4763 = vmatprep.mubr.bf16.mxu0 %v7629_v56 }
 0x285   :  { %4733 = vmatprep.subr.bf16.mxu0 %v7550_v52  ;;  %6620 = vmatpush3.bf16.msra.mxu1 %v7576_v1  ;;  %v7588_v1 = vld [vmem:[%s9834_s3 + $0x98] sm:$0xff]  }
 0x286   :  { %6621 = vmatprep.subr.bf16.mxu1 %v7577_v59  ;;  %v7589_v59 = vld [vmem:[%s9834_s3 + $0xa0] sm:$0xff]  }
 0x288   :  { %4734 = vmatpush1.bf16.msra.mxu0 %v7548_v3 }
 0x289   :  { %4735 = vmatprep.subr.bf16.mxu0 %v7553_v57  ;;  %6622 = vmatpush3.bf16.msra.mxu1 %v7578_v0  ;;  %v7592_v0 = vld [vmem:[%s9834_s3 + $0xb8] sm:$0xff]  }
 0x28a   :  { %6623 = vmatprep.subr.bf16.mxu1 %v7579_v46 }
 0x28c   :  { %4736 = vmatpush1.bf16.msra.mxu0 %v7551_v60  ;;  %v7590_v60 = vld [vmem:[%s9834_s3 + $0xa8] sm:$0xff]  }
 0x28d   :  { %4737 = vmatprep.subr.bf16.mxu0 %v7556_v63  ;;  %6624 = vmatpush3.bf16.msra.mxu1 %v7580_v22  ;;  %v7591_v63 = vld [vmem:[%s9834_s3 + $0xb0] sm:$0xff]   ;;  %v7594_v22 = vld [vmem:[%s9836_s5 + $0x8] sm:$0xff]  }
 0x28e   :  { %6625 = vmatprep.subr.bf16.mxu1 %v7581_v28 }
 0x290   :  { %4738 = vmatpush1.bf16.msra.mxu0 %v7554_v53 }
 0x291   :  { %4739 = vmatprep.subr.bf16.mxu0 %v7559_v2  ;;  %v7593_v2 = vld [vmem:[%s9836_s5] sm:$0xff]  }
 0x294   :  { %4740 = vmatpush1.bf16.msra.mxu0 %v7557_v24  ;;  %v7595_v24 = vld [vmem:[%s9836_s5 + $0x10] sm:$0xff]  }
 0x295   :  { %4741 = vmatprep.subr.bf16.mxu0 %v7562_v4  ;;  %v6554_v58 = vpop.f32.mrb[40].mxu1  ;;  %v7596_v4 = vld [vmem:[%s9836_s5 + $0x18] sm:$0xff]  }
 0x296   :  { %v6555_v40 = vpop.f32.mrb[41].mxu1 }
 0x297   :  { %v6556_v7 = vadd.f32 %v6555_v40, %v6554_v58  ;;  %v6557_v43 = vpop.f32.mrb[42].mxu1  ;;  %v7599_v58 = vld [vmem:[%s9836_s5 + $0x30] sm:$0xff]   ;;  %v7600_v40 = vld [vmem:[%s9836_s5 + $0x38] sm:$0xff]  }
 0x298   :  { %4742 = vmatpush1.bf16.msra.mxu0 %v7560_v5  ;;  %v6558_v10 = vpop.f32.mrb[43].mxu1  ;;  %v7597_v5 = vld [vmem:[%s9836_s5 + $0x20] sm:$0xff]  }
 0x299   :  { %4743 = vmatprep.subr.bf16.mxu0 %v7565_v6  ;;  %v5167_v61 = vadd.f32 %v6556_v7, %v9634_v37  ;;  %v7601_v37 = vld [vmem:[%s9833_s2] sm:$0x7]  ;;  %v7598_v6 = vld [vmem:[%s9836_s5 + $0x28] sm:$0xff]  }
 0x29a   :  { %v837_v38 = vrot.slane %v7601_v37, %v836_v49  ;;  %v841_v39 = vrot.slane %v7601_v37, %v840_v36 }
 0x29c   :  { %4744 = vmatpush1.bf16.msra.mxu0 %v7563_v8  ;;  %v6713_v62 = vadd.f32 %v8825_v21, %v837_v38  ;;  %v6715_v44 = vadd.f32 %v8833_v25, %v841_v39  ;;  %v7586_v21 = vld [vmem:[%s9834_s3 + $0x88] sm:$0xff]   ;;  %v7587_v25 = vld [vmem:[%s9834_s3 + $0x90] sm:$0xff]  }
 0x29d   :  { %4745 = vmatprep.subr.bf16.mxu0 %v7568_v9 }
 0x2a0   :  { %4746 = vmatpush1.bf16.msra.mxu0 %v7566_v11 }
 0x2a3   :  { %4764 = vmatmul.mubr.bf16.vlgmr.msra.gmra.mrb[0].mxu0 %v9491_v33  ;;  %v7582_v33 = vld [vmem:[%s9834_s3 + $0x30] sm:$0xff]  }
 0x2a4   :  { %6626 = vmatpush3.bf16.msra.mxu1 %v7582_v33 }
 0x2a5   :  { %6627 = vmatprep.subr.bf16.mxu1 %v7583_v30 }
 0x2a8   :  { %6628 = vmatpush3.bf16.msra.mxu1 %v7584_v35 }
 0x2a9   :  { %6673 = vmatprep.subr.bf16.mxu1 %v7627_v55 }
 0x2b5   :  { %v6576_v17 = vpop.f32.mrb[44].mxu1 }
 0x2b6   :  { %v6577_v12 = vpop.f32.mrb[45].mxu1 }
 0x2b7   :  { %v6578_v13 = vadd.f32 %v6577_v12, %v6576_v17  ;;  %v6579_v14 = vpop.f32.mrb[46].mxu1 }
 0x2b8   :  { %v6580_v15 = vpop.f32.mrb[47].mxu1 }
 0x2b9   :  { %v5207_v16 = vadd.f32 %v6578_v13, %v5167_v61  ;;  %v6306_v61 = vld [vmem:[%s9835_s4] ss:$0 sm:$0xff]  ;;  %s7602_s4 = scalar_lea.vmem %s5698_s26, 32 }
 0x2ba   :  { %p7603_p0 = scmp.ne.s32.totalorder %s5698_s26, %s7602_s4  ;;  %p7608_p2 = scmp.lt.s32.totalorder %s7602_s4, %s7602_s4 }
 0x2bc   :  { %p7609_p3 = por %p7608_p2, %p7607_p1 }
 0x2be   :  { %p7610_p4 = pnand %p7609_p3, %p7603_p0 }
 0x2d5   :  { %v6598_v19 = vpop.f32.mrb[48].mxu1 }
 0x2d6   :  { %v6599_v20 = vpop.f32.mrb[49].mxu1 }
 0x2d7   :  { %v6600_v18 = vadd.f32 %v6599_v20, %v6598_v19  ;;  %v6601_v23 = vpop.f32.mrb[50].mxu1  ;;  %v6331_v19 = vld [vmem:[%s9837_s6] ss:$0 sm:$0xff] }
 0x2d8   :  { %v6602_v26 = vpop.f32.mrb[51].mxu1 }
 0x2d9   :  { %v5247_v27 = vadd.f32 %v6600_v18, %v5207_v16 }
 0x2f5   :  { %v5286_v31 = vpop.f32.mrb[52].mxu1 }
 0x2f6   :  { %v5287_v41 = vadd.f32 %v5286_v31, %v5247_v27  ;;  %v6671_v32 = vpop.f32.mrb[53].mxu1 }
 0x2f7   :  { %v5289_v34 = vpop.f32.mrb[54].mxu1 }
 0x2f8   :  { %v6672_v48 = vpop.f32.mrb[55].mxu1  ;;  %v5294_v46 = vmax.f32 %v5287_v41, 0.0 }
 0x2fa   :  { %v5297_v53 = vpack.c.bf16 %v5294_v46, %v5294_v46 }
 0x376   :  { %v4765_v45 = vpop.f32.mrb[0].mxu0 }
 0x377   :  { %v6714_v47 = vadd.f32 %v6713_v62, %v4765_v45  ;;  %v4767_v50 = vpop.f32.mrb[1].mxu0 }
 0x378   :  { %v6716_v51 = vadd.f32 %v6715_v44, %v4767_v50  ;;  %v4769_v52 = vpop.f32.mrb[2].mxu0 }
 0x379   :  { %v5292_v29 = vmax.f32 %v6714_v47, 0.0  ;;  %v4770_v54 = vpop.f32.mrb[3].mxu0 }
 0x37a   :  { %v5293_v3 = vmax.f32 %v6716_v51, 0.0 }
 0x37b   :  { %v5295_v57 = vpack.c.bf16 %v5292_v29, %v5292_v29 }
 0x37c   :  { %v5296_v56 = vpack.c.bf16 %v5293_v3, %v5293_v3 }
 0x37e   :  { %5529 = vmatprep.mubr.bf16.mxu1 %v5296_v56 }
 0x37f   :  { %5530 = vmatmul.mubr.bf16.vlgmr.msra.gmra.mrb[56].mxu1 %v5295_v57 }
 0x380   :  { %6674 = vmatpush3.bf16.msra.mxu1 %v7585_v42  ;;  %6689 = vmatprep.mubr.msk.bf16.mxu1 %vm7628_vm0, %v7627_v55 }
 0x381   :  { %6675 = vmatprep.subr.bf16.mxu1 %v7627_v55 }
 0x384   :  { %6676 = vmatpush3.bf16.msra.mxu1 %v7586_v21 }
 0x385   :  { %6677 = vmatprep.subr.bf16.mxu1 %v7627_v55 }
 0x388   :  { %6678 = vmatpush3.bf16.msra.mxu1 %v7587_v25 }
 0x389   :  { %6679 = vmatprep.subr.bf16.mxu1 %v7627_v55 }
 0x38c   :  { %6680 = vmatpush3.bf16.msra.mxu1 %v7588_v1 }
 0x38d   :  { %6681 = vmatprep.subr.bf16.mxu1 %v7627_v55 }
 0x390   :  { %6682 = vmatpush3.bf16.msra.mxu1 %v7589_v59 }
 0x391   :  { %6683 = vmatprep.subr.bf16.mxu1 %v7627_v55 }
 0x394   :  { %6684 = vmatpush3.bf16.msra.mxu1 %v7590_v60 }
 0x395   :  { %6685 = vmatprep.subr.bf16.mxu1 %v7627_v55 }
 0x398   :  { %6686 = vmatpush3.bf16.msra.mxu1 %v7591_v63 }
 0x399   :  { %6687 = vmatprep.subr.bf16.mxu1 %v7627_v55 }
 0x39c   :  { %6688 = vmatpush3.bf16.msra.mxu1 %v7592_v0 }
 0x39d   :  { %6693 = vmatprep.subr.bf16.mxu1 %v7627_v55 }
 0x39f   :  { %6690 = vmatmul.mubr.bf16.vlgmr.msra.gmra.mrb[60].mxu1 %v5297_v53 }
 0x3a0   :  { %6709 = vmatprep.mubr.msk.bf16.mxu1 %vm7628_vm0, %v7627_v55  ;;  %6694 = vmatpush3.bf16.msra.mxu1 %v7593_v2 }
 0x3a1   :  { %6695 = vmatprep.subr.bf16.mxu1 %v7627_v55 }
 0x3a4   :  { %6696 = vmatpush3.bf16.msra.mxu1 %v7594_v22 }
 0x3a5   :  { %6697 = vmatprep.subr.bf16.mxu1 %v7627_v55 }
 0x3a8   :  { %6698 = vmatpush3.bf16.msra.mxu1 %v7595_v24 }
 0x3a9   :  { %6699 = vmatprep.subr.bf16.mxu1 %v7627_v55 }
 0x3ac   :  { %6700 = vmatpush3.bf16.msra.mxu1 %v7596_v4 }
 0x3ad   :  { %6701 = vmatprep.subr.bf16.mxu1 %v7627_v55 }
 0x3b0   :  { %6702 = vmatpush3.bf16.msra.mxu1 %v7597_v5 }
 0x3b1   :  { %6703 = vmatprep.subr.bf16.mxu1 %v7627_v55 }
 0x3b4   :  { %6704 = vmatpush3.bf16.msra.mxu1 %v7598_v6 }
 0x3b5   :  { %6705 = vmatprep.subr.bf16.mxu1 %v7627_v55 }
 0x3b8   :  { %6706 = vmatpush3.bf16.msra.mxu1 %v7599_v58 }
 0x3b9   :  { %6707 = vmatprep.subr.bf16.mxu1 %v7627_v55 }
 0x3bc   :  { %6708 = vmatpush3.bf16.msra.mxu1 %v7600_v40 }
 0x452   :  { %v6629_v7 = vpop.f32.mrb[56].mxu1 }
 0x453   :  { %v6630_v8 = vpop.f32.mrb[57].mxu1 }
 0x454   :  { %v6631_v43 = vadd.f32 %v6630_v8, %v6629_v7  ;;  %v6632_v9 = vpop.f32.mrb[58].mxu1 }
 0x455   :  { %v6633_v10 = vpop.f32.mrb[59].mxu1 }
 0x456   :  { %v5532_v11 = vadd.f32 %v6631_v43, %v6306_v61 }
 0x472   :  { %v5571_v17 = vpop.f32.mrb[60].mxu1 }
 0x473   :  { %v5572_v12 = vadd.f32 %v5571_v17, %v5532_v11  ;;  %v6691_v13 = vpop.f32.mrb[61].mxu1 }
 0x474   :  { %v5574_v14 = vpop.f32.mrb[62].mxu1 }
 0x475   :  { %v5577_v55 = vmax.f32 %v5572_v12, 0.0  ;;  %v6692_v15 = vpop.f32.mrb[63].mxu1 }
 0x477   :  { %v5578_v16 = vpack.c.bf16 %v5577_v55, %v5577_v55 }
 0x479   :  { %6710 = vmatmul.mubr.bf16.vlgmr.msra.gmra.mrb[64].mxu1 %v5578_v16 }
 0x54c   :  { %v5684_v20 = vpop.f32.mrb[64].mxu1 }
 0x54d   :  { %v5685_v18 = vadd.f32 %v6331_v19, %v5684_v20  ;;  %v6711_v23 = vpop.f32.mrb[65].mxu1 }
 0x54e   :  { %v5687_v26 = vpop.f32.mrb[66].mxu1 }
 0x54f   :  { %5690 = vst [vmem:[#allocation2] sm:$0x3] %v5685_v18  ;;  %v6712_v27 = vpop.f32.mrb[67].mxu1 }
 0x550   :  { %7613 = shalt.err (!%p7610_p4)
}
 0x551   :  { %s7614_s6 = scalar_lea.hbm %s9838_s7, 32 }
 0x552   :  { %p7615_p5 = scmp.ne.s32.totalorder %s9838_s7, %s7614_s6  ;;  %p7618_p6 = scmp.lt.u32.totalorder %s7614_s6, %s9838_s7 }
 0x554   :  { %p7620_p7 = pnand %p7618_p6, %p7615_p5 }
 0x556   :  { %7623 = shalt.err (!%p7620_p7)
}
 0x557   :  { %5700 = dma.vmem_to_hbm [thread:$0]  %s5698_s26, 32, %s9838_s7, [#allocation3]  }
 0x558   :  { %7624 = dma.done.wait [#allocation3], 32  }
 0x559   :  { %7625 = vsyncadd [#allocation3], 4294967264 }
 0x55a   :  { %5704 = vsyncpa [#allocation3], 1 }

</bundles_post_ra>
